<compile_context>
chip_gen: v5e
topology: v5e:2x2
jax: 0.10.0
libtpu: 0.0.40
codegen_flags: <defaults>
</compile_context>

<pallas_src>
import jax
import jax.numpy as jnp
from jax.experimental import pallas as pl
from jax.experimental.pallas import tpu as pltpu

# ---------------- small model hyper-params (consistent with the module) -----
VOCAB_SIZE = 512
EMBEDDING_DIM = 128
HIDDEN_DIM = 128
N_LAYERS = 3
OUTPUT_SIZE = 4
OUT_PAD = 128          # lane-dense padded FC output width (slice [:, :4] outside)
SEQ_LENGTH = 8
BATCH = 2


# ---------------- LSTM cell gate math (gate column order [i, f, o, g]) ------
def _lstm_gates(z, c, H):
    """z: (B, 4H) f32 pre-activations with columns packed [i, f, o, g]."""
    s = jax.nn.sigmoid(z[:, :3 * H])        # one contiguous EUP slice
    g = jnp.tanh(z[:, 3 * H:])
    i = s[:, 0 * H:1 * H]
    f = s[:, 1 * H:2 * H]
    o = s[:, 2 * H:3 * H]
    c_new = f * c + i * g
    h_new = o * jnp.tanh(c_new)
    return h_new, c_new


# ---------------- fused gather + LSTM(3 layers) + FC kernel -----------------
def fused_lstm_fc_kernel(tok_ref,                      # (B*T,) int32 in SMEM (batch-major)
                         proj_ref,                     # (VOCAB, 4H) f32: E @ W_ih0^T + b0
                         h0_ref, c0_ref,               # (N_LAYERS, B, H) f32
                         whh0_ref,                     # (H, 4H) bf16
                         wih1_ref, whh1_ref, b1_ref,   # (H,4H) bf16, (H,4H) bf16, (1,4H) f32
                         wih2_ref, whh2_ref, b2_ref,
                         wfc_ref, bfc_ref,             # (H, OUT_PAD) bf16, (1, OUT_PAD) f32
                         out_ref, hfin_ref, cfin_ref):
    B = h0_ref.shape[1]
    H = h0_ref.shape[2]
    T = tok_ref.shape[0] // B

    # ---- layer 0: in-kernel gather of pre-projected embedding rows ---------
    # (W_ih0 and b0 are already folded into proj_table, so these rows ARE the
    #  layer-0 input pre-activations.)
    xz0 = []
    for t in range(T):
        rows = [proj_ref[pl.ds(tok_ref[b * T + t], 1), :] for b in range(B)]
        xz0.append(jnp.concatenate(rows, axis=0))      # (B, 4H) f32

    h, c = h0_ref[0], c0_ref[0]
    h0_seq = []
    for t in range(T):     # static, fully unrolled -> full LLO visibility
        z = xz0[t] + jnp.dot(h.astype(jnp.bfloat16), whh0_ref[...],
                             preferred_element_type=jnp.float32)
        h, c = _lstm_gates(z, c, H)
        h0_seq.append(h)
    hfin_ref[0] = h
    cfin_ref[0] = c
    h0_all = jnp.concatenate(h0_seq, axis=0)           # (T*B, H), time-major

    # ---- layer 1: hoisted input projection (one big MXU pass, bias folded) -
    xz1 = jnp.dot(h0_all.astype(jnp.bfloat16), wih1_ref[...],
                  preferred_element_type=jnp.float32) + b1_ref[...]
    h, c = h0_ref[1], c0_ref[1]
    h1_seq = []
    for t in range(T):
        z = xz1[t * B:(t + 1) * B, :] + jnp.dot(
            h.astype(jnp.bfloat16), whh1_ref[...],
            preferred_element_type=jnp.float32)
        h, c = _lstm_gates(z, c, H)
        h1_seq.append(h)
    hfin_ref[1] = h
    cfin_ref[1] = c
    h1_all = jnp.concatenate(h1_seq, axis=0)

    # ---- layer 2 ------------------------------------------------------------
    xz2 = jnp.dot(h1_all.astype(jnp.bfloat16), wih2_ref[...],
                  preferred_element_type=jnp.float32) + b2_ref[...]
    h, c = h0_ref[2], c0_ref[2]
    for t in range(T):
        z = xz2[t * B:(t + 1) * B, :] + jnp.dot(
            h.astype(jnp.bfloat16), whh2_ref[...],
            preferred_element_type=jnp.float32)
        h, c = _lstm_gates(z, c, H)
    hfin_ref[2] = h
    cfin_ref[2] = c

    # ---- FC on the last-step hidden of the top layer; lane-dense output ----
    out_ref[...] = (jnp.dot(h.astype(jnp.bfloat16), wfc_ref[...],
                            preferred_element_type=jnp.float32)
                    + bfc_ref[...])


def _fused_call(tokens_flat, params, h0_all, c0_all):
    B, H = h0_all.shape[1], h0_all.shape[2]
    vmem = pl.BlockSpec(memory_space=pltpu.MemorySpace.VMEM)
    smem = pl.BlockSpec(memory_space=pltpu.MemorySpace.SMEM)
    return pl.pallas_call(
        fused_lstm_fc_kernel,
        out_shape=(jax.ShapeDtypeStruct((B, OUT_PAD), jnp.float32),
                   jax.ShapeDtypeStruct((N_LAYERS, B, H), jnp.float32),
                   jax.ShapeDtypeStruct((N_LAYERS, B, H), jnp.float32)),
        in_specs=[smem] + [vmem] * 12,
        out_specs=(vmem, vmem, vmem),
    )(tokens_flat, params["proj_table"], h0_all, c0_all,
      params["whh0"],
      params["wih1"], params["whh1"], params["b1"],
      params["wih2"], params["whh2"], params["b2"],
      params["wfc"], params["bfc"])


# ---------------- parameter construction (deterministic, synthetic) ---------
def _reorder_ifog(w):
    """Permute torch gate blocks along axis 0: [i, f, g, o] -> [i, f, o, g]."""
    i, f, g, o = jnp.split(w, 4, axis=0)
    return jnp.concatenate([i, f, o, g], axis=0)


def init_params(key):
    k = 1.0 / jnp.sqrt(HIDDEN_DIM)
    keys = jax.random.split(key, 2 + N_LAYERS)

    # embedding table (vocab, E) ~ N(0, 1) like nn.Embedding default
    embedding = jax.random.normal(keys[0], (VOCAB_SIZE, EMBEDDING_DIM),
                                  jnp.float32)

    raw = []
    for l in range(N_LAYERS):
        in_dim = EMBEDDING_DIM if l == 0 else HIDDEN_DIM
        kw = jax.random.split(keys[1 + l], 4)
        w_ih = jax.random.uniform(kw[0], (4 * HIDDEN_DIM, in_dim),
                                  jnp.float32, -k, k)
        w_hh = jax.random.uniform(kw[1], (4 * HIDDEN_DIM, HIDDEN_DIM),
                                  jnp.float32, -k, k)
        b_ih = jax.random.uniform(kw[2], (4 * HIDDEN_DIM,), jnp.float32, -k, k)
        b_hh = jax.random.uniform(kw[3], (4 * HIDDEN_DIM,), jnp.float32, -k, k)
        raw.append((_reorder_ifog(w_ih), _reorder_ifog(w_hh),
                    _reorder_ifog(b_ih + b_hh)))

    params = {}
    # Fold layer-0 input projection + bias into the embedding table.
    w_ih0, w_hh0, b0 = raw[0]
    params["proj_table"] = embedding @ w_ih0.T + b0[None, :]     # (VOCAB, 4H) f32
    params["whh0"] = w_hh0.T.astype(jnp.bfloat16)                # (H, 4H) bf16

    for l in (1, 2):
        w_ih, w_hh, b = raw[l]
        params[f"wih{l}"] = w_ih.T.astype(jnp.bfloat16)          # (H, 4H) bf16
        params[f"whh{l}"] = w_hh.T.astype(jnp.bfloat16)          # (H, 4H) bf16
        params[f"b{l}"] = b[None, :]                             # (1, 4H) f32

    kw = jax.random.split(keys[1 + N_LAYERS], 2)
    w_fc = jax.random.uniform(kw[0], (OUTPUT_SIZE, HIDDEN_DIM),
                              jnp.float32, -k, k)
    b_fc = jax.random.uniform(kw[1], (OUTPUT_SIZE,), jnp.float32, -k, k)
    # lane-dense padded FC weight/bias: columns [OUTPUT_SIZE:] are zero.
    wfc_pad = jnp.zeros((HIDDEN_DIM, OUT_PAD), jnp.float32)
    wfc_pad = wfc_pad.at[:, :OUTPUT_SIZE].set(w_fc.T)
    bfc_pad = jnp.zeros((1, OUT_PAD), jnp.float32)
    bfc_pad = bfc_pad.at[0, :OUTPUT_SIZE].set(b_fc)
    params["wfc"] = wfc_pad.astype(jnp.bfloat16)                 # (H, OUT_PAD) bf16
    params["bfc"] = bfc_pad                                      # (1, OUT_PAD) f32
    return params


# ---------------- forward pass ----------------------------------------------
@jax.jit
def sentiment_rnn_forward(params, tokens, hidden):
    """tokens: (B, T) int32; hidden: (h0, c0), each (n_layers, B, H) f32."""
    h0_all, c0_all = hidden
    tokens_flat = tokens.reshape(-1).astype(jnp.int32)   # (B*T,), batch-major
    out_pad, h_n, c_n = _fused_call(tokens_flat, params, h0_all, c0_all)
    out = out_pad[:, :OUTPUT_SIZE]       # dropout is identity in eval mode
    return out, (h_n, c_n)


def init_hidden(batch_size):
    z = jnp.zeros((N_LAYERS, batch_size, HIDDEN_DIM), jnp.float32)
    return (z, z)


# ---------------- plain-JAX reference (same bf16 weights / f32 accumulation) -
def reference_forward(params, tokens, hidden):
    h_all, c_all = hidden
    B, T = tokens.shape
    H = HIDDEN_DIM
    xz = jnp.take(params["proj_table"], tokens.reshape(-1), axis=0)
    xz = xz.reshape(B, T, 4 * H)

    def run_layer(xz_seq, h, c, whh):
        hs = []
        for t in range(T):
            z = xz_seq[:, t, :] + jnp.dot(h.astype(jnp.bfloat16), whh,
                                          preferred_element_type=jnp.float32)
            h, c = _lstm_gates(z, c, H)
            hs.append(h)
        return jnp.stack(hs, axis=1), h, c

    h0_seq, h0, c0 = run_layer(xz, h_all[0], c_all[0], params["whh0"])
    xz1 = jnp.dot(h0_seq.astype(jnp.bfloat16), params["wih1"],
                  preferred_element_type=jnp.float32) + params["b1"]
    h1_seq, h1, c1 = run_layer(xz1, h_all[1], c_all[1], params["whh1"])
    xz2 = jnp.dot(h1_seq.astype(jnp.bfloat16), params["wih2"],
                  preferred_element_type=jnp.float32) + params["b2"]
    _, h2, c2 = run_layer(xz2, h_all[2], c_all[2], params["whh2"])
    out = jnp.dot(h2.astype(jnp.bfloat16), params["wfc"],
                  preferred_element_type=jnp.float32) + params["bfc"]
    return out[:, :OUTPUT_SIZE], (jnp.stack([h0, h1, h2]),
                                  jnp.stack([c0, c1, c2]))


# ---------------- main -------------------------------------------------------
if __name__ == "__main__":
    key = jax.random.PRNGKey(0)
    k_params, k_tokens = jax.random.split(key)

    params = init_params(k_params)
    tokens = jax.random.randint(k_tokens, (BATCH, SEQ_LENGTH), 0, VOCAB_SIZE,
                                dtype=jnp.int32)
    hidden = init_hidden(BATCH)

    out, (h_n, c_n) = sentiment_rnn_forward(params, tokens, hidden)
    jax.block_until_ready((out, h_n, c_n))

    assert out.shape == (BATCH, OUTPUT_SIZE)
    assert h_n.shape == (N_LAYERS, BATCH, HIDDEN_DIM)
    assert c_n.shape == (N_LAYERS, BATCH, HIDDEN_DIM)
    assert bool(jnp.all(jnp.isfinite(out)))

    # correctness vs. plain-JAX mirror of the same math
    ref_out, (ref_h, ref_c) = reference_forward(params, tokens, hidden)
    assert float(jnp.max(jnp.abs(out - ref_out))) < 1e-2
    assert float(jnp.max(jnp.abs(h_n - ref_h))) < 1e-2
    assert float(jnp.max(jnp.abs(c_n - ref_c))) < 1e-2

    print("KERNEL_OK")
</pallas_src>

<mosaic_0001>
module attributes {stable_mosaic.version = 11 : i64} {
  func.func @fused_lstm_fc_kernel(%arg0: memref<16xi32, #tpu.memory_space<smem>>, %arg1: memref<512x512xf32, #tpu.memory_space<vmem>>, %arg2: memref<3x2x128xf32, #tpu.memory_space<vmem>>, %arg3: memref<3x2x128xf32, #tpu.memory_space<vmem>>, %arg4: memref<128x512xbf16, #tpu.memory_space<vmem>>, %arg5: memref<128x512xbf16, #tpu.memory_space<vmem>>, %arg6: memref<128x512xbf16, #tpu.memory_space<vmem>>, %arg7: memref<1x512xf32, #tpu.memory_space<vmem>>, %arg8: memref<128x512xbf16, #tpu.memory_space<vmem>>, %arg9: memref<128x512xbf16, #tpu.memory_space<vmem>>, %arg10: memref<1x512xf32, #tpu.memory_space<vmem>>, %arg11: memref<128x128xbf16, #tpu.memory_space<vmem>>, %arg12: memref<1x128xf32, #tpu.memory_space<vmem>>, %arg13: memref<2x128xf32, #tpu.memory_space<vmem>>, %arg14: memref<3x2x128xf32, #tpu.memory_space<vmem>>, %arg15: memref<3x2x128xf32, #tpu.memory_space<vmem>>) attributes {dimension_semantics = [], scalar_prefetch = 0 : i64, scratch_operands = 0 : i64, tpu.core_type = #tpu.core_type<tc>} {
    %c0 = arith.constant 0 : index
    %0 = memref.load %arg0[%c0] : memref<16xi32, #tpu.memory_space<smem>>
    %1 = arith.index_cast %0 : i32 to index
    %c0_0 = arith.constant 0 : index
    %2 = vector.load %arg1[%1, %c0_0] : memref<512x512xf32, #tpu.memory_space<vmem>>, vector<1x512xf32>
    %c8 = arith.constant 8 : index
    %3 = memref.load %arg0[%c8] : memref<16xi32, #tpu.memory_space<smem>>
    %4 = arith.index_cast %3 : i32 to index
    %c0_1 = arith.constant 0 : index
    %5 = vector.load %arg1[%4, %c0_1] : memref<512x512xf32, #tpu.memory_space<vmem>>, vector<1x512xf32>
    %6 = tpu.concatenate %2, %5 in 0 : vector<1x512xf32>, vector<1x512xf32> -> vector<2x512xf32>
    %c1 = arith.constant 1 : index
    %7 = memref.load %arg0[%c1] : memref<16xi32, #tpu.memory_space<smem>>
    %8 = arith.index_cast %7 : i32 to index
    %c0_2 = arith.constant 0 : index
    %9 = vector.load %arg1[%8, %c0_2] : memref<512x512xf32, #tpu.memory_space<vmem>>, vector<1x512xf32>
    %c9 = arith.constant 9 : index
    %10 = memref.load %arg0[%c9] : memref<16xi32, #tpu.memory_space<smem>>
    %11 = arith.index_cast %10 : i32 to index
    %c0_3 = arith.constant 0 : index
    %12 = vector.load %arg1[%11, %c0_3] : memref<512x512xf32, #tpu.memory_space<vmem>>, vector<1x512xf32>
    %13 = tpu.concatenate %9, %12 in 0 : vector<1x512xf32>, vector<1x512xf32> -> vector<2x512xf32>
    %c2 = arith.constant 2 : index
    %14 = memref.load %arg0[%c2] : memref<16xi32, #tpu.memory_space<smem>>
    %15 = arith.index_cast %14 : i32 to index
    %c0_4 = arith.constant 0 : index
    %16 = vector.load %arg1[%15, %c0_4] : memref<512x512xf32, #tpu.memory_space<vmem>>, vector<1x512xf32>
    %c10 = arith.constant 10 : index
    %17 = memref.load %arg0[%c10] : memref<16xi32, #tpu.memory_space<smem>>
    %18 = arith.index_cast %17 : i32 to index
    %c0_5 = arith.constant 0 : index
    %19 = vector.load %arg1[%18, %c0_5] : memref<512x512xf32, #tpu.memory_space<vmem>>, vector<1x512xf32>
    %20 = tpu.concatenate %16, %19 in 0 : vector<1x512xf32>, vector<1x512xf32> -> vector<2x512xf32>
    %c3 = arith.constant 3 : index
    %21 = memref.load %arg0[%c3] : memref<16xi32, #tpu.memory_space<smem>>
    %22 = arith.index_cast %21 : i32 to index
    %c0_6 = arith.constant 0 : index
    %23 = vector.load %arg1[%22, %c0_6] : memref<512x512xf32, #tpu.memory_space<vmem>>, vector<1x512xf32>
    %c11 = arith.constant 11 : index
    %24 = memref.load %arg0[%c11] : memref<16xi32, #tpu.memory_space<smem>>
    %25 = arith.index_cast %24 : i32 to index
    %c0_7 = arith.constant 0 : index
    %26 = vector.load %arg1[%25, %c0_7] : memref<512x512xf32, #tpu.memory_space<vmem>>, vector<1x512xf32>
    %27 = tpu.concatenate %23, %26 in 0 : vector<1x512xf32>, vector<1x512xf32> -> vector<2x512xf32>
    %c4 = arith.constant 4 : index
    %28 = memref.load %arg0[%c4] : memref<16xi32, #tpu.memory_space<smem>>
    %29 = arith.index_cast %28 : i32 to index
    %c0_8 = arith.constant 0 : index
    %30 = vector.load %arg1[%29, %c0_8] : memref<512x512xf32, #tpu.memory_space<vmem>>, vector<1x512xf32>
    %c12 = arith.constant 12 : index
    %31 = memref.load %arg0[%c12] : memref<16xi32, #tpu.memory_space<smem>>
    %32 = arith.index_cast %31 : i32 to index
    %c0_9 = arith.constant 0 : index
    %33 = vector.load %arg1[%32, %c0_9] : memref<512x512xf32, #tpu.memory_space<vmem>>, vector<1x512xf32>
    %34 = tpu.concatenate %30, %33 in 0 : vector<1x512xf32>, vector<1x512xf32> -> vector<2x512xf32>
    %c5 = arith.constant 5 : index
    %35 = memref.load %arg0[%c5] : memref<16xi32, #tpu.memory_space<smem>>
    %36 = arith.index_cast %35 : i32 to index
    %c0_10 = arith.constant 0 : index
    %37 = vector.load %arg1[%36, %c0_10] : memref<512x512xf32, #tpu.memory_space<vmem>>, vector<1x512xf32>
    %c13 = arith.constant 13 : index
    %38 = memref.load %arg0[%c13] : memref<16xi32, #tpu.memory_space<smem>>
    %39 = arith.index_cast %38 : i32 to index
    %c0_11 = arith.constant 0 : index
    %40 = vector.load %arg1[%39, %c0_11] : memref<512x512xf32, #tpu.memory_space<vmem>>, vector<1x512xf32>
    %41 = tpu.concatenate %37, %40 in 0 : vector<1x512xf32>, vector<1x512xf32> -> vector<2x512xf32>
    %c6 = arith.constant 6 : index
    %42 = memref.load %arg0[%c6] : memref<16xi32, #tpu.memory_space<smem>>
    %43 = arith.index_cast %42 : i32 to index
    %c0_12 = arith.constant 0 : index
    %44 = vector.load %arg1[%43, %c0_12] : memref<512x512xf32, #tpu.memory_space<vmem>>, vector<1x512xf32>
    %c14 = arith.constant 14 : index
    %45 = memref.load %arg0[%c14] : memref<16xi32, #tpu.memory_space<smem>>
    %46 = arith.index_cast %45 : i32 to index
    %c0_13 = arith.constant 0 : index
    %47 = vector.load %arg1[%46, %c0_13] : memref<512x512xf32, #tpu.memory_space<vmem>>, vector<1x512xf32>
    %48 = tpu.concatenate %44, %47 in 0 : vector<1x512xf32>, vector<1x512xf32> -> vector<2x512xf32>
    %c7 = arith.constant 7 : index
    %49 = memref.load %arg0[%c7] : memref<16xi32, #tpu.memory_space<smem>>
    %50 = arith.index_cast %49 : i32 to index
    %c0_14 = arith.constant 0 : index
    %51 = vector.load %arg1[%50, %c0_14] : memref<512x512xf32, #tpu.memory_space<vmem>>, vector<1x512xf32>
    %c15 = arith.constant 15 : index
    %52 = memref.load %arg0[%c15] : memref<16xi32, #tpu.memory_space<smem>>
    %53 = arith.index_cast %52 : i32 to index
    %c0_15 = arith.constant 0 : index
    %54 = vector.load %arg1[%53, %c0_15] : memref<512x512xf32, #tpu.memory_space<vmem>>, vector<1x512xf32>
    %55 = tpu.concatenate %51, %54 in 0 : vector<1x512xf32>, vector<1x512xf32> -> vector<2x512xf32>
    %c0_16 = arith.constant 0 : index
    %c0_17 = arith.constant 0 : index
    %c0_18 = arith.constant 0 : index
    %56 = vector.load %arg2[%c0_16, %c0_17, %c0_18] : memref<3x2x128xf32, #tpu.memory_space<vmem>>, vector<1x2x128xf32>
    %57 = vector.shape_cast %56 : vector<1x2x128xf32> to vector<2x128xf32>
    %c0_19 = arith.constant 0 : index
    %c0_20 = arith.constant 0 : index
    %c0_21 = arith.constant 0 : index
    %58 = vector.load %arg3[%c0_19, %c0_20, %c0_21] : memref<3x2x128xf32, #tpu.memory_space<vmem>>, vector<1x2x128xf32>
    %59 = vector.shape_cast %58 : vector<1x2x128xf32> to vector<2x128xf32>
    %60 = arith.truncf %57 : vector<2x128xf32> to vector<2x128xbf16>
    %c0_22 = arith.constant 0 : index
    %c0_23 = arith.constant 0 : index
    %61 = vector.load %arg4[%c0_22, %c0_23] : memref<128x512xbf16, #tpu.memory_space<vmem>>, vector<128x512xbf16>
    %cst = arith.constant dense<0.000000e+00> : vector<2x512xf32>
    %62 = tpu.matmul %60, %61, %cst {dimension_numbers = #tpu.dot_dimension_numbers<[1], [0], [0], [1], [0, 0, 1, 1], [], []>} : vector<2x128xbf16>, vector<128x512xbf16>, vector<2x512xf32> -> vector<2x512xf32>
    %63 = arith.addf %6, %62 : vector<2x512xf32>
    %64 = vector.extract_strided_slice %63 {offsets = [0, 0], sizes = [2, 384], strides = [1, 1]} : vector<2x512xf32> to vector<2x384xf32>
    %65 = arith.negf %64 : vector<2x384xf32>
    %66 = math.exp %65 : vector<2x384xf32>
    %cst_24 = arith.constant 1.000000e+00 : f32
    %67 = vector.broadcast %cst_24 : f32 to vector<2x384xf32>
    %68 = arith.addf %67, %66 : vector<2x384xf32>
    %69 = arith.divf %67, %68 : vector<2x384xf32>
    %70 = vector.extract_strided_slice %63 {offsets = [0, 384], sizes = [2, 128], strides = [1, 1]} : vector<2x512xf32> to vector<2x128xf32>
    %71 = math.tanh %70 : vector<2x128xf32>
    %72 = vector.extract_strided_slice %69 {offsets = [0, 0], sizes = [2, 128], strides = [1, 1]} : vector<2x384xf32> to vector<2x128xf32>
    %73 = vector.extract_strided_slice %69 {offsets = [0, 128], sizes = [2, 128], strides = [1, 1]} : vector<2x384xf32> to vector<2x128xf32>
    %74 = vector.extract_strided_slice %69 {offsets = [0, 256], sizes = [2, 128], strides = [1, 1]} : vector<2x384xf32> to vector<2x128xf32>
    %75 = arith.mulf %73, %59 : vector<2x128xf32>
    %76 = arith.mulf %72, %71 : vector<2x128xf32>
    %77 = arith.addf %75, %76 : vector<2x128xf32>
    %78 = math.tanh %77 : vector<2x128xf32>
    %79 = arith.mulf %74, %78 : vector<2x128xf32>
    %80 = arith.truncf %79 : vector<2x128xf32> to vector<2x128xbf16>
    %c0_25 = arith.constant 0 : index
    %c0_26 = arith.constant 0 : index
    %81 = vector.load %arg4[%c0_25, %c0_26] : memref<128x512xbf16, #tpu.memory_space<vmem>>, vector<128x512xbf16>
    %cst_27 = arith.constant dense<0.000000e+00> : vector<2x512xf32>
    %82 = tpu.matmul %80, %81, %cst_27 {dimension_numbers = #tpu.dot_dimension_numbers<[1], [0], [0], [1], [0, 0, 1, 1], [], []>} : vector<2x128xbf16>, vector<128x512xbf16>, vector<2x512xf32> -> vector<2x512xf32>
    %83 = arith.addf %13, %82 : vector<2x512xf32>
    %84 = vector.extract_strided_slice %83 {offsets = [0, 0], sizes = [2, 384], strides = [1, 1]} : vector<2x512xf32> to vector<2x384xf32>
    %85 = arith.negf %84 : vector<2x384xf32>
    %86 = math.exp %85 : vector<2x384xf32>
    %cst_28 = arith.constant 1.000000e+00 : f32
    %87 = vector.broadcast %cst_28 : f32 to vector<2x384xf32>
    %88 = arith.addf %87, %86 : vector<2x384xf32>
    %89 = arith.divf %87, %88 : vector<2x384xf32>
    %90 = vector.extract_strided_slice %83 {offsets = [0, 384], sizes = [2, 128], strides = [1, 1]} : vector<2x512xf32> to vector<2x128xf32>
    %91 = math.tanh %90 : vector<2x128xf32>
    %92 = vector.extract_strided_slice %89 {offsets = [0, 0], sizes = [2, 128], strides = [1, 1]} : vector<2x384xf32> to vector<2x128xf32>
    %93 = vector.extract_strided_slice %89 {offsets = [0, 128], sizes = [2, 128], strides = [1, 1]} : vector<2x384xf32> to vector<2x128xf32>
    %94 = vector.extract_strided_slice %89 {offsets = [0, 256], sizes = [2, 128], strides = [1, 1]} : vector<2x384xf32> to vector<2x128xf32>
    %95 = arith.mulf %93, %77 : vector<2x128xf32>
    %96 = arith.mulf %92, %91 : vector<2x128xf32>
    %97 = arith.addf %95, %96 : vector<2x128xf32>
    %98 = math.tanh %97 : vector<2x128xf32>
    %99 = arith.mulf %94, %98 : vector<2x128xf32>
    %100 = arith.truncf %99 : vector<2x128xf32> to vector<2x128xbf16>
    %c0_29 = arith.constant 0 : index
    %c0_30 = arith.constant 0 : index
    %101 = vector.load %arg4[%c0_29, %c0_30] : memref<128x512xbf16, #tpu.memory_space<vmem>>, vector<128x512xbf16>
    %cst_31 = arith.constant dense<0.000000e+00> : vector<2x512xf32>
    %102 = tpu.matmul %100, %101, %cst_31 {dimension_numbers = #tpu.dot_dimension_numbers<[1], [0], [0], [1], [0, 0, 1, 1], [], []>} : vector<2x128xbf16>, vector<128x512xbf16>, vector<2x512xf32> -> vector<2x512xf32>
    %103 = arith.addf %20, %102 : vector<2x512xf32>
    %104 = vector.extract_strided_slice %103 {offsets = [0, 0], sizes = [2, 384], strides = [1, 1]} : vector<2x512xf32> to vector<2x384xf32>
    %105 = arith.negf %104 : vector<2x384xf32>
    %106 = math.exp %105 : vector<2x384xf32>
    %cst_32 = arith.constant 1.000000e+00 : f32
    %107 = vector.broadcast %cst_32 : f32 to vector<2x384xf32>
    %108 = arith.addf %107, %106 : vector<2x384xf32>
    %109 = arith.divf %107, %108 : vector<2x384xf32>
    %110 = vector.extract_strided_slice %103 {offsets = [0, 384], sizes = [2, 128], strides = [1, 1]} : vector<2x512xf32> to vector<2x128xf32>
    %111 = math.tanh %110 : vector<2x128xf32>
    %112 = vector.extract_strided_slice %109 {offsets = [0, 0], sizes = [2, 128], strides = [1, 1]} : vector<2x384xf32> to vector<2x128xf32>
    %113 = vector.extract_strided_slice %109 {offsets = [0, 128], sizes = [2, 128], strides = [1, 1]} : vector<2x384xf32> to vector<2x128xf32>
    %114 = vector.extract_strided_slice %109 {offsets = [0, 256], sizes = [2, 128], strides = [1, 1]} : vector<2x384xf32> to vector<2x128xf32>
    %115 = arith.mulf %113, %97 : vector<2x128xf32>
    %116 = arith.mulf %112, %111 : vector<2x128xf32>
    %117 = arith.addf %115, %116 : vector<2x128xf32>
    %118 = math.tanh %117 : vector<2x128xf32>
    %119 = arith.mulf %114, %118 : vector<2x128xf32>
    %120 = arith.truncf %119 : vector<2x128xf32> to vector<2x128xbf16>
    %c0_33 = arith.constant 0 : index
    %c0_34 = arith.constant 0 : index
    %121 = vector.load %arg4[%c0_33, %c0_34] : memref<128x512xbf16, #tpu.memory_space<vmem>>, vector<128x512xbf16>
    %cst_35 = arith.constant dense<0.000000e+00> : vector<2x512xf32>
    %122 = tpu.matmul %120, %121, %cst_35 {dimension_numbers = #tpu.dot_dimension_numbers<[1], [0], [0], [1], [0, 0, 1, 1], [], []>} : vector<2x128xbf16>, vector<128x512xbf16>, vector<2x512xf32> -> vector<2x512xf32>
    %123 = arith.addf %27, %122 : vector<2x512xf32>
    %124 = vector.extract_strided_slice %123 {offsets = [0, 0], sizes = [2, 384], strides = [1, 1]} : vector<2x512xf32> to vector<2x384xf32>
    %125 = arith.negf %124 : vector<2x384xf32>
    %126 = math.exp %125 : vector<2x384xf32>
    %cst_36 = arith.constant 1.000000e+00 : f32
    %127 = vector.broadcast %cst_36 : f32 to vector<2x384xf32>
    %128 = arith.addf %127, %126 : vector<2x384xf32>
    %129 = arith.divf %127, %128 : vector<2x384xf32>
    %130 = vector.extract_strided_slice %123 {offsets = [0, 384], sizes = [2, 128], strides = [1, 1]} : vector<2x512xf32> to vector<2x128xf32>
    %131 = math.tanh %130 : vector<2x128xf32>
    %132 = vector.extract_strided_slice %129 {offsets = [0, 0], sizes = [2, 128], strides = [1, 1]} : vector<2x384xf32> to vector<2x128xf32>
    %133 = vector.extract_strided_slice %129 {offsets = [0, 128], sizes = [2, 128], strides = [1, 1]} : vector<2x384xf32> to vector<2x128xf32>
    %134 = vector.extract_strided_slice %129 {offsets = [0, 256], sizes = [2, 128], strides = [1, 1]} : vector<2x384xf32> to vector<2x128xf32>
    %135 = arith.mulf %133, %117 : vector<2x128xf32>
    %136 = arith.mulf %132, %131 : vector<2x128xf32>
    %137 = arith.addf %135, %136 : vector<2x128xf32>
    %138 = math.tanh %137 : vector<2x128xf32>
    %139 = arith.mulf %134, %138 : vector<2x128xf32>
    %140 = arith.truncf %139 : vector<2x128xf32> to vector<2x128xbf16>
    %c0_37 = arith.constant 0 : index
    %c0_38 = arith.constant 0 : index
    %141 = vector.load %arg4[%c0_37, %c0_38] : memref<128x512xbf16, #tpu.memory_space<vmem>>, vector<128x512xbf16>
    %cst_39 = arith.constant dense<0.000000e+00> : vector<2x512xf32>
    %142 = tpu.matmul %140, %141, %cst_39 {dimension_numbers = #tpu.dot_dimension_numbers<[1], [0], [0], [1], [0, 0, 1, 1], [], []>} : vector<2x128xbf16>, vector<128x512xbf16>, vector<2x512xf32> -> vector<2x512xf32>
    %143 = arith.addf %34, %142 : vector<2x512xf32>
    %144 = vector.extract_strided_slice %143 {offsets = [0, 0], sizes = [2, 384], strides = [1, 1]} : vector<2x512xf32> to vector<2x384xf32>
    %145 = arith.negf %144 : vector<2x384xf32>
    %146 = math.exp %145 : vector<2x384xf32>
    %cst_40 = arith.constant 1.000000e+00 : f32
    %147 = vector.broadcast %cst_40 : f32 to vector<2x384xf32>
    %148 = arith.addf %147, %146 : vector<2x384xf32>
    %149 = arith.divf %147, %148 : vector<2x384xf32>
    %150 = vector.extract_strided_slice %143 {offsets = [0, 384], sizes = [2, 128], strides = [1, 1]} : vector<2x512xf32> to vector<2x128xf32>
    %151 = math.tanh %150 : vector<2x128xf32>
    %152 = vector.extract_strided_slice %149 {offsets = [0, 0], sizes = [2, 128], strides = [1, 1]} : vector<2x384xf32> to vector<2x128xf32>
    %153 = vector.extract_strided_slice %149 {offsets = [0, 128], sizes = [2, 128], strides = [1, 1]} : vector<2x384xf32> to vector<2x128xf32>
    %154 = vector.extract_strided_slice %149 {offsets = [0, 256], sizes = [2, 128], strides = [1, 1]} : vector<2x384xf32> to vector<2x128xf32>
    %155 = arith.mulf %153, %137 : vector<2x128xf32>
    %156 = arith.mulf %152, %151 : vector<2x128xf32>
    %157 = arith.addf %155, %156 : vector<2x128xf32>
    %158 = math.tanh %157 : vector<2x128xf32>
    %159 = arith.mulf %154, %158 : vector<2x128xf32>
    %160 = arith.truncf %159 : vector<2x128xf32> to vector<2x128xbf16>
    %c0_41 = arith.constant 0 : index
    %c0_42 = arith.constant 0 : index
    %161 = vector.load %arg4[%c0_41, %c0_42] : memref<128x512xbf16, #tpu.memory_space<vmem>>, vector<128x512xbf16>
    %cst_43 = arith.constant dense<0.000000e+00> : vector<2x512xf32>
    %162 = tpu.matmul %160, %161, %cst_43 {dimension_numbers = #tpu.dot_dimension_numbers<[1], [0], [0], [1], [0, 0, 1, 1], [], []>} : vector<2x128xbf16>, vector<128x512xbf16>, vector<2x512xf32> -> vector<2x512xf32>
    %163 = arith.addf %41, %162 : vector<2x512xf32>
    %164 = vector.extract_strided_slice %163 {offsets = [0, 0], sizes = [2, 384], strides = [1, 1]} : vector<2x512xf32> to vector<2x384xf32>
    %165 = arith.negf %164 : vector<2x384xf32>
    %166 = math.exp %165 : vector<2x384xf32>
    %cst_44 = arith.constant 1.000000e+00 : f32
    %167 = vector.broadcast %cst_44 : f32 to vector<2x384xf32>
    %168 = arith.addf %167, %166 : vector<2x384xf32>
    %169 = arith.divf %167, %168 : vector<2x384xf32>
    %170 = vector.extract_strided_slice %163 {offsets = [0, 384], sizes = [2, 128], strides = [1, 1]} : vector<2x512xf32> to vector<2x128xf32>
    %171 = math.tanh %170 : vector<2x128xf32>
    %172 = vector.extract_strided_slice %169 {offsets = [0, 0], sizes = [2, 128], strides = [1, 1]} : vector<2x384xf32> to vector<2x128xf32>
    %173 = vector.extract_strided_slice %169 {offsets = [0, 128], sizes = [2, 128], strides = [1, 1]} : vector<2x384xf32> to vector<2x128xf32>
    %174 = vector.extract_strided_slice %169 {offsets = [0, 256], sizes = [2, 128], strides = [1, 1]} : vector<2x384xf32> to vector<2x128xf32>
    %175 = arith.mulf %173, %157 : vector<2x128xf32>
    %176 = arith.mulf %172, %171 : vector<2x128xf32>
    %177 = arith.addf %175, %176 : vector<2x128xf32>
    %178 = math.tanh %177 : vector<2x128xf32>
    %179 = arith.mulf %174, %178 : vector<2x128xf32>
    %180 = arith.truncf %179 : vector<2x128xf32> to vector<2x128xbf16>
    %c0_45 = arith.constant 0 : index
    %c0_46 = arith.constant 0 : index
    %181 = vector.load %arg4[%c0_45, %c0_46] : memref<128x512xbf16, #tpu.memory_space<vmem>>, vector<128x512xbf16>
    %cst_47 = arith.constant dense<0.000000e+00> : vector<2x512xf32>
    %182 = tpu.matmul %180, %181, %cst_47 {dimension_numbers = #tpu.dot_dimension_numbers<[1], [0], [0], [1], [0, 0, 1, 1], [], []>} : vector<2x128xbf16>, vector<128x512xbf16>, vector<2x512xf32> -> vector<2x512xf32>
    %183 = arith.addf %48, %182 : vector<2x512xf32>
    %184 = vector.extract_strided_slice %183 {offsets = [0, 0], sizes = [2, 384], strides = [1, 1]} : vector<2x512xf32> to vector<2x384xf32>
    %185 = arith.negf %184 : vector<2x384xf32>
    %186 = math.exp %185 : vector<2x384xf32>
    %cst_48 = arith.constant 1.000000e+00 : f32
    %187 = vector.broadcast %cst_48 : f32 to vector<2x384xf32>
    %188 = arith.addf %187, %186 : vector<2x384xf32>
    %189 = arith.divf %187, %188 : vector<2x384xf32>
    %190 = vector.extract_strided_slice %183 {offsets = [0, 384], sizes = [2, 128], strides = [1, 1]} : vector<2x512xf32> to vector<2x128xf32>
    %191 = math.tanh %190 : vector<2x128xf32>
    %192 = vector.extract_strided_slice %189 {offsets = [0, 0], sizes = [2, 128], strides = [1, 1]} : vector<2x384xf32> to vector<2x128xf32>
    %193 = vector.extract_strided_slice %189 {offsets = [0, 128], sizes = [2, 128], strides = [1, 1]} : vector<2x384xf32> to vector<2x128xf32>
    %194 = vector.extract_strided_slice %189 {offsets = [0, 256], sizes = [2, 128], strides = [1, 1]} : vector<2x384xf32> to vector<2x128xf32>
    %195 = arith.mulf %193, %177 : vector<2x128xf32>
    %196 = arith.mulf %192, %191 : vector<2x128xf32>
    %197 = arith.addf %195, %196 : vector<2x128xf32>
    %198 = math.tanh %197 : vector<2x128xf32>
    %199 = arith.mulf %194, %198 : vector<2x128xf32>
    %200 = arith.truncf %199 : vector<2x128xf32> to vector<2x128xbf16>
    %c0_49 = arith.constant 0 : index
    %c0_50 = arith.constant 0 : index
    %201 = vector.load %arg4[%c0_49, %c0_50] : memref<128x512xbf16, #tpu.memory_space<vmem>>, vector<128x512xbf16>
    %cst_51 = arith.constant dense<0.000000e+00> : vector<2x512xf32>
    %202 = tpu.matmul %200, %201, %cst_51 {dimension_numbers = #tpu.dot_dimension_numbers<[1], [0], [0], [1], [0, 0, 1, 1], [], []>} : vector<2x128xbf16>, vector<128x512xbf16>, vector<2x512xf32> -> vector<2x512xf32>
    %203 = arith.addf %55, %202 : vector<2x512xf32>
    %204 = vector.extract_strided_slice %203 {offsets = [0, 0], sizes = [2, 384], strides = [1, 1]} : vector<2x512xf32> to vector<2x384xf32>
    %205 = arith.negf %204 : vector<2x384xf32>
    %206 = math.exp %205 : vector<2x384xf32>
    %cst_52 = arith.constant 1.000000e+00 : f32
    %207 = vector.broadcast %cst_52 : f32 to vector<2x384xf32>
    %208 = arith.addf %207, %206 : vector<2x384xf32>
    %209 = arith.divf %207, %208 : vector<2x384xf32>
    %210 = vector.extract_strided_slice %203 {offsets = [0, 384], sizes = [2, 128], strides = [1, 1]} : vector<2x512xf32> to vector<2x128xf32>
    %211 = math.tanh %210 : vector<2x128xf32>
    %212 = vector.extract_strided_slice %209 {offsets = [0, 0], sizes = [2, 128], strides = [1, 1]} : vector<2x384xf32> to vector<2x128xf32>
    %213 = vector.extract_strided_slice %209 {offsets = [0, 128], sizes = [2, 128], strides = [1, 1]} : vector<2x384xf32> to vector<2x128xf32>
    %214 = vector.extract_strided_slice %209 {offsets = [0, 256], sizes = [2, 128], strides = [1, 1]} : vector<2x384xf32> to vector<2x128xf32>
    %215 = arith.mulf %213, %197 : vector<2x128xf32>
    %216 = arith.mulf %212, %211 : vector<2x128xf32>
    %217 = arith.addf %215, %216 : vector<2x128xf32>
    %218 = math.tanh %217 : vector<2x128xf32>
    %219 = arith.mulf %214, %218 : vector<2x128xf32>
    %c0_53 = arith.constant 0 : index
    %c0_54 = arith.constant 0 : index
    %c0_55 = arith.constant 0 : index
    %220 = vector.load %arg14[%c0_53, %c0_54, %c0_55] : memref<3x2x128xf32, #tpu.memory_space<vmem>>, vector<1x2x128xf32>
    %221 = vector.shape_cast %220 : vector<1x2x128xf32> to vector<2x128xf32>
    %222 = vector.shape_cast %219 : vector<2x128xf32> to vector<1x2x128xf32>
    tpu.vector_store %arg14[%c0_53, %c0_54, %c0_55], %222 {strides = array<i32>} : memref<3x2x128xf32, #tpu.memory_space<vmem>>, vector<1x2x128xf32>,
    %c0_56 = arith.constant 0 : index
    %c0_57 = arith.constant 0 : index
    %c0_58 = arith.constant 0 : index
    %223 = vector.load %arg15[%c0_56, %c0_57, %c0_58] : memref<3x2x128xf32, #tpu.memory_space<vmem>>, vector<1x2x128xf32>
    %224 = vector.shape_cast %223 : vector<1x2x128xf32> to vector<2x128xf32>
    %225 = vector.shape_cast %217 : vector<2x128xf32> to vector<1x2x128xf32>
    tpu.vector_store %arg15[%c0_56, %c0_57, %c0_58], %225 {strides = array<i32>} : memref<3x2x128xf32, #tpu.memory_space<vmem>>, vector<1x2x128xf32>,
    %226 = tpu.concatenate %79, %99, %119, %139, %159, %179, %199, %219 in 0 : vector<2x128xf32>, vector<2x128xf32>, vector<2x128xf32>, vector<2x128xf32>, vector<2x128xf32>, vector<2x128xf32>, vector<2x128xf32>, vector<2x128xf32> -> vector<16x128xf32>
    %227 = arith.truncf %226 : vector<16x128xf32> to vector<16x128xbf16>
    %c0_59 = arith.constant 0 : index
    %c0_60 = arith.constant 0 : index
    %228 = vector.load %arg5[%c0_59, %c0_60] : memref<128x512xbf16, #tpu.memory_space<vmem>>, vector<128x512xbf16>
    %cst_61 = arith.constant dense<0.000000e+00> : vector<16x512xf32>
    %229 = tpu.matmul %227, %228, %cst_61 {dimension_numbers = #tpu.dot_dimension_numbers<[1], [0], [0], [1], [0, 0, 1, 1], [], []>} : vector<16x128xbf16>, vector<128x512xbf16>, vector<16x512xf32> -> vector<16x512xf32>
    %c0_62 = arith.constant 0 : index
    %c0_63 = arith.constant 0 : index
    %230 = vector.load %arg7[%c0_62, %c0_63] : memref<1x512xf32, #tpu.memory_space<vmem>>, vector<1x512xf32>
    %231 = vector.broadcast %230 : vector<1x512xf32> to vector<16x512xf32>
    %232 = arith.addf %229, %231 : vector<16x512xf32>
    %c1_64 = arith.constant 1 : index
    %c0_65 = arith.constant 0 : index
    %c0_66 = arith.constant 0 : index
    %233 = vector.load %arg2[%c1_64, %c0_65, %c0_66] : memref<3x2x128xf32, #tpu.memory_space<vmem>>, vector<1x2x128xf32>
    %234 = vector.shape_cast %233 : vector<1x2x128xf32> to vector<2x128xf32>
    %c1_67 = arith.constant 1 : index
    %c0_68 = arith.constant 0 : index
    %c0_69 = arith.constant 0 : index
    %235 = vector.load %arg3[%c1_67, %c0_68, %c0_69] : memref<3x2x128xf32, #tpu.memory_space<vmem>>, vector<1x2x128xf32>
    %236 = vector.shape_cast %235 : vector<1x2x128xf32> to vector<2x128xf32>
    %237 = vector.extract_strided_slice %232 {offsets = [0, 0], sizes = [2, 512], strides = [1, 1]} : vector<16x512xf32> to vector<2x512xf32>
    %238 = arith.truncf %234 : vector<2x128xf32> to vector<2x128xbf16>
    %c0_70 = arith.constant 0 : index
    %c0_71 = arith.constant 0 : index
    %239 = vector.load %arg6[%c0_70, %c0_71] : memref<128x512xbf16, #tpu.memory_space<vmem>>, vector<128x512xbf16>
    %cst_72 = arith.constant dense<0.000000e+00> : vector<2x512xf32>
    %240 = tpu.matmul %238, %239, %cst_72 {dimension_numbers = #tpu.dot_dimension_numbers<[1], [0], [0], [1], [0, 0, 1, 1], [], []>} : vector<2x128xbf16>, vector<128x512xbf16>, vector<2x512xf32> -> vector<2x512xf32>
    %241 = arith.addf %237, %240 : vector<2x512xf32>
    %242 = vector.extract_strided_slice %241 {offsets = [0, 0], sizes = [2, 384], strides = [1, 1]} : vector<2x512xf32> to vector<2x384xf32>
    %243 = arith.negf %242 : vector<2x384xf32>
    %244 = math.exp %243 : vector<2x384xf32>
    %cst_73 = arith.constant 1.000000e+00 : f32
    %245 = vector.broadcast %cst_73 : f32 to vector<2x384xf32>
    %246 = arith.addf %245, %244 : vector<2x384xf32>
    %247 = arith.divf %245, %246 : vector<2x384xf32>
    %248 = vector.extract_strided_slice %241 {offsets = [0, 384], sizes = [2, 128], strides = [1, 1]} : vector<2x512xf32> to vector<2x128xf32>
    %249 = math.tanh %248 : vector<2x128xf32>
    %250 = vector.extract_strided_slice %247 {offsets = [0, 0], sizes = [2, 128], strides = [1, 1]} : vector<2x384xf32> to vector<2x128xf32>
    %251 = vector.extract_strided_slice %247 {offsets = [0, 128], sizes = [2, 128], strides = [1, 1]} : vector<2x384xf32> to vector<2x128xf32>
    %252 = vector.extract_strided_slice %247 {offsets = [0, 256], sizes = [2, 128], strides = [1, 1]} : vector<2x384xf32> to vector<2x128xf32>
    %253 = arith.mulf %251, %236 : vector<2x128xf32>
    %254 = arith.mulf %250, %249 : vector<2x128xf32>
    %255 = arith.addf %253, %254 : vector<2x128xf32>
    %256 = math.tanh %255 : vector<2x128xf32>
    %257 = arith.mulf %252, %256 : vector<2x128xf32>
    %258 = vector.extract_strided_slice %232 {offsets = [2, 0], sizes = [2, 512], strides = [1, 1]} : vector<16x512xf32> to vector<2x512xf32>
    %259 = arith.truncf %257 : vector<2x128xf32> to vector<2x128xbf16>
    %c0_74 = arith.constant 0 : index
    %c0_75 = arith.constant 0 : index
    %260 = vector.load %arg6[%c0_74, %c0_75] : memref<128x512xbf16, #tpu.memory_space<vmem>>, vector<128x512xbf16>
    %cst_76 = arith.constant dense<0.000000e+00> : vector<2x512xf32>
    %261 = tpu.matmul %259, %260, %cst_76 {dimension_numbers = #tpu.dot_dimension_numbers<[1], [0], [0], [1], [0, 0, 1, 1], [], []>} : vector<2x128xbf16>, vector<128x512xbf16>, vector<2x512xf32> -> vector<2x512xf32>
    %262 = arith.addf %258, %261 : vector<2x512xf32>
    %263 = vector.extract_strided_slice %262 {offsets = [0, 0], sizes = [2, 384], strides = [1, 1]} : vector<2x512xf32> to vector<2x384xf32>
    %264 = arith.negf %263 : vector<2x384xf32>
    %265 = math.exp %264 : vector<2x384xf32>
    %cst_77 = arith.constant 1.000000e+00 : f32
    %266 = vector.broadcast %cst_77 : f32 to vector<2x384xf32>
    %267 = arith.addf %266, %265 : vector<2x384xf32>
    %268 = arith.divf %266, %267 : vector<2x384xf32>
    %269 = vector.extract_strided_slice %262 {offsets = [0, 384], sizes = [2, 128], strides = [1, 1]} : vector<2x512xf32> to vector<2x128xf32>
    %270 = math.tanh %269 : vector<2x128xf32>
    %271 = vector.extract_strided_slice %268 {offsets = [0, 0], sizes = [2, 128], strides = [1, 1]} : vector<2x384xf32> to vector<2x128xf32>
    %272 = vector.extract_strided_slice %268 {offsets = [0, 128], sizes = [2, 128], strides = [1, 1]} : vector<2x384xf32> to vector<2x128xf32>
    %273 = vector.extract_strided_slice %268 {offsets = [0, 256], sizes = [2, 128], strides = [1, 1]} : vector<2x384xf32> to vector<2x128xf32>
    %274 = arith.mulf %272, %255 : vector<2x128xf32>
    %275 = arith.mulf %271, %270 : vector<2x128xf32>
    %276 = arith.addf %274, %275 : vector<2x128xf32>
    %277 = math.tanh %276 : vector<2x128xf32>
    %278 = arith.mulf %273, %277 : vector<2x128xf32>
    %279 = vector.extract_strided_slice %232 {offsets = [4, 0], sizes = [2, 512], strides = [1, 1]} : vector<16x512xf32> to vector<2x512xf32>
    %280 = arith.truncf %278 : vector<2x128xf32> to vector<2x128xbf16>
    %c0_78 = arith.constant 0 : index
    %c0_79 = arith.constant 0 : index
    %281 = vector.load %arg6[%c0_78, %c0_79] : memref<128x512xbf16, #tpu.memory_space<vmem>>, vector<128x512xbf16>
    %cst_80 = arith.constant dense<0.000000e+00> : vector<2x512xf32>
    %282 = tpu.matmul %280, %281, %cst_80 {dimension_numbers = #tpu.dot_dimension_numbers<[1], [0], [0], [1], [0, 0, 1, 1], [], []>} : vector<2x128xbf16>, vector<128x512xbf16>, vector<2x512xf32> -> vector<2x512xf32>
    %283 = arith.addf %279, %282 : vector<2x512xf32>
    %284 = vector.extract_strided_slice %283 {offsets = [0, 0], sizes = [2, 384], strides = [1, 1]} : vector<2x512xf32> to vector<2x384xf32>
    %285 = arith.negf %284 : vector<2x384xf32>
    %286 = math.exp %285 : vector<2x384xf32>
    %cst_81 = arith.constant 1.000000e+00 : f32
    %287 = vector.broadcast %cst_81 : f32 to vector<2x384xf32>
    %288 = arith.addf %287, %286 : vector<2x384xf32>
    %289 = arith.divf %287, %288 : vector<2x384xf32>
    %290 = vector.extract_strided_slice %283 {offsets = [0, 384], sizes = [2, 128], strides = [1, 1]} : vector<2x512xf32> to vector<2x128xf32>
    %291 = math.tanh %290 : vector<2x128xf32>
    %292 = vector.extract_strided_slice %289 {offsets = [0, 0], sizes = [2, 128], strides = [1, 1]} : vector<2x384xf32> to vector<2x128xf32>
    %293 = vector.extract_strided_slice %289 {offsets = [0, 128], sizes = [2, 128], strides = [1, 1]} : vector<2x384xf32> to vector<2x128xf32>
    %294 = vector.extract_strided_slice %289 {offsets = [0, 256], sizes = [2, 128], strides = [1, 1]} : vector<2x384xf32> to vector<2x128xf32>
    %295 = arith.mulf %293, %276 : vector<2x128xf32>
    %296 = arith.mulf %292, %291 : vector<2x128xf32>
    %297 = arith.addf %295, %296 : vector<2x128xf32>
    %298 = math.tanh %297 : vector<2x128xf32>
    %299 = arith.mulf %294, %298 : vector<2x128xf32>
    %300 = vector.extract_strided_slice %232 {offsets = [6, 0], sizes = [2, 512], strides = [1, 1]} : vector<16x512xf32> to vector<2x512xf32>
    %301 = arith.truncf %299 : vector<2x128xf32> to vector<2x128xbf16>
    %c0_82 = arith.constant 0 : index
    %c0_83 = arith.constant 0 : index
    %302 = vector.load %arg6[%c0_82, %c0_83] : memref<128x512xbf16, #tpu.memory_space<vmem>>, vector<128x512xbf16>
    %cst_84 = arith.constant dense<0.000000e+00> : vector<2x512xf32>
    %303 = tpu.matmul %301, %302, %cst_84 {dimension_numbers = #tpu.dot_dimension_numbers<[1], [0], [0], [1], [0, 0, 1, 1], [], []>} : vector<2x128xbf16>, vector<128x512xbf16>, vector<2x512xf32> -> vector<2x512xf32>
    %304 = arith.addf %300, %303 : vector<2x512xf32>
    %305 = vector.extract_strided_slice %304 {offsets = [0, 0], sizes = [2, 384], strides = [1, 1]} : vector<2x512xf32> to vector<2x384xf32>
    %306 = arith.negf %305 : vector<2x384xf32>
    %307 = math.exp %306 : vector<2x384xf32>
    %cst_85 = arith.constant 1.000000e+00 : f32
    %308 = vector.broadcast %cst_85 : f32 to vector<2x384xf32>
    %309 = arith.addf %308, %307 : vector<2x384xf32>
    %310 = arith.divf %308, %309 : vector<2x384xf32>
    %311 = vector.extract_strided_slice %304 {offsets = [0, 384], sizes = [2, 128], strides = [1, 1]} : vector<2x512xf32> to vector<2x128xf32>
    %312 = math.tanh %311 : vector<2x128xf32>
    %313 = vector.extract_strided_slice %310 {offsets = [0, 0], sizes = [2, 128], strides = [1, 1]} : vector<2x384xf32> to vector<2x128xf32>
    %314 = vector.extract_strided_slice %310 {offsets = [0, 128], sizes = [2, 128], strides = [1, 1]} : vector<2x384xf32> to vector<2x128xf32>
    %315 = vector.extract_strided_slice %310 {offsets = [0, 256], sizes = [2, 128], strides = [1, 1]} : vector<2x384xf32> to vector<2x128xf32>
    %316 = arith.mulf %314, %297 : vector<2x128xf32>
    %317 = arith.mulf %313, %312 : vector<2x128xf32>
    %318 = arith.addf %316, %317 : vector<2x128xf32>
    %319 = math.tanh %318 : vector<2x128xf32>
    %320 = arith.mulf %315, %319 : vector<2x128xf32>
    %321 = vector.extract_strided_slice %232 {offsets = [8, 0], sizes = [2, 512], strides = [1, 1]} : vector<16x512xf32> to vector<2x512xf32>
    %322 = arith.truncf %320 : vector<2x128xf32> to vector<2x128xbf16>
    %c0_86 = arith.constant 0 : index
    %c0_87 = arith.constant 0 : index
    %323 = vector.load %arg6[%c0_86, %c0_87] : memref<128x512xbf16, #tpu.memory_space<vmem>>, vector<128x512xbf16>
    %cst_88 = arith.constant dense<0.000000e+00> : vector<2x512xf32>
    %324 = tpu.matmul %322, %323, %cst_88 {dimension_numbers = #tpu.dot_dimension_numbers<[1], [0], [0], [1], [0, 0, 1, 1], [], []>} : vector<2x128xbf16>, vector<128x512xbf16>, vector<2x512xf32> -> vector<2x512xf32>
    %325 = arith.addf %321, %324 : vector<2x512xf32>
    %326 = vector.extract_strided_slice %325 {offsets = [0, 0], sizes = [2, 384], strides = [1, 1]} : vector<2x512xf32> to vector<2x384xf32>
    %327 = arith.negf %326 : vector<2x384xf32>
    %328 = math.exp %327 : vector<2x384xf32>
    %cst_89 = arith.constant 1.000000e+00 : f32
    %329 = vector.broadcast %cst_89 : f32 to vector<2x384xf32>
    %330 = arith.addf %329, %328 : vector<2x384xf32>
    %331 = arith.divf %329, %330 : vector<2x384xf32>
    %332 = vector.extract_strided_slice %325 {offsets = [0, 384], sizes = [2, 128], strides = [1, 1]} : vector<2x512xf32> to vector<2x128xf32>
    %333 = math.tanh %332 : vector<2x128xf32>
    %334 = vector.extract_strided_slice %331 {offsets = [0, 0], sizes = [2, 128], strides = [1, 1]} : vector<2x384xf32> to vector<2x128xf32>
    %335 = vector.extract_strided_slice %331 {offsets = [0, 128], sizes = [2, 128], strides = [1, 1]} : vector<2x384xf32> to vector<2x128xf32>
    %336 = vector.extract_strided_slice %331 {offsets = [0, 256], sizes = [2, 128], strides = [1, 1]} : vector<2x384xf32> to vector<2x128xf32>
    %337 = arith.mulf %335, %318 : vector<2x128xf32>
    %338 = arith.mulf %334, %333 : vector<2x128xf32>
    %339 = arith.addf %337, %338 : vector<2x128xf32>
    %340 = math.tanh %339 : vector<2x128xf32>
    %341 = arith.mulf %336, %340 : vector<2x128xf32>
    %342 = vector.extract_strided_slice %232 {offsets = [10, 0], sizes = [2, 512], strides = [1, 1]} : vector<16x512xf32> to vector<2x512xf32>
    %343 = arith.truncf %341 : vector<2x128xf32> to vector<2x128xbf16>
    %c0_90 = arith.constant 0 : index
    %c0_91 = arith.constant 0 : index
    %344 = vector.load %arg6[%c0_90, %c0_91] : memref<128x512xbf16, #tpu.memory_space<vmem>>, vector<128x512xbf16>
    %cst_92 = arith.constant dense<0.000000e+00> : vector<2x512xf32>
    %345 = tpu.matmul %343, %344, %cst_92 {dimension_numbers = #tpu.dot_dimension_numbers<[1], [0], [0], [1], [0, 0, 1, 1], [], []>} : vector<2x128xbf16>, vector<128x512xbf16>, vector<2x512xf32> -> vector<2x512xf32>
    %346 = arith.addf %342, %345 : vector<2x512xf32>
    %347 = vector.extract_strided_slice %346 {offsets = [0, 0], sizes = [2, 384], strides = [1, 1]} : vector<2x512xf32> to vector<2x384xf32>
    %348 = arith.negf %347 : vector<2x384xf32>
    %349 = math.exp %348 : vector<2x384xf32>
    %cst_93 = arith.constant 1.000000e+00 : f32
    %350 = vector.broadcast %cst_93 : f32 to vector<2x384xf32>
    %351 = arith.addf %350, %349 : vector<2x384xf32>
    %352 = arith.divf %350, %351 : vector<2x384xf32>
    %353 = vector.extract_strided_slice %346 {offsets = [0, 384], sizes = [2, 128], strides = [1, 1]} : vector<2x512xf32> to vector<2x128xf32>
    %354 = math.tanh %353 : vector<2x128xf32>
    %355 = vector.extract_strided_slice %352 {offsets = [0, 0], sizes = [2, 128], strides = [1, 1]} : vector<2x384xf32> to vector<2x128xf32>
    %356 = vector.extract_strided_slice %352 {offsets = [0, 128], sizes = [2, 128], strides = [1, 1]} : vector<2x384xf32> to vector<2x128xf32>
    %357 = vector.extract_strided_slice %352 {offsets = [0, 256], sizes = [2, 128], strides = [1, 1]} : vector<2x384xf32> to vector<2x128xf32>
    %358 = arith.mulf %356, %339 : vector<2x128xf32>
    %359 = arith.mulf %355, %354 : vector<2x128xf32>
    %360 = arith.addf %358, %359 : vector<2x128xf32>
    %361 = math.tanh %360 : vector<2x128xf32>
    %362 = arith.mulf %357, %361 : vector<2x128xf32>
    %363 = vector.extract_strided_slice %232 {offsets = [12, 0], sizes = [2, 512], strides = [1, 1]} : vector<16x512xf32> to vector<2x512xf32>
    %364 = arith.truncf %362 : vector<2x128xf32> to vector<2x128xbf16>
    %c0_94 = arith.constant 0 : index
    %c0_95 = arith.constant 0 : index
    %365 = vector.load %arg6[%c0_94, %c0_95] : memref<128x512xbf16, #tpu.memory_space<vmem>>, vector<128x512xbf16>
    %cst_96 = arith.constant dense<0.000000e+00> : vector<2x512xf32>
    %366 = tpu.matmul %364, %365, %cst_96 {dimension_numbers = #tpu.dot_dimension_numbers<[1], [0], [0], [1], [0, 0, 1, 1], [], []>} : vector<2x128xbf16>, vector<128x512xbf16>, vector<2x512xf32> -> vector<2x512xf32>
    %367 = arith.addf %363, %366 : vector<2x512xf32>
    %368 = vector.extract_strided_slice %367 {offsets = [0, 0], sizes = [2, 384], strides = [1, 1]} : vector<2x512xf32> to vector<2x384xf32>
    %369 = arith.negf %368 : vector<2x384xf32>
    %370 = math.exp %369 : vector<2x384xf32>
    %cst_97 = arith.constant 1.000000e+00 : f32
    %371 = vector.broadcast %cst_97 : f32 to vector<2x384xf32>
    %372 = arith.addf %371, %370 : vector<2x384xf32>
    %373 = arith.divf %371, %372 : vector<2x384xf32>
    %374 = vector.extract_strided_slice %367 {offsets = [0, 384], sizes = [2, 128], strides = [1, 1]} : vector<2x512xf32> to vector<2x128xf32>
    %375 = math.tanh %374 : vector<2x128xf32>
    %376 = vector.extract_strided_slice %373 {offsets = [0, 0], sizes = [2, 128], strides = [1, 1]} : vector<2x384xf32> to vector<2x128xf32>
    %377 = vector.extract_strided_slice %373 {offsets = [0, 128], sizes = [2, 128], strides = [1, 1]} : vector<2x384xf32> to vector<2x128xf32>
    %378 = vector.extract_strided_slice %373 {offsets = [0, 256], sizes = [2, 128], strides = [1, 1]} : vector<2x384xf32> to vector<2x128xf32>
    %379 = arith.mulf %377, %360 : vector<2x128xf32>
    %380 = arith.mulf %376, %375 : vector<2x128xf32>
    %381 = arith.addf %379, %380 : vector<2x128xf32>
    %382 = math.tanh %381 : vector<2x128xf32>
    %383 = arith.mulf %378, %382 : vector<2x128xf32>
    %384 = vector.extract_strided_slice %232 {offsets = [14, 0], sizes = [2, 512], strides = [1, 1]} : vector<16x512xf32> to vector<2x512xf32>
    %385 = arith.truncf %383 : vector<2x128xf32> to vector<2x128xbf16>
    %c0_98 = arith.constant 0 : index
    %c0_99 = arith.constant 0 : index
    %386 = vector.load %arg6[%c0_98, %c0_99] : memref<128x512xbf16, #tpu.memory_space<vmem>>, vector<128x512xbf16>
    %cst_100 = arith.constant dense<0.000000e+00> : vector<2x512xf32>
    %387 = tpu.matmul %385, %386, %cst_100 {dimension_numbers = #tpu.dot_dimension_numbers<[1], [0], [0], [1], [0, 0, 1, 1], [], []>} : vector<2x128xbf16>, vector<128x512xbf16>, vector<2x512xf32> -> vector<2x512xf32>
    %388 = arith.addf %384, %387 : vector<2x512xf32>
    %389 = vector.extract_strided_slice %388 {offsets = [0, 0], sizes = [2, 384], strides = [1, 1]} : vector<2x512xf32> to vector<2x384xf32>
    %390 = arith.negf %389 : vector<2x384xf32>
    %391 = math.exp %390 : vector<2x384xf32>
    %cst_101 = arith.constant 1.000000e+00 : f32
    %392 = vector.broadcast %cst_101 : f32 to vector<2x384xf32>
    %393 = arith.addf %392, %391 : vector<2x384xf32>
    %394 = arith.divf %392, %393 : vector<2x384xf32>
    %395 = vector.extract_strided_slice %388 {offsets = [0, 384], sizes = [2, 128], strides = [1, 1]} : vector<2x512xf32> to vector<2x128xf32>
    %396 = math.tanh %395 : vector<2x128xf32>
    %397 = vector.extract_strided_slice %394 {offsets = [0, 0], sizes = [2, 128], strides = [1, 1]} : vector<2x384xf32> to vector<2x128xf32>
    %398 = vector.extract_strided_slice %394 {offsets = [0, 128], sizes = [2, 128], strides = [1, 1]} : vector<2x384xf32> to vector<2x128xf32>
    %399 = vector.extract_strided_slice %394 {offsets = [0, 256], sizes = [2, 128], strides = [1, 1]} : vector<2x384xf32> to vector<2x128xf32>
    %400 = arith.mulf %398, %381 : vector<2x128xf32>
    %401 = arith.mulf %397, %396 : vector<2x128xf32>
    %402 = arith.addf %400, %401 : vector<2x128xf32>
    %403 = math.tanh %402 : vector<2x128xf32>
    %404 = arith.mulf %399, %403 : vector<2x128xf32>
    %c1_102 = arith.constant 1 : index
    %c0_103 = arith.constant 0 : index
    %c0_104 = arith.constant 0 : index
    %405 = vector.load %arg14[%c1_102, %c0_103, %c0_104] : memref<3x2x128xf32, #tpu.memory_space<vmem>>, vector<1x2x128xf32>
    %406 = vector.shape_cast %405 : vector<1x2x128xf32> to vector<2x128xf32>
    %407 = vector.shape_cast %404 : vector<2x128xf32> to vector<1x2x128xf32>
    tpu.vector_store %arg14[%c1_102, %c0_103, %c0_104], %407 {strides = array<i32>} : memref<3x2x128xf32, #tpu.memory_space<vmem>>, vector<1x2x128xf32>,
    %c1_105 = arith.constant 1 : index
    %c0_106 = arith.constant 0 : index
    %c0_107 = arith.constant 0 : index
    %408 = vector.load %arg15[%c1_105, %c0_106, %c0_107] : memref<3x2x128xf32, #tpu.memory_space<vmem>>, vector<1x2x128xf32>
    %409 = vector.shape_cast %408 : vector<1x2x128xf32> to vector<2x128xf32>
    %410 = vector.shape_cast %402 : vector<2x128xf32> to vector<1x2x128xf32>
    tpu.vector_store %arg15[%c1_105, %c0_106, %c0_107], %410 {strides = array<i32>} : memref<3x2x128xf32, #tpu.memory_space<vmem>>, vector<1x2x128xf32>,
    %411 = tpu.concatenate %257, %278, %299, %320, %341, %362, %383, %404 in 0 : vector<2x128xf32>, vector<2x128xf32>, vector<2x128xf32>, vector<2x128xf32>, vector<2x128xf32>, vector<2x128xf32>, vector<2x128xf32>, vector<2x128xf32> -> vector<16x128xf32>
    %412 = arith.truncf %411 : vector<16x128xf32> to vector<16x128xbf16>
    %c0_108 = arith.constant 0 : index
    %c0_109 = arith.constant 0 : index
    %413 = vector.load %arg8[%c0_108, %c0_109] : memref<128x512xbf16, #tpu.memory_space<vmem>>, vector<128x512xbf16>
    %cst_110 = arith.constant dense<0.000000e+00> : vector<16x512xf32>
    %414 = tpu.matmul %412, %413, %cst_110 {dimension_numbers = #tpu.dot_dimension_numbers<[1], [0], [0], [1], [0, 0, 1, 1], [], []>} : vector<16x128xbf16>, vector<128x512xbf16>, vector<16x512xf32> -> vector<16x512xf32>
    %c0_111 = arith.constant 0 : index
    %c0_112 = arith.constant 0 : index
    %415 = vector.load %arg10[%c0_111, %c0_112] : memref<1x512xf32, #tpu.memory_space<vmem>>, vector<1x512xf32>
    %416 = vector.broadcast %415 : vector<1x512xf32> to vector<16x512xf32>
    %417 = arith.addf %414, %416 : vector<16x512xf32>
    %c2_113 = arith.constant 2 : index
    %c0_114 = arith.constant 0 : index
    %c0_115 = arith.constant 0 : index
    %418 = vector.load %arg2[%c2_113, %c0_114, %c0_115] : memref<3x2x128xf32, #tpu.memory_space<vmem>>, vector<1x2x128xf32>
    %419 = vector.shape_cast %418 : vector<1x2x128xf32> to vector<2x128xf32>
    %c2_116 = arith.constant 2 : index
    %c0_117 = arith.constant 0 : index
    %c0_118 = arith.constant 0 : index
    %420 = vector.load %arg3[%c2_116, %c0_117, %c0_118] : memref<3x2x128xf32, #tpu.memory_space<vmem>>, vector<1x2x128xf32>
    %421 = vector.shape_cast %420 : vector<1x2x128xf32> to vector<2x128xf32>
    %422 = vector.extract_strided_slice %417 {offsets = [0, 0], sizes = [2, 512], strides = [1, 1]} : vector<16x512xf32> to vector<2x512xf32>
    %423 = arith.truncf %419 : vector<2x128xf32> to vector<2x128xbf16>
    %c0_119 = arith.constant 0 : index
    %c0_120 = arith.constant 0 : index
    %424 = vector.load %arg9[%c0_119, %c0_120] : memref<128x512xbf16, #tpu.memory_space<vmem>>, vector<128x512xbf16>
    %cst_121 = arith.constant dense<0.000000e+00> : vector<2x512xf32>
    %425 = tpu.matmul %423, %424, %cst_121 {dimension_numbers = #tpu.dot_dimension_numbers<[1], [0], [0], [1], [0, 0, 1, 1], [], []>} : vector<2x128xbf16>, vector<128x512xbf16>, vector<2x512xf32> -> vector<2x512xf32>
    %426 = arith.addf %422, %425 : vector<2x512xf32>
    %427 = vector.extract_strided_slice %426 {offsets = [0, 0], sizes = [2, 384], strides = [1, 1]} : vector<2x512xf32> to vector<2x384xf32>
    %428 = arith.negf %427 : vector<2x384xf32>
    %429 = math.exp %428 : vector<2x384xf32>
    %cst_122 = arith.constant 1.000000e+00 : f32
    %430 = vector.broadcast %cst_122 : f32 to vector<2x384xf32>
    %431 = arith.addf %430, %429 : vector<2x384xf32>
    %432 = arith.divf %430, %431 : vector<2x384xf32>
    %433 = vector.extract_strided_slice %426 {offsets = [0, 384], sizes = [2, 128], strides = [1, 1]} : vector<2x512xf32> to vector<2x128xf32>
    %434 = math.tanh %433 : vector<2x128xf32>
    %435 = vector.extract_strided_slice %432 {offsets = [0, 0], sizes = [2, 128], strides = [1, 1]} : vector<2x384xf32> to vector<2x128xf32>
    %436 = vector.extract_strided_slice %432 {offsets = [0, 128], sizes = [2, 128], strides = [1, 1]} : vector<2x384xf32> to vector<2x128xf32>
    %437 = vector.extract_strided_slice %432 {offsets = [0, 256], sizes = [2, 128], strides = [1, 1]} : vector<2x384xf32> to vector<2x128xf32>
    %438 = arith.mulf %436, %421 : vector<2x128xf32>
    %439 = arith.mulf %435, %434 : vector<2x128xf32>
    %440 = arith.addf %438, %439 : vector<2x128xf32>
    %441 = math.tanh %440 : vector<2x128xf32>
    %442 = arith.mulf %437, %441 : vector<2x128xf32>
    %443 = vector.extract_strided_slice %417 {offsets = [2, 0], sizes = [2, 512], strides = [1, 1]} : vector<16x512xf32> to vector<2x512xf32>
    %444 = arith.truncf %442 : vector<2x128xf32> to vector<2x128xbf16>
    %c0_123 = arith.constant 0 : index
    %c0_124 = arith.constant 0 : index
    %445 = vector.load %arg9[%c0_123, %c0_124] : memref<128x512xbf16, #tpu.memory_space<vmem>>, vector<128x512xbf16>
    %cst_125 = arith.constant dense<0.000000e+00> : vector<2x512xf32>
    %446 = tpu.matmul %444, %445, %cst_125 {dimension_numbers = #tpu.dot_dimension_numbers<[1], [0], [0], [1], [0, 0, 1, 1], [], []>} : vector<2x128xbf16>, vector<128x512xbf16>, vector<2x512xf32> -> vector<2x512xf32>
    %447 = arith.addf %443, %446 : vector<2x512xf32>
    %448 = vector.extract_strided_slice %447 {offsets = [0, 0], sizes = [2, 384], strides = [1, 1]} : vector<2x512xf32> to vector<2x384xf32>
    %449 = arith.negf %448 : vector<2x384xf32>
    %450 = math.exp %449 : vector<2x384xf32>
    %cst_126 = arith.constant 1.000000e+00 : f32
    %451 = vector.broadcast %cst_126 : f32 to vector<2x384xf32>
    %452 = arith.addf %451, %450 : vector<2x384xf32>
    %453 = arith.divf %451, %452 : vector<2x384xf32>
    %454 = vector.extract_strided_slice %447 {offsets = [0, 384], sizes = [2, 128], strides = [1, 1]} : vector<2x512xf32> to vector<2x128xf32>
    %455 = math.tanh %454 : vector<2x128xf32>
    %456 = vector.extract_strided_slice %453 {offsets = [0, 0], sizes = [2, 128], strides = [1, 1]} : vector<2x384xf32> to vector<2x128xf32>
    %457 = vector.extract_strided_slice %453 {offsets = [0, 128], sizes = [2, 128], strides = [1, 1]} : vector<2x384xf32> to vector<2x128xf32>
    %458 = vector.extract_strided_slice %453 {offsets = [0, 256], sizes = [2, 128], strides = [1, 1]} : vector<2x384xf32> to vector<2x128xf32>
    %459 = arith.mulf %457, %440 : vector<2x128xf32>
    %460 = arith.mulf %456, %455 : vector<2x128xf32>
    %461 = arith.addf %459, %460 : vector<2x128xf32>
    %462 = math.tanh %461 : vector<2x128xf32>
    %463 = arith.mulf %458, %462 : vector<2x128xf32>
    %464 = vector.extract_strided_slice %417 {offsets = [4, 0], sizes = [2, 512], strides = [1, 1]} : vector<16x512xf32> to vector<2x512xf32>
    %465 = arith.truncf %463 : vector<2x128xf32> to vector<2x128xbf16>
    %c0_127 = arith.constant 0 : index
    %c0_128 = arith.constant 0 : index
    %466 = vector.load %arg9[%c0_127, %c0_128] : memref<128x512xbf16, #tpu.memory_space<vmem>>, vector<128x512xbf16>
    %cst_129 = arith.constant dense<0.000000e+00> : vector<2x512xf32>
    %467 = tpu.matmul %465, %466, %cst_129 {dimension_numbers = #tpu.dot_dimension_numbers<[1], [0], [0], [1], [0, 0, 1, 1], [], []>} : vector<2x128xbf16>, vector<128x512xbf16>, vector<2x512xf32> -> vector<2x512xf32>
    %468 = arith.addf %464, %467 : vector<2x512xf32>
    %469 = vector.extract_strided_slice %468 {offsets = [0, 0], sizes = [2, 384], strides = [1, 1]} : vector<2x512xf32> to vector<2x384xf32>
    %470 = arith.negf %469 : vector<2x384xf32>
    %471 = math.exp %470 : vector<2x384xf32>
    %cst_130 = arith.constant 1.000000e+00 : f32
    %472 = vector.broadcast %cst_130 : f32 to vector<2x384xf32>
    %473 = arith.addf %472, %471 : vector<2x384xf32>
    %474 = arith.divf %472, %473 : vector<2x384xf32>
    %475 = vector.extract_strided_slice %468 {offsets = [0, 384], sizes = [2, 128], strides = [1, 1]} : vector<2x512xf32> to vector<2x128xf32>
    %476 = math.tanh %475 : vector<2x128xf32>
    %477 = vector.extract_strided_slice %474 {offsets = [0, 0], sizes = [2, 128], strides = [1, 1]} : vector<2x384xf32> to vector<2x128xf32>
    %478 = vector.extract_strided_slice %474 {offsets = [0, 128], sizes = [2, 128], strides = [1, 1]} : vector<2x384xf32> to vector<2x128xf32>
    %479 = vector.extract_strided_slice %474 {offsets = [0, 256], sizes = [2, 128], strides = [1, 1]} : vector<2x384xf32> to vector<2x128xf32>
    %480 = arith.mulf %478, %461 : vector<2x128xf32>
    %481 = arith.mulf %477, %476 : vector<2x128xf32>
    %482 = arith.addf %480, %481 : vector<2x128xf32>
    %483 = math.tanh %482 : vector<2x128xf32>
    %484 = arith.mulf %479, %483 : vector<2x128xf32>
    %485 = vector.extract_strided_slice %417 {offsets = [6, 0], sizes = [2, 512], strides = [1, 1]} : vector<16x512xf32> to vector<2x512xf32>
    %486 = arith.truncf %484 : vector<2x128xf32> to vector<2x128xbf16>
    %c0_131 = arith.constant 0 : index
    %c0_132 = arith.constant 0 : index
    %487 = vector.load %arg9[%c0_131, %c0_132] : memref<128x512xbf16, #tpu.memory_space<vmem>>, vector<128x512xbf16>
    %cst_133 = arith.constant dense<0.000000e+00> : vector<2x512xf32>
    %488 = tpu.matmul %486, %487, %cst_133 {dimension_numbers = #tpu.dot_dimension_numbers<[1], [0], [0], [1], [0, 0, 1, 1], [], []>} : vector<2x128xbf16>, vector<128x512xbf16>, vector<2x512xf32> -> vector<2x512xf32>
    %489 = arith.addf %485, %488 : vector<2x512xf32>
    %490 = vector.extract_strided_slice %489 {offsets = [0, 0], sizes = [2, 384], strides = [1, 1]} : vector<2x512xf32> to vector<2x384xf32>
    %491 = arith.negf %490 : vector<2x384xf32>
    %492 = math.exp %491 : vector<2x384xf32>
    %cst_134 = arith.constant 1.000000e+00 : f32
    %493 = vector.broadcast %cst_134 : f32 to vector<2x384xf32>
    %494 = arith.addf %493, %492 : vector<2x384xf32>
    %495 = arith.divf %493, %494 : vector<2x384xf32>
    %496 = vector.extract_strided_slice %489 {offsets = [0, 384], sizes = [2, 128], strides = [1, 1]} : vector<2x512xf32> to vector<2x128xf32>
    %497 = math.tanh %496 : vector<2x128xf32>
    %498 = vector.extract_strided_slice %495 {offsets = [0, 0], sizes = [2, 128], strides = [1, 1]} : vector<2x384xf32> to vector<2x128xf32>
    %499 = vector.extract_strided_slice %495 {offsets = [0, 128], sizes = [2, 128], strides = [1, 1]} : vector<2x384xf32> to vector<2x128xf32>
    %500 = vector.extract_strided_slice %495 {offsets = [0, 256], sizes = [2, 128], strides = [1, 1]} : vector<2x384xf32> to vector<2x128xf32>
    %501 = arith.mulf %499, %482 : vector<2x128xf32>
    %502 = arith.mulf %498, %497 : vector<2x128xf32>
    %503 = arith.addf %501, %502 : vector<2x128xf32>
    %504 = math.tanh %503 : vector<2x128xf32>
    %505 = arith.mulf %500, %504 : vector<2x128xf32>
    %506 = vector.extract_strided_slice %417 {offsets = [8, 0], sizes = [2, 512], strides = [1, 1]} : vector<16x512xf32> to vector<2x512xf32>
    %507 = arith.truncf %505 : vector<2x128xf32> to vector<2x128xbf16>
    %c0_135 = arith.constant 0 : index
    %c0_136 = arith.constant 0 : index
    %508 = vector.load %arg9[%c0_135, %c0_136] : memref<128x512xbf16, #tpu.memory_space<vmem>>, vector<128x512xbf16>
    %cst_137 = arith.constant dense<0.000000e+00> : vector<2x512xf32>
    %509 = tpu.matmul %507, %508, %cst_137 {dimension_numbers = #tpu.dot_dimension_numbers<[1], [0], [0], [1], [0, 0, 1, 1], [], []>} : vector<2x128xbf16>, vector<128x512xbf16>, vector<2x512xf32> -> vector<2x512xf32>
    %510 = arith.addf %506, %509 : vector<2x512xf32>
    %511 = vector.extract_strided_slice %510 {offsets = [0, 0], sizes = [2, 384], strides = [1, 1]} : vector<2x512xf32> to vector<2x384xf32>
    %512 = arith.negf %511 : vector<2x384xf32>
    %513 = math.exp %512 : vector<2x384xf32>
    %cst_138 = arith.constant 1.000000e+00 : f32
    %514 = vector.broadcast %cst_138 : f32 to vector<2x384xf32>
    %515 = arith.addf %514, %513 : vector<2x384xf32>
    %516 = arith.divf %514, %515 : vector<2x384xf32>
    %517 = vector.extract_strided_slice %510 {offsets = [0, 384], sizes = [2, 128], strides = [1, 1]} : vector<2x512xf32> to vector<2x128xf32>
    %518 = math.tanh %517 : vector<2x128xf32>
    %519 = vector.extract_strided_slice %516 {offsets = [0, 0], sizes = [2, 128], strides = [1, 1]} : vector<2x384xf32> to vector<2x128xf32>
    %520 = vector.extract_strided_slice %516 {offsets = [0, 128], sizes = [2, 128], strides = [1, 1]} : vector<2x384xf32> to vector<2x128xf32>
    %521 = vector.extract_strided_slice %516 {offsets = [0, 256], sizes = [2, 128], strides = [1, 1]} : vector<2x384xf32> to vector<2x128xf32>
    %522 = arith.mulf %520, %503 : vector<2x128xf32>
    %523 = arith.mulf %519, %518 : vector<2x128xf32>
    %524 = arith.addf %522, %523 : vector<2x128xf32>
    %525 = math.tanh %524 : vector<2x128xf32>
    %526 = arith.mulf %521, %525 : vector<2x128xf32>
    %527 = vector.extract_strided_slice %417 {offsets = [10, 0], sizes = [2, 512], strides = [1, 1]} : vector<16x512xf32> to vector<2x512xf32>
    %528 = arith.truncf %526 : vector<2x128xf32> to vector<2x128xbf16>
    %c0_139 = arith.constant 0 : index
    %c0_140 = arith.constant 0 : index
    %529 = vector.load %arg9[%c0_139, %c0_140] : memref<128x512xbf16, #tpu.memory_space<vmem>>, vector<128x512xbf16>
    %cst_141 = arith.constant dense<0.000000e+00> : vector<2x512xf32>
    %530 = tpu.matmul %528, %529, %cst_141 {dimension_numbers = #tpu.dot_dimension_numbers<[1], [0], [0], [1], [0, 0, 1, 1], [], []>} : vector<2x128xbf16>, vector<128x512xbf16>, vector<2x512xf32> -> vector<2x512xf32>
    %531 = arith.addf %527, %530 : vector<2x512xf32>
    %532 = vector.extract_strided_slice %531 {offsets = [0, 0], sizes = [2, 384], strides = [1, 1]} : vector<2x512xf32> to vector<2x384xf32>
    %533 = arith.negf %532 : vector<2x384xf32>
    %534 = math.exp %533 : vector<2x384xf32>
    %cst_142 = arith.constant 1.000000e+00 : f32
    %535 = vector.broadcast %cst_142 : f32 to vector<2x384xf32>
    %536 = arith.addf %535, %534 : vector<2x384xf32>
    %537 = arith.divf %535, %536 : vector<2x384xf32>
    %538 = vector.extract_strided_slice %531 {offsets = [0, 384], sizes = [2, 128], strides = [1, 1]} : vector<2x512xf32> to vector<2x128xf32>
    %539 = math.tanh %538 : vector<2x128xf32>
    %540 = vector.extract_strided_slice %537 {offsets = [0, 0], sizes = [2, 128], strides = [1, 1]} : vector<2x384xf32> to vector<2x128xf32>
    %541 = vector.extract_strided_slice %537 {offsets = [0, 128], sizes = [2, 128], strides = [1, 1]} : vector<2x384xf32> to vector<2x128xf32>
    %542 = vector.extract_strided_slice %537 {offsets = [0, 256], sizes = [2, 128], strides = [1, 1]} : vector<2x384xf32> to vector<2x128xf32>
    %543 = arith.mulf %541, %524 : vector<2x128xf32>
    %544 = arith.mulf %540, %539 : vector<2x128xf32>
    %545 = arith.addf %543, %544 : vector<2x128xf32>
    %546 = math.tanh %545 : vector<2x128xf32>
    %547 = arith.mulf %542, %546 : vector<2x128xf32>
    %548 = vector.extract_strided_slice %417 {offsets = [12, 0], sizes = [2, 512], strides = [1, 1]} : vector<16x512xf32> to vector<2x512xf32>
    %549 = arith.truncf %547 : vector<2x128xf32> to vector<2x128xbf16>
    %c0_143 = arith.constant 0 : index
    %c0_144 = arith.constant 0 : index
    %550 = vector.load %arg9[%c0_143, %c0_144] : memref<128x512xbf16, #tpu.memory_space<vmem>>, vector<128x512xbf16>
    %cst_145 = arith.constant dense<0.000000e+00> : vector<2x512xf32>
    %551 = tpu.matmul %549, %550, %cst_145 {dimension_numbers = #tpu.dot_dimension_numbers<[1], [0], [0], [1], [0, 0, 1, 1], [], []>} : vector<2x128xbf16>, vector<128x512xbf16>, vector<2x512xf32> -> vector<2x512xf32>
    %552 = arith.addf %548, %551 : vector<2x512xf32>
    %553 = vector.extract_strided_slice %552 {offsets = [0, 0], sizes = [2, 384], strides = [1, 1]} : vector<2x512xf32> to vector<2x384xf32>
    %554 = arith.negf %553 : vector<2x384xf32>
    %555 = math.exp %554 : vector<2x384xf32>
    %cst_146 = arith.constant 1.000000e+00 : f32
    %556 = vector.broadcast %cst_146 : f32 to vector<2x384xf32>
    %557 = arith.addf %556, %555 : vector<2x384xf32>
    %558 = arith.divf %556, %557 : vector<2x384xf32>
    %559 = vector.extract_strided_slice %552 {offsets = [0, 384], sizes = [2, 128], strides = [1, 1]} : vector<2x512xf32> to vector<2x128xf32>
    %560 = math.tanh %559 : vector<2x128xf32>
    %561 = vector.extract_strided_slice %558 {offsets = [0, 0], sizes = [2, 128], strides = [1, 1]} : vector<2x384xf32> to vector<2x128xf32>
    %562 = vector.extract_strided_slice %558 {offsets = [0, 128], sizes = [2, 128], strides = [1, 1]} : vector<2x384xf32> to vector<2x128xf32>
    %563 = vector.extract_strided_slice %558 {offsets = [0, 256], sizes = [2, 128], strides = [1, 1]} : vector<2x384xf32> to vector<2x128xf32>
    %564 = arith.mulf %562, %545 : vector<2x128xf32>
    %565 = arith.mulf %561, %560 : vector<2x128xf32>
    %566 = arith.addf %564, %565 : vector<2x128xf32>
    %567 = math.tanh %566 : vector<2x128xf32>
    %568 = arith.mulf %563, %567 : vector<2x128xf32>
    %569 = vector.extract_strided_slice %417 {offsets = [14, 0], sizes = [2, 512], strides = [1, 1]} : vector<16x512xf32> to vector<2x512xf32>
    %570 = arith.truncf %568 : vector<2x128xf32> to vector<2x128xbf16>
    %c0_147 = arith.constant 0 : index
    %c0_148 = arith.constant 0 : index
    %571 = vector.load %arg9[%c0_147, %c0_148] : memref<128x512xbf16, #tpu.memory_space<vmem>>, vector<128x512xbf16>
    %cst_149 = arith.constant dense<0.000000e+00> : vector<2x512xf32>
    %572 = tpu.matmul %570, %571, %cst_149 {dimension_numbers = #tpu.dot_dimension_numbers<[1], [0], [0], [1], [0, 0, 1, 1], [], []>} : vector<2x128xbf16>, vector<128x512xbf16>, vector<2x512xf32> -> vector<2x512xf32>
    %573 = arith.addf %569, %572 : vector<2x512xf32>
    %574 = vector.extract_strided_slice %573 {offsets = [0, 0], sizes = [2, 384], strides = [1, 1]} : vector<2x512xf32> to vector<2x384xf32>
    %575 = arith.negf %574 : vector<2x384xf32>
    %576 = math.exp %575 : vector<2x384xf32>
    %cst_150 = arith.constant 1.000000e+00 : f32
    %577 = vector.broadcast %cst_150 : f32 to vector<2x384xf32>
    %578 = arith.addf %577, %576 : vector<2x384xf32>
    %579 = arith.divf %577, %578 : vector<2x384xf32>
    %580 = vector.extract_strided_slice %573 {offsets = [0, 384], sizes = [2, 128], strides = [1, 1]} : vector<2x512xf32> to vector<2x128xf32>
    %581 = math.tanh %580 : vector<2x128xf32>
    %582 = vector.extract_strided_slice %579 {offsets = [0, 0], sizes = [2, 128], strides = [1, 1]} : vector<2x384xf32> to vector<2x128xf32>
    %583 = vector.extract_strided_slice %579 {offsets = [0, 128], sizes = [2, 128], strides = [1, 1]} : vector<2x384xf32> to vector<2x128xf32>
    %584 = vector.extract_strided_slice %579 {offsets = [0, 256], sizes = [2, 128], strides = [1, 1]} : vector<2x384xf32> to vector<2x128xf32>
    %585 = arith.mulf %583, %566 : vector<2x128xf32>
    %586 = arith.mulf %582, %581 : vector<2x128xf32>
    %587 = arith.addf %585, %586 : vector<2x128xf32>
    %588 = math.tanh %587 : vector<2x128xf32>
    %589 = arith.mulf %584, %588 : vector<2x128xf32>
    %c2_151 = arith.constant 2 : index
    %c0_152 = arith.constant 0 : index
    %c0_153 = arith.constant 0 : index
    %590 = vector.load %arg14[%c2_151, %c0_152, %c0_153] : memref<3x2x128xf32, #tpu.memory_space<vmem>>, vector<1x2x128xf32>
    %591 = vector.shape_cast %590 : vector<1x2x128xf32> to vector<2x128xf32>
    %592 = vector.shape_cast %589 : vector<2x128xf32> to vector<1x2x128xf32>
    tpu.vector_store %arg14[%c2_151, %c0_152, %c0_153], %592 {strides = array<i32>} : memref<3x2x128xf32, #tpu.memory_space<vmem>>, vector<1x2x128xf32>,
    %c2_154 = arith.constant 2 : index
    %c0_155 = arith.constant 0 : index
    %c0_156 = arith.constant 0 : index
    %593 = vector.load %arg15[%c2_154, %c0_155, %c0_156] : memref<3x2x128xf32, #tpu.memory_space<vmem>>, vector<1x2x128xf32>
    %594 = vector.shape_cast %593 : vector<1x2x128xf32> to vector<2x128xf32>
    %595 = vector.shape_cast %587 : vector<2x128xf32> to vector<1x2x128xf32>
    tpu.vector_store %arg15[%c2_154, %c0_155, %c0_156], %595 {strides = array<i32>} : memref<3x2x128xf32, #tpu.memory_space<vmem>>, vector<1x2x128xf32>,
    %596 = arith.truncf %589 : vector<2x128xf32> to vector<2x128xbf16>
    %c0_157 = arith.constant 0 : index
    %c0_158 = arith.constant 0 : index
    %597 = vector.load %arg11[%c0_157, %c0_158] : memref<128x128xbf16, #tpu.memory_space<vmem>>, vector<128x128xbf16>
    %cst_159 = arith.constant dense<0.000000e+00> : vector<2x128xf32>
    %598 = tpu.matmul %596, %597, %cst_159 {dimension_numbers = #tpu.dot_dimension_numbers<[1], [0], [0], [1], [0, 0, 1, 1], [], []>} : vector<2x128xbf16>, vector<128x128xbf16>, vector<2x128xf32> -> vector<2x128xf32>
    %c0_160 = arith.constant 0 : index
    %c0_161 = arith.constant 0 : index
    %599 = vector.load %arg12[%c0_160, %c0_161] : memref<1x128xf32, #tpu.memory_space<vmem>>, vector<1x128xf32>
    %600 = vector.broadcast %599 : vector<1x128xf32> to vector<2x128xf32>
    %601 = arith.addf %598, %600 : vector<2x128xf32>
    %c0_162 = arith.constant 0 : index
    %c0_163 = arith.constant 0 : index
    %602 = vector.load %arg13[%c0_162, %c0_163] : memref<2x128xf32, #tpu.memory_space<vmem>>, vector<2x128xf32>
    tpu.vector_store %arg13[%c0_162, %c0_163], %601 {strides = array<i32>} : memref<2x128xf32, #tpu.memory_space<vmem>>, vector<2x128xf32>,
    return
  }
}

</mosaic_0001>

<bundles_post_ra>
// kernel: sentiment_rnn_forward.1
= control target key start
LH: loop header
LB: loop body
LE: loop exit
PB: predicated region body
PF: predicated region fallthrough
CT: control target
= control target key end

     0   :  { %21 = vsyncpa [#allocation5], 0  ;;  %s8316_s0 = inlined_call_operand.vmem [shape: s32[16], index: 0, kind: input, shape index: {}]   ;;  %s8317_s1 = inlined_call_operand.hbm [shape: f32[512,512], index: 1, kind: input, shape index: {}]   ;;  %s8318_s2 = inlined_call_operand.vmem [shape: f32[3,2,128], index: 2, kind: input, shape index: {}]   ;;  %s8319_s3 = inlined_call_operand.hbm [shape: f32[3,2,128], index: 3, kind: input, shape index: {}]   ;;  %s8320_s4 = inlined_call_operand.hbm [shape: bf16[128,512], index: 4, kind: input, shape index: {}]   ;;  %s8321_s5 = inlined_call_operand.hbm [shape: bf16[128,512], index: 5, kind: input, shape index: {}]   ;;  %s8322_s6 = inlined_call_operand.hbm [shape: bf16[128,512], index: 6, kind: input, shape index: {}]   ;;  %s8323_s7 = inlined_call_operand.hbm [shape: f32[1,512], index: 7, kind: input, shape index: {}]   ;;  %s8324_s8 = inlined_call_operand.hbm [shape: bf16[128,512], index: 8, kind: input, shape index: {}]   ;;  %s8325_s9 = inlined_call_operand.hbm [shape: bf16[128,512], index: 9, kind: input, shape index: {}]   ;;  %s8326_s10 = inlined_call_operand.hbm [shape: f32[1,512], index: 10, kind: input, shape index: {}]   ;;  %s8327_s11 = inlined_call_operand.hbm [shape: bf16[128,128], index: 11, kind: input, shape index: {}]   ;;  %s8328_s12 = inlined_call_operand.vmem [shape: f32[1,128], index: 12, kind: input, shape index: {}]   ;;  %s8329_s13 = inlined_call_operand.hbm [shape: f32[2,128], index: 13, kind: output, shape index: {0}]   ;;  %s8330_s14 = inlined_call_operand.hbm [shape: f32[3,2,128], index: 14, kind: output, shape index: {1}]   ;;  %s8331_s15 = inlined_call_operand.hbm [shape: f32[3,2,128], index: 15, kind: output, shape index: {2}]  }
   0x1   :  { %22 = vsyncpa [#allocation3], 0 }
   0x2   :  { %23 = vsyncpa [#allocation8], 0 }
   0x3   :  { %24 = vsyncpa [#allocation11], 0 }
   0x4   :  { %25 = vsyncpa [#allocation14], 0 }
   0x5   :  { %26 = vsyncpa [#allocation17], 0 }
   0x6   :  { %27 = vsyncpa [#allocation20], 0 }
   0x7   :  { %28 = vsyncpa [#allocation4], 0  ;;  %s58_s20 = sshll.u32 %s8319_s3, 4  ;;  %s59_s20 = int_to_ptr.hbm [resolvable:$true] %s58_s20 }
   0x8   :  { %29 = vsyncpa [#allocation23], 0  ;;  %s6711_s21 = smov [#allocation7]   ;;  %s6712_s23 = smov 32  }
   0x9   :  { %s60_s22 = sshll.u32 %s6711_s21, 4  ;;  %s6713_s24 = smov 2   ;;  %s61_s22 = int_to_ptr.vmem [resolvable:$true] %s60_s22 }
   0xa   :  { %66 = dma.hbm_to_vmem [thread:$0]  %s59_s20, 96, %s61_s22, [#allocation8], %s6712_s23, %s6712_s23, %s6713_s24  }
   0xb   :  { %s84_s27 = sshll.u32 %s8321_s5, 4  ;;  %s6714_s28 = smov [#allocation10]   ;;  %s85_s27 = int_to_ptr.hbm [resolvable:$true] %s84_s27 }
   0xc   :  { %s86_s29 = sshll.u32 %s6714_s28, 4  ;;  %s111_s16 = sshll.u32 %s8323_s7, 4  ;;  %s87_s29 = int_to_ptr.vmem [resolvable:$true] %s86_s29  ;;  %s112_s16 = int_to_ptr.hbm [resolvable:$true] %s111_s16 }
   0xd   :  { %s6715_s17 = smov 256   ;;  %s6716_s18 = smov 16  }
   0xe   :  { %92 = dma.hbm_to_vmem [thread:$0]  %s85_s27, 4096, %s87_s29, [#allocation11], %s6715_s17, %s6715_s17, %s6716_s18  }
   0xf   :  { %s134_s21 = sshll.u32 %s8325_s9, 4  ;;  %s6717_s5 = smov [#allocation13]   ;;  %s135_s21 = int_to_ptr.hbm [resolvable:$true] %s134_s21 }
  0x10   :  { %s113_s22 = sshll.u32 %s6717_s5, 4  ;;  %s6718_s25 = smov [#allocation16]   ;;  %s114_s22 = int_to_ptr.vmem [resolvable:$true] %s113_s22 }
  0x11   :  { %116 = dma.hbm_to_vmem [thread:$0]  %s112_s16, 64, %s114_s22, [#allocation14]  }
  0x12   :  { %s136_s26 = sshll.u32 %s6718_s25, 4  ;;  %s35_s30 = sshll.u32 %s8316_s0, 4  ;;  %s137_s26 = int_to_ptr.vmem [resolvable:$true] %s136_s26  ;;  %s36_s30 = int_to_ptr.vmem [resolvable:$true] %s35_s30 }
  0x13   :  { %142 = dma.hbm_to_vmem [thread:$0]  %s135_s21, 4096, %s137_s26, [#allocation17], %s6715_s17, %s6715_s17, %s6716_s18  }
  0x14   :  { %s43_s9 = sshll.u32 %s8317_s1, 4  ;;  %s6719_s3 = smov [#allocation2]   ;;  %s44_s9 = int_to_ptr.hbm [resolvable:$true] %s43_s9 }
  0x15   :  { %38 = dma.vmem_to_smem %s36_s30, 16, %s6719_s3, [#allocation5]  }
  0x16   :  { %s6720_s16 = smov [#allocation6]   ;;  %s71_s0 = sshll.u32 %s8320_s4, 4  ;;  %s72_s0 = int_to_ptr.hbm [resolvable:$true] %s71_s0 }
  0x17   :  { %s45_s19 = sshll.u32 %s6720_s16, 4  ;;  %s6721_s22 = smov 512   ;;  %s46_s19 = int_to_ptr.vmem [resolvable:$true] %s45_s19 }
  0x18   :  { %51 = dma.hbm_to_vmem [thread:$0]  %s44_s9, 32768, %s46_s19, [#allocation3], %s6721_s22, %s6721_s22, %s6712_s23  }
  0x19   :  { %s6722_s25 = smov [#allocation9]   ;;  %s97_s1 = sshll.u32 %s8322_s6, 4  ;;  %s98_s1 = int_to_ptr.hbm [resolvable:$true] %s97_s1 }
  0x1a   :  { %s73_s21 = sshll.u32 %s6722_s25, 4  ;;  %s121_s4 = sshll.u32 %s8324_s8, 4  ;;  %s74_s21 = int_to_ptr.vmem [resolvable:$true] %s73_s21  ;;  %s122_s4 = int_to_ptr.hbm [resolvable:$true] %s121_s4 }
  0x1b   :  { %79 = dma.hbm_to_vmem [thread:$0]  %s72_s0, 4096, %s74_s21, [#allocation8], %s6715_s17, %s6715_s17, %s6716_s18  }
  0x1c   :  { %s6723_s27 = smov [#allocation12]   ;;  %s6724_s9 = smov [#allocation15]  }
  0x1d   :  { %s99_s29 = sshll.u32 %s6723_s27, 4  ;;  %s123_s6 = sshll.u32 %s6724_s9, 4  ;;  %s100_s29 = int_to_ptr.vmem [resolvable:$true] %s99_s29  ;;  %s124_s6 = int_to_ptr.vmem [resolvable:$true] %s123_s6 }
  0x1e   :  { %105 = dma.hbm_to_vmem [thread:$0]  %s98_s1, 4096, %s100_s29, [#allocation11], %s6715_s17, %s6715_s17, %s6716_s18  }
  0x1f   :  { %s148_s19 = sshll.u32 %s8326_s10, 4  ;;  %s158_s5 = sshll.u32 %s8327_s11, 4  ;;  %s149_s19 = int_to_ptr.hbm [resolvable:$true] %s148_s19  ;;  %s159_s5 = int_to_ptr.hbm [resolvable:$true] %s158_s5 }
  0x20   :  { %129 = dma.hbm_to_vmem [thread:$0]  %s122_s4, 4096, %s124_s6, [#allocation14], %s6715_s17, %s6715_s17, %s6716_s18  }
  0x21   :  { %s6725_s0 = smov [#allocation18]   ;;  %s6726_s25 = smov [#allocation19]  }
  0x22   :  { %s150_s22 = sshll.u32 %s6725_s0, 4  ;;  %s160_s21 = sshll.u32 %s6726_s25, 4  ;;  %s151_s22 = int_to_ptr.vmem [resolvable:$true] %s150_s22  ;;  %s161_s21 = int_to_ptr.vmem [resolvable:$true] %s160_s21 }
  0x23   :  { %153 = dma.hbm_to_vmem [thread:$0]  %s149_s19, 64, %s151_s22, [#allocation17]  }
  0x24   :  { %s6727_s26 = smov 64   ;;  %s6728_s10 = smov 4  }
  0x25   :  { %166 = dma.hbm_to_vmem [thread:$0]  %s159_s5, 1024, %s161_s21, [#allocation20], %s6727_s26, %s6727_s26, %s6728_s10  }
  0x26   :  { %6693 = dma.done.wait [#allocation5], 16  }
  0x27   :  { %6694 = vsyncadd [#allocation5], 4294967280 }
  0x28   :  { %6695 = dma.done.wait [#allocation3], 32768  }
  0x29   :  { %6696 = vsyncadd [#allocation3], 4294934528 }
  0x2a   :  { %6697 = dma.done.wait [#allocation8], 4192  }
  0x2b   :  { %6698 = vsyncadd [#allocation8], 4294963104 }
  0x2c   :  { %6699 = dma.done.wait [#allocation11], 8192  }
  0x2d   :  { %6700 = vsyncadd [#allocation11], 4294959104 }
  0x2e   :  { %6701 = dma.done.wait [#allocation14], 4160  }
  0x2f   :  { %6702 = vsyncadd [#allocation14], 4294963136 }
  0x30   :  { %6703 = dma.done.wait [#allocation17], 4160  }
  0x31   :  { %6704 = vsyncadd [#allocation17], 4294963136 }
  0x32   :  { %6705 = dma.done.wait [#allocation20], 1024  }
  0x33   :  { %6706 = vsyncadd [#allocation20], 4294966272 }
  0x34   :  { %213 = sfence }
  0x35   :  { %v5147_v0 = vld [vmem:[#allocation9 + $0xe0] sm:$0xf]  ;;  %v5825_v1 = vld [vmem:[#allocation9 + $0xec] sm:$0xf0]  ;;  %v5823_v2 = vld [vmem:[#allocation9 + $0xe4] sm:$0xf] }
  0x36   :  { %v6864_v3 = vor.u32 %v5825_v1, %v5147_v0  ;;  %v5149_v4 = vld [vmem:[#allocation9 + $0xf0] sm:$0xf0]  ;;  %v5155_v5 = vld [vmem:[#allocation9 + $0xe8] sm:$0xf]  ;;  %v5826_v6 = vld [vmem:[#allocation9 + $0xf4] sm:$0xf0] }
  0x37   :  { %v6866_v7 = vor.u32 %v5823_v2, %v5149_v4  ;;  %v6868_v8 = vor.u32 %v5826_v6, %v5155_v5  ;;  %v5131_v9 = vld [vmem:[#allocation9 + $0xc0] sm:$0xf]  ;;  %v5821_v10 = vld [vmem:[#allocation9 + $0xcc] sm:$0xf0]  ;;  %v5819_v11 = vld [vmem:[#allocation9 + $0xc4] sm:$0xf] }
  0x38   :  { %746 = vmatpush.bf16.msra.mxu0 %v6864_v3  ;;  %v6871_v12 = vor.u32 %v5821_v10, %v5131_v9  ;;  %v5133_v13 = vld [vmem:[#allocation9 + $0xd0] sm:$0xf0]  ;;  %v5139_v14 = vld [vmem:[#allocation9 + $0xc8] sm:$0xf]  ;;  %v5822_v15 = vld [vmem:[#allocation9 + $0xd4] sm:$0xf0] }
  0x39   :  { %759 = vmatpush.bf16.msra.mxu1 %v6866_v7  ;;  %772 = vmatpush.bf16.msra.mxu2 %v6868_v8  ;;  %v6875_v16 = vor.u32 %v5819_v11, %v5133_v13  ;;  %v6877_v17 = vor.u32 %v5822_v15, %v5139_v14  ;;  %v5824_v18 = vld [vmem:[#allocation9 + $0xec] sm:$0xf]  ;;  %v5157_v19 = vld [vmem:[#allocation9 + $0xf8] sm:$0xf0]  ;;  %v5115_v20 = vld [vmem:[#allocation9 + $0xa0] sm:$0xf] }
  0x3a   :  { %v6879_v21 = vor.u32 %v5824_v18, %v5157_v19  ;;  %v5817_v22 = vld [vmem:[#allocation9 + $0xac] sm:$0xf0]  ;;  %v5815_v23 = vld [vmem:[#allocation9 + $0xa4] sm:$0xf]  ;;  %v5117_v24 = vld [vmem:[#allocation9 + $0xb0] sm:$0xf0] }
  0x3b   :  { %v5123_v25 = vld [vmem:[#allocation9 + $0xa8] sm:$0xf]  ;;  %v5818_v26 = vld [vmem:[#allocation9 + $0xb4] sm:$0xf0]  ;;  %v5820_v27 = vld [vmem:[#allocation9 + $0xcc] sm:$0xf]  ;;  %v6883_v28 = vor.u32 %v5817_v22, %v5115_v20  ;;  %v6887_v32 = vor.u32 %v5815_v23, %v5117_v24 }
  0x3c   :  { %747 = vmatpush.bf16.msra.mxu0 %v6871_v12  ;;  %785 = vmatpush.bf16.msra.mxu3 %v6879_v21  ;;  %v5141_v29 = vld [vmem:[#allocation9 + $0xd8] sm:$0xf0]  ;;  %v5099_v30 = vld [vmem:[#allocation9 + $0x80] sm:$0xf]  ;;  %v5813_v31 = vld [vmem:[#allocation9 + $0x8c] sm:$0xf0]  ;;  %v6889_v33 = vor.u32 %v5818_v26, %v5123_v25 }
  0x3d   :  { %760 = vmatpush.bf16.msra.mxu1 %v6875_v16  ;;  %773 = vmatpush.bf16.msra.mxu2 %v6877_v17  ;;  %v6891_v34 = vor.u32 %v5820_v27, %v5141_v29  ;;  %v5811_v35 = vld [vmem:[#allocation9 + $0x84] sm:$0xf]  ;;  %v5101_v36 = vld [vmem:[#allocation9 + $0x90] sm:$0xf0]  ;;  %v5107_v37 = vld [vmem:[#allocation9 + $0x88] sm:$0xf]  ;;  %v6895_v41 = vor.u32 %v5813_v31, %v5099_v30 }
  0x3e   :  { %v5814_v38 = vld [vmem:[#allocation9 + $0x94] sm:$0xf0]  ;;  %v5816_v39 = vld [vmem:[#allocation9 + $0xac] sm:$0xf]  ;;  %v5125_v40 = vld [vmem:[#allocation9 + $0xb8] sm:$0xf0]  ;;  %v6901_v45 = vor.u32 %v5811_v35, %v5101_v36 }
  0x3f   :  { %v6897_v42 = vor.u32 %v5816_v39, %v5125_v40  ;;  %v5083_v43 = vld [vmem:[#allocation9 + $0x60] sm:$0xf]  ;;  %v5809_v44 = vld [vmem:[#allocation9 + $0x6c] sm:$0xf0]  ;;  %v6903_v46 = vor.u32 %v5814_v38, %v5107_v37  ;;  %v5807_v47 = vld [vmem:[#allocation9 + $0x64] sm:$0xf] }
  0x40   :  { %748 = vmatpush.bf16.msra.mxu0 %v6883_v28  ;;  %786 = vmatpush.bf16.msra.mxu3 %v6891_v34  ;;  %v5812_v48 = vld [vmem:[#allocation9 + $0x8c] sm:$0xf]  ;;  %v5109_v49 = vld [vmem:[#allocation9 + $0x98] sm:$0xf0]  ;;  %v5085_v50 = vld [vmem:[#allocation9 + $0x70] sm:$0xf0]  ;;  %v6907_v53 = vor.u32 %v5809_v44, %v5083_v43 }
  0x41   :  { %761 = vmatpush.bf16.msra.mxu1 %v6887_v32  ;;  %774 = vmatpush.bf16.msra.mxu2 %v6889_v33  ;;  %v5091_v51 = vld [vmem:[#allocation9 + $0x68] sm:$0xf]  ;;  %v5810_v52 = vld [vmem:[#allocation9 + $0x74] sm:$0xf0]  ;;  %v6909_v54 = vor.u32 %v5812_v48, %v5109_v49  ;;  %v5067_v55 = vld [vmem:[#allocation9 + $0x40] sm:$0xf]  ;;  %v6913_v57 = vor.u32 %v5807_v47, %v5085_v50 }
  0x42   :  { %v5805_v56 = vld [vmem:[#allocation9 + $0x4c] sm:$0xf0]  ;;  %v6915_v58 = vor.u32 %v5810_v52, %v5091_v51  ;;  %v5803_v59 = vld [vmem:[#allocation9 + $0x44] sm:$0xf]  ;;  %v5808_v60 = vld [vmem:[#allocation9 + $0x6c] sm:$0xf] }
  0x43   :  { %v5093_v61 = vld [vmem:[#allocation9 + $0x78] sm:$0xf0]  ;;  %v5069_v62 = vld [vmem:[#allocation9 + $0x50] sm:$0xf0]  ;;  %v5075_v63 = vld [vmem:[#allocation9 + $0x48] sm:$0xf]  ;;  %v6919_v1 = vor.u32 %v5805_v56, %v5067_v55 }
  0x44   :  { %749 = vmatpush.bf16.msra.mxu0 %v6895_v41  ;;  %787 = vmatpush.bf16.msra.mxu3 %v6897_v42  ;;  %v5806_v0 = vld [vmem:[#allocation9 + $0x54] sm:$0xf0]  ;;  %v6921_v2 = vor.u32 %v5808_v60, %v5093_v61  ;;  %v5051_v4 = vld [vmem:[#allocation9 + $0x20] sm:$0xf]  ;;  %v5801_v5 = vld [vmem:[#allocation9 + $0x2c] sm:$0xf0]  ;;  %v6925_v6 = vor.u32 %v5803_v59, %v5069_v62 }
  0x45   :  { %762 = vmatpush.bf16.msra.mxu1 %v6901_v45  ;;  %775 = vmatpush.bf16.msra.mxu2 %v6903_v46  ;;  %v6927_v9 = vor.u32 %v5806_v0, %v5075_v63  ;;  %v5799_v10 = vld [vmem:[#allocation9 + $0x24] sm:$0xf]  ;;  %v5804_v11 = vld [vmem:[#allocation9 + $0x4c] sm:$0xf]  ;;  %v5077_v13 = vld [vmem:[#allocation9 + $0x58] sm:$0xf0]  ;;  %v6931_v19 = vor.u32 %v5801_v5, %v5051_v4 }
  0x46   :  { %v5053_v14 = vld [vmem:[#allocation9 + $0x30] sm:$0xf0]  ;;  %v5059_v15 = vld [vmem:[#allocation9 + $0x28] sm:$0xf]  ;;  %v5802_v18 = vld [vmem:[#allocation9 + $0x34] sm:$0xf0]  ;;  %v6933_v20 = vor.u32 %v5804_v11, %v5077_v13 }
  0x47   :  { %v5035_v22 = vld [vmem:[#allocation9] sm:$0xf]  ;;  %v5797_v23 = vld [vmem:[#allocation9 + $0xc] sm:$0xf0]  ;;  %v6937_v24 = vor.u32 %v5799_v10, %v5053_v14  ;;  %v6939_v25 = vor.u32 %v5802_v18, %v5059_v15  ;;  %v5795_v26 = vld [vmem:[#allocation9 + $0x4] sm:$0xf] }
  0x48   :  { %750 = vmatpush.bf16.msra.mxu0 %v6907_v53  ;;  %788 = vmatpush.bf16.msra.mxu3 %v6909_v54  ;;  %v5800_v27 = vld [vmem:[#allocation9 + $0x2c] sm:$0xf]  ;;  %v5061_v29 = vld [vmem:[#allocation9 + $0x38] sm:$0xf0]  ;;  %v5037_v30 = vld [vmem:[#allocation9 + $0x10] sm:$0xf0]  ;;  %v6943_v36 = vor.u32 %v5797_v23, %v5035_v22 }
  0x49   :  { %763 = vmatpush.bf16.msra.mxu1 %v6913_v57  ;;  %776 = vmatpush.bf16.msra.mxu2 %v6915_v58  ;;  %v5043_v31 = vld [vmem:[#allocation9 + $0x8] sm:$0xf]  ;;  %v5798_v35 = vld [vmem:[#allocation9 + $0x14] sm:$0xf0]  ;;  %v6948_v38 = vor.u32 %v5800_v27, %v5061_v29  ;;  %v6952_v39 = vor.u32 %v5795_v26, %v5037_v30  ;;  %v5796_v43 = vld [vmem:[#allocation9 + $0xc] sm:$0xf] }
  0x4a   :  { %v551_v37 = vld [vmem:[%s8318_s2] sm:$0x3]  ;;  %v6954_v40 = vor.u32 %v5798_v35, %v5043_v31  ;;  %v5045_v44 = vld [vmem:[#allocation9 + $0x18] sm:$0xf0]  ;;  %s214_s18 = sld [smem:[#allocation2]]  ;;  %vm252_vm0 = vcmask 1040384  }
  0x4b   :  { %v553_v47 = vpack.c.bf16 %v551_v37, %v551_v37  ;;  %v6960_v48 = vor.u32 %v5796_v43, %v5045_v44  ;;  %s4988_s7 = sld [smem:[#allocation2 + $0x8]] }
  0x4c   :  { %751 = vmatpush.bf16.msra.mxu0 %v6919_v1  ;;  %789 = vmatpush.bf16.msra.mxu3 %v6921_v2  ;;  %s4991_s19 = sld [smem:[#allocation2 + $0x1]] }
  0x4d   :  { %764 = vmatpush.bf16.msra.mxu1 %v6925_v6  ;;  %777 = vmatpush.bf16.msra.mxu2 %v6927_v9  ;;  %s4994_s8 = sld [smem:[#allocation2 + $0x9]] }
  0x50   :  { %752 = vmatpush.bf16.msra.mxu0 %v6931_v19  ;;  %790 = vmatpush.bf16.msra.mxu3 %v6933_v20  ;;  %s215_s1 = sshra.s32 %s214_s18, 3  ;;  %s218_s30 = sand.u32 7, %s214_s18 }
  0x51   :  { %765 = vmatpush.bf16.msra.mxu1 %v6937_v24  ;;  %778 = vmatpush.bf16.msra.mxu2 %v6939_v25  ;;  %s225_s28 = sshra.s32 %s4988_s7, 3  ;;  %s5779_s4 = sshll.u32 %s215_s1, 5 }
  0x52   :  { %s228_s27 = sand.u32 7, %s4988_s7  ;;  %s5780_s29 = sshll.u32 %s225_s28, 5 }
  0x53   :  { %s221_s9 = sadd.s32 %s5779_s4, %s218_s30  ;;  %s231_s6 = sadd.s32 %s5780_s29, %s228_s27 }
  0x54   :  { %753 = vmatpush.bf16.msra.mxu0 %v6943_v36  ;;  %791 = vmatpush.bf16.msra.mxu3 %v6948_v38  ;;  %s222_s3 = scalar_lea.vmem [#allocation6], %s221_s9  ;;  %s232_s16 = scalar_lea.vmem [#allocation6], %s231_s6 }
  0x55   :  { %766 = vmatpush.bf16.msra.mxu1 %v6952_v39  ;;  %779 = vmatpush.bf16.msra.mxu2 %v6954_v40  ;;  %v223_v49 = vld [vmem:[%s222_s3] ss:$8 sm:$0xf]  ;;  %s258_s20 = sshra.s32 %s4991_s19, 3  ;;  %s268_s5 = sshra.s32 %s4994_s8, 3 }
  0x56   :  { %v233_v50 = vld [vmem:[%s232_s16] ss:$8 sm:$0xf]  ;;  %v235_v51 = vperm.slane %v223_v49, 0  ;;  %v236_v55 = vperm.slane %v223_v49, 1  ;;  %v237_v0 = vperm.slane %v223_v49, 2 }
  0x57   :  { %754 = vmatmul.bf16.vlgmr.msra.gmra.mxu0 %v553_v47  ;;  %v244_v52 = vperm.slane %v233_v50, 0  ;;  %v245_v56 = vperm.slane %v233_v50, 1  ;;  %v246_v4 = vperm.slane %v233_v50, 2  ;;  %v238_v27 = vperm.slane %v223_v49, 3  ;;  %s261_s0 = sand.u32 7, %s4991_s19  ;;  %s5781_s22 = sshll.u32 %s258_s20, 5 }
  0x58   :  { %866 = vmatpush.bf16.msrb.mxu0 %v6864_v3  ;;  %767 = vmatmul.bf16.vlgmr.msra.gmra.mxu1 %v553_v47  ;;  %v247_v29 = vperm.slane %v233_v50, 3  ;;  %s271_s25 = sand.u32 7, %s4994_s8  ;;  %s5782_s21 = sshll.u32 %s268_s5, 5 }
  0x59   :  { %879 = vmatpush.bf16.msrb.mxu1 %v6866_v7  ;;  %892 = vmatpush.bf16.msrb.mxu2 %v6868_v8  ;;  %v253_v59 = vsel %vm252_vm0, %v235_v51, %v244_v52  ;;  %v254_v60 = vsel %vm252_vm0, %v236_v55, %v245_v56  ;;  %v255_v13 = vsel %vm252_vm0, %v237_v0, %v246_v4  ;;  %s264_s26 = sadd.s32 %s5781_s22, %s261_s0  ;;  %s274_s10 = sadd.s32 %s5782_s21, %s271_s25 }
  0x5a   :  { %780 = vmatmul.bf16.vlgmr.msra.gmra.mxu2 %v553_v47  ;;  %792 = vmatpush.bf16.msra.mxu3 %v6960_v48  ;;  %v256_v43 = vsel %vm252_vm0, %v238_v27, %v247_v29  ;;  %s265_s11 = scalar_lea.vmem [#allocation6], %s264_s26  ;;  %s275_s17 = scalar_lea.vmem [#allocation6], %s274_s10 }
  0x5b   :  { %s4997_s18 = sld [smem:[#allocation2 + $0x2]] }
  0x5c   :  { %867 = vmatpush.bf16.msrb.mxu0 %v6871_v12  ;;  %s5000_s7 = sld [smem:[#allocation2 + $0xa]] }
  0x5d   :  { %880 = vmatpush.bf16.msrb.mxu1 %v6875_v16  ;;  %893 = vmatpush.bf16.msrb.mxu2 %v6877_v17  ;;  %s5003_s19 = sld [smem:[#allocation2 + $0x3]] }
  0x5e   :  { %905 = vmatpush.bf16.msrb.mxu3 %v6879_v21  ;;  %s5006_s8 = sld [smem:[#allocation2 + $0xb]] }
  0x5f   :  { %793 = vmatmul.bf16.vlgmr.msra.gmra.mxu3 %v553_v47 }
  0x60   :  { %868 = vmatpush.bf16.msrb.mxu0 %v6883_v28 }
  0x61   :  { %881 = vmatpush.bf16.msrb.mxu1 %v6887_v32  ;;  %894 = vmatpush.bf16.msrb.mxu2 %v6889_v33  ;;  %s300_s1 = sshra.s32 %s4997_s18, 3  ;;  %s303_s30 = sand.u32 7, %s4997_s18 }
  0x62   :  { %906 = vmatpush.bf16.msrb.mxu3 %v6891_v34  ;;  %s310_s28 = sshra.s32 %s5000_s7, 3  ;;  %s5783_s4 = sshll.u32 %s300_s1, 5 }
  0x63   :  { %s313_s27 = sand.u32 7, %s5000_s7  ;;  %s5784_s29 = sshll.u32 %s310_s28, 5 }
  0x64   :  { %869 = vmatpush.bf16.msrb.mxu0 %v6895_v41  ;;  %s306_s9 = sadd.s32 %s5783_s4, %s303_s30  ;;  %s316_s6 = sadd.s32 %s5784_s29, %s313_s27 }
  0x65   :  { %882 = vmatpush.bf16.msrb.mxu1 %v6901_v45  ;;  %895 = vmatpush.bf16.msrb.mxu2 %v6903_v46  ;;  %s307_s3 = scalar_lea.vmem [#allocation6], %s306_s9  ;;  %s317_s16 = scalar_lea.vmem [#allocation6], %s316_s6 }
  0x66   :  { %907 = vmatpush.bf16.msrb.mxu3 %v6897_v42  ;;  %s342_s20 = sshra.s32 %s5003_s19, 3  ;;  %s352_s5 = sshra.s32 %s5006_s8, 3 }
  0x67   :  { %s345_s0 = sand.u32 7, %s5003_s19  ;;  %s5785_s22 = sshll.u32 %s342_s20, 5 }
  0x68   :  { %870 = vmatpush.bf16.msrb.mxu0 %v6907_v53  ;;  %s355_s25 = sand.u32 7, %s5006_s8  ;;  %s5786_s21 = sshll.u32 %s352_s5, 5 }
  0x69   :  { %883 = vmatpush.bf16.msrb.mxu1 %v6913_v57  ;;  %896 = vmatpush.bf16.msrb.mxu2 %v6915_v58  ;;  %s348_s26 = sadd.s32 %s5785_s22, %s345_s0  ;;  %s358_s10 = sadd.s32 %s5786_s21, %s355_s25 }
  0x6a   :  { %908 = vmatpush.bf16.msrb.mxu3 %v6909_v54  ;;  %s5009_s18 = sld [smem:[#allocation2 + $0x4]] }
  0x6b   :  { %s5012_s7 = sld [smem:[#allocation2 + $0xc]] }
  0x6c   :  { %871 = vmatpush.bf16.msrb.mxu0 %v6919_v1  ;;  %s5015_s19 = sld [smem:[#allocation2 + $0x5]] }
  0x6d   :  { %884 = vmatpush.bf16.msrb.mxu1 %v6925_v6  ;;  %897 = vmatpush.bf16.msrb.mxu2 %v6927_v9  ;;  %s5018_s8 = sld [smem:[#allocation2 + $0xd]] }
  0x6e   :  { %909 = vmatpush.bf16.msrb.mxu3 %v6921_v2 }
  0x70   :  { %872 = vmatpush.bf16.msrb.mxu0 %v6931_v19  ;;  %s384_s1 = sshra.s32 %s5009_s18, 3  ;;  %s387_s30 = sand.u32 7, %s5009_s18 }
  0x71   :  { %885 = vmatpush.bf16.msrb.mxu1 %v6937_v24  ;;  %898 = vmatpush.bf16.msrb.mxu2 %v6939_v25  ;;  %s394_s28 = sshra.s32 %s5012_s7, 3  ;;  %s5787_s4 = sshll.u32 %s384_s1, 5 }
  0x72   :  { %910 = vmatpush.bf16.msrb.mxu3 %v6933_v20  ;;  %s397_s27 = sand.u32 7, %s5012_s7  ;;  %s5788_s29 = sshll.u32 %s394_s28, 5 }
  0x73   :  { %s390_s9 = sadd.s32 %s5787_s4, %s387_s30  ;;  %s400_s6 = sadd.s32 %s5788_s29, %s397_s27 }
  0x74   :  { %873 = vmatpush.bf16.msrb.mxu0 %v6943_v36  ;;  %s426_s20 = sshra.s32 %s5015_s19, 3  ;;  %s436_s5 = sshra.s32 %s5018_s8, 3 }
  0x75   :  { %886 = vmatpush.bf16.msrb.mxu1 %v6952_v39  ;;  %899 = vmatpush.bf16.msrb.mxu2 %v6954_v40  ;;  %s429_s0 = sand.u32 7, %s5015_s19  ;;  %s5789_s22 = sshll.u32 %s426_s20, 5 }
  0x76   :  { %911 = vmatpush.bf16.msrb.mxu3 %v6948_v38  ;;  %s439_s25 = sand.u32 7, %s5018_s8  ;;  %s5790_s21 = sshll.u32 %s436_s5, 5 }
  0x77   :  { %s5021_s18 = sld [smem:[#allocation2 + $0x6]] }
  0x78   :  { %986 = vmatpush.bf16.msra.mxu0 %v6864_v3  ;;  %s5024_s7 = sld [smem:[#allocation2 + $0xe]] }
  0x79   :  { %999 = vmatpush.bf16.msra.mxu1 %v6866_v7  ;;  %1012 = vmatpush.bf16.msra.mxu2 %v6868_v8  ;;  %s7274_s19 = sld [smem:[#allocation2 + $0x7]] }
  0x7a   :  { %912 = vmatpush.bf16.msrb.mxu3 %v6960_v48  ;;  %s7276_s8 = sld [smem:[#allocation2 + $0xf]] }
  0x7c   :  { %987 = vmatpush.bf16.msra.mxu0 %v6871_v12 }
  0x7d   :  { %1000 = vmatpush.bf16.msra.mxu1 %v6875_v16  ;;  %1013 = vmatpush.bf16.msra.mxu2 %v6877_v17  ;;  %s468_s1 = sshra.s32 %s5021_s18, 3  ;;  %s471_s30 = sand.u32 7, %s5021_s18 }
  0x7e   :  { %1025 = vmatpush.bf16.msra.mxu3 %v6879_v21  ;;  %s478_s28 = sshra.s32 %s5024_s7, 3  ;;  %s5791_s4 = sshll.u32 %s468_s1, 5 }
  0x7f   :  { %s481_s27 = sand.u32 7, %s5024_s7  ;;  %s5792_s29 = sshll.u32 %s478_s28, 5 }
  0x80   :  { %988 = vmatpush.bf16.msra.mxu0 %v6883_v28  ;;  %s510_s20 = sshra.s32 %s7274_s19, 3  ;;  %s520_s5 = sshra.s32 %s7276_s8, 3 }
  0x81   :  { %1001 = vmatpush.bf16.msra.mxu1 %v6887_v32  ;;  %1014 = vmatpush.bf16.msra.mxu2 %v6889_v33 }
  0x82   :  { %1026 = vmatpush.bf16.msra.mxu3 %v6891_v34 }
  0x84   :  { %989 = vmatpush.bf16.msra.mxu0 %v6895_v41 }
  0x85   :  { %1002 = vmatpush.bf16.msra.mxu1 %v6901_v45  ;;  %1015 = vmatpush.bf16.msra.mxu2 %v6903_v46 }
  0x86   :  { %1027 = vmatpush.bf16.msra.mxu3 %v6897_v42 }
  0x88   :  { %990 = vmatpush.bf16.msra.mxu0 %v6907_v53 }
  0x89   :  { %1003 = vmatpush.bf16.msra.mxu1 %v6913_v57  ;;  %1016 = vmatpush.bf16.msra.mxu2 %v6915_v58 }
  0x8a   :  { %1028 = vmatpush.bf16.msra.mxu3 %v6909_v54 }
  0x8c   :  { %991 = vmatpush.bf16.msra.mxu0 %v6919_v1 }
  0x8d   :  { %1004 = vmatpush.bf16.msra.mxu1 %v6925_v6  ;;  %1017 = vmatpush.bf16.msra.mxu2 %v6927_v9 }
  0x8e   :  { %1029 = vmatpush.bf16.msra.mxu3 %v6921_v2 }
  0x90   :  { %992 = vmatpush.bf16.msra.mxu0 %v6931_v19 }
  0x91   :  { %1005 = vmatpush.bf16.msra.mxu1 %v6937_v24  ;;  %1018 = vmatpush.bf16.msra.mxu2 %v6939_v25 }
  0x92   :  { %1030 = vmatpush.bf16.msra.mxu3 %v6933_v20 }
  0x94   :  { %993 = vmatpush.bf16.msra.mxu0 %v6943_v36 }
  0x95   :  { %1006 = vmatpush.bf16.msra.mxu1 %v6952_v39  ;;  %1019 = vmatpush.bf16.msra.mxu2 %v6954_v40 }
  0x96   :  { %1031 = vmatpush.bf16.msra.mxu3 %v6948_v38 }
  0x9a   :  { %1032 = vmatpush.bf16.msra.mxu3 %v6960_v48 }
  0xd4   :  { %v755_v61 = vpop.f32.mrf.mxu0 }
  0xd5   :  { %v798_v62 = vadd.f32 %v755_v61, %v253_v59  ;;  %v768_v63 = vpop.f32.mrf.mxu1 }
  0xd6   :  { %v799_v5 = vadd.f32 %v768_v63, %v254_v60 }
  0xd7   :  { %v5161_v10 = vmul.f32 -1.442695, %v798_v62 }
  0xd8   :  { %v5162_v11 = vmul.f32 -1.442695, %v799_v5 }
  0xd9   :  { %5985 = vpow2.f32 %v5161_v10 }
  0xda   :  { %5987 = vpow2.f32 %v5162_v11 }
  0xdc   :  { %v757_v18 = vpop.f32.mrf.mxu0 }
  0xdd   :  { %v781_v14 = vpop.f32.mrf.mxu2  ;;  %v770_v22 = vpop.f32.mrf.mxu1 }
  0xde   :  { %v800_v15 = vadd.f32 %v781_v14, %v255_v13 }
  0xdf   :  { %v5986_v26 = vpop.eup %5985 }
  0xe0   :  { %v5163_v23 = vmul.f32 -1.442695, %v800_v15  ;;  %v5988_v31 = vpop.eup %5987  ;;  %v811_v35 = vadd.f32 1.0, %v5986_v26  ;;  %v552_v26 = vld [vmem:[#allocation7] sm:$0x3] }
  0xe1   :  { %v812_v37 = vadd.f32 1.0, %v5988_v31 }
  0xe2   :  { %v794_v30 = vpop.f32.mrf.mxu3  ;;  %5989 = vpow2.f32 %v5163_v23  ;;  %v825_v62 = vand.u32 2147483648, %v811_v35  ;;  %v823_v4 = vand.u32 2147483647, %v811_v35  ;;  %vm819_vm3 = vweird.f32 %v811_v35 }
  0xe3   :  { %5991 = vrcp.f32 %v811_v35  ;;  %v801_v51 = vadd.f32 %v794_v30, %v256_v43  ;;  %v840_v63 = vand.u32 2147483648, %v812_v37  ;;  %v838_v10 = vand.u32 2147483647, %v812_v37 }
  0xe4   :  { %5993 = vrcp.f32 %v812_v37  ;;  %vm834_vm4 = vweird.f32 %v812_v37  ;;  %v826_v18 = vor.u32 1.1754944e-38, %v825_v62  ;;  %vm824_vm7 = vcmp.eq.f32.partialorder %v823_v4, 8.507059e+37 }
  0xe5   :  { %v783_v44 = vpop.f32.mrf.mxu2  ;;  %v841_v23 = vor.u32 1.1754944e-38, %v840_v63  ;;  %vm839_vm8 = vcmp.eq.f32.partialorder %v838_v10, 8.507059e+37  ;;  %v276_v63 = vld [vmem:[%s275_s17] ss:$8 sm:$0xf]  ;;  %s359_s17 = scalar_lea.vmem [#allocation6], %s358_s10  ;;  %s442_s10 = sadd.s32 %s5790_s21, %s439_s25 }
  0xe6   :  { %v287_v4 = vperm.slane %v276_v63, 0  ;;  %v288_v10 = vperm.slane %v276_v63, 1  ;;  %s523_s25 = sand.u32 7, %s7276_s8  ;;  %s5794_s21 = sshll.u32 %s520_s5, 5 }
  0xe8   :  { %v5990_v47 = vpop.eup %5989 }
  0xe9   :  { %v813_v52 = vadd.f32 1.0, %v5990_v47  ;;  %v5992_v56 = vpop.eup %5991 }
  0xea   :  { %v796_v55 = vpop.f32.mrf.mxu3  ;;  %v5994_v59 = vpop.eup %5993  ;;  %v815_v60 = vmul.f32 %v5992_v56, %v811_v35  ;;  %vm820_vm1 = vweird.f32 %v5992_v56 }
  0xeb   :  { %5995 = vrcp.f32 %v813_v52  ;;  %v830_v49 = vmul.f32 %v5994_v59, %v812_v37  ;;  %vm835_vm2 = vweird.f32 %v5994_v59  ;;  %vm821_vm5 = vmor %vm819_vm3, %vm820_vm1  ;;  %v855_v55 = vand.u32 2147483648, %v813_v52 }
  0xec   :  { %5997 = vtanh.f32 %v801_v51  ;;  %v816_v50 = vsub.f32 1.0, %v815_v60  ;;  %vm836_vm6 = vmor %vm834_vm4, %vm835_vm2  ;;  %vm849_vm10 = vweird.f32 %v813_v52  ;;  %v853_v60 = vand.u32 2147483647, %v813_v52 }
  0xed   :  { %v831_v61 = vsub.f32 1.0, %v830_v49  ;;  %v856_v49 = vor.u32 1.1754944e-38, %v855_v55 }
  0xee   :  { %v817_v0 = vmul.f32 %v5992_v56, %v816_v50  ;;  %vm854_vm12 = vcmp.eq.f32.partialorder %v853_v60, 8.507059e+37 }
  0xef   :  { %v832_v5 = vmul.f32 %v5994_v59, %v831_v61 }
  0xf0   :  { %v818_v13 = vadd.f32 %v5992_v56, %v817_v0 }
  0xf1   :  { %v5996_v11 = vpop.eup %5995  ;;  %v833_v22 = vadd.f32 %v5994_v59, %v832_v5 }
  0xf2   :  { %v5998_v14 = vpop.eup %5997  ;;  %v845_v15 = vmul.f32 %v5996_v11, %v813_v52  ;;  %v822_v27 = vsel %vm821_vm5, %v5992_v56, %v818_v13  ;;  %vm850_vm9 = vweird.f32 %v5996_v11  ;;  %v266_v52 = vld [vmem:[%s265_s11] ss:$8 sm:$0xf]  ;;  %s349_s11 = scalar_lea.vmem [#allocation6], %s348_s26  ;;  %s432_s26 = sadd.s32 %s5789_s22, %s429_s0 }
  0xf3   :  { %v827_v30 = vsel %vm824_vm7, %v826_v18, %v822_v27  ;;  %v837_v31 = vsel %vm836_vm6, %v5994_v59, %v833_v22  ;;  %vm851_vm11 = vmor %vm849_vm10, %vm850_vm9  ;;  %v278_v0 = vperm.slane %v266_v52, 0  ;;  %v279_v5 = vperm.slane %v266_v52, 1  ;;  %s513_s0 = sand.u32 7, %s7274_s19  ;;  %s5793_s22 = sshll.u32 %s510_s20, 5 }
  0xf4   :  { %v846_v29 = vsub.f32 1.0, %v845_v15  ;;  %v842_v43 = vsel %vm839_vm8, %v841_v23, %v837_v31  ;;  %v861_v44 = vmul.f32 %v5998_v14, %v827_v30  ;;  %v280_v23 = vperm.slane %v266_v52, 2  ;;  %s4910_s19 = sshll.u32 %s8331_s15, 4  ;;  %s6731_s20 = smov [#allocation21]   ;;  %s4911_s19 = int_to_ptr.hbm [resolvable:$true] %s4910_s19 }
  0xf5   :  { %v860_v51 = vmul.f32 %v842_v43, %v552_v26  ;;  %v296_v13 = vsel %vm252_vm0, %v279_v5, %v288_v10  ;;  %v289_v26 = vperm.slane %v276_v63, 2  ;;  %s4885_s5 = sshll.u32 %s6731_s20, 4  ;;  %s4886_s5 = int_to_ptr.vmem [resolvable:$true] %s4885_s5 }
  0xf6   :  { %v847_v47 = vmul.f32 %v5996_v11, %v846_v29 }
  0xf7   :  { %v7031_v35 = vadd.f32 %v861_v44, %v860_v51  ;;  %v297_v30 = vsel %vm252_vm0, %v280_v23, %v289_v26 }
  0xf8   :  { %v848_v37 = vadd.f32 %v5996_v11, %v847_v47 }
  0xf9   :  { %5999 = vtanh.f32 %v7031_v35 }
  0xfa   :  { %v852_v56 = vsel %vm851_vm11, %v5996_v11, %v848_v37  ;;  %v295_v11 = vsel %vm252_vm0, %v278_v0, %v287_v4 }
  0xfb   :  { %v857_v59 = vsel %vm854_vm12, %v856_v49, %v852_v56 }
  0xff   :  { %v6000_v50 = vpop.eup %5999 }
 0x100   :  { %v7034_v61 = vmul.f32 %v6000_v50, %v857_v59  ;;  %v281_v50 = vperm.slane %v266_v52, 3  ;;  %v290_v59 = vperm.slane %v276_v63, 3 }
 0x102   :  { %v865_v62 = vpack.c.bf16 %v7034_v61, %v7034_v61  ;;  %v298_v4 = vsel %vm252_vm0, %v281_v50, %v290_v59 }
 0x104   :  { %874 = vmatmul.bf16.vlgmr.msrb.gmra.mxu0 %v865_v62  ;;  %887 = vmatmul.bf16.vlgmr.msrb.gmra.mxu1 %v865_v62 }
 0x105   :  { %900 = vmatmul.bf16.vlgmr.msrb.gmra.mxu2 %v865_v62  ;;  %913 = vmatmul.bf16.vlgmr.msrb.gmra.mxu3 %v865_v62 }
 0x106   :  { %1106 = vmatpush.bf16.msrb.mxu0 %v6864_v3  ;;  %1119 = vmatpush.bf16.msrb.mxu1 %v6866_v7 }
 0x107   :  { %1132 = vmatpush.bf16.msrb.mxu2 %v6868_v8  ;;  %1145 = vmatpush.bf16.msrb.mxu3 %v6879_v21 }
 0x10a   :  { %1107 = vmatpush.bf16.msrb.mxu0 %v6871_v12  ;;  %1120 = vmatpush.bf16.msrb.mxu1 %v6875_v16 }
 0x10b   :  { %1133 = vmatpush.bf16.msrb.mxu2 %v6877_v17  ;;  %1146 = vmatpush.bf16.msrb.mxu3 %v6891_v34 }
 0x10e   :  { %1108 = vmatpush.bf16.msrb.mxu0 %v6883_v28  ;;  %1121 = vmatpush.bf16.msrb.mxu1 %v6887_v32 }
 0x10f   :  { %1134 = vmatpush.bf16.msrb.mxu2 %v6889_v33  ;;  %1147 = vmatpush.bf16.msrb.mxu3 %v6897_v42 }
 0x112   :  { %1109 = vmatpush.bf16.msrb.mxu0 %v6895_v41  ;;  %1122 = vmatpush.bf16.msrb.mxu1 %v6901_v45 }
 0x113   :  { %1135 = vmatpush.bf16.msrb.mxu2 %v6903_v46  ;;  %1148 = vmatpush.bf16.msrb.mxu3 %v6909_v54 }
 0x116   :  { %1110 = vmatpush.bf16.msrb.mxu0 %v6907_v53  ;;  %1123 = vmatpush.bf16.msrb.mxu1 %v6913_v57 }
 0x117   :  { %1136 = vmatpush.bf16.msrb.mxu2 %v6915_v58  ;;  %1149 = vmatpush.bf16.msrb.mxu3 %v6921_v2 }
 0x11a   :  { %1111 = vmatpush.bf16.msrb.mxu0 %v6919_v1  ;;  %1124 = vmatpush.bf16.msrb.mxu1 %v6925_v6 }
 0x11b   :  { %1137 = vmatpush.bf16.msrb.mxu2 %v6927_v9  ;;  %1150 = vmatpush.bf16.msrb.mxu3 %v6933_v20 }
 0x11e   :  { %1112 = vmatpush.bf16.msrb.mxu0 %v6931_v19  ;;  %1125 = vmatpush.bf16.msrb.mxu1 %v6937_v24 }
 0x11f   :  { %1138 = vmatpush.bf16.msrb.mxu2 %v6939_v25  ;;  %1151 = vmatpush.bf16.msrb.mxu3 %v6948_v38 }
 0x122   :  { %1113 = vmatpush.bf16.msrb.mxu0 %v6943_v36  ;;  %1126 = vmatpush.bf16.msrb.mxu1 %v6952_v39 }
 0x123   :  { %1139 = vmatpush.bf16.msrb.mxu2 %v6954_v40  ;;  %1152 = vmatpush.bf16.msrb.mxu3 %v6960_v48 }
 0x181   :  { %v875_v14 = vpop.f32.mrf.mxu0  ;;  %v888_v15 = vpop.f32.mrf.mxu1 }
 0x182   :  { %v918_v18 = vadd.f32 %v875_v14, %v295_v11  ;;  %v919_v22 = vadd.f32 %v888_v15, %v296_v13 }
 0x184   :  { %v5164_v27 = vmul.f32 -1.442695, %v918_v18  ;;  %v5165_v29 = vmul.f32 -1.442695, %v919_v22 }
 0x186   :  { %6001 = vpow2.f32 %v5164_v27 }
 0x187   :  { %6003 = vpow2.f32 %v5165_v29 }
 0x188   :  { %v901_v31 = vpop.f32.mrf.mxu2  ;;  %v914_v43 = vpop.f32.mrf.mxu3 }
 0x189   :  { %v920_v44 = vadd.f32 %v901_v31, %v297_v30  ;;  %v877_v47 = vpop.f32.mrf.mxu0  ;;  %v890_v51 = vpop.f32.mrf.mxu1  ;;  %v921_v13 = vadd.f32 %v914_v43, %v298_v4 }
 0x18b   :  { %v5166_v37 = vmul.f32 -1.442695, %v920_v44 }
 0x18c   :  { %v6002_v55 = vpop.eup %6001 }
 0x18d   :  { %v6004_v60 = vpop.eup %6003  ;;  %v931_v56 = vadd.f32 1.0, %v6002_v55  ;;  %6005 = vpow2.f32 %v5166_v37 }
 0x18e   :  { %v932_v49 = vadd.f32 1.0, %v6004_v60 }
 0x18f   :  { %6007 = vrcp.f32 %v931_v56  ;;  %v945_v26 = vand.u32 2147483648, %v931_v56  ;;  %v943_v27 = vand.u32 2147483647, %v931_v56  ;;  %vm939_vm15 = vweird.f32 %v931_v56 }
 0x190   :  { %6009 = vrcp.f32 %v932_v49  ;;  %v903_v62 = vpop.f32.mrf.mxu2  ;;  %v916_v0 = vpop.f32.mrf.mxu3  ;;  %v960_v52 = vand.u32 2147483648, %v932_v49  ;;  %v958_v30 = vand.u32 2147483647, %v932_v49  ;;  %vm954_vm1 = vweird.f32 %v932_v49 }
 0x191   :  { %v946_v47 = vor.u32 1.1754944e-38, %v945_v26  ;;  %vm944_vm4 = vcmp.eq.f32.partialorder %v943_v27, 8.507059e+37 }
 0x192   :  { %v961_v37 = vor.u32 1.1754944e-38, %v960_v52  ;;  %vm959_vm5 = vcmp.eq.f32.partialorder %v958_v30, 8.507059e+37  ;;  %v318_v52 = vld [vmem:[%s317_s16] ss:$8 sm:$0xf]  ;;  %s401_s16 = scalar_lea.vmem [#allocation6], %s400_s6  ;;  %s484_s6 = sadd.s32 %s5792_s29, %s481_s27 }
 0x193   :  { %v6006_v5 = vpop.eup %6005  ;;  %v329_v27 = vperm.slane %v318_v52, 0  ;;  %v330_v30 = vperm.slane %v318_v52, 1  ;;  %s6729_s27 = smov [#allocation22]  }
 0x194   :  { %v933_v10 = vadd.f32 1.0, %v6006_v5  ;;  %s4895_s29 = sshll.u32 %s6729_s27, 4  ;;  %s4896_s29 = int_to_ptr.vmem [resolvable:$true] %s4895_s29 }
 0x195   :  { %v6008_v11 = vpop.eup %6007 }
 0x196   :  { %v6010_v14 = vpop.eup %6009  ;;  %v935_v15 = vmul.f32 %v6008_v11, %v931_v56  ;;  %6011 = vrcp.f32 %v933_v10  ;;  %vm940_vm13 = vweird.f32 %v6008_v11  ;;  %vm969_vm7 = vweird.f32 %v933_v10 }
 0x197   :  { %v950_v18 = vmul.f32 %v6010_v14, %v932_v49  ;;  %6013 = vtanh.f32 %v921_v13  ;;  %vm955_vm14 = vweird.f32 %v6010_v14  ;;  %vm941_vm2 = vmor %vm939_vm15, %vm940_vm13 }
 0x198   :  { %v936_v22 = vsub.f32 1.0, %v935_v15  ;;  %vm956_vm3 = vmor %vm954_vm1, %vm955_vm14  ;;  %v975_v15 = vand.u32 2147483648, %v933_v10 }
 0x199   :  { %v951_v23 = vsub.f32 1.0, %v950_v18 }
 0x19a   :  { %v937_v63 = vmul.f32 %v6008_v11, %v936_v22  ;;  %v976_v22 = vor.u32 1.1754944e-38, %v975_v15 }
 0x19b   :  { %v952_v29 = vmul.f32 %v6010_v14, %v951_v23 }
 0x19c   :  { %v6012_v31 = vpop.eup %6011  ;;  %v938_v44 = vadd.f32 %v6008_v11, %v937_v63 }
 0x19d   :  { %v965_v43 = vmul.f32 %v6012_v31, %v933_v10  ;;  %v953_v51 = vadd.f32 %v6010_v14, %v952_v29  ;;  %v6014_v60 = vpop.eup %6013  ;;  %vm970_vm6 = vweird.f32 %v6012_v31 }
 0x19e   :  { %v942_v55 = vsel %vm941_vm2, %v6008_v11, %v938_v44  ;;  %v973_v11 = vand.u32 2147483647, %v933_v10  ;;  %vm971_vm8 = vmor %vm969_vm7, %vm970_vm6  ;;  %v308_v10 = vld [vmem:[%s307_s3] ss:$8 sm:$0xf]  ;;  %vm1725_vm7 = vcmask 1041408  }
 0x19f   :  { %v966_v50 = vsub.f32 1.0, %v965_v43  ;;  %v947_v59 = vsel %vm944_vm4, %v946_v47, %v942_v55  ;;  %v957_v62 = vsel %vm956_vm3, %v6010_v14, %v953_v51  ;;  %v320_v63 = vperm.slane %v308_v10, 0  ;;  %s391_s3 = scalar_lea.vmem [#allocation6], %s390_s9  ;;  %s474_s9 = sadd.s32 %s5791_s4, %s471_s30 }
 0x1a0   :  { %v962_v0 = vsel %vm959_vm5, %v961_v37, %v957_v62  ;;  %v981_v4 = vmul.f32 %v6014_v60, %v947_v59  ;;  %vm974_vm9 = vcmp.eq.f32.partialorder %v973_v11, 8.507059e+37  ;;  %v321_v29 = vperm.slane %v308_v10, 1  ;;  %s4897_s4 = sshll.u32 %s8330_s14, 4  ;;  %s4898_s4 = int_to_ptr.hbm [resolvable:$true] %s4897_s4 }
 0x1a1   :  { %v967_v5 = vmul.f32 %v6012_v31, %v966_v50  ;;  %v980_v13 = vmul.f32 %v962_v0, %v7031_v35  ;;  %v322_v55 = vperm.slane %v308_v10, 2  ;;  %v331_v60 = vperm.slane %v318_v52, 2 }
 0x1a2   :  { %v338_v44 = vsel %vm252_vm0, %v321_v29, %v330_v30 }
 0x1a3   :  { %v7075_v56 = vadd.f32 %v981_v4, %v980_v13  ;;  %v968_v49 = vadd.f32 %v6012_v31, %v967_v5  ;;  %v339_v62 = vsel %vm252_vm0, %v322_v55, %v331_v60 }
 0x1a5   :  { %6015 = vtanh.f32 %v7075_v56  ;;  %v972_v18 = vsel %vm971_vm8, %v6012_v31, %v968_v49  ;;  %v337_v31 = vsel %vm252_vm0, %v320_v63, %v329_v27  ;;  %vm1727_vm8 = vcmask 1043456  }
 0x1a6   :  { %v977_v23 = vsel %vm974_vm9, %v976_v22, %v972_v18 }
 0x1ab   :  { %v6016_v14 = vpop.eup %6015 }
 0x1ac   :  { %v7078_v26 = vmul.f32 %v6016_v14, %v977_v23  ;;  %v323_v23 = vperm.slane %v308_v10, 3 }
 0x1ae   :  { %v985_v35 = vpack.c.bf16 %v7078_v26, %v7078_v26 }
 0x1b0   :  { %994 = vmatmul.bf16.vlgmr.msra.gmra.mxu0 %v985_v35  ;;  %1007 = vmatmul.bf16.vlgmr.msra.gmra.mxu1 %v985_v35 }
 0x1b1   :  { %1020 = vmatmul.bf16.vlgmr.msra.gmra.mxu2 %v985_v35  ;;  %1033 = vmatmul.bf16.vlgmr.msra.gmra.mxu3 %v985_v35  ;;  %v332_v35 = vperm.slane %v318_v52, 3 }
 0x1b2   :  { %1226 = vmatpush.bf16.msra.mxu0 %v6864_v3  ;;  %1239 = vmatpush.bf16.msra.mxu1 %v6866_v7 }
 0x1b3   :  { %1252 = vmatpush.bf16.msra.mxu2 %v6868_v8  ;;  %1265 = vmatpush.bf16.msra.mxu3 %v6879_v21  ;;  %v340_v29 = vsel %vm252_vm0, %v323_v23, %v332_v35 }
 0x1b6   :  { %1227 = vmatpush.bf16.msra.mxu0 %v6871_v12  ;;  %1240 = vmatpush.bf16.msra.mxu1 %v6875_v16 }
 0x1b7   :  { %1253 = vmatpush.bf16.msra.mxu2 %v6877_v17  ;;  %1266 = vmatpush.bf16.msra.mxu3 %v6891_v34 }
 0x1ba   :  { %1228 = vmatpush.bf16.msra.mxu0 %v6883_v28  ;;  %1241 = vmatpush.bf16.msra.mxu1 %v6887_v32 }
 0x1bb   :  { %1254 = vmatpush.bf16.msra.mxu2 %v6889_v33  ;;  %1267 = vmatpush.bf16.msra.mxu3 %v6897_v42 }
 0x1be   :  { %1229 = vmatpush.bf16.msra.mxu0 %v6895_v41  ;;  %1242 = vmatpush.bf16.msra.mxu1 %v6901_v45 }
 0x1bf   :  { %1255 = vmatpush.bf16.msra.mxu2 %v6903_v46  ;;  %1268 = vmatpush.bf16.msra.mxu3 %v6909_v54 }
 0x1c2   :  { %1230 = vmatpush.bf16.msra.mxu0 %v6907_v53  ;;  %1243 = vmatpush.bf16.msra.mxu1 %v6913_v57 }
 0x1c3   :  { %1256 = vmatpush.bf16.msra.mxu2 %v6915_v58  ;;  %1269 = vmatpush.bf16.msra.mxu3 %v6921_v2 }
 0x1c6   :  { %1231 = vmatpush.bf16.msra.mxu0 %v6919_v1  ;;  %1244 = vmatpush.bf16.msra.mxu1 %v6925_v6 }
 0x1c7   :  { %1257 = vmatpush.bf16.msra.mxu2 %v6927_v9  ;;  %1270 = vmatpush.bf16.msra.mxu3 %v6933_v20 }
 0x1ca   :  { %1232 = vmatpush.bf16.msra.mxu0 %v6931_v19  ;;  %1245 = vmatpush.bf16.msra.mxu1 %v6937_v24 }
 0x1cb   :  { %1258 = vmatpush.bf16.msra.mxu2 %v6939_v25  ;;  %1271 = vmatpush.bf16.msra.mxu3 %v6948_v38 }
 0x1ce   :  { %1233 = vmatpush.bf16.msra.mxu0 %v6943_v36  ;;  %1246 = vmatpush.bf16.msra.mxu1 %v6952_v39 }
 0x1cf   :  { %1259 = vmatpush.bf16.msra.mxu2 %v6954_v40  ;;  %1272 = vmatpush.bf16.msra.mxu3 %v6960_v48 }
 0x22d   :  { %v995_v43 = vpop.f32.mrf.mxu0  ;;  %v1008_v47 = vpop.f32.mrf.mxu1 }
 0x22e   :  { %v1038_v51 = vadd.f32 %v995_v43, %v337_v31  ;;  %v1039_v37 = vadd.f32 %v1008_v47, %v338_v44 }
 0x230   :  { %v5167_v50 = vmul.f32 -1.442695, %v1038_v51  ;;  %v5168_v59 = vmul.f32 -1.442695, %v1039_v37 }
 0x232   :  { %6017 = vpow2.f32 %v5167_v50 }
 0x233   :  { %6019 = vpow2.f32 %v5168_v59 }
 0x234   :  { %v1021_v0 = vpop.f32.mrf.mxu2  ;;  %v1034_v4 = vpop.f32.mrf.mxu3 }
 0x235   :  { %v1040_v5 = vadd.f32 %v1021_v0, %v339_v62  ;;  %v997_v13 = vpop.f32.mrf.mxu0  ;;  %v1010_v49 = vpop.f32.mrf.mxu1  ;;  %v1041_v43 = vadd.f32 %v1034_v4, %v340_v29 }
 0x237   :  { %v5169_v15 = vmul.f32 -1.442695, %v1040_v5 }
 0x238   :  { %v6018_v11 = vpop.eup %6017 }
 0x239   :  { %v6020_v18 = vpop.eup %6019  ;;  %v1051_v22 = vadd.f32 1.0, %v6018_v11  ;;  %6021 = vpow2.f32 %v5169_v15 }
 0x23a   :  { %v1052_v14 = vadd.f32 1.0, %v6020_v18 }
 0x23b   :  { %6023 = vrcp.f32 %v1051_v22  ;;  %v1065_v50 = vand.u32 2147483648, %v1051_v22  ;;  %v1063_v59 = vand.u32 2147483647, %v1051_v22  ;;  %vm1059_vm12 = vweird.f32 %v1051_v22 }
 0x23c   :  { %6025 = vrcp.f32 %v1052_v14  ;;  %v1023_v63 = vpop.f32.mrf.mxu2  ;;  %v1036_v27 = vpop.f32.mrf.mxu3  ;;  %v1080_v10 = vand.u32 2147483648, %v1052_v14  ;;  %v1078_v0 = vand.u32 2147483647, %v1052_v14  ;;  %vm1074_vm13 = vweird.f32 %v1052_v14 }
 0x23d   :  { %v1066_v49 = vor.u32 1.1754944e-38, %v1065_v50  ;;  %vm1064_vm1 = vcmp.eq.f32.partialorder %v1063_v59, 8.507059e+37  ;;  %v1708_v50 = vrot.slane %v7078_v26, 6  ;;  %v360_v26 = vld [vmem:[%s359_s17] ss:$8 sm:$0xf] }
 0x23e   :  { %v1081_v11 = vor.u32 1.1754944e-38, %v1080_v10  ;;  %vm1079_vm2 = vcmp.eq.f32.partialorder %v1078_v0, 8.507059e+37  ;;  %s443_s17 = scalar_lea.vmem [#allocation6], %s442_s10  ;;  %s7284_s10 = sadd.s32 %s5794_s21, %s523_s25 }
 0x23f   :  { %v6022_v30 = vpop.eup %6021  ;;  %s4887_s25 = sshll.u32 %s8329_s13, 4  ;;  %s4888_s25 = int_to_ptr.hbm [resolvable:$true] %s4887_s25 }
 0x240   :  { %v1053_v31 = vadd.f32 1.0, %v6022_v30 }
 0x241   :  { %v6024_v44 = vpop.eup %6023 }
 0x242   :  { %v6026_v47 = vpop.eup %6025  ;;  %v1055_v51 = vmul.f32 %v6024_v44, %v1051_v22  ;;  %6027 = vrcp.f32 %v1053_v31  ;;  %vm1060_vm10 = vweird.f32 %v6024_v44  ;;  %vm1089_vm4 = vweird.f32 %v1053_v31 }
 0x243   :  { %v1070_v37 = vmul.f32 %v6026_v47, %v1052_v14  ;;  %6029 = vtanh.f32 %v1041_v43  ;;  %vm1075_vm11 = vweird.f32 %v6026_v47  ;;  %vm1061_vm14 = vmor %vm1059_vm12, %vm1060_vm10 }
 0x244   :  { %v1056_v55 = vsub.f32 1.0, %v1055_v51  ;;  %vm1076_vm15 = vmor %vm1074_vm13, %vm1075_vm11 }
 0x245   :  { %v1071_v60 = vsub.f32 1.0, %v1070_v37  ;;  %v1095_v37 = vand.u32 2147483648, %v1053_v31 }
 0x246   :  { %v1057_v52 = vmul.f32 %v6024_v44, %v1056_v55 }
 0x247   :  { %v1072_v62 = vmul.f32 %v6026_v47, %v1071_v60  ;;  %v1096_v60 = vor.u32 1.1754944e-38, %v1095_v37 }
 0x248   :  { %v6028_v5 = vpop.eup %6027  ;;  %v1058_v13 = vadd.f32 %v6024_v44, %v1057_v52 }
 0x249   :  { %v1085_v4 = vmul.f32 %v6028_v5, %v1053_v31  ;;  %v1073_v15 = vadd.f32 %v6026_v47, %v1072_v62  ;;  %v6030_v23 = vpop.eup %6029  ;;  %vm1090_vm3 = vweird.f32 %v6028_v5  ;;  %v1726_v62 = vsel %vm1725_vm7, %v7034_v61, %v1708_v50  ;;  %v350_v61 = vld [vmem:[%s349_s11] ss:$8 sm:$0xf]  ;;  %s433_s11 = scalar_lea.vmem [#allocation6], %s432_s26  ;;  %s7282_s26 = sadd.s32 %s5793_s22, %s513_s0 }
 0x24a   :  { %v1062_v18 = vsel %vm1061_vm14, %v6024_v44, %v1058_v13  ;;  %v1093_v44 = vand.u32 2147483647, %v1053_v31  ;;  %vm1091_vm5 = vmor %vm1089_vm4, %vm1090_vm3  ;;  %v362_v0 = vperm.slane %v350_v61, 0  ;;  %v363_v13 = vperm.slane %v350_v61, 1 }
 0x24b   :  { %v1086_v35 = vsub.f32 1.0, %v1085_v4  ;;  %v1067_v63 = vsel %vm1064_vm1, %v1066_v49, %v1062_v18  ;;  %v1077_v27 = vsel %vm1076_vm15, %v6026_v47, %v1073_v15  ;;  %v372_v4 = vperm.slane %v360_v26, 1 }
 0x24c   :  { %v1082_v29 = vsel %vm1079_vm2, %v1081_v11, %v1077_v27  ;;  %v1101_v30 = vmul.f32 %v6030_v23, %v1067_v63  ;;  %vm1094_vm6 = vcmp.eq.f32.partialorder %v1093_v44, 8.507059e+37  ;;  %v364_v63 = vperm.slane %v350_v61, 2 }
 0x24d   :  { %v1087_v43 = vmul.f32 %v6028_v5, %v1086_v35  ;;  %v1100_v51 = vmul.f32 %v1082_v29, %v7075_v56  ;;  %v380_v15 = vsel %vm252_vm0, %v363_v13, %v372_v4  ;;  %v373_v27 = vperm.slane %v360_v26, 2 }
 0x24f   :  { %v7119_v22 = vadd.f32 %v1101_v30, %v1100_v51  ;;  %v1088_v14 = vadd.f32 %v6028_v5, %v1087_v43  ;;  %v381_v43 = vsel %vm252_vm0, %v364_v63, %v373_v27 }
 0x251   :  { %6031 = vtanh.f32 %v7119_v22  ;;  %v1092_v55 = vsel %vm1091_vm5, %v6028_v5, %v1088_v14  ;;  %v371_v5 = vperm.slane %v360_v26, 0 }
 0x252   :  { %v1097_v10 = vsel %vm1094_vm6, %v1096_v60, %v1092_v55  ;;  %vm1729_vm6 = vcmask 1045504  }
 0x253   :  { %v379_v49 = vsel %vm252_vm0, %v362_v0, %v371_v5 }
 0x257   :  { %v6032_v47 = vpop.eup %6031 }
 0x258   :  { %v1104_v52 = vmul.f32 %v6032_v47, %v1097_v10 }
 0x25a   :  { %v1105_v56 = vpack.c.bf16 %v1104_v52, %v1104_v52  ;;  %v1711_v59 = vrot.slane %v1104_v52, 4 }
 0x25c   :  { %1114 = vmatmul.bf16.vlgmr.msrb.gmra.mxu0 %v1105_v56  ;;  %1127 = vmatmul.bf16.vlgmr.msrb.gmra.mxu1 %v1105_v56  ;;  %v7126_v31 = vsel %vm1727_vm8, %v1726_v62, %v1711_v59  ;;  %v374_v59 = vperm.slane %v360_v26, 3 }
 0x25d   :  { %1140 = vmatmul.bf16.vlgmr.msrb.gmra.mxu2 %v1105_v56  ;;  %1153 = vmatmul.bf16.vlgmr.msrb.gmra.mxu3 %v1105_v56  ;;  %v365_v56 = vperm.slane %v350_v61, 3 }
 0x25e   :  { %1346 = vmatpush.bf16.msrb.mxu0 %v6864_v3  ;;  %1359 = vmatpush.bf16.msrb.mxu1 %v6866_v7 }
 0x25f   :  { %1372 = vmatpush.bf16.msrb.mxu2 %v6868_v8  ;;  %1385 = vmatpush.bf16.msrb.mxu3 %v6879_v21  ;;  %v382_v5 = vsel %vm252_vm0, %v365_v56, %v374_v59 }
 0x262   :  { %1347 = vmatpush.bf16.msrb.mxu0 %v6871_v12  ;;  %1360 = vmatpush.bf16.msrb.mxu1 %v6875_v16 }
 0x263   :  { %1373 = vmatpush.bf16.msrb.mxu2 %v6877_v17  ;;  %1386 = vmatpush.bf16.msrb.mxu3 %v6891_v34 }
 0x266   :  { %1348 = vmatpush.bf16.msrb.mxu0 %v6883_v28  ;;  %1361 = vmatpush.bf16.msrb.mxu1 %v6887_v32 }
 0x267   :  { %1374 = vmatpush.bf16.msrb.mxu2 %v6889_v33  ;;  %1387 = vmatpush.bf16.msrb.mxu3 %v6897_v42 }
 0x26a   :  { %1349 = vmatpush.bf16.msrb.mxu0 %v6895_v41  ;;  %1362 = vmatpush.bf16.msrb.mxu1 %v6901_v45 }
 0x26b   :  { %1375 = vmatpush.bf16.msrb.mxu2 %v6903_v46  ;;  %1388 = vmatpush.bf16.msrb.mxu3 %v6909_v54 }
 0x26e   :  { %1350 = vmatpush.bf16.msrb.mxu0 %v6907_v53  ;;  %1363 = vmatpush.bf16.msrb.mxu1 %v6913_v57 }
 0x26f   :  { %1376 = vmatpush.bf16.msrb.mxu2 %v6915_v58  ;;  %1389 = vmatpush.bf16.msrb.mxu3 %v6921_v2 }
 0x272   :  { %1351 = vmatpush.bf16.msrb.mxu0 %v6919_v1  ;;  %1364 = vmatpush.bf16.msrb.mxu1 %v6925_v6 }
 0x273   :  { %1377 = vmatpush.bf16.msrb.mxu2 %v6927_v9  ;;  %1390 = vmatpush.bf16.msrb.mxu3 %v6933_v20 }
 0x276   :  { %1352 = vmatpush.bf16.msrb.mxu0 %v6931_v19  ;;  %1365 = vmatpush.bf16.msrb.mxu1 %v6937_v24 }
 0x277   :  { %1378 = vmatpush.bf16.msrb.mxu2 %v6939_v25  ;;  %1391 = vmatpush.bf16.msrb.mxu3 %v6948_v38 }
 0x27a   :  { %1353 = vmatpush.bf16.msrb.mxu0 %v6943_v36  ;;  %1366 = vmatpush.bf16.msrb.mxu1 %v6952_v39 }
 0x27b   :  { %1379 = vmatpush.bf16.msrb.mxu2 %v6954_v40  ;;  %1392 = vmatpush.bf16.msrb.mxu3 %v6960_v48 }
 0x2d9   :  { %v1115_v11 = vpop.f32.mrf.mxu0  ;;  %v1128_v18 = vpop.f32.mrf.mxu1 }
 0x2da   :  { %v1158_v23 = vadd.f32 %v1115_v11, %v379_v49  ;;  %v1159_v35 = vadd.f32 %v1128_v18, %v380_v15 }
 0x2dc   :  { %v5170_v29 = vmul.f32 -1.442695, %v1158_v23  ;;  %v5171_v30 = vmul.f32 -1.442695, %v1159_v35 }
 0x2de   :  { %6033 = vpow2.f32 %v5170_v29 }
 0x2df   :  { %6035 = vpow2.f32 %v5171_v30 }
 0x2e0   :  { %v1141_v51 = vpop.f32.mrf.mxu2  ;;  %v1154_v14 = vpop.f32.mrf.mxu3 }
 0x2e1   :  { %v1160_v37 = vadd.f32 %v1141_v51, %v381_v43  ;;  %v1117_v44 = vpop.f32.mrf.mxu0  ;;  %v1130_v55 = vpop.f32.mrf.mxu1  ;;  %v1161_v15 = vadd.f32 %v1154_v14, %v382_v5 }
 0x2e3   :  { %v5172_v60 = vmul.f32 -1.442695, %v1160_v37 }
 0x2e4   :  { %v6034_v47 = vpop.eup %6033 }
 0x2e5   :  { %v6036_v50 = vpop.eup %6035  ;;  %v1171_v10 = vadd.f32 1.0, %v6034_v47  ;;  %6037 = vpow2.f32 %v5172_v60 }
 0x2e6   :  { %v1172_v52 = vadd.f32 1.0, %v6036_v50 }
 0x2e7   :  { %6039 = vrcp.f32 %v1171_v10  ;;  %v1185_v27 = vand.u32 2147483648, %v1171_v10  ;;  %v1183_v29 = vand.u32 2147483647, %v1171_v10  ;;  %vm1179_vm11 = vweird.f32 %v1171_v10 }
 0x2e8   :  { %6041 = vrcp.f32 %v1172_v52  ;;  %v1143_v62 = vpop.f32.mrf.mxu2  ;;  %v1156_v0 = vpop.f32.mrf.mxu3  ;;  %v1200_v61 = vand.u32 2147483648, %v1172_v52  ;;  %v1198_v43 = vand.u32 2147483647, %v1172_v52  ;;  %vm1194_vm12 = vweird.f32 %v1172_v52 }
 0x2e9   :  { %v1186_v44 = vor.u32 1.1754944e-38, %v1185_v27  ;;  %vm1184_vm15 = vcmp.eq.f32.partialorder %v1183_v29, 8.507059e+37 }
 0x2ea   :  { %v1201_v60 = vor.u32 1.1754944e-38, %v1200_v61  ;;  %vm1199_vm1 = vcmp.eq.f32.partialorder %v1198_v43, 8.507059e+37 }
 0x2eb   :  { %v6038_v13 = vpop.eup %6037 }
 0x2ec   :  { %v1173_v4 = vadd.f32 1.0, %v6038_v13 }
 0x2ed   :  { %v6040_v49 = vpop.eup %6039 }
 0x2ee   :  { %v6042_v11 = vpop.eup %6041  ;;  %v1175_v18 = vmul.f32 %v6040_v49, %v1171_v10  ;;  %6043 = vrcp.f32 %v1173_v4  ;;  %vm1180_vm9 = vweird.f32 %v6040_v49  ;;  %vm1209_vm3 = vweird.f32 %v1173_v4 }
 0x2ef   :  { %v1190_v23 = vmul.f32 %v6042_v11, %v1172_v52  ;;  %6045 = vtanh.f32 %v1161_v15  ;;  %vm1195_vm10 = vweird.f32 %v6042_v11  ;;  %vm1181_vm13 = vmor %vm1179_vm11, %vm1180_vm9 }
 0x2f0   :  { %v1176_v35 = vsub.f32 1.0, %v1175_v18  ;;  %vm1196_vm14 = vmor %vm1194_vm12, %vm1195_vm10  ;;  %v1215_v18 = vand.u32 2147483648, %v1173_v4 }
 0x2f1   :  { %v1191_v63 = vsub.f32 1.0, %v1190_v23 }
 0x2f2   :  { %v1177_v26 = vmul.f32 %v6040_v49, %v1176_v35  ;;  %v1216_v35 = vor.u32 1.1754944e-38, %v1215_v18 }
 0x2f3   :  { %v1192_v30 = vmul.f32 %v6042_v11, %v1191_v63 }
 0x2f4   :  { %v6044_v51 = vpop.eup %6043  ;;  %v1178_v37 = vadd.f32 %v6040_v49, %v1177_v26 }
 0x2f5   :  { %v1205_v14 = vmul.f32 %v6044_v51, %v1173_v4  ;;  %v1193_v55 = vadd.f32 %v6042_v11, %v1192_v30  ;;  %v6046_v50 = vpop.eup %6045  ;;  %vm1210_vm2 = vweird.f32 %v6044_v51 }
 0x2f6   :  { %v1182_v47 = vsel %vm1181_vm13, %v6040_v49, %v1178_v37  ;;  %v1213_v49 = vand.u32 2147483647, %v1173_v4  ;;  %vm1211_vm4 = vmor %vm1209_vm3, %vm1210_vm2  ;;  %v402_v4 = vld [vmem:[%s401_s16] ss:$8 sm:$0xf]  ;;  %s485_s16 = scalar_lea.vmem [#allocation6], %s484_s6 }
 0x2f7   :  { %v1206_v56 = vsub.f32 1.0, %v1205_v14  ;;  %v1187_v59 = vsel %vm1184_vm15, %v1186_v44, %v1182_v47  ;;  %v1197_v62 = vsel %vm1196_vm14, %v6042_v11, %v1193_v55  ;;  %v413_v30 = vperm.slane %v402_v4, 0 }
 0x2f8   :  { %v1202_v0 = vsel %vm1199_vm1, %v1201_v60, %v1197_v62  ;;  %v1221_v5 = vmul.f32 %v6046_v50, %v1187_v59  ;;  %vm1214_vm5 = vcmp.eq.f32.partialorder %v1213_v49, 8.507059e+37 }
 0x2f9   :  { %v1207_v13 = vmul.f32 %v6044_v51, %v1206_v56  ;;  %v1220_v15 = vmul.f32 %v1202_v0, %v7119_v22  ;;  %v415_v56 = vperm.slane %v402_v4, 2 }
 0x2fb   :  { %v7165_v10 = vadd.f32 %v1221_v5, %v1220_v15  ;;  %v1208_v52 = vadd.f32 %v6044_v51, %v1207_v13 }
 0x2fd   :  { %6047 = vtanh.f32 %v7165_v10  ;;  %v1212_v23 = vsel %vm1211_vm4, %v6044_v51, %v1208_v52  ;;  %v414_v51 = vperm.slane %v402_v4, 1 }
 0x2fe   :  { %v1217_v63 = vsel %vm1214_vm5, %v1216_v35, %v1212_v23 }
 0x303   :  { %v6048_v11 = vpop.eup %6047 }
 0x304   :  { %v1224_v27 = vmul.f32 %v6048_v11, %v1217_v63 }
 0x306   :  { %v1225_v61 = vpack.c.bf16 %v1224_v27, %v1224_v27  ;;  %v1714_v26 = vrot.slane %v1224_v27, 2 }
 0x308   :  { %1234 = vmatmul.bf16.vlgmr.msra.gmra.mxu0 %v1225_v61  ;;  %1247 = vmatmul.bf16.vlgmr.msra.gmra.mxu1 %v1225_v61  ;;  %v7170_v22 = vsel %vm1729_vm6, %v7126_v31, %v1714_v26  ;;  %v392_v31 = vld [vmem:[%s391_s3] ss:$8 sm:$0xf]  ;;  %s475_s3 = scalar_lea.vmem [#allocation6], %s474_s9  ;;  %s6730_s9 = smov [#allocation24]  }
 0x309   :  { %1260 = vmatmul.bf16.vlgmr.msra.gmra.mxu2 %v1225_v61  ;;  %1273 = vmatmul.bf16.vlgmr.msra.gmra.mxu3 %v1225_v61  ;;  %v404_v29 = vperm.slane %v392_v31, 0  ;;  %v405_v43 = vperm.slane %v392_v31, 1  ;;  %v406_v50 = vperm.slane %v392_v31, 2  ;;  %v407_v27 = vperm.slane %v392_v31, 3  ;;  %s4908_s6 = sshll.u32 %s6730_s9, 4  ;;  %s4909_s6 = int_to_ptr.vmem [resolvable:$true] %s4908_s6 }
 0x30a   :  { %1466 = vmatpush.bf16.msra.mxu0 %v6864_v3  ;;  %1479 = vmatpush.bf16.msra.mxu1 %v6866_v7  ;;  %v416_v61 = vperm.slane %v402_v4, 3 }
 0x30b   :  { %1492 = vmatpush.bf16.msra.mxu2 %v6868_v8  ;;  %1505 = vmatpush.bf16.msra.mxu3 %v6879_v21  ;;  %v421_v37 = vsel %vm252_vm0, %v404_v29, %v413_v30  ;;  %v422_v14 = vsel %vm252_vm0, %v405_v43, %v414_v51  ;;  %v423_v0 = vsel %vm252_vm0, %v406_v50, %v415_v56 }
 0x30c   :  { %v424_v30 = vsel %vm252_vm0, %v407_v27, %v416_v61 }
 0x30e   :  { %1467 = vmatpush.bf16.msra.mxu0 %v6871_v12  ;;  %1480 = vmatpush.bf16.msra.mxu1 %v6875_v16 }
 0x30f   :  { %1493 = vmatpush.bf16.msra.mxu2 %v6877_v17  ;;  %1506 = vmatpush.bf16.msra.mxu3 %v6891_v34 }
 0x312   :  { %1468 = vmatpush.bf16.msra.mxu0 %v6883_v28  ;;  %1481 = vmatpush.bf16.msra.mxu1 %v6887_v32 }
 0x313   :  { %1494 = vmatpush.bf16.msra.mxu2 %v6889_v33  ;;  %1507 = vmatpush.bf16.msra.mxu3 %v6897_v42 }
 0x316   :  { %1469 = vmatpush.bf16.msra.mxu0 %v6895_v41  ;;  %1482 = vmatpush.bf16.msra.mxu1 %v6901_v45 }
 0x317   :  { %1495 = vmatpush.bf16.msra.mxu2 %v6903_v46  ;;  %1508 = vmatpush.bf16.msra.mxu3 %v6909_v54 }
 0x31a   :  { %1470 = vmatpush.bf16.msra.mxu0 %v6907_v53  ;;  %1483 = vmatpush.bf16.msra.mxu1 %v6913_v57 }
 0x31b   :  { %1496 = vmatpush.bf16.msra.mxu2 %v6915_v58  ;;  %1509 = vmatpush.bf16.msra.mxu3 %v6921_v2 }
 0x31e   :  { %1471 = vmatpush.bf16.msra.mxu0 %v6919_v1  ;;  %1484 = vmatpush.bf16.msra.mxu1 %v6925_v6 }
 0x31f   :  { %1497 = vmatpush.bf16.msra.mxu2 %v6927_v9  ;;  %1510 = vmatpush.bf16.msra.mxu3 %v6933_v20 }
 0x322   :  { %1472 = vmatpush.bf16.msra.mxu0 %v6931_v19  ;;  %1485 = vmatpush.bf16.msra.mxu1 %v6937_v24 }
 0x323   :  { %1498 = vmatpush.bf16.msra.mxu2 %v6939_v25  ;;  %1511 = vmatpush.bf16.msra.mxu3 %v6948_v38 }
 0x326   :  { %1473 = vmatpush.bf16.msra.mxu0 %v6943_v36  ;;  %1486 = vmatpush.bf16.msra.mxu1 %v6952_v39 }
 0x327   :  { %1499 = vmatpush.bf16.msra.mxu2 %v6954_v40  ;;  %1512 = vmatpush.bf16.msra.mxu3 %v6960_v48 }
 0x385   :  { %v1235_v44 = vpop.f32.mrf.mxu0  ;;  %v1248_v55 = vpop.f32.mrf.mxu1 }
 0x386   :  { %v1278_v60 = vadd.f32 %v1235_v44, %v421_v37  ;;  %v1279_v47 = vadd.f32 %v1248_v55, %v422_v14 }
 0x388   :  { %v5173_v59 = vmul.f32 -1.442695, %v1278_v60  ;;  %v5174_v62 = vmul.f32 -1.442695, %v1279_v47 }
 0x38a   :  { %6049 = vpow2.f32 %v5173_v59 }
 0x38b   :  { %6051 = vpow2.f32 %v5174_v62 }
 0x38c   :  { %v1261_v5 = vpop.f32.mrf.mxu2  ;;  %v1274_v13 = vpop.f32.mrf.mxu3 }
 0x38d   :  { %v1280_v15 = vadd.f32 %v1261_v5, %v423_v0  ;;  %v1237_v52 = vpop.f32.mrf.mxu0  ;;  %v1250_v18 = vpop.f32.mrf.mxu1  ;;  %v1281_v14 = vadd.f32 %v1274_v13, %v424_v30 }
 0x38f   :  { %v5175_v49 = vmul.f32 -1.442695, %v1280_v15 }
 0x390   :  { %v6050_v23 = vpop.eup %6049 }
 0x391   :  { %v6052_v35 = vpop.eup %6051  ;;  %v1291_v11 = vadd.f32 1.0, %v6050_v23  ;;  %6053 = vpow2.f32 %v5175_v49 }
 0x392   :  { %v1292_v63 = vadd.f32 1.0, %v6052_v35 }
 0x393   :  { %6055 = vrcp.f32 %v1291_v11  ;;  %v1305_v56 = vand.u32 2147483648, %v1291_v11  ;;  %v1303_v59 = vand.u32 2147483647, %v1291_v11  ;;  %vm1299_vm11 = vweird.f32 %v1291_v11 }
 0x394   :  { %6057 = vrcp.f32 %v1292_v63  ;;  %v1263_v26 = vpop.f32.mrf.mxu2  ;;  %v1276_v29 = vpop.f32.mrf.mxu3  ;;  %v1320_v31 = vand.u32 2147483648, %v1292_v63  ;;  %v1318_v0 = vand.u32 2147483647, %v1292_v63  ;;  %vm1314_vm12 = vweird.f32 %v1292_v63 }
 0x395   :  { %v1306_v52 = vor.u32 1.1754944e-38, %v1305_v56  ;;  %vm1304_vm15 = vcmp.eq.f32.partialorder %v1303_v59, 8.507059e+37 }
 0x396   :  { %v1321_v49 = vor.u32 1.1754944e-38, %v1320_v31  ;;  %vm1319_vm1 = vcmp.eq.f32.partialorder %v1318_v0, 8.507059e+37 }
 0x397   :  { %v6054_v43 = vpop.eup %6053 }
 0x398   :  { %v1293_v51 = vadd.f32 1.0, %v6054_v43 }
 0x399   :  { %v6056_v37 = vpop.eup %6055 }
 0x39a   :  { %v6058_v44 = vpop.eup %6057  ;;  %v1295_v55 = vmul.f32 %v6056_v37, %v1291_v11  ;;  %6059 = vrcp.f32 %v1293_v51  ;;  %vm1300_vm9 = vweird.f32 %v6056_v37  ;;  %vm1329_vm3 = vweird.f32 %v1293_v51 }
 0x39b   :  { %v1310_v60 = vmul.f32 %v6058_v44, %v1292_v63  ;;  %6061 = vtanh.f32 %v1281_v14  ;;  %vm1315_vm10 = vweird.f32 %v6058_v44  ;;  %vm1301_vm13 = vmor %vm1299_vm11, %vm1300_vm9 }
 0x39c   :  { %v1296_v47 = vsub.f32 1.0, %v1295_v55  ;;  %vm1316_vm14 = vmor %vm1314_vm12, %vm1315_vm10  ;;  %v1335_v55 = vand.u32 2147483648, %v1293_v51 }
 0x39d   :  { %v1311_v50 = vsub.f32 1.0, %v1310_v60 }
 0x39e   :  { %v1297_v4 = vmul.f32 %v6056_v37, %v1296_v47  ;;  %v1336_v47 = vor.u32 1.1754944e-38, %v1335_v55 }
 0x39f   :  { %v1312_v62 = vmul.f32 %v6058_v44, %v1311_v50 }
 0x3a0   :  { %v6060_v5 = vpop.eup %6059  ;;  %v1298_v15 = vadd.f32 %v6056_v37, %v1297_v4 }
 0x3a1   :  { %v1325_v13 = vmul.f32 %v6060_v5, %v1293_v51  ;;  %v1313_v18 = vadd.f32 %v6058_v44, %v1312_v62  ;;  %v6062_v35 = vpop.eup %6061  ;;  %vm1330_vm2 = vweird.f32 %v6060_v5 }
 0x3a2   :  { %v1302_v23 = vsel %vm1301_vm13, %v6056_v37, %v1298_v15  ;;  %v1333_v37 = vand.u32 2147483647, %v1293_v51  ;;  %vm1331_vm4 = vmor %vm1329_vm3, %vm1330_vm2 }
 0x3a3   :  { %v1326_v27 = vsub.f32 1.0, %v1325_v13  ;;  %v1307_v61 = vsel %vm1304_vm15, %v1306_v52, %v1302_v23  ;;  %v1317_v26 = vsel %vm1316_vm14, %v6058_v44, %v1313_v18 }
 0x3a4   :  { %v1322_v29 = vsel %vm1319_vm1, %v1321_v49, %v1317_v26  ;;  %v1341_v30 = vmul.f32 %v6062_v35, %v1307_v61  ;;  %vm1334_vm5 = vcmp.eq.f32.partialorder %v1333_v37, 8.507059e+37 }
 0x3a5   :  { %v1327_v43 = vmul.f32 %v6060_v5, %v1326_v27  ;;  %v1340_v14 = vmul.f32 %v1322_v29, %v7165_v10 }
 0x3a7   :  { %v7209_v11 = vadd.f32 %v1341_v30, %v1340_v14  ;;  %v1328_v63 = vadd.f32 %v6060_v5, %v1327_v43 }
 0x3a9   :  { %6063 = vtanh.f32 %v7209_v11  ;;  %v1332_v60 = vsel %vm1331_vm4, %v6060_v5, %v1328_v63 }
 0x3aa   :  { %v1337_v50 = vsel %vm1334_vm5, %v1336_v47, %v1332_v60 }
 0x3af   :  { %v6064_v44 = vpop.eup %6063 }
 0x3b0   :  { %v7212_v56 = vmul.f32 %v6064_v44, %v1337_v50 }
 0x3b2   :  { %v1345_v10 = vpack.c.bf16 %v7212_v56, %v7212_v56 }
 0x3b4   :  { %1354 = vmatmul.bf16.vlgmr.msrb.gmra.mxu0 %v1345_v10  ;;  %1367 = vmatmul.bf16.vlgmr.msrb.gmra.mxu1 %v1345_v10 }
 0x3b5   :  { %1380 = vmatmul.bf16.vlgmr.msrb.gmra.mxu2 %v1345_v10  ;;  %1393 = vmatmul.bf16.vlgmr.msrb.gmra.mxu3 %v1345_v10 }
 0x3b6   :  { %1586 = vmatpush.bf16.msrb.mxu0 %v6864_v3  ;;  %1599 = vmatpush.bf16.msrb.mxu1 %v6866_v7  ;;  %v434_v3 = vld [vmem:[%s433_s11] ss:$8 sm:$0xf]  ;;  %s517_s11 = scalar_lea.vmem [#allocation6], %s7282_s26 }
 0x3b7   :  { %1612 = vmatpush.bf16.msrb.mxu2 %v6868_v8  ;;  %1625 = vmatpush.bf16.msrb.mxu3 %v6879_v21  ;;  %v444_v7 = vld [vmem:[%s443_s17] ss:$8 sm:$0xf]  ;;  %v446_v8 = vperm.slane %v434_v3, 0  ;;  %s527_s17 = scalar_lea.vmem [#allocation6], %s7284_s10 }
 0x3ba   :  { %1587 = vmatpush.bf16.msrb.mxu0 %v6871_v12  ;;  %1600 = vmatpush.bf16.msrb.mxu1 %v6875_v16  ;;  %v455_v12 = vperm.slane %v444_v7, 0  ;;  %v447_v16 = vperm.slane %v434_v3, 1 }
 0x3bb   :  { %1613 = vmatpush.bf16.msrb.mxu2 %v6877_v17  ;;  %1626 = vmatpush.bf16.msrb.mxu3 %v6891_v34  ;;  %v456_v17 = vperm.slane %v444_v7, 1 }
 0x3bc   :  { %v463_v21 = vsel %vm252_vm0, %v446_v8, %v455_v12 }
 0x3be   :  { %1588 = vmatpush.bf16.msrb.mxu0 %v6883_v28  ;;  %1601 = vmatpush.bf16.msrb.mxu1 %v6887_v32  ;;  %v464_v28 = vsel %vm252_vm0, %v447_v16, %v456_v17 }
 0x3bf   :  { %1614 = vmatpush.bf16.msrb.mxu2 %v6889_v33  ;;  %1627 = vmatpush.bf16.msrb.mxu3 %v6897_v42  ;;  %v448_v42 = vperm.slane %v434_v3, 2 }
 0x3c2   :  { %1589 = vmatpush.bf16.msrb.mxu0 %v6895_v41  ;;  %1602 = vmatpush.bf16.msrb.mxu1 %v6901_v45  ;;  %v457_v45 = vperm.slane %v444_v7, 2 }
 0x3c3   :  { %1615 = vmatpush.bf16.msrb.mxu2 %v6903_v46  ;;  %1628 = vmatpush.bf16.msrb.mxu3 %v6909_v54 }
 0x3c4   :  { %v465_v54 = vsel %vm252_vm0, %v448_v42, %v457_v45 }
 0x3c6   :  { %1590 = vmatpush.bf16.msrb.mxu0 %v6907_v53  ;;  %1603 = vmatpush.bf16.msrb.mxu1 %v6913_v57 }
 0x3c7   :  { %1616 = vmatpush.bf16.msrb.mxu2 %v6915_v58  ;;  %1629 = vmatpush.bf16.msrb.mxu3 %v6921_v2 }
 0x3ca   :  { %1591 = vmatpush.bf16.msrb.mxu0 %v6919_v1  ;;  %1604 = vmatpush.bf16.msrb.mxu1 %v6925_v6 }
 0x3cb   :  { %1617 = vmatpush.bf16.msrb.mxu2 %v6927_v9  ;;  %1630 = vmatpush.bf16.msrb.mxu3 %v6933_v20 }
 0x3ce   :  { %1592 = vmatpush.bf16.msrb.mxu0 %v6931_v19  ;;  %1605 = vmatpush.bf16.msrb.mxu1 %v6937_v24 }
 0x3cf   :  { %1618 = vmatpush.bf16.msrb.mxu2 %v6939_v25  ;;  %1631 = vmatpush.bf16.msrb.mxu3 %v6948_v38  ;;  %v458_v38 = vperm.slane %v444_v7, 3 }
 0x3d2   :  { %1593 = vmatpush.bf16.msrb.mxu0 %v6943_v36  ;;  %1606 = vmatpush.bf16.msrb.mxu1 %v6952_v39  ;;  %v449_v36 = vperm.slane %v434_v3, 3 }
 0x3d3   :  { %1619 = vmatpush.bf16.msrb.mxu2 %v6954_v40  ;;  %1632 = vmatpush.bf16.msrb.mxu3 %v6960_v48 }
 0x3d4   :  { %v466_v48 = vsel %vm252_vm0, %v449_v36, %v458_v38 }
 0x431   :  { %v1355_v32 = vpop.f32.mrf.mxu0  ;;  %v1368_v33 = vpop.f32.mrf.mxu1 }
 0x432   :  { %v1398_v34 = vadd.f32 %v1355_v32, %v463_v21  ;;  %v1399_v41 = vadd.f32 %v1368_v33, %v464_v28 }
 0x434   :  { %v5176_v46 = vmul.f32 -1.442695, %v1398_v34  ;;  %v5177_v53 = vmul.f32 -1.442695, %v1399_v41 }
 0x435   :  { %v476_v34 = vld [vmem:[%s475_s3] ss:$8 sm:$0xf] }
 0x436   :  { %6065 = vpow2.f32 %v5176_v46  ;;  %v486_v41 = vld [vmem:[%s485_s16] ss:$8 sm:$0xf]  ;;  %v488_v42 = vperm.slane %v476_v34, 0  ;;  %v489_v46 = vperm.slane %v476_v34, 1 }
 0x437   :  { %6067 = vpow2.f32 %v5177_v53  ;;  %v497_v45 = vperm.slane %v486_v41, 0  ;;  %v498_v53 = vperm.slane %v486_v41, 1 }
 0x438   :  { %v1381_v57 = vpop.f32.mrf.mxu2  ;;  %v1394_v58 = vpop.f32.mrf.mxu3 }
 0x439   :  { %v1400_v1 = vadd.f32 %v1381_v57, %v465_v54  ;;  %v1357_v2 = vpop.f32.mrf.mxu0  ;;  %v1370_v6 = vpop.f32.mrf.mxu1  ;;  %v1401_v59 = vadd.f32 %v1394_v58, %v466_v48  ;;  %v505_v54 = vsel %vm252_vm0, %v488_v42, %v497_v45  ;;  %v506_v57 = vsel %vm252_vm0, %v489_v46, %v498_v53 }
 0x43b   :  { %v5178_v9 = vmul.f32 -1.442695, %v1400_v1 }
 0x43c   :  { %v6066_v19 = vpop.eup %6065 }
 0x43d   :  { %v6068_v20 = vpop.eup %6067  ;;  %v1411_v24 = vadd.f32 1.0, %v6066_v19  ;;  %6069 = vpow2.f32 %v5178_v9  ;;  %v490_v9 = vperm.slane %v476_v34, 2  ;;  %v499_v19 = vperm.slane %v486_v41, 2 }
 0x43e   :  { %v1412_v25 = vadd.f32 1.0, %v6068_v20 }
 0x43f   :  { %6071 = vrcp.f32 %v1411_v24  ;;  %v1425_v52 = vand.u32 2147483648, %v1411_v24  ;;  %v1423_v23 = vand.u32 2147483647, %v1411_v24  ;;  %vm1419_vm11 = vweird.f32 %v1411_v24 }
 0x440   :  { %6073 = vrcp.f32 %v1412_v25  ;;  %v1383_v39 = vpop.f32.mrf.mxu2  ;;  %v1396_v40 = vpop.f32.mrf.mxu3  ;;  %v1440_v18 = vand.u32 2147483648, %v1412_v25  ;;  %v1438_v27 = vand.u32 2147483647, %v1412_v25  ;;  %vm1434_vm12 = vweird.f32 %v1412_v25 }
 0x441   :  { %v1426_v30 = vor.u32 1.1754944e-38, %v1425_v52  ;;  %vm1424_vm15 = vcmp.eq.f32.partialorder %v1423_v23, 8.507059e+37 }
 0x442   :  { %v1441_v14 = vor.u32 1.1754944e-38, %v1440_v18  ;;  %vm1439_vm1 = vcmp.eq.f32.partialorder %v1438_v27, 8.507059e+37 }
 0x443   :  { %v6070_v51 = vpop.eup %6069 }
 0x444   :  { %v1413_v31 = vadd.f32 1.0, %v6070_v51 }
 0x445   :  { %v6072_v4 = vpop.eup %6071 }
 0x446   :  { %v6074_v62 = vpop.eup %6073  ;;  %v1415_v0 = vmul.f32 %v6072_v4, %v1411_v24  ;;  %6075 = vrcp.f32 %v1413_v31  ;;  %vm1420_vm9 = vweird.f32 %v6072_v4  ;;  %v1455_v12 = vand.u32 2147483648, %v1413_v31 }
 0x447   :  { %v1430_v5 = vmul.f32 %v6074_v62, %v1412_v25  ;;  %6077 = vtanh.f32 %v1401_v59  ;;  %vm1435_vm10 = vweird.f32 %v6074_v62  ;;  %vm1421_vm13 = vmor %vm1419_vm11, %vm1420_vm9  ;;  %vm1449_vm3 = vweird.f32 %v1413_v31 }
 0x448   :  { %v1416_v15 = vsub.f32 1.0, %v1415_v0  ;;  %vm1436_vm14 = vmor %vm1434_vm12, %vm1435_vm10  ;;  %v1453_v16 = vand.u32 2147483647, %v1413_v31  ;;  %v1456_v21 = vor.u32 1.1754944e-38, %v1455_v12  ;;  %v507_v25 = vsel %vm252_vm0, %v490_v9, %v499_v19 }
 0x449   :  { %v1431_v13 = vsub.f32 1.0, %v1430_v5  ;;  %v491_v0 = vperm.slane %v476_v34, 3  ;;  %v500_v5 = vperm.slane %v486_v41, 3 }
 0x44a   :  { %v1417_v49 = vmul.f32 %v6072_v4, %v1416_v15  ;;  %vm1454_vm5 = vcmp.eq.f32.partialorder %v1453_v16, 8.507059e+37 }
 0x44b   :  { %v1432_v35 = vmul.f32 %v6074_v62, %v1431_v13  ;;  %v508_v52 = vsel %vm252_vm0, %v491_v0, %v500_v5  ;;  %v5851_v0 = vld [vmem:[#allocation10 + $0xc4] sm:$0xf] }
 0x44c   :  { %v6076_v61 = vpop.eup %6075  ;;  %v1418_v26 = vadd.f32 %v6072_v4, %v1417_v49 }
 0x44d   :  { %v1445_v29 = vmul.f32 %v6076_v61, %v1413_v31  ;;  %v1433_v43 = vadd.f32 %v6074_v62, %v1432_v35  ;;  %v6078_v55 = vpop.eup %6077  ;;  %vm1450_vm2 = vweird.f32 %v6076_v61 }
 0x44e   :  { %v1422_v63 = vsel %vm1421_vm13, %v6072_v4, %v1418_v26  ;;  %vm1451_vm4 = vmor %vm1449_vm3, %vm1450_vm2 }
 0x44f   :  { %v1446_v37 = vsub.f32 1.0, %v1445_v29  ;;  %v1427_v60 = vsel %vm1424_vm15, %v1426_v30, %v1422_v63  ;;  %v1437_v47 = vsel %vm1436_vm14, %v6074_v62, %v1433_v43 }
 0x450   :  { %v1442_v44 = vsel %vm1439_vm1, %v1441_v14, %v1437_v47  ;;  %v1461_v50 = vmul.f32 %v6078_v55, %v1427_v60 }
 0x451   :  { %v1447_v10 = vmul.f32 %v6076_v61, %v1446_v37  ;;  %v1460_v3 = vmul.f32 %v1442_v44, %v7209_v11 }
 0x453   :  { %v7253_v7 = vadd.f32 %v1461_v50, %v1460_v3  ;;  %v1448_v8 = vadd.f32 %v6076_v61, %v1447_v10 }
 0x455   :  { %6079 = vtanh.f32 %v7253_v7  ;;  %v1452_v17 = vsel %vm1451_vm4, %v6076_v61, %v1448_v8 }
 0x456   :  { %v1457_v32 = vsel %vm1454_vm5, %v1456_v21, %v1452_v17 }
 0x45b   :  { %v6080_v28 = vpop.eup %6079 }
 0x45c   :  { %v7256_v33 = vmul.f32 %v6080_v28, %v1457_v32 }
 0x45e   :  { %v1465_v11 = vpack.c.bf16 %v7256_v33, %v7256_v33 }
 0x460   :  { %1474 = vmatmul.bf16.vlgmr.msra.gmra.mxu0 %v1465_v11  ;;  %1487 = vmatmul.bf16.vlgmr.msra.gmra.mxu1 %v1465_v11 }
 0x461   :  { %1500 = vmatmul.bf16.vlgmr.msra.gmra.mxu2 %v1465_v11  ;;  %1513 = vmatmul.bf16.vlgmr.msra.gmra.mxu3 %v1465_v11 }
 0x4dd   :  { %v1475_v58 = vpop.f32.mrf.mxu0  ;;  %v1488_v1 = vpop.f32.mrf.mxu1 }
 0x4de   :  { %v1518_v2 = vadd.f32 %v1475_v58, %v505_v54  ;;  %v1519_v6 = vadd.f32 %v1488_v1, %v506_v57  ;;  %v1717_v1 = vrot.slane %v7256_v33, 6  ;;  %v5299_v33 = vld [vmem:[#allocation10 + $0xe0] sm:$0xf] }
 0x4e0   :  { %v5179_v20 = vmul.f32 -1.442695, %v1518_v2  ;;  %v5180_v24 = vmul.f32 -1.442695, %v1519_v6  ;;  %v1731_v19 = vsel %vm1725_vm7, %v7212_v56, %v1717_v1  ;;  %v5855_v56 = vld [vmem:[#allocation10 + $0xe4] sm:$0xf] }
 0x4e1   :  { %v5243_v1 = vld [vmem:[#allocation10 + $0x68] sm:$0xf] }
 0x4e2   :  { %6081 = vpow2.f32 %v5179_v20 }
 0x4e3   :  { %6083 = vpow2.f32 %v5180_v24  ;;  %v5857_v24 = vld [vmem:[#allocation10 + $0xec] sm:$0xf0] }
 0x4e4   :  { %v1501_v36 = vpop.f32.mrf.mxu2  ;;  %v1514_v38 = vpop.f32.mrf.mxu3 }
 0x4e5   :  { %v1520_v39 = vadd.f32 %v1501_v36, %v507_v25  ;;  %v1477_v40 = vpop.f32.mrf.mxu0  ;;  %v1490_v48 = vpop.f32.mrf.mxu1  ;;  %v1521_v35 = vadd.f32 %v1514_v38, %v508_v52  ;;  %v5300_v25 = vor.u32 %v5857_v24, %v5299_v33  ;;  %v5301_v36 = vld [vmem:[#allocation10 + $0xf0] sm:$0xf0]  ;;  %v5307_v38 = vld [vmem:[#allocation10 + $0xe8] sm:$0xf]  ;;  %v5854_v52 = vld [vmem:[#allocation10 + $0xd4] sm:$0xf0] }
 0x4e6   :  { %v5304_v40 = vor.u32 %v5855_v56, %v5301_v36  ;;  %v5837_v36 = vld [vmem:[#allocation10 + $0x4c] sm:$0xf0] }
 0x4e7   :  { %v5181_v51 = vmul.f32 -1.442695, %v1520_v39  ;;  %v5858_v39 = vld [vmem:[#allocation10 + $0xf4] sm:$0xf0]  ;;  %1937 = vmatpush.bf16.msra.mxu0 %v5300_v25  ;;  %v5219_v25 = vld [vmem:[#allocation10 + $0x40] sm:$0xf] }
 0x4e8   :  { %v6082_v31 = vpop.eup %6081  ;;  %v5308_v48 = vor.u32 %v5858_v39, %v5307_v38  ;;  %1951 = vmatpush.bf16.msra.mxu1 %v5304_v40  ;;  %v5835_v38 = vld [vmem:[#allocation10 + $0x44] sm:$0xf]  ;;  %v5220_v39 = vor.u32 %v5837_v36, %v5219_v25  ;;  %v5221_v40 = vld [vmem:[#allocation10 + $0x50] sm:$0xf0]  ;;  %v5888_v25 = vld [vmem:[#allocation12 + $0xec] sm:$0xf] }
 0x4e9   :  { %v6084_v4 = vpop.eup %6083  ;;  %v1531_v59 = vadd.f32 1.0, %v6082_v31  ;;  %6085 = vpow2.f32 %v5181_v51  ;;  %v5856_v51 = vld [vmem:[#allocation10 + $0xec] sm:$0xf]  ;;  %v5309_v31 = vld [vmem:[#allocation10 + $0xf8] sm:$0xf0] }
 0x4ea   :  { %v1532_v62 = vadd.f32 1.0, %v6084_v4  ;;  %v5312_v4 = vor.u32 %v5856_v51, %v5309_v31  ;;  %1965 = vmatpush.bf16.msra.mxu2 %v5308_v48  ;;  %v5227_v48 = vld [vmem:[#allocation10 + $0x48] sm:$0xf]  ;;  %v5838_v51 = vld [vmem:[#allocation10 + $0x54] sm:$0xf0] }
 0x4eb   :  { %6087 = vrcp.f32 %v1531_v59  ;;  %v1545_v43 = vand.u32 2147483648, %v1531_v59  ;;  %v1543_v55 = vand.u32 2147483647, %v1531_v59  ;;  %vm1539_vm11 = vweird.f32 %v1531_v59  ;;  %v5438_v36 = vld [vmem:[#allocation12 + $0xf8] sm:$0xf0] }
 0x4ec   :  { %6089 = vrcp.f32 %v1532_v62  ;;  %v1503_v15 = vpop.f32.mrf.mxu2  ;;  %v1516_v13 = vpop.f32.mrf.mxu3  ;;  %v1560_v14 = vand.u32 2147483648, %v1532_v62  ;;  %v1558_v60 = vand.u32 2147483647, %v1532_v62  ;;  %vm1554_vm12 = vweird.f32 %v1532_v62  ;;  %1979 = vmatpush.bf16.msra.mxu3 %v5312_v4 }
 0x4ed   :  { %v1546_v10 = vor.u32 1.1754944e-38, %v1545_v43  ;;  %vm1544_vm15 = vcmp.eq.f32.partialorder %v1543_v55, 8.507059e+37  ;;  %v5285_v15 = vld [vmem:[#allocation10 + $0xd0] sm:$0xf0]  ;;  %v5291_v13 = vld [vmem:[#allocation10 + $0xc8] sm:$0xf] }
 0x4ee   :  { %v1561_v8 = vor.u32 1.1754944e-38, %v1560_v14  ;;  %vm1559_vm1 = vcmp.eq.f32.partialorder %v1558_v60, 8.507059e+37  ;;  %v5269_v43 = vld [vmem:[#allocation10 + $0xb0] sm:$0xf0]  ;;  %v5275_v14 = vld [vmem:[#allocation10 + $0xa8] sm:$0xf] }
 0x4ef   :  { %v6086_v18 = vpop.eup %6085  ;;  %v5848_v60 = vld [vmem:[#allocation10 + $0xac] sm:$0xf] }
 0x4f0   :  { %v1533_v49 = vadd.f32 1.0, %v6086_v18  ;;  %v5288_v18 = vor.u32 %v5851_v0, %v5285_v15  ;;  %v5836_v0 = vld [vmem:[#allocation10 + $0x4c] sm:$0xf] }
 0x4f1   :  { %v6088_v23 = vpop.eup %6087 }
 0x4f2   :  { %v6090_v27 = vpop.eup %6089  ;;  %v1535_v61 = vmul.f32 %v6088_v23, %v1531_v59  ;;  %6091 = vrcp.f32 %v1533_v49  ;;  %vm1540_vm9 = vweird.f32 %v6088_v23  ;;  %v1575_v46 = vand.u32 2147483648, %v1533_v49  ;;  %v5283_v59 = vld [vmem:[#allocation10 + $0xc0] sm:$0xf]  ;;  %1952 = vmatpush.bf16.msra.mxu1 %v5288_v18  ;;  %v5831_v18 = vld [vmem:[#allocation10 + $0x24] sm:$0xf] }
 0x4f3   :  { %v1550_v26 = vmul.f32 %v6090_v27, %v1532_v62  ;;  %6093 = vtanh.f32 %v1521_v35  ;;  %vm1555_vm10 = vweird.f32 %v6090_v27  ;;  %vm1541_vm13 = vmor %vm1539_vm11, %vm1540_vm9  ;;  %vm1569_vm3 = vweird.f32 %v1533_v49  ;;  %v5853_v62 = vld [vmem:[#allocation10 + $0xcc] sm:$0xf0]  ;;  %v5293_v35 = vld [vmem:[#allocation10 + $0xd8] sm:$0xf0] }
 0x4f4   :  { %v1536_v29 = vsub.f32 1.0, %v1535_v61  ;;  %vm1556_vm14 = vmor %vm1554_vm12, %vm1555_vm10  ;;  %v1573_v53 = vand.u32 2147483647, %v1533_v49  ;;  %v1576_v57 = vor.u32 1.1754944e-38, %v1575_v46  ;;  %v5284_v5 = vor.u32 %v5853_v62, %v5283_v59  ;;  %v5267_v61 = vld [vmem:[#allocation10 + $0xa0] sm:$0xf] }
 0x4f5   :  { %v1551_v30 = vsub.f32 1.0, %v1550_v26  ;;  %v5849_v26 = vld [vmem:[#allocation10 + $0xac] sm:$0xf0]  ;;  %v5235_v46 = vld [vmem:[#allocation10 + $0x60] sm:$0xf]  ;;  %v5224_v59 = vor.u32 %v5835_v38, %v5221_v40  ;;  %v5228_v62 = vor.u32 %v5838_v51, %v5227_v48 }
 0x4f6   :  { %v1537_v63 = vmul.f32 %v6088_v23, %v1536_v29  ;;  %vm1574_vm5 = vcmp.eq.f32.partialorder %v1573_v53, 8.507059e+37  ;;  %1938 = vmatpush.bf16.msra.mxu0 %v5284_v5  ;;  %v5847_v29 = vld [vmem:[#allocation10 + $0xa4] sm:$0xf]  ;;  %v5841_v53 = vld [vmem:[#allocation10 + $0x6c] sm:$0xf0] }
 0x4f7   :  { %v1552_v37 = vmul.f32 %v6090_v27, %v1551_v30  ;;  %v5268_v30 = vor.u32 %v5849_v26, %v5267_v61  ;;  %v5272_v55 = vor.u32 %v5847_v29, %v5269_v43  ;;  %v5229_v5 = vld [vmem:[#allocation10 + $0x58] sm:$0xf0]  ;;  %v5834_v61 = vld [vmem:[#allocation10 + $0x34] sm:$0xf0]  ;;  %v5412_v40 = vld [vmem:[#allocation12 + $0xc0] sm:$0xf] }
 0x4f8   :  { %v6092_v47 = vpop.eup %6091  ;;  %v1538_v44 = vadd.f32 %v6088_v23, %v1537_v63  ;;  %v5850_v63 = vld [vmem:[#allocation10 + $0xb4] sm:$0xf0]  ;;  %v5232_v15 = vor.u32 %v5836_v0, %v5229_v5  ;;  %v5885_v48 = vld [vmem:[#allocation12 + $0xcc] sm:$0xf0]  ;;  %v5883_v51 = vld [vmem:[#allocation12 + $0xc4] sm:$0xf] }
 0x4f9   :  { %v1565_v50 = vmul.f32 %v6092_v47, %v1533_v49  ;;  %v1553_v3 = vadd.f32 %v6090_v27, %v1552_v37  ;;  %v6094_v16 = vpop.eup %6093  ;;  %vm1570_vm2 = vweird.f32 %v6092_v47  ;;  %v5292_v49 = vor.u32 %v5854_v52, %v5291_v13  ;;  %1953 = vmatpush.bf16.msra.mxu1 %v5272_v55  ;;  %v5203_v13 = vld [vmem:[#allocation10 + $0x20] sm:$0xf]  ;;  %v5833_v52 = vld [vmem:[#allocation10 + $0x2c] sm:$0xf0]  ;;  %v5420_v0 = vld [vmem:[#allocation12 + $0xc8] sm:$0xf] }
 0x4fa   :  { %v1542_v12 = vsel %vm1541_vm13, %v6088_v23, %v1538_v44  ;;  %vm1571_vm4 = vmor %vm1569_vm3, %vm1570_vm2  ;;  %v5852_v23 = vld [vmem:[#allocation10 + $0xcc] sm:$0xf]  ;;  %v5276_v37 = vor.u32 %v5850_v63, %v5275_v14  ;;  %1939 = vmatpush.bf16.msra.mxu0 %v5268_v30  ;;  %v5213_v63 = vld [vmem:[#allocation10 + $0x38] sm:$0xf0] }
 0x4fb   :  { %v1566_v17 = vsub.f32 1.0, %v1565_v50  ;;  %v1547_v21 = vsel %vm1544_vm15, %v1546_v10, %v1542_v12  ;;  %v1557_v28 = vsel %vm1556_vm14, %v6090_v27, %v1553_v3  ;;  %v5296_v27 = vor.u32 %v5852_v23, %v5293_v35  ;;  %1966 = vmatpush.bf16.msra.mxu2 %v5292_v49  ;;  %v5251_v50 = vld [vmem:[#allocation10 + $0x80] sm:$0xf]  ;;  %v5845_v10 = vld [vmem:[#allocation10 + $0x8c] sm:$0xf0] }
 0x4fc   :  { %v1562_v32 = vsel %vm1559_vm1, %v1561_v8, %v1557_v28  ;;  %v1581_v11 = vmul.f32 %v6094_v16, %v1547_v21  ;;  %v5843_v3 = vld [vmem:[#allocation10 + $0x84] sm:$0xf]  ;;  %v5252_v8 = vor.u32 %v5845_v10, %v5251_v50  ;;  %v5253_v12 = vld [vmem:[#allocation10 + $0x90] sm:$0xf0]  ;;  %v5259_v16 = vld [vmem:[#allocation10 + $0x88] sm:$0xf]  ;;  %v5204_v23 = vor.u32 %v5833_v52, %v5203_v13 }
 0x4fd   :  { %v1567_v34 = vmul.f32 %v6092_v47, %v1566_v17  ;;  %v1580_v41 = vmul.f32 %v1562_v32, %v7253_v7  ;;  %1980 = vmatpush.bf16.msra.mxu3 %v5296_v27  ;;  %v5846_v17 = vld [vmem:[#allocation10 + $0x94] sm:$0xf0]  ;;  %v5256_v21 = vor.u32 %v5843_v3, %v5253_v12  ;;  %v5844_v32 = vld [vmem:[#allocation10 + $0x8c] sm:$0xf]  ;;  %v5205_v35 = vld [vmem:[#allocation10 + $0x30] sm:$0xf0] }
 0x4fe   :  { %v5260_v28 = vor.u32 %v5846_v17, %v5259_v16  ;;  %1940 = vmatpush.bf16.msra.mxu0 %v5252_v8  ;;  %v5211_v27 = vld [vmem:[#allocation10 + $0x28] sm:$0xf]  ;;  %v5208_v30 = vor.u32 %v5831_v18, %v5205_v35  ;;  %v5832_v14 = vld [vmem:[#allocation10 + $0x2c] sm:$0xf]  ;;  %v5187_v10 = vld [vmem:[#allocation10] sm:$0xf] }
 0x4ff   :  { %v7265_v42 = vadd.f32 %v1581_v11, %v1580_v41  ;;  %v1568_v45 = vadd.f32 %v6092_v47, %v1567_v34  ;;  %1967 = vmatpush.bf16.msra.mxu2 %v5276_v37  ;;  %v5261_v11 = vld [vmem:[#allocation10 + $0x98] sm:$0xf0]  ;;  %v7287_v34 = vld [vmem:[%s517_s11] ss:$8 sm:$0xf]  ;;  %1954 = vmatpush.bf16.msra.mxu1 %v5256_v21  ;;  %v5212_v43 = vor.u32 %v5834_v61, %v5211_v27 }
 0x500   :  { %v7290_v41 = vld [vmem:[%s527_s17] ss:$8 sm:$0xf]  ;;  %v530_v33 = vperm.slane %v7287_v34, 0  ;;  %v531_v31 = vperm.slane %v7287_v34, 1  ;;  %v532_v29 = vperm.slane %v7287_v34, 2 }
 0x501   :  { %6095 = vtanh.f32 %v7265_v42  ;;  %v1572_v54 = vsel %vm1571_vm4, %v6092_v47, %v1568_v45  ;;  %v5277_v47 = vld [vmem:[#allocation10 + $0xb8] sm:$0xf0]  ;;  %v5264_v45 = vor.u32 %v5844_v32, %v5261_v11  ;;  %v539_v24 = vperm.slane %v7290_v41, 0  ;;  %v5829_v3 = vld [vmem:[#allocation10 + $0xc] sm:$0xf0] }
 0x502   :  { %v1577_v2 = vsel %vm1574_vm5, %v1576_v57, %v1572_v54  ;;  %v5280_v44 = vor.u32 %v5848_v60, %v5277_v47  ;;  %v5839_v54 = vld [vmem:[#allocation10 + $0x64] sm:$0xf]  ;;  %v5236_v57 = vor.u32 %v5841_v53, %v5235_v46  ;;  %v540_v4 = vperm.slane %v7290_v41, 1  ;;  %v5189_v21 = vld [vmem:[#allocation10 + $0x10] sm:$0xf0] }
 0x503   :  { %1968 = vmatpush.bf16.msra.mxu2 %v5260_v28  ;;  %v547_v49 = vsel %vm252_vm0, %v530_v33, %v539_v24  ;;  %v541_v55 = vperm.slane %v7290_v41, 2  ;;  %v533_v37 = vperm.slane %v7287_v34, 3  ;;  %v542_v60 = vperm.slane %v7290_v41, 3  ;;  %v5827_v8 = vld [vmem:[#allocation10 + $0x4] sm:$0xf] }
 0x504   :  { %1981 = vmatpush.bf16.msra.mxu3 %v5280_v44  ;;  %1941 = vmatpush.bf16.msra.mxu0 %v5236_v57  ;;  %v548_v26 = vsel %vm252_vm0, %v531_v31, %v540_v4  ;;  %v5216_v47 = vor.u32 %v5832_v14, %v5213_v63  ;;  %v5188_v17 = vor.u32 %v5829_v3, %v5187_v10  ;;  %v5195_v28 = vld [vmem:[#allocation10 + $0x8] sm:$0xf]  ;;  %v5830_v32 = vld [vmem:[#allocation10 + $0x14] sm:$0xf0]  ;;  %v5828_v46 = vld [vmem:[#allocation10 + $0xc] sm:$0xf] }
 0x505   :  { %v5192_v11 = vor.u32 %v5827_v8, %v5189_v21  ;;  %v5197_v53 = vld [vmem:[#allocation10 + $0x18] sm:$0xf0]  ;;  %v549_v33 = vsel %vm252_vm0, %v532_v29, %v541_v55  ;;  %v5886_v5 = vld [vmem:[#allocation12 + $0xd4] sm:$0xf0]  ;;  %v5396_v35 = vld [vmem:[#allocation12 + $0xa0] sm:$0xf] }
 0x506   :  { %v7319_v27 = vor.u32 %v5886_v5, %v5420_v0  ;;  %v5879_v29 = vld [vmem:[#allocation12 + $0xa4] sm:$0xf]  ;;  %v5404_v63 = vld [vmem:[#allocation12 + $0xa8] sm:$0xf]  ;;  %v5882_v55 = vld [vmem:[#allocation12 + $0xb4] sm:$0xf0] }
 0x507   :  { %v6096_v58 = vpop.eup %6095  ;;  %v5406_v10 = vld [vmem:[#allocation12 + $0xb8] sm:$0xf0]  ;;  %v5380_v3 = vld [vmem:[#allocation12 + $0x80] sm:$0xf]  ;;  %v5877_v21 = vld [vmem:[#allocation12 + $0x8c] sm:$0xf0] }
 0x508   :  { %v1584_v6 = vmul.f32 %v6096_v58, %v1577_v2  ;;  %1982 = vmatpush.bf16.msra.mxu3 %v5264_v45  ;;  %v5237_v58 = vld [vmem:[#allocation10 + $0x70] sm:$0xf0]  ;;  %v5842_v2 = vld [vmem:[#allocation10 + $0x74] sm:$0xf0]  ;;  %1942 = vmatpush.bf16.msra.mxu0 %v5220_v39  ;;  %v5196_v45 = vor.u32 %v5830_v32, %v5195_v28  ;;  %v7310_v39 = vor.u32 %v5888_v25, %v5438_v36  ;;  %v5875_v28 = vld [vmem:[#allocation12 + $0x84] sm:$0xf] }
 0x509   :  { %v5364_v41 = vld [vmem:[#allocation12 + $0x60] sm:$0xf]  ;;  %v5873_v34 = vld [vmem:[#allocation12 + $0x6c] sm:$0xf0]  ;;  %v5366_v25 = vld [vmem:[#allocation12 + $0x70] sm:$0xf0] }
 0x50a   :  { %v1585_v9 = vpack.c.bf16 %v1584_v6, %v1584_v6  ;;  %v1720_v7 = vrot.slane %v1584_v6, 4  ;;  %v5240_v6 = vor.u32 %v5839_v54, %v5237_v58  ;;  %v5428_v54 = vld [vmem:[#allocation12 + $0xe0] sm:$0xf]  ;;  %v5372_v36 = vld [vmem:[#allocation12 + $0x68] sm:$0xf] }
 0x50b   :  { %v5374_v0 = vld [vmem:[#allocation12 + $0x78] sm:$0xf0]  ;;  %v5348_v5 = vld [vmem:[#allocation12 + $0x40] sm:$0xf] }
 0x50c   :  { %1594 = vmatmul.bf16.vlgmr.msrb.gmra.mxu0 %v1585_v9  ;;  %1607 = vmatmul.bf16.vlgmr.msrb.gmra.mxu1 %v1585_v9  ;;  %v7272_v20 = vsel %vm1727_vm8, %v1731_v19, %v1720_v7  ;;  %v5840_v7 = vld [vmem:[#allocation10 + $0x6c] sm:$0xf]  ;;  %v5245_v19 = vld [vmem:[#allocation10 + $0x78] sm:$0xf0] }
 0x50d   :  { %1620 = vmatmul.bf16.vlgmr.msrb.gmra.mxu2 %v1585_v9  ;;  %1633 = vmatmul.bf16.vlgmr.msrb.gmra.mxu3 %v1585_v9  ;;  %v5244_v9 = vor.u32 %v5842_v2, %v5243_v1  ;;  %v5248_v56 = vor.u32 %v5840_v7, %v5245_v19  ;;  %v5200_v1 = vor.u32 %v5828_v46, %v5197_v53  ;;  %v5889_v2 = vld [vmem:[#allocation12 + $0xec] sm:$0xf0]  ;;  %v5430_v7 = vld [vmem:[#allocation12 + $0xf0] sm:$0xf0]  ;;  %v5436_v19 = vld [vmem:[#allocation12 + $0xe8] sm:$0xf] }
 0x50e   :  { %1955 = vmatpush.bf16.msra.mxu1 %v5240_v6  ;;  %1943 = vmatpush.bf16.msra.mxu0 %v5204_v23  ;;  %v7302_v6 = vor.u32 %v5889_v2, %v5428_v54  ;;  %v5422_v23 = vld [vmem:[#allocation12 + $0xd8] sm:$0xf0]  ;;  %v7341_v46 = vor.u32 %v5877_v21, %v5380_v3  ;;  %v5878_v53 = vld [vmem:[#allocation12 + $0x94] sm:$0xf0]  ;;  %v550_v54 = vsel %vm252_vm0, %v533_v37, %v542_v60 }
 0x50f   :  { %1969 = vmatpush.bf16.msra.mxu2 %v5244_v9  ;;  %1983 = vmatpush.bf16.msra.mxu3 %v5248_v56  ;;  %v5887_v9 = vld [vmem:[#allocation12 + $0xe4] sm:$0xf]  ;;  %v5890_v56 = vld [vmem:[#allocation12 + $0xf4] sm:$0xf0]  ;;  %v7359_v60 = vor.u32 %v5873_v34, %v5364_v41  ;;  %v5358_v3 = vld [vmem:[#allocation12 + $0x58] sm:$0xf0] }
 0x510   :  { %v7305_v24 = vor.u32 %v5887_v9, %v5430_v7  ;;  %v7308_v38 = vor.u32 %v5890_v56, %v5436_v19  ;;  %v5390_v7 = vld [vmem:[#allocation12 + $0x98] sm:$0xf0]  ;;  %v5871_v56 = vld [vmem:[#allocation12 + $0x64] sm:$0xf] }
 0x512   :  { %1956 = vmatpush.bf16.msra.mxu1 %v5224_v59  ;;  %1944 = vmatpush.bf16.msra.mxu0 %v5188_v17  ;;  %v7313_v59 = vor.u32 %v5885_v48, %v5412_v40  ;;  %v7364_v48 = vor.u32 %v5871_v56, %v5366_v25  ;;  %v5342_v56 = vld [vmem:[#allocation12 + $0x38] sm:$0xf0] }
 0x513   :  { %1970 = vmatpush.bf16.msra.mxu2 %v5228_v62  ;;  %1984 = vmatpush.bf16.msra.mxu3 %v5232_v15  ;;  %v5414_v62 = vld [vmem:[#allocation12 + $0xd0] sm:$0xf0] }
 0x514   :  { %v7317_v18 = vor.u32 %v5883_v51, %v5414_v62  ;;  %v5874_v51 = vld [vmem:[#allocation12 + $0x74] sm:$0xf0] }
 0x516   :  { %1957 = vmatpush.bf16.msra.mxu1 %v5208_v30  ;;  %2190 = vmatpush.bf16.msrb.mxu0 %v7302_v6  ;;  %v5398_v30 = vld [vmem:[#allocation12 + $0xb0] sm:$0xf0] }
 0x517   :  { %1971 = vmatpush.bf16.msra.mxu2 %v5212_v43  ;;  %1985 = vmatpush.bf16.msra.mxu3 %v5216_v47 }
 0x51a   :  { %1958 = vmatpush.bf16.msra.mxu1 %v5192_v11  ;;  %2191 = vmatpush.bf16.msrb.mxu0 %v7313_v59  ;;  %v5382_v11 = vld [vmem:[#allocation12 + $0x90] sm:$0xf0] }
 0x51b   :  { %1972 = vmatpush.bf16.msra.mxu2 %v5196_v45  ;;  %1986 = vmatpush.bf16.msra.mxu3 %v5200_v1  ;;  %v5388_v45 = vld [vmem:[#allocation12 + $0x88] sm:$0xf]  ;;  %v5876_v1 = vld [vmem:[#allocation12 + $0x8c] sm:$0xf]  ;;  %v7352_v2 = vor.u32 %v5875_v28, %v5382_v11 }
 0x51c   :  { %v7354_v9 = vor.u32 %v5878_v53, %v5388_v45  ;;  %v7356_v19 = vor.u32 %v5876_v1, %v5390_v7  ;;  %v5332_v45 = vld [vmem:[#allocation12 + $0x20] sm:$0xf]  ;;  %v5865_v53 = vld [vmem:[#allocation12 + $0x2c] sm:$0xf0]  ;;  %v5334_v1 = vld [vmem:[#allocation12 + $0x30] sm:$0xf0] }
 0x51d   :  { %v5340_v7 = vld [vmem:[#allocation12 + $0x28] sm:$0xf]  ;;  %v7403_v34 = vor.u32 %v5865_v53, %v5332_v45 }
 0x51e   :  { %2203 = vmatpush.bf16.msrb.mxu1 %v7305_v24 }
 0x51f   :  { %2216 = vmatpush.bf16.msrb.mxu2 %v7308_v38  ;;  %2229 = vmatpush.bf16.msrb.mxu3 %v7310_v39 }
 0x522   :  { %2204 = vmatpush.bf16.msrb.mxu1 %v7317_v18 }
 0x523   :  { %2217 = vmatpush.bf16.msrb.mxu2 %v7319_v27 }
 0x589   :  { %v1595_v44 = vpop.f32.mrf.mxu0  ;;  %v1608_v50 = vpop.f32.mrf.mxu1 }
 0x58a   :  { %v1638_v12 = vadd.f32 %v1595_v44, %v547_v49  ;;  %v1639_v16 = vadd.f32 %v1608_v50, %v548_v26  ;;  %v5884_v49 = vld [vmem:[#allocation12 + $0xcc] sm:$0xf]  ;;  %v5881_v26 = vld [vmem:[#allocation12 + $0xac] sm:$0xf0]  ;;  %v7327_v44 = vor.u32 %v5879_v29, %v5398_v30  ;;  %v5356_v30 = vld [vmem:[#allocation12 + $0x48] sm:$0xf] }
 0x58b   :  { %v7321_v61 = vor.u32 %v5884_v49, %v5422_v23  ;;  %v7324_v14 = vor.u32 %v5881_v26, %v5396_v35  ;;  %v5880_v50 = vld [vmem:[#allocation12 + $0xac] sm:$0xf]  ;;  %v5867_v23 = vld [vmem:[#allocation12 + $0x44] sm:$0xf]  ;;  %v5350_v35 = vld [vmem:[#allocation12 + $0x50] sm:$0xf0] }
 0x58c   :  { %v5182_v57 = vmul.f32 -1.442695, %v1638_v12  ;;  %v5183_v58 = vmul.f32 -1.442695, %v1639_v16  ;;  %v7333_v16 = vor.u32 %v5882_v55, %v5404_v63  ;;  %v7335_v17 = vor.u32 %v5880_v50, %v5406_v10  ;;  %2205 = vmatpush.bf16.msrb.mxu1 %v7327_v44  ;;  %v5868_v10 = vld [vmem:[#allocation12 + $0x4c] sm:$0xf] }
 0x58d   :  { %2230 = vmatpush.bf16.msrb.mxu3 %v7321_v61  ;;  %2192 = vmatpush.bf16.msrb.mxu0 %v7324_v14  ;;  %v7390_v28 = vor.u32 %v5867_v23, %v5350_v35 }
 0x58e   :  { %6097 = vpow2.f32 %v5182_v57  ;;  %2218 = vmatpush.bf16.msrb.mxu2 %v7333_v16 }
 0x58f   :  { %6099 = vpow2.f32 %v5183_v58 }
 0x590   :  { %v1621_v31 = vpop.f32.mrf.mxu2  ;;  %v1634_v4 = vpop.f32.mrf.mxu3  ;;  %2206 = vmatpush.bf16.msrb.mxu1 %v7352_v2 }
 0x591   :  { %v1640_v15 = vadd.f32 %v1621_v31, %v549_v33  ;;  %v1597_v13 = vpop.f32.mrf.mxu0  ;;  %v1610_v52 = vpop.f32.mrf.mxu1  ;;  %2231 = vmatpush.bf16.msrb.mxu3 %v7335_v17  ;;  %v1641_v37 = vadd.f32 %v1634_v4, %v550_v54  ;;  %2193 = vmatpush.bf16.msrb.mxu0 %v7341_v46  ;;  %v5872_v31 = vld [vmem:[#allocation12 + $0x6c] sm:$0xf]  ;;  %v7370_v4 = vor.u32 %v5874_v51, %v5372_v36 }
 0x592   :  { %2219 = vmatpush.bf16.msrb.mxu2 %v7354_v9 }
 0x593   :  { %v5184_v43 = vmul.f32 -1.442695, %v1640_v15  ;;  %v5869_v15 = vld [vmem:[#allocation12 + $0x4c] sm:$0xf0] }
 0x594   :  { %v6098_v47 = vpop.eup %6097  ;;  %2207 = vmatpush.bf16.msrb.mxu1 %v7364_v48  ;;  %v7386_v50 = vor.u32 %v5869_v15, %v5348_v5  ;;  %v5861_v5 = vld [vmem:[#allocation12 + $0xc] sm:$0xf0] }
 0x595   :  { %v6100_v8 = vpop.eup %6099  ;;  %v7329_v12 = vadd.f32 1.0, %v6098_v47  ;;  %6101 = vpow2.f32 %v5184_v43  ;;  %2232 = vmatpush.bf16.msrb.mxu3 %v7356_v19  ;;  %2194 = vmatpush.bf16.msrb.mxu0 %v7359_v60  ;;  %v5870_v43 = vld [vmem:[#allocation12 + $0x54] sm:$0xf0]  ;;  %v7384_v47 = vor.u32 %v5872_v31, %v5374_v0  ;;  %v5316_v0 = vld [vmem:[#allocation12] sm:$0xf] }
 0x596   :  { %v7337_v32 = vadd.f32 1.0, %v6100_v8  ;;  %2220 = vmatpush.bf16.msrb.mxu2 %v7370_v4  ;;  %v7392_v11 = vor.u32 %v5870_v43, %v5356_v30  ;;  %v5859_v30 = vld [vmem:[#allocation12 + $0x4] sm:$0xf]  ;;  %v5318_v43 = vld [vmem:[#allocation12 + $0x10] sm:$0xf0] }
 0x597   :  { %6103 = vrcp.f32 %v7329_v12  ;;  %v1663_v49 = vand.u32 2147483647, %v7329_v12  ;;  %v1665_v55 = vand.u32 2147483648, %v7329_v12  ;;  %vm1659_vm10 = vweird.f32 %v7329_v12 }
 0x598   :  { %6105 = vrcp.f32 %v7337_v32  ;;  %v1623_v57 = vpop.f32.mrf.mxu2  ;;  %v1636_v58 = vpop.f32.mrf.mxu3  ;;  %v1678_v29 = vand.u32 2147483647, %v7337_v32  ;;  %v1680_v21 = vand.u32 2147483648, %v7337_v32  ;;  %vm1674_vm11 = vweird.f32 %v7337_v32  ;;  %2208 = vmatpush.bf16.msrb.mxu1 %v7390_v28 }
 0x599   :  { %2233 = vmatpush.bf16.msrb.mxu3 %v7384_v47  ;;  %v7397_v57 = vor.u32 %v5868_v10, %v5358_v3  ;;  %v5863_v58 = vld [vmem:[#allocation12 + $0x24] sm:$0xf]  ;;  %2195 = vmatpush.bf16.msrb.mxu0 %v7386_v50  ;;  %vm7407_vm12 = vcmp.eq.f32.partialorder %v1663_v49, 8.507059e+37  ;;  %v1666_v49 = vor.u32 1.1754944e-38, %v1665_v55  ;;  %v5324_v3 = vld [vmem:[#allocation12 + $0x8] sm:$0xf] }
 0x59a   :  { %v7412_v31 = vor.u32 %v5863_v58, %v5334_v1  ;;  %2221 = vmatpush.bf16.msrb.mxu2 %v7392_v11  ;;  %vm1679_vm15 = vcmp.eq.f32.partialorder %v1678_v29, 8.507059e+37  ;;  %v5326_v29 = vld [vmem:[#allocation12 + $0x18] sm:$0xf0]  ;;  %v7450_v1 = vor.u32 %v5859_v30, %v5318_v43 }
 0x59b   :  { %v6102_v33 = vpop.eup %6101 }
 0x59c   :  { %v7361_v40 = vadd.f32 1.0, %v6102_v33  ;;  %v5866_v33 = vld [vmem:[#allocation12 + $0x34] sm:$0xf0]  ;;  %2209 = vmatpush.bf16.msrb.mxu1 %v7412_v31 }
 0x59d   :  { %v7366_v62 = vpop.eup %6103  ;;  %2234 = vmatpush.bf16.msrb.mxu3 %v7397_v57  ;;  %2196 = vmatpush.bf16.msrb.mxu0 %v7403_v34 }
 0x59e   :  { %v7372_v13 = vpop.eup %6105  ;;  %v1655_v52 = vmul.f32 %v7366_v62, %v7329_v12  ;;  %6107 = vrcp.f32 %v7361_v40  ;;  %vm1660_vm0 = vweird.f32 %v7366_v62  ;;  %v1681_v12 = vor.u32 1.1754944e-38, %v1680_v21 }
 0x59f   :  { %v1670_v26 = vmul.f32 %v7372_v13, %v7337_v32  ;;  %6109 = vtanh.f32 %v1641_v37  ;;  %vm1675_vm9 = vweird.f32 %v7372_v13  ;;  %v5864_v37 = vld [vmem:[#allocation12 + $0x2c] sm:$0xf]  ;;  %vm7419_vm13 = vmor %vm1659_vm10, %vm1660_vm0  ;;  %v7447_v21 = vor.u32 %v5861_v5, %v5316_v0 }
 0x5a0   :  { %v1656_v63 = vsub.f32 1.0, %v1655_v52  ;;  %vm7431_vm14 = vmor %vm1674_vm11, %vm1675_vm9  ;;  %v7439_v10 = vor.u32 %v5864_v37, %v5342_v56  ;;  %2210 = vmatpush.bf16.msrb.mxu1 %v7450_v1  ;;  %vm1689_vm2 = vweird.f32 %v7361_v40 }
 0x5a1   :  { %v1671_v8 = vsub.f32 1.0, %v1670_v26  ;;  %v7425_v26 = vor.u32 %v5866_v33, %v5340_v7  ;;  %2197 = vmatpush.bf16.msrb.mxu0 %v7447_v21 }
 0x5a2   :  { %v1657_v54 = vmul.f32 %v7366_v62, %v1656_v63  ;;  %2235 = vmatpush.bf16.msrb.mxu3 %v7439_v10  ;;  %v7536_v63 = vld [vmem:[#allocation13] sm:$0xf] }
 0x5a3   :  { %v1672_v41 = vmul.f32 %v7372_v13, %v1671_v8  ;;  %v5862_v8 = vld [vmem:[#allocation12 + $0x14] sm:$0xf0]  ;;  %2222 = vmatpush.bf16.msrb.mxu2 %v7425_v26  ;;  %8347 = vst [vmem:[#allocation34_spill] sm:$0xff] %v7536_v63 }
 0x5a4   :  { %v6108_v25 = vpop.eup %6107  ;;  %v1658_v36 = vadd.f32 %v7366_v62, %v1657_v54  ;;  %v7454_v33 = vor.u32 %v5862_v8, %v5324_v3  ;;  %v8335_v3 = vperm.slane %v7536_v63, 0  ;;  %v8334_v8 = vperm.slane %v7536_v63, 1 }
 0x5a5   :  { %v6110_v15 = vpop.eup %6109  ;;  %v1685_v52 = vmul.f32 %v6108_v25, %v7361_v40  ;;  %v1673_v35 = vadd.f32 %v7372_v13, %v1672_v41  ;;  %vm1690_vm1 = vweird.f32 %v6108_v25 }
 0x5a6   :  { %v1662_v55 = vsel %vm7419_vm13, %v7366_v62, %v1658_v36  ;;  %v5860_v62 = vld [vmem:[#allocation12 + $0xc] sm:$0xf]  ;;  %v1695_v36 = vand.u32 2147483648, %v7361_v40  ;;  %vm1691_vm3 = vmor %vm1689_vm2, %vm1690_vm1 }
 0x5a7   :  { %v1686_v45 = vsub.f32 1.0, %v1685_v52  ;;  %v1667_v32 = vsel %vm7407_vm12, %v1666_v49, %v1662_v55  ;;  %v1677_v53 = vsel %vm7431_vm14, %v7372_v13, %v1673_v35  ;;  %v7457_v13 = vor.u32 %v5860_v62, %v5326_v29  ;;  %2223 = vmatpush.bf16.msrb.mxu2 %v7454_v33 }
 0x5a8   :  { %v1682_v54 = vsel %vm1679_vm15, %v1681_v12, %v1677_v53  ;;  %v1701_v58 = vmul.f32 %v6110_v15, %v1667_v32  ;;  %v1696_v0 = vor.u32 1.1754944e-38, %v1695_v36 }
 0x5a9   :  { %v1687_v7 = vmul.f32 %v6108_v25, %v1686_v45  ;;  %v1700_v41 = vmul.f32 %v1682_v54, %v7265_v42  ;;  %v1693_v42 = vand.u32 2147483647, %v7361_v40  ;;  %2236 = vmatpush.bf16.msrb.mxu3 %v7457_v13 }
 0x5ab   :  { %v1702_v37 = vadd.f32 %v1701_v58, %v1700_v41  ;;  %v1688_v56 = vadd.f32 %v6108_v25, %v1687_v7  ;;  %vm1694_vm4 = vcmp.eq.f32.partialorder %v1693_v42, 8.507059e+37  ;;  %v8333_v41 = vperm.slane %v7536_v63, 2 }
 0x5ad   :  { %6111 = vtanh.f32 %v1702_v37  ;;  %1706 = vst [vmem:[#allocation24] sm:$0x3] %v1702_v37  ;;  %v1692_v51 = vsel %vm1691_vm3, %v6108_v25, %v1688_v56 }
 0x5ae   :  { %v1697_v15 = vsel %vm1694_vm4, %v1696_v0, %v1692_v51 }
 0x5b3   :  { %v6112_v5 = vpop.eup %6111 }
 0x5b4   :  { %v1704_v52 = vmul.f32 %v6112_v5, %v1697_v15 }
 0x5b6   :  { %v1723_v23 = vrot.slane %v1704_v52, 2  ;;  %1705 = vst [vmem:[#allocation22] sm:$0x3] %v1704_v52 }
 0x5b8   :  { %v1733_v49 = vsel %vm1729_vm6, %v7272_v20, %v1723_v23 }
 0x5b9   :  { %v1734_v35 = vpack.c.bf16 %v1733_v49, %v7170_v22  ;;  %v5313_v22 = vld [vmem:[%s8318_s2 + $0x2] sm:$0x3] }
 0x5ba   :  { %v1997_v20 = vpack.c.bf16 %v5313_v22, %v5313_v22 }
 0x5bb   :  { %1945 = vmatmul.bf16.vlgmr.msra.gmra.mxu0 %v1734_v35  ;;  %1959 = vmatmul.bf16.vlgmr.msra.gmra.mxu1 %v1734_v35 }
 0x5bc   :  { %1973 = vmatmul.bf16.vlgmr.msra.gmra.mxu2 %v1734_v35  ;;  %1987 = vmatmul.bf16.vlgmr.msra.gmra.mxu3 %v1734_v35 }
 0x5bd   :  { %2310 = vmatpush.bf16.msra.mxu0 %v7302_v6  ;;  %2323 = vmatpush.bf16.msra.mxu1 %v7305_v24 }
 0x5be   :  { %2336 = vmatpush.bf16.msra.mxu2 %v7308_v38  ;;  %2349 = vmatpush.bf16.msra.mxu3 %v7310_v39 }
 0x5c1   :  { %2311 = vmatpush.bf16.msra.mxu0 %v7313_v59  ;;  %2324 = vmatpush.bf16.msra.mxu1 %v7317_v18 }
 0x5c2   :  { %2337 = vmatpush.bf16.msra.mxu2 %v7319_v27  ;;  %2350 = vmatpush.bf16.msra.mxu3 %v7321_v61 }
 0x5c5   :  { %2312 = vmatpush.bf16.msra.mxu0 %v7324_v14  ;;  %2325 = vmatpush.bf16.msra.mxu1 %v7327_v44 }
 0x5c6   :  { %2338 = vmatpush.bf16.msra.mxu2 %v7333_v16  ;;  %2351 = vmatpush.bf16.msra.mxu3 %v7335_v17 }
 0x5c9   :  { %2313 = vmatpush.bf16.msra.mxu0 %v7341_v46  ;;  %2326 = vmatpush.bf16.msra.mxu1 %v7352_v2 }
 0x5ca   :  { %2339 = vmatpush.bf16.msra.mxu2 %v7354_v9  ;;  %2352 = vmatpush.bf16.msra.mxu3 %v7356_v19 }
 0x5cb   :  { %2198 = vmatmul.bf16.vlgmr.msrb.gmra.mxu0 %v1997_v20  ;;  %2211 = vmatmul.bf16.vlgmr.msrb.gmra.mxu1 %v1997_v20 }
 0x5cc   :  { %2224 = vmatmul.bf16.vlgmr.msrb.gmra.mxu2 %v1997_v20  ;;  %2237 = vmatmul.bf16.vlgmr.msrb.gmra.mxu3 %v1997_v20  ;;  %v8332_v20 = vperm.slane %v7536_v63, 3 }
 0x5cd   :  { %2314 = vmatpush.bf16.msra.mxu0 %v7359_v60  ;;  %2327 = vmatpush.bf16.msra.mxu1 %v7364_v48 }
 0x5ce   :  { %2340 = vmatpush.bf16.msra.mxu2 %v7370_v4  ;;  %2353 = vmatpush.bf16.msra.mxu3 %v7384_v47 }
 0x5d1   :  { %2315 = vmatpush.bf16.msra.mxu0 %v7386_v50  ;;  %2328 = vmatpush.bf16.msra.mxu1 %v7390_v28 }
 0x5d2   :  { %2341 = vmatpush.bf16.msra.mxu2 %v7392_v11  ;;  %2354 = vmatpush.bf16.msra.mxu3 %v7397_v57 }
 0x5d5   :  { %2316 = vmatpush.bf16.msra.mxu0 %v7403_v34  ;;  %2329 = vmatpush.bf16.msra.mxu1 %v7412_v31 }
 0x5d6   :  { %2342 = vmatpush.bf16.msra.mxu2 %v7425_v26  ;;  %2355 = vmatpush.bf16.msra.mxu3 %v7439_v10 }
 0x5d9   :  { %2317 = vmatpush.bf16.msra.mxu0 %v7447_v21  ;;  %2330 = vmatpush.bf16.msra.mxu1 %v7450_v1 }
 0x5da   :  { %2343 = vmatpush.bf16.msra.mxu2 %v7454_v33  ;;  %2356 = vmatpush.bf16.msra.mxu3 %v7457_v13 }
 0x5dd   :  { %2448 = vmatpush.bf16.msrb.mxu0 %v7302_v6  ;;  %2461 = vmatpush.bf16.msrb.mxu1 %v7305_v24 }
 0x5de   :  { %2474 = vmatpush.bf16.msrb.mxu2 %v7308_v38  ;;  %2487 = vmatpush.bf16.msrb.mxu3 %v7310_v39 }
 0x5e1   :  { %2449 = vmatpush.bf16.msrb.mxu0 %v7313_v59  ;;  %2462 = vmatpush.bf16.msrb.mxu1 %v7317_v18 }
 0x5e2   :  { %2475 = vmatpush.bf16.msrb.mxu2 %v7319_v27  ;;  %2488 = vmatpush.bf16.msrb.mxu3 %v7321_v61 }
 0x5e5   :  { %2450 = vmatpush.bf16.msrb.mxu0 %v7324_v14  ;;  %2463 = vmatpush.bf16.msrb.mxu1 %v7327_v44 }
 0x5e6   :  { %2476 = vmatpush.bf16.msrb.mxu2 %v7333_v16  ;;  %2489 = vmatpush.bf16.msrb.mxu3 %v7335_v17 }
 0x5e9   :  { %2451 = vmatpush.bf16.msrb.mxu0 %v7341_v46  ;;  %2464 = vmatpush.bf16.msrb.mxu1 %v7352_v2 }
 0x5ea   :  { %2477 = vmatpush.bf16.msrb.mxu2 %v7354_v9  ;;  %2490 = vmatpush.bf16.msrb.mxu3 %v7356_v19 }
 0x5ed   :  { %2452 = vmatpush.bf16.msrb.mxu0 %v7359_v60  ;;  %2465 = vmatpush.bf16.msrb.mxu1 %v7364_v48 }
 0x5ee   :  { %2478 = vmatpush.bf16.msrb.mxu2 %v7370_v4  ;;  %2491 = vmatpush.bf16.msrb.mxu3 %v7384_v47 }
 0x5f1   :  { %2453 = vmatpush.bf16.msrb.mxu0 %v7386_v50  ;;  %2466 = vmatpush.bf16.msrb.mxu1 %v7390_v28 }
 0x5f2   :  { %2479 = vmatpush.bf16.msrb.mxu2 %v7392_v11  ;;  %2492 = vmatpush.bf16.msrb.mxu3 %v7397_v57 }
 0x5f5   :  { %2454 = vmatpush.bf16.msrb.mxu0 %v7403_v34  ;;  %2467 = vmatpush.bf16.msrb.mxu1 %v7412_v31 }
 0x5f6   :  { %2480 = vmatpush.bf16.msrb.mxu2 %v7425_v26  ;;  %2493 = vmatpush.bf16.msrb.mxu3 %v7439_v10 }
 0x5f9   :  { %2455 = vmatpush.bf16.msrb.mxu0 %v7447_v21  ;;  %2468 = vmatpush.bf16.msrb.mxu1 %v7450_v1 }
 0x5fa   :  { %2481 = vmatpush.bf16.msrb.mxu2 %v7454_v33  ;;  %2494 = vmatpush.bf16.msrb.mxu3 %v7457_v13 }
 0x638   :  { %v1946_v40 = vpop.f32.mrf.mxu0  ;;  %v1960_v25 = vpop.f32.mrf.mxu1 }
 0x639   :  { %v7546_v45 = vadd.f32 %v1946_v40, %v8335_v3  ;;  %v7550_v32 = vadd.f32 %v1960_v25, %v8334_v8 }
 0x63f   :  { %v1974_v30 = vpop.f32.mrf.mxu2  ;;  %v1988_v43 = vpop.f32.mrf.mxu3 }
 0x640   :  { %v7538_v12 = vpop.f32.mrf.mxu0  ;;  %v7540_v55 = vpop.f32.mrf.mxu1  ;;  %v7561_v36 = vadd.f32 %v1974_v30, %v8333_v41 }
 0x641   :  { %8348 = vst [vmem:[#allocation35_spill] sm:$0xff] %v7538_v12 }
 0x642   :  { %8349 = vst [vmem:[#allocation36_spill] sm:$0xff] %v7540_v55 }
 0x647   :  { %v7552_v53 = vpop.f32.mrf.mxu2  ;;  %v7554_v62 = vpop.f32.mrf.mxu3 }
 0x648   :  { %8350 = vst [vmem:[#allocation37_spill] sm:$0xff] %v7552_v53  ;;  %v2199_v29 = vpop.f32.mrf.mxu0  ;;  %v2212_v54 = vpop.f32.mrf.mxu1 }
 0x649   :  { %8351 = vst [vmem:[#allocation38_spill] sm:$0xff] %v7554_v62  ;;  %v2242_v58 = vadd.f32 %v2199_v29, %v7546_v45  ;;  %v2243_v7 = vadd.f32 %v2212_v54, %v7550_v32  ;;  %v7567_v29 = vadd.f32 %v1988_v43, %v8332_v20 }
 0x64b   :  { %v5442_v37 = vmul.f32 -1.442695, %v2242_v58  ;;  %v5443_v56 = vmul.f32 -1.442695, %v2243_v7 }
 0x64d   :  { %6113 = vpow2.f32 %v5442_v37 }
 0x64e   :  { %6115 = vpow2.f32 %v5443_v56 }
 0x64f   :  { %v2225_v42 = vpop.f32.mrf.mxu2  ;;  %v2238_v51 = vpop.f32.mrf.mxu3 }
 0x650   :  { %v2244_v0 = vadd.f32 %v2225_v42, %v7561_v36  ;;  %v2201_v5 = vpop.f32.mrf.mxu0  ;;  %v2214_v15 = vpop.f32.mrf.mxu1  ;;  %v2245_v7 = vadd.f32 %v2238_v51, %v7567_v29 }
 0x652   :  { %v5444_v52 = vmul.f32 -1.442695, %v2244_v0 }
 0x653   :  { %v6114_v23 = vpop.eup %6113 }
 0x654   :  { %v6116_v49 = vpop.eup %6115  ;;  %v2255_v35 = vadd.f32 1.0, %v6114_v23  ;;  %6117 = vpow2.f32 %v5444_v52 }
 0x655   :  { %v2256_v22 = vadd.f32 1.0, %v6116_v49 }
 0x656   :  { %6119 = vrcp.f32 %v2255_v35  ;;  %v2269_v15 = vand.u32 2147483648, %v2255_v35  ;;  %v2267_v49 = vand.u32 2147483647, %v2255_v35  ;;  %vm2263_vm9 = vweird.f32 %v2255_v35 }
 0x657   :  { %6121 = vrcp.f32 %v2256_v22  ;;  %v2227_v40 = vpop.f32.mrf.mxu2  ;;  %v2240_v25 = vpop.f32.mrf.mxu3  ;;  %v2284_v52 = vand.u32 2147483648, %v2256_v22  ;;  %v2282_v43 = vand.u32 2147483647, %v2256_v22  ;;  %vm2278_vm10 = vweird.f32 %v2256_v22 }
 0x658   :  { %v2270_v20 = vor.u32 1.1754944e-38, %v2269_v15  ;;  %vm2268_vm13 = vcmp.eq.f32.partialorder %v2267_v49, 8.507059e+37 }
 0x659   :  { %vm2283_vm14 = vcmp.eq.f32.partialorder %v2282_v43, 8.507059e+37 }
 0x65a   :  { %v6118_v30 = vpop.eup %6117 }
 0x65b   :  { %v2257_v54 = vadd.f32 1.0, %v6118_v30 }
 0x65c   :  { %v6120_v58 = vpop.eup %6119 }
 0x65d   :  { %v6122_v37 = vpop.eup %6121  ;;  %v2259_v56 = vmul.f32 %v6120_v58, %v2255_v35  ;;  %6123 = vrcp.f32 %v2257_v54  ;;  %vm2264_vm5 = vweird.f32 %v6120_v58  ;;  %v2299_v15 = vand.u32 2147483648, %v2257_v54 }
 0x65e   :  { %v2274_v42 = vmul.f32 %v6122_v37, %v2256_v22  ;;  %6125 = vtanh.f32 %v2245_v7  ;;  %vm2279_vm0 = vweird.f32 %v6122_v37  ;;  %vm2265_vm11 = vmor %vm2263_vm9, %vm2264_vm5  ;;  %vm2293_vm1 = vweird.f32 %v2257_v54 }
 0x65f   :  { %v2260_v0 = vsub.f32 1.0, %v2259_v56  ;;  %vm2280_vm12 = vmor %vm2278_vm10, %vm2279_vm0  ;;  %v2285_v56 = vor.u32 1.1754944e-38, %v2284_v52  ;;  %v2297_v52 = vand.u32 2147483647, %v2257_v54  ;;  %v2300_v49 = vor.u32 1.1754944e-38, %v2299_v15 }
 0x660   :  { %v2275_v5 = vsub.f32 1.0, %v2274_v42  ;;  %v1996_v42 = vld [vmem:[#allocation7 + $0x2] sm:$0x3] }
 0x661   :  { %v2261_v23 = vmul.f32 %v6120_v58, %v2260_v0  ;;  %vm2298_vm3 = vcmp.eq.f32.partialorder %v2297_v52, 8.507059e+37 }
 0x662   :  { %v2276_v40 = vmul.f32 %v6122_v37, %v2275_v5 }
 0x663   :  { %v6124_v25 = vpop.eup %6123  ;;  %v2262_v30 = vadd.f32 %v6120_v58, %v2261_v23 }
 0x664   :  { %v2289_v51 = vmul.f32 %v6124_v25, %v2257_v54  ;;  %v2277_v41 = vadd.f32 %v6122_v37, %v2276_v40  ;;  %v6126_v7 = vpop.eup %6125  ;;  %vm2294_vm15 = vweird.f32 %v6124_v25 }
 0x665   :  { %v2266_v8 = vsel %vm2265_vm11, %v6120_v58, %v2262_v30  ;;  %vm2295_vm2 = vmor %vm2293_vm1, %vm2294_vm15 }
 0x666   :  { %v2290_v0 = vsub.f32 1.0, %v2289_v51  ;;  %v2271_v3 = vsel %vm2268_vm13, %v2270_v20, %v2266_v8  ;;  %v2281_v62 = vsel %vm2280_vm12, %v6122_v37, %v2277_v41 }
 0x667   :  { %v2286_v5 = vsel %vm2283_vm14, %v2285_v56, %v2281_v62  ;;  %v2305_v53 = vmul.f32 %v6126_v7, %v2271_v3 }
 0x668   :  { %v2291_v55 = vmul.f32 %v6124_v25, %v2290_v0  ;;  %v2304_v23 = vmul.f32 %v2286_v5, %v1996_v42 }
 0x66a   :  { %v7570_v35 = vadd.f32 %v2305_v53, %v2304_v23  ;;  %v2292_v22 = vadd.f32 %v6124_v25, %v2291_v55 }
 0x66c   :  { %6127 = vtanh.f32 %v7570_v35  ;;  %v2296_v58 = vsel %vm2295_vm2, %v6124_v25, %v2292_v22 }
 0x66d   :  { %v2301_v41 = vsel %vm2298_vm3, %v2300_v49, %v2296_v58 }
 0x672   :  { %v6128_v8 = vpop.eup %6127 }
 0x673   :  { %v7573_v20 = vmul.f32 %v6128_v8, %v2301_v41 }
 0x675   :  { %v2309_v3 = vpack.c.bf16 %v7573_v20, %v7573_v20 }
 0x677   :  { %2318 = vmatmul.bf16.vlgmr.msra.gmra.mxu0 %v2309_v3  ;;  %2331 = vmatmul.bf16.vlgmr.msra.gmra.mxu1 %v2309_v3 }
 0x678   :  { %2344 = vmatmul.bf16.vlgmr.msra.gmra.mxu2 %v2309_v3  ;;  %2357 = vmatmul.bf16.vlgmr.msra.gmra.mxu3 %v2309_v3 }
 0x679   :  { %2586 = vmatpush.bf16.msra.mxu0 %v7302_v6  ;;  %2599 = vmatpush.bf16.msra.mxu1 %v7305_v24 }
 0x67a   :  { %2612 = vmatpush.bf16.msra.mxu2 %v7308_v38  ;;  %2625 = vmatpush.bf16.msra.mxu3 %v7310_v39 }
 0x67d   :  { %2587 = vmatpush.bf16.msra.mxu0 %v7313_v59  ;;  %2600 = vmatpush.bf16.msra.mxu1 %v7317_v18 }
 0x67e   :  { %2613 = vmatpush.bf16.msra.mxu2 %v7319_v27  ;;  %2626 = vmatpush.bf16.msra.mxu3 %v7321_v61 }
 0x681   :  { %2588 = vmatpush.bf16.msra.mxu0 %v7324_v14  ;;  %2601 = vmatpush.bf16.msra.mxu1 %v7327_v44 }
 0x682   :  { %2614 = vmatpush.bf16.msra.mxu2 %v7333_v16  ;;  %2627 = vmatpush.bf16.msra.mxu3 %v7335_v17 }
 0x685   :  { %2589 = vmatpush.bf16.msra.mxu0 %v7341_v46  ;;  %2602 = vmatpush.bf16.msra.mxu1 %v7352_v2 }
 0x686   :  { %2615 = vmatpush.bf16.msra.mxu2 %v7354_v9  ;;  %2628 = vmatpush.bf16.msra.mxu3 %v7356_v19 }
 0x689   :  { %2590 = vmatpush.bf16.msra.mxu0 %v7359_v60  ;;  %2603 = vmatpush.bf16.msra.mxu1 %v7364_v48 }
 0x68a   :  { %2616 = vmatpush.bf16.msra.mxu2 %v7370_v4  ;;  %2629 = vmatpush.bf16.msra.mxu3 %v7384_v47 }
 0x68d   :  { %2591 = vmatpush.bf16.msra.mxu0 %v7386_v50  ;;  %2604 = vmatpush.bf16.msra.mxu1 %v7390_v28 }
 0x68e   :  { %2617 = vmatpush.bf16.msra.mxu2 %v7392_v11  ;;  %2630 = vmatpush.bf16.msra.mxu3 %v7397_v57 }
 0x691   :  { %2592 = vmatpush.bf16.msra.mxu0 %v7403_v34  ;;  %2605 = vmatpush.bf16.msra.mxu1 %v7412_v31 }
 0x692   :  { %2618 = vmatpush.bf16.msra.mxu2 %v7425_v26  ;;  %2631 = vmatpush.bf16.msra.mxu3 %v7439_v10 }
 0x695   :  { %2593 = vmatpush.bf16.msra.mxu0 %v7447_v21  ;;  %2606 = vmatpush.bf16.msra.mxu1 %v7450_v1 }
 0x696   :  { %2619 = vmatpush.bf16.msra.mxu2 %v7454_v33  ;;  %2632 = vmatpush.bf16.msra.mxu3 %v7457_v13 }
 0x6f4   :  { %v2319_v55 = vpop.f32.mrf.mxu0  ;;  %v2332_v53 = vpop.f32.mrf.mxu1 }
 0x6f5   :  { %v2366_v62 = vrot.slane %v2319_v55, 6  ;;  %v2367_v54 = vrot.slane %v2332_v53, 6 }
 0x6f7   :  { %v2374_v37 = vadd.f32 %v2366_v62, %v7546_v45  ;;  %v2375_v40 = vadd.f32 %v2367_v54, %v7550_v32 }
 0x6f9   :  { %v5445_v43 = vmul.f32 -1.442695, %v2374_v37  ;;  %v5446_v25 = vmul.f32 -1.442695, %v2375_v40 }
 0x6fb   :  { %6129 = vpow2.f32 %v5445_v43  ;;  %v2345_v30 = vpop.f32.mrf.mxu2  ;;  %v2358_v51 = vpop.f32.mrf.mxu3 }
 0x6fc   :  { %6131 = vpow2.f32 %v5446_v25  ;;  %v2368_v56 = vrot.slane %v2345_v30, 6  ;;  %v2321_v42 = vpop.f32.mrf.mxu0  ;;  %v2334_v7 = vpop.f32.mrf.mxu1  ;;  %v2369_v8 = vrot.slane %v2358_v51, 6 }
 0x6fe   :  { %v2376_v0 = vadd.f32 %v2368_v56, %v7561_v36  ;;  %v2377_v53 = vadd.f32 %v2369_v8, %v7567_v29 }
 0x700   :  { %v5447_v5 = vmul.f32 -1.442695, %v2376_v0 }
 0x701   :  { %v6130_v23 = vpop.eup %6129 }
 0x702   :  { %v6132_v22 = vpop.eup %6131  ;;  %v2387_v15 = vadd.f32 1.0, %v6130_v23  ;;  %6133 = vpow2.f32 %v5447_v5 }
 0x703   :  { %v2388_v52 = vadd.f32 1.0, %v6132_v22  ;;  %v2347_v58 = vpop.f32.mrf.mxu2  ;;  %v2360_v49 = vpop.f32.mrf.mxu3 }
 0x704   :  { %6135 = vrcp.f32 %v2387_v15  ;;  %v2401_v25 = vand.u32 2147483648, %v2387_v15  ;;  %v2399_v42 = vand.u32 2147483647, %v2387_v15  ;;  %vm2395_vm0 = vweird.f32 %v2387_v15 }
 0x705   :  { %6137 = vrcp.f32 %v2388_v52  ;;  %v2416_v30 = vand.u32 2147483648, %v2388_v52  ;;  %v2414_v51 = vand.u32 2147483647, %v2388_v52  ;;  %vm2410_vm9 = vweird.f32 %v2388_v52 }
 0x706   :  { %v2402_v22 = vor.u32 1.1754944e-38, %v2401_v25  ;;  %v2437_v49 = vrot.slane %v7570_v35, 6  ;;  %vm2400_vm12 = vcmp.eq.f32.partialorder %v2399_v42, 8.507059e+37 }
 0x707   :  { %v2417_v8 = vor.u32 1.1754944e-38, %v2416_v30  ;;  %vm2415_vm13 = vcmp.eq.f32.partialorder %v2414_v51, 8.507059e+37 }
 0x708   :  { %v6134_v41 = vpop.eup %6133 }
 0x709   :  { %v2389_v3 = vadd.f32 1.0, %v6134_v41 }
 0x70a   :  { %v6136_v55 = vpop.eup %6135 }
 0x70b   :  { %v6138_v62 = vpop.eup %6137  ;;  %v2391_v54 = vmul.f32 %v6136_v55, %v2387_v15  ;;  %6139 = vrcp.f32 %v2389_v3  ;;  %vm2396_vm4 = vweird.f32 %v6136_v55  ;;  %v2431_v35 = vand.u32 2147483648, %v2389_v3 }
 0x70c   :  { %v2406_v37 = vmul.f32 %v6138_v62, %v2388_v52  ;;  %6141 = vtanh.f32 %v2377_v53  ;;  %vm2411_vm5 = vweird.f32 %v6138_v62  ;;  %vm2397_vm10 = vmor %vm2395_vm0, %vm2396_vm4  ;;  %vm2425_vm15 = vweird.f32 %v2389_v3 }
 0x70d   :  { %v2392_v40 = vsub.f32 1.0, %v2391_v54  ;;  %vm2412_vm11 = vmor %vm2410_vm9, %vm2411_vm5  ;;  %v2429_v25 = vand.u32 2147483647, %v2389_v3  ;;  %v2432_v30 = vor.u32 1.1754944e-38, %v2431_v35 }
 0x70e   :  { %v2407_v43 = vsub.f32 1.0, %v2406_v37 }
 0x70f   :  { %v2393_v56 = vmul.f32 %v6136_v55, %v2392_v40  ;;  %vm2430_vm2 = vcmp.eq.f32.partialorder %v2429_v25, 8.507059e+37 }
 0x710   :  { %v2408_v7 = vmul.f32 %v6138_v62, %v2407_v43 }
 0x711   :  { %v6140_v0 = vpop.eup %6139  ;;  %v2394_v5 = vadd.f32 %v6136_v55, %v2393_v56 }
 0x712   :  { %v2421_v23 = vmul.f32 %v6140_v0, %v2389_v3  ;;  %v2409_v58 = vadd.f32 %v6138_v62, %v2408_v7  ;;  %v6142_v53 = vpop.eup %6141  ;;  %vm2426_vm14 = vweird.f32 %v6140_v0 }
 0x713   :  { %v2398_v41 = vsel %vm2397_vm10, %v6136_v55, %v2394_v5  ;;  %vm2427_vm1 = vmor %vm2425_vm15, %vm2426_vm14 }
 0x714   :  { %v2422_v54 = vsub.f32 1.0, %v2421_v23  ;;  %v2403_v37 = vsel %vm2400_vm12, %v2402_v22, %v2398_v41  ;;  %v2413_v40 = vsel %vm2412_vm11, %v6138_v62, %v2409_v58 }
 0x715   :  { %v2418_v43 = vsel %vm2415_vm13, %v2417_v8, %v2413_v40  ;;  %v2440_v12 = vmul.f32 %v6142_v53, %v2403_v37 }
 0x716   :  { %v2439_v56 = vmul.f32 %v2437_v49, %v2418_v43  ;;  %v2423_v15 = vmul.f32 %v6140_v0, %v2422_v54 }
 0x718   :  { %v7614_v52 = vadd.f32 %v2440_v12, %v2439_v56  ;;  %v2424_v63 = vadd.f32 %v6140_v0, %v2423_v15 }
 0x71a   :  { %6143 = vtanh.f32 %v7614_v52  ;;  %v2428_v55 = vsel %vm2427_vm1, %v6140_v0, %v2424_v63 }
 0x71b   :  { %v2433_v62 = vsel %vm2430_vm2, %v2432_v30, %v2428_v55 }
 0x720   :  { %v6144_v42 = vpop.eup %6143 }
 0x721   :  { %v7617_v7 = vmul.f32 %v6144_v42, %v2433_v62 }
 0x723   :  { %v2444_v51 = vpack.c.bf16 %v7617_v7, %v7617_v7 }
 0x725   :  { %v2446_v12 = vrot.slane %v2444_v51, 1 }
 0x727   :  { %2456 = vmatmul.bf16.vlgmr.msrb.gmra.mxu0 %v2446_v12  ;;  %2469 = vmatmul.bf16.vlgmr.msrb.gmra.mxu1 %v2446_v12 }
 0x728   :  { %2482 = vmatmul.bf16.vlgmr.msrb.gmra.mxu2 %v2446_v12  ;;  %2495 = vmatmul.bf16.vlgmr.msrb.gmra.mxu3 %v2446_v12 }
 0x729   :  { %2724 = vmatpush.bf16.msrb.mxu0 %v7302_v6  ;;  %2737 = vmatpush.bf16.msrb.mxu1 %v7305_v24 }
 0x72a   :  { %2750 = vmatpush.bf16.msrb.mxu2 %v7308_v38  ;;  %2763 = vmatpush.bf16.msrb.mxu3 %v7310_v39 }
 0x72d   :  { %2725 = vmatpush.bf16.msrb.mxu0 %v7313_v59  ;;  %2738 = vmatpush.bf16.msrb.mxu1 %v7317_v18 }
 0x72e   :  { %2751 = vmatpush.bf16.msrb.mxu2 %v7319_v27  ;;  %2764 = vmatpush.bf16.msrb.mxu3 %v7321_v61 }
 0x731   :  { %2726 = vmatpush.bf16.msrb.mxu0 %v7324_v14  ;;  %2739 = vmatpush.bf16.msrb.mxu1 %v7327_v44 }
 0x732   :  { %2752 = vmatpush.bf16.msrb.mxu2 %v7333_v16  ;;  %2765 = vmatpush.bf16.msrb.mxu3 %v7335_v17 }
 0x735   :  { %2727 = vmatpush.bf16.msrb.mxu0 %v7341_v46  ;;  %2740 = vmatpush.bf16.msrb.mxu1 %v7352_v2 }
 0x736   :  { %2753 = vmatpush.bf16.msrb.mxu2 %v7354_v9  ;;  %2766 = vmatpush.bf16.msrb.mxu3 %v7356_v19 }
 0x739   :  { %2728 = vmatpush.bf16.msrb.mxu0 %v7359_v60  ;;  %2741 = vmatpush.bf16.msrb.mxu1 %v7364_v48 }
 0x73a   :  { %2754 = vmatpush.bf16.msrb.mxu2 %v7370_v4  ;;  %2767 = vmatpush.bf16.msrb.mxu3 %v7384_v47 }
 0x73d   :  { %2729 = vmatpush.bf16.msrb.mxu0 %v7386_v50  ;;  %2742 = vmatpush.bf16.msrb.mxu1 %v7390_v28 }
 0x73e   :  { %2755 = vmatpush.bf16.msrb.mxu2 %v7392_v11  ;;  %2768 = vmatpush.bf16.msrb.mxu3 %v7397_v57 }
 0x741   :  { %2730 = vmatpush.bf16.msrb.mxu0 %v7403_v34  ;;  %2743 = vmatpush.bf16.msrb.mxu1 %v7412_v31 }
 0x742   :  { %2756 = vmatpush.bf16.msrb.mxu2 %v7425_v26  ;;  %2769 = vmatpush.bf16.msrb.mxu3 %v7439_v10 }
 0x745   :  { %2731 = vmatpush.bf16.msrb.mxu0 %v7447_v21  ;;  %2744 = vmatpush.bf16.msrb.mxu1 %v7450_v1 }
 0x746   :  { %2757 = vmatpush.bf16.msrb.mxu2 %v7454_v33  ;;  %2770 = vmatpush.bf16.msrb.mxu3 %v7457_v13 }
 0x7a4   :  { %v2457_v63 = vpop.f32.mrf.mxu0  ;;  %v2470_v3 = vpop.f32.mrf.mxu1 }
 0x7a5   :  { %v2504_v0 = vrot.slane %v2457_v63, 4  ;;  %v2505_v5 = vrot.slane %v2470_v3, 4 }
 0x7a7   :  { %v2512_v23 = vadd.f32 %v2504_v0, %v7546_v45  ;;  %v2513_v22 = vadd.f32 %v2505_v5, %v7550_v32 }
 0x7a9   :  { %v5448_v58 = vmul.f32 -1.442695, %v2512_v23  ;;  %v5449_v49 = vmul.f32 -1.442695, %v2513_v22 }
 0x7ab   :  { %6145 = vpow2.f32 %v5448_v58  ;;  %v2483_v8 = vpop.f32.mrf.mxu2  ;;  %v2496_v41 = vpop.f32.mrf.mxu3 }
 0x7ac   :  { %6147 = vpow2.f32 %v5449_v49  ;;  %v2506_v53 = vrot.slane %v2483_v8, 4  ;;  %v2459_v54 = vpop.f32.mrf.mxu0  ;;  %v2472_v37 = vpop.f32.mrf.mxu1  ;;  %v2507_v42 = vrot.slane %v2496_v41, 4 }
 0x7ae   :  { %v2514_v40 = vadd.f32 %v2506_v53, %v7561_v36  ;;  %v2515_v63 = vadd.f32 %v2507_v42, %v7567_v29 }
 0x7b0   :  { %v5450_v43 = vmul.f32 -1.442695, %v2514_v40 }
 0x7b1   :  { %v6146_v56 = vpop.eup %6145 }
 0x7b2   :  { %v6148_v15 = vpop.eup %6147  ;;  %v2525_v35 = vadd.f32 1.0, %v6146_v56  ;;  %6149 = vpow2.f32 %v5450_v43 }
 0x7b3   :  { %v2526_v25 = vadd.f32 1.0, %v6148_v15  ;;  %v2485_v55 = vpop.f32.mrf.mxu2  ;;  %v2498_v30 = vpop.f32.mrf.mxu3 }
 0x7b4   :  { %6151 = vrcp.f32 %v2525_v35  ;;  %v2539_v58 = vand.u32 2147483648, %v2525_v35  ;;  %v2537_v53 = vand.u32 2147483647, %v2525_v35  ;;  %vm2533_vm5 = vweird.f32 %v2525_v35 }
 0x7b5   :  { %6153 = vrcp.f32 %v2526_v25  ;;  %v2554_v49 = vand.u32 2147483648, %v2526_v25  ;;  %v2552_v41 = vand.u32 2147483647, %v2526_v25  ;;  %vm2548_vm0 = vweird.f32 %v2526_v25 }
 0x7b6   :  { %v2540_v56 = vor.u32 1.1754944e-38, %v2539_v58  ;;  %v2575_v55 = vrot.slane %v7614_v52, 6  ;;  %vm2538_vm11 = vcmp.eq.f32.partialorder %v2537_v53, 8.507059e+37 }
 0x7b7   :  { %v2555_v30 = vor.u32 1.1754944e-38, %v2554_v49  ;;  %vm2553_vm12 = vcmp.eq.f32.partialorder %v2552_v41, 8.507059e+37 }
 0x7b8   :  { %v6150_v62 = vpop.eup %6149 }
 0x7b9   :  { %v2527_v51 = vadd.f32 1.0, %v6150_v62 }
 0x7ba   :  { %v6152_v12 = vpop.eup %6151 }
 0x7bb   :  { %v6154_v3 = vpop.eup %6153  ;;  %v2529_v0 = vmul.f32 %v6152_v12, %v2525_v35  ;;  %6155 = vrcp.f32 %v2527_v51  ;;  %vm2534_vm3 = vweird.f32 %v6152_v12  ;;  %vm2563_vm14 = vweird.f32 %v2527_v51 }
 0x7bc   :  { %v2544_v5 = vmul.f32 %v6154_v3, %v2526_v25  ;;  %6157 = vtanh.f32 %v2515_v63  ;;  %vm2549_vm4 = vweird.f32 %v6154_v3  ;;  %vm2535_vm9 = vmor %vm2533_vm5, %vm2534_vm3  ;;  %v2567_v52 = vand.u32 2147483647, %v2527_v51 }
 0x7bd   :  { %v2530_v23 = vsub.f32 1.0, %v2529_v0  ;;  %vm2550_vm10 = vmor %vm2548_vm0, %vm2549_vm4 }
 0x7be   :  { %v2545_v22 = vsub.f32 1.0, %v2544_v5  ;;  %vm2568_vm1 = vcmp.eq.f32.partialorder %v2567_v52, 8.507059e+37 }
 0x7bf   :  { %v2531_v8 = vmul.f32 %v6152_v12, %v2530_v23 }
 0x7c0   :  { %v2546_v54 = vmul.f32 %v6154_v3, %v2545_v22 }
 0x7c1   :  { %v6156_v37 = vpop.eup %6155  ;;  %v2532_v40 = vadd.f32 %v6152_v12, %v2531_v8 }
 0x7c2   :  { %v2559_v43 = vmul.f32 %v6156_v37, %v2527_v51  ;;  %v2547_v15 = vadd.f32 %v6154_v3, %v2546_v54  ;;  %v6158_v62 = vpop.eup %6157  ;;  %vm2564_vm13 = vweird.f32 %v6156_v37  ;;  %v2569_v54 = vand.u32 2147483648, %v2527_v51 }
 0x7c3   :  { %v2536_v42 = vsel %vm2535_vm9, %v6152_v12, %v2532_v40  ;;  %vm2565_vm15 = vmor %vm2563_vm14, %vm2564_vm13  ;;  %v3261_v40 = vsel %vm1725_vm7, %v7573_v20, %v7617_v7 }
 0x7c4   :  { %v2560_v63 = vsub.f32 1.0, %v2559_v43  ;;  %v2541_v0 = vsel %vm2538_vm11, %v2540_v56, %v2536_v42  ;;  %v2551_v5 = vsel %vm2550_vm10, %v6154_v3, %v2547_v15  ;;  %v2570_v49 = vor.u32 1.1754944e-38, %v2569_v54 }
 0x7c5   :  { %v2556_v23 = vsel %vm2553_vm12, %v2555_v30, %v2551_v5  ;;  %v2578_v22 = vmul.f32 %v6158_v62, %v2541_v0 }
 0x7c6   :  { %v2561_v8 = vmul.f32 %v6156_v37, %v2560_v63  ;;  %v2577_v35 = vmul.f32 %v2575_v55, %v2556_v23 }
 0x7c8   :  { %v7658_v25 = vadd.f32 %v2578_v22, %v2577_v35  ;;  %v2562_v58 = vadd.f32 %v6156_v37, %v2561_v8 }
 0x7ca   :  { %6159 = vtanh.f32 %v7658_v25  ;;  %v2566_v12 = vsel %vm2565_vm15, %v6156_v37, %v2562_v58 }
 0x7cb   :  { %v2571_v3 = vsel %vm2568_vm1, %v2570_v49, %v2566_v12 }
 0x7d0   :  { %v6160_v53 = vpop.eup %6159 }
 0x7d1   :  { %v2581_v41 = vmul.f32 %v6160_v53, %v2571_v3 }
 0x7d3   :  { %v2582_v43 = vpack.c.bf16 %v2581_v41, %v2581_v41  ;;  %v7665_v56 = vsel %vm1727_vm8, %v3261_v40, %v2581_v41 }
 0x7d5   :  { %v2584_v15 = vrot.slane %v2582_v43, 2 }
 0x7d7   :  { %2594 = vmatmul.bf16.vlgmr.msra.gmra.mxu0 %v2584_v15  ;;  %2607 = vmatmul.bf16.vlgmr.msra.gmra.mxu1 %v2584_v15 }
 0x7d8   :  { %2620 = vmatmul.bf16.vlgmr.msra.gmra.mxu2 %v2584_v15  ;;  %2633 = vmatmul.bf16.vlgmr.msra.gmra.mxu3 %v2584_v15 }
 0x7d9   :  { %2847 = vmatpush.bf16.msra.mxu0 %v7302_v6  ;;  %2860 = vmatpush.bf16.msra.mxu1 %v7305_v24 }
 0x7da   :  { %2873 = vmatpush.bf16.msra.mxu2 %v7308_v38  ;;  %2886 = vmatpush.bf16.msra.mxu3 %v7310_v39 }
 0x7dd   :  { %2848 = vmatpush.bf16.msra.mxu0 %v7313_v59  ;;  %2861 = vmatpush.bf16.msra.mxu1 %v7317_v18 }
 0x7de   :  { %2874 = vmatpush.bf16.msra.mxu2 %v7319_v27  ;;  %2887 = vmatpush.bf16.msra.mxu3 %v7321_v61 }
 0x7e1   :  { %2849 = vmatpush.bf16.msra.mxu0 %v7324_v14  ;;  %2862 = vmatpush.bf16.msra.mxu1 %v7327_v44 }
 0x7e2   :  { %2875 = vmatpush.bf16.msra.mxu2 %v7333_v16  ;;  %2888 = vmatpush.bf16.msra.mxu3 %v7335_v17 }
 0x7e5   :  { %2850 = vmatpush.bf16.msra.mxu0 %v7341_v46  ;;  %2863 = vmatpush.bf16.msra.mxu1 %v7352_v2 }
 0x7e6   :  { %2876 = vmatpush.bf16.msra.mxu2 %v7354_v9  ;;  %2889 = vmatpush.bf16.msra.mxu3 %v7356_v19 }
 0x7e9   :  { %2851 = vmatpush.bf16.msra.mxu0 %v7359_v60  ;;  %2864 = vmatpush.bf16.msra.mxu1 %v7364_v48 }
 0x7ea   :  { %2877 = vmatpush.bf16.msra.mxu2 %v7370_v4  ;;  %2890 = vmatpush.bf16.msra.mxu3 %v7384_v47 }
 0x7ed   :  { %2852 = vmatpush.bf16.msra.mxu0 %v7386_v50  ;;  %2865 = vmatpush.bf16.msra.mxu1 %v7390_v28 }
 0x7ee   :  { %2878 = vmatpush.bf16.msra.mxu2 %v7392_v11  ;;  %2891 = vmatpush.bf16.msra.mxu3 %v7397_v57 }
 0x7f1   :  { %2853 = vmatpush.bf16.msra.mxu0 %v7403_v34  ;;  %2866 = vmatpush.bf16.msra.mxu1 %v7412_v31 }
 0x7f2   :  { %2879 = vmatpush.bf16.msra.mxu2 %v7425_v26  ;;  %2892 = vmatpush.bf16.msra.mxu3 %v7439_v10 }
 0x7f5   :  { %2854 = vmatpush.bf16.msra.mxu0 %v7447_v21  ;;  %2867 = vmatpush.bf16.msra.mxu1 %v7450_v1 }
 0x7f6   :  { %2880 = vmatpush.bf16.msra.mxu2 %v7454_v33  ;;  %2893 = vmatpush.bf16.msra.mxu3 %v7457_v13 }
 0x854   :  { %v2595_v20 = vpop.f32.mrf.mxu0  ;;  %v2608_v7 = vpop.f32.mrf.mxu1 }
 0x855   :  { %v2642_v51 = vrot.slane %v2595_v20, 2  ;;  %v2643_v37 = vrot.slane %v2608_v7, 2 }
 0x857   :  { %v2650_v55 = vadd.f32 %v2642_v51, %v7546_v45  ;;  %v2651_v30 = vadd.f32 %v2643_v37, %v7550_v32 }
 0x859   :  { %v5451_v42 = vmul.f32 -1.442695, %v2650_v55  ;;  %v5452_v62 = vmul.f32 -1.442695, %v2651_v30 }
 0x85b   :  { %6161 = vpow2.f32 %v5451_v42  ;;  %v2621_v63 = vpop.f32.mrf.mxu2  ;;  %v2634_v0 = vpop.f32.mrf.mxu3 }
 0x85c   :  { %6163 = vpow2.f32 %v5452_v62  ;;  %v2644_v5 = vrot.slane %v2621_v63, 2  ;;  %v2597_v23 = vpop.f32.mrf.mxu0  ;;  %v2610_v22 = vpop.f32.mrf.mxu1  ;;  %v2645_v32 = vrot.slane %v2634_v0, 2 }
 0x85d   :  { %v2713_v22 = vrot.slane %v7658_v25, 6 }
 0x85e   :  { %v2652_v8 = vadd.f32 %v2644_v5, %v7561_v36  ;;  %v2653_v40 = vadd.f32 %v2645_v32, %v7567_v29 }
 0x860   :  { %v5453_v35 = vmul.f32 -1.442695, %v2652_v8 }
 0x861   :  { %v6162_v58 = vpop.eup %6161 }
 0x862   :  { %v6164_v54 = vpop.eup %6163  ;;  %v2663_v52 = vadd.f32 1.0, %v6162_v58  ;;  %6165 = vpow2.f32 %v5453_v35 }
 0x863   :  { %v2664_v12 = vadd.f32 1.0, %v6164_v54  ;;  %v2623_v45 = vpop.f32.mrf.mxu2  ;;  %v2636_v49 = vpop.f32.mrf.mxu3 }
 0x864   :  { %6167 = vrcp.f32 %v2663_v52  ;;  %v2677_v51 = vand.u32 2147483648, %v2663_v52  ;;  %v2675_v30 = vand.u32 2147483647, %v2663_v52  ;;  %vm2671_vm4 = vweird.f32 %v2663_v52 }
 0x865   :  { %6169 = vrcp.f32 %v2664_v12  ;;  %v2692_v37 = vand.u32 2147483648, %v2664_v12  ;;  %v2690_v62 = vand.u32 2147483647, %v2664_v12  ;;  %vm2686_vm5 = vweird.f32 %v2664_v12 }
 0x866   :  { %v2678_v5 = vor.u32 1.1754944e-38, %v2677_v51  ;;  %vm2676_vm10 = vcmp.eq.f32.partialorder %v2675_v30, 8.507059e+37 }
 0x867   :  { %v2693_v8 = vor.u32 1.1754944e-38, %v2692_v37  ;;  %vm2691_vm11 = vcmp.eq.f32.partialorder %v2690_v62, 8.507059e+37 }
 0x868   :  { %v6166_v53 = vpop.eup %6165 }
 0x869   :  { %v2665_v3 = vadd.f32 1.0, %v6166_v53 }
 0x86a   :  { %v6168_v41 = vpop.eup %6167 }
 0x86b   :  { %v6170_v43 = vpop.eup %6169  ;;  %v2667_v15 = vmul.f32 %v6168_v41, %v2663_v52  ;;  %6171 = vrcp.f32 %v2665_v3  ;;  %vm2672_vm2 = vweird.f32 %v6168_v41  ;;  %vm2701_vm13 = vweird.f32 %v2665_v3 }
 0x86c   :  { %v2682_v36 = vmul.f32 %v6170_v43, %v2664_v12  ;;  %6173 = vtanh.f32 %v2653_v40  ;;  %vm2687_vm3 = vweird.f32 %v6170_v43  ;;  %vm2673_vm0 = vmor %vm2671_vm4, %vm2672_vm2  ;;  %v2705_v25 = vand.u32 2147483647, %v2665_v3 }
 0x86d   :  { %v2668_v20 = vsub.f32 1.0, %v2667_v15  ;;  %vm2688_vm9 = vmor %vm2686_vm5, %vm2687_vm3 }
 0x86e   :  { %v2683_v7 = vsub.f32 1.0, %v2682_v36  ;;  %v2707_v36 = vand.u32 2147483648, %v2665_v3  ;;  %vm2706_vm15 = vcmp.eq.f32.partialorder %v2705_v25, 8.507059e+37 }
 0x86f   :  { %v2669_v55 = vmul.f32 %v6168_v41, %v2668_v20 }
 0x870   :  { %v2684_v42 = vmul.f32 %v6170_v43, %v2683_v7  ;;  %v2708_v20 = vor.u32 1.1754944e-38, %v2707_v36 }
 0x871   :  { %v6172_v63 = vpop.eup %6171  ;;  %v2670_v0 = vadd.f32 %v6168_v41, %v2669_v55 }
 0x872   :  { %v2697_v29 = vmul.f32 %v6172_v63, %v2665_v3  ;;  %v2685_v23 = vadd.f32 %v6170_v43, %v2684_v42  ;;  %v6174_v58 = vpop.eup %6173  ;;  %vm2702_vm12 = vweird.f32 %v6172_v63  ;;  %v8354_v42 = vld [vmem:[#allocation35_spill] sm:$0xff] }
 0x873   :  { %v2674_v35 = vsel %vm2673_vm0, %v6168_v41, %v2670_v0  ;;  %vm2703_vm14 = vmor %vm2701_vm13, %vm2702_vm12  ;;  %v8356_v0 = vld [vmem:[#allocation36_spill] sm:$0xff] }
 0x874   :  { %v2698_v54 = vsub.f32 1.0, %v2697_v29  ;;  %v2679_v45 = vsel %vm2676_vm10, %v2678_v5, %v2674_v35  ;;  %v2689_v49 = vsel %vm2688_vm9, %v6170_v43, %v2685_v23 }
 0x875   :  { %v2694_v32 = vsel %vm2691_vm11, %v2693_v8, %v2689_v49  ;;  %v2716_v53 = vmul.f32 %v6174_v58, %v2679_v45  ;;  %v8358_v45 = vld [vmem:[#allocation37_spill] sm:$0xff] }
 0x876   :  { %v2699_v40 = vmul.f32 %v6172_v63, %v2698_v54  ;;  %v2715_v52 = vmul.f32 %v2713_v22, %v2694_v32 }
 0x878   :  { %v7704_v12 = vadd.f32 %v2716_v53, %v2715_v52  ;;  %v2700_v15 = vadd.f32 %v6172_v63, %v2699_v40 }
 0x87a   :  { %6175 = vtanh.f32 %v7704_v12  ;;  %v2704_v41 = vsel %vm2703_vm14, %v6172_v63, %v2700_v15 }
 0x87b   :  { %v2709_v43 = vsel %vm2706_vm15, %v2708_v20, %v2704_v41 }
 0x880   :  { %v6176_v7 = vpop.eup %6175 }
 0x881   :  { %v2719_v51 = vmul.f32 %v6176_v7, %v2709_v43 }
 0x883   :  { %v2720_v37 = vpack.c.bf16 %v2719_v51, %v2719_v51  ;;  %v7709_v55 = vsel %vm1729_vm6, %v7665_v56, %v2719_v51  ;;  %v8352_v56 = vld [vmem:[#allocation34_spill] sm:$0xff] }
 0x884   :  { %v8353_v3 = vperm.slane %v8352_v56, 0  ;;  %v8355_v63 = vperm.slane %v8352_v56, 1  ;;  %v8357_v54 = vperm.slane %v8352_v56, 2 }
 0x885   :  { %v2722_v30 = vrot.slane %v2720_v37, 3 }
 0x886   :  { %v7746_v62 = vadd.f32 %v8354_v42, %v8353_v3  ;;  %v7751_v29 = vadd.f32 %v8356_v0, %v8355_v63  ;;  %v7758_v49 = vadd.f32 %v8358_v45, %v8357_v54  ;;  %v8360_v3 = vld [vmem:[#allocation38_spill] sm:$0xff] }
 0x887   :  { %2732 = vmatmul.bf16.vlgmr.msrb.gmra.mxu0 %v2722_v30  ;;  %2745 = vmatmul.bf16.vlgmr.msrb.gmra.mxu1 %v2722_v30 }
 0x888   :  { %2758 = vmatmul.bf16.vlgmr.msrb.gmra.mxu2 %v2722_v30  ;;  %2771 = vmatmul.bf16.vlgmr.msrb.gmra.mxu3 %v2722_v30  ;;  %v8359_v30 = vperm.slane %v8352_v56, 3 }
 0x889   :  { %2985 = vmatpush.bf16.msrb.mxu0 %v7302_v6  ;;  %2998 = vmatpush.bf16.msrb.mxu1 %v7305_v24 }
 0x88a   :  { %3011 = vmatpush.bf16.msrb.mxu2 %v7308_v38  ;;  %3024 = vmatpush.bf16.msrb.mxu3 %v7310_v39  ;;  %v7764_v42 = vadd.f32 %v8360_v3, %v8359_v30 }
 0x88d   :  { %2986 = vmatpush.bf16.msrb.mxu0 %v7313_v59  ;;  %2999 = vmatpush.bf16.msrb.mxu1 %v7317_v18 }
 0x88e   :  { %3012 = vmatpush.bf16.msrb.mxu2 %v7319_v27  ;;  %3025 = vmatpush.bf16.msrb.mxu3 %v7321_v61 }
 0x891   :  { %2987 = vmatpush.bf16.msrb.mxu0 %v7324_v14  ;;  %3000 = vmatpush.bf16.msrb.mxu1 %v7327_v44 }
 0x892   :  { %3013 = vmatpush.bf16.msrb.mxu2 %v7333_v16  ;;  %3026 = vmatpush.bf16.msrb.mxu3 %v7335_v17 }
 0x895   :  { %2988 = vmatpush.bf16.msrb.mxu0 %v7341_v46  ;;  %3001 = vmatpush.bf16.msrb.mxu1 %v7352_v2 }
 0x896   :  { %3014 = vmatpush.bf16.msrb.mxu2 %v7354_v9  ;;  %3027 = vmatpush.bf16.msrb.mxu3 %v7356_v19 }
 0x899   :  { %2989 = vmatpush.bf16.msrb.mxu0 %v7359_v60  ;;  %3002 = vmatpush.bf16.msrb.mxu1 %v7364_v48 }
 0x89a   :  { %3015 = vmatpush.bf16.msrb.mxu2 %v7370_v4  ;;  %3028 = vmatpush.bf16.msrb.mxu3 %v7384_v47 }
 0x89d   :  { %2990 = vmatpush.bf16.msrb.mxu0 %v7386_v50  ;;  %3003 = vmatpush.bf16.msrb.mxu1 %v7390_v28 }
 0x89e   :  { %3016 = vmatpush.bf16.msrb.mxu2 %v7392_v11  ;;  %3029 = vmatpush.bf16.msrb.mxu3 %v7397_v57 }
 0x8a1   :  { %2991 = vmatpush.bf16.msrb.mxu0 %v7403_v34  ;;  %3004 = vmatpush.bf16.msrb.mxu1 %v7412_v31 }
 0x8a2   :  { %3017 = vmatpush.bf16.msrb.mxu2 %v7425_v26  ;;  %3030 = vmatpush.bf16.msrb.mxu3 %v7439_v10 }
 0x8a5   :  { %2992 = vmatpush.bf16.msrb.mxu0 %v7447_v21  ;;  %3005 = vmatpush.bf16.msrb.mxu1 %v7450_v1 }
 0x8a6   :  { %3018 = vmatpush.bf16.msrb.mxu2 %v7454_v33  ;;  %3031 = vmatpush.bf16.msrb.mxu3 %v7457_v13 }
 0x904   :  { %v2733_v5 = vpop.f32.mrf.mxu0  ;;  %v2746_v23 = vpop.f32.mrf.mxu1 }
 0x905   :  { %v2776_v22 = vadd.f32 %v2733_v5, %v7746_v62  ;;  %v2777_v8 = vadd.f32 %v2746_v23, %v7751_v29 }
 0x907   :  { %v5454_v35 = vmul.f32 -1.442695, %v2776_v22  ;;  %v5455_v58 = vmul.f32 -1.442695, %v2777_v8 }
 0x909   :  { %6177 = vpow2.f32 %v5454_v35 }
 0x90a   :  { %6179 = vpow2.f32 %v5455_v58 }
 0x90b   :  { %v2759_v32 = vpop.f32.mrf.mxu2  ;;  %v2772_v53 = vpop.f32.mrf.mxu3 }
 0x90c   :  { %v2778_v40 = vadd.f32 %v2759_v32, %v7758_v49  ;;  %v2735_v52 = vpop.f32.mrf.mxu0  ;;  %v2748_v15 = vpop.f32.mrf.mxu1  ;;  %v2779_v5 = vadd.f32 %v2772_v53, %v7764_v42 }
 0x90e   :  { %v5456_v36 = vmul.f32 -1.442695, %v2778_v40 }
 0x90f   :  { %v6178_v25 = vpop.eup %6177 }
 0x910   :  { %v6180_v41 = vpop.eup %6179  ;;  %v2789_v20 = vadd.f32 1.0, %v6178_v25  ;;  %6181 = vpow2.f32 %v5456_v36 }
 0x911   :  { %v2790_v7 = vadd.f32 1.0, %v6180_v41 }
 0x912   :  { %6183 = vrcp.f32 %v2789_v20  ;;  %v2803_v54 = vand.u32 2147483648, %v2789_v20  ;;  %v2801_v40 = vand.u32 2147483647, %v2789_v20  ;;  %vm2797_vm3 = vweird.f32 %v2789_v20 }
 0x913   :  { %6185 = vrcp.f32 %v2790_v7  ;;  %v2761_v43 = vpop.f32.mrf.mxu2  ;;  %v2774_v51 = vpop.f32.mrf.mxu3  ;;  %v2818_v45 = vand.u32 2147483648, %v2790_v7  ;;  %v2816_v52 = vand.u32 2147483647, %v2790_v7  ;;  %vm2812_vm4 = vweird.f32 %v2790_v7 }
 0x914   :  { %v2804_v25 = vor.u32 1.1754944e-38, %v2803_v54  ;;  %vm2802_vm9 = vcmp.eq.f32.partialorder %v2801_v40, 8.507059e+37 }
 0x915   :  { %v2819_v43 = vor.u32 1.1754944e-38, %v2818_v45  ;;  %vm2817_vm10 = vcmp.eq.f32.partialorder %v2816_v52, 8.507059e+37 }
 0x916   :  { %v6182_v37 = vpop.eup %6181 }
 0x917   :  { %v2791_v63 = vadd.f32 1.0, %v6182_v37  ;;  %v2839_v37 = vrot.slane %v7704_v12, 6 }
 0x918   :  { %v6184_v0 = vpop.eup %6183 }
 0x919   :  { %v6186_v23 = vpop.eup %6185  ;;  %v2793_v22 = vmul.f32 %v6184_v0, %v2789_v20  ;;  %6187 = vrcp.f32 %v2791_v63  ;;  %vm2798_vm1 = vweird.f32 %v6184_v0  ;;  %v2833_v54 = vand.u32 2147483648, %v2791_v63 }
 0x91a   :  { %v2808_v8 = vmul.f32 %v6186_v23, %v2790_v7  ;;  %6189 = vtanh.f32 %v2779_v5  ;;  %vm2813_vm2 = vweird.f32 %v6186_v23  ;;  %vm2799_vm5 = vmor %vm2797_vm3, %vm2798_vm1  ;;  %vm2827_vm12 = vweird.f32 %v2791_v63 }
 0x91b   :  { %v2794_v35 = vsub.f32 1.0, %v2793_v22  ;;  %vm2814_vm0 = vmor %vm2812_vm4, %vm2813_vm2  ;;  %v2834_v45 = vor.u32 1.1754944e-38, %v2833_v54 }
 0x91c   :  { %v2809_v58 = vsub.f32 1.0, %v2808_v8 }
 0x91d   :  { %v2795_v32 = vmul.f32 %v6184_v0, %v2794_v35 }
 0x91e   :  { %v2810_v56 = vmul.f32 %v6186_v23, %v2809_v58 }
 0x91f   :  { %v6188_v15 = vpop.eup %6187  ;;  %v2796_v36 = vadd.f32 %v6184_v0, %v2795_v32 }
 0x920   :  { %v2823_v53 = vmul.f32 %v6188_v15, %v2791_v63  ;;  %v2811_v41 = vadd.f32 %v6186_v23, %v2810_v56  ;;  %v6190_v30 = vpop.eup %6189  ;;  %vm2828_vm11 = vweird.f32 %v6188_v15 }
 0x921   :  { %v2800_v51 = vsel %vm2799_vm5, %v6184_v0, %v2796_v36  ;;  %v2831_v0 = vand.u32 2147483647, %v2791_v63  ;;  %vm2829_vm13 = vmor %vm2827_vm12, %vm2828_vm11 }
 0x922   :  { %v2824_v3 = vsub.f32 1.0, %v2823_v53  ;;  %v2805_v5 = vsel %vm2802_vm9, %v2804_v25, %v2800_v51  ;;  %v2815_v22 = vsel %vm2814_vm0, %v6186_v23, %v2811_v41 }
 0x923   :  { %v2820_v8 = vsel %vm2817_vm10, %v2819_v43, %v2815_v22  ;;  %v2842_v35 = vmul.f32 %v6190_v30, %v2805_v5  ;;  %vm2832_vm14 = vcmp.eq.f32.partialorder %v2831_v0, 8.507059e+37 }
 0x924   :  { %v2825_v58 = vmul.f32 %v6188_v15, %v2824_v3  ;;  %v2841_v20 = vmul.f32 %v2839_v37, %v2820_v8 }
 0x926   :  { %v7768_v7 = vadd.f32 %v2842_v35, %v2841_v20  ;;  %v2826_v32 = vadd.f32 %v6188_v15, %v2825_v58 }
 0x928   :  { %6191 = vtanh.f32 %v7768_v7  ;;  %v2830_v12 = vsel %vm2829_vm13, %v6188_v15, %v2826_v32  ;;  %v2974_v3 = vrot.slane %v7768_v7, 6 }
 0x929   :  { %v2835_v23 = vsel %vm2832_vm14, %v2834_v45, %v2830_v12 }
 0x92e   :  { %v6192_v40 = vpop.eup %6191 }
 0x92f   :  { %v7771_v56 = vmul.f32 %v6192_v40, %v2835_v23 }
 0x931   :  { %v2846_v52 = vpack.c.bf16 %v7771_v56, %v7771_v56 }
 0x933   :  { %2855 = vmatmul.bf16.vlgmr.msra.gmra.mxu0 %v2846_v52  ;;  %2868 = vmatmul.bf16.vlgmr.msra.gmra.mxu1 %v2846_v52 }
 0x934   :  { %2881 = vmatmul.bf16.vlgmr.msra.gmra.mxu2 %v2846_v52  ;;  %2894 = vmatmul.bf16.vlgmr.msra.gmra.mxu3 %v2846_v52 }
 0x935   :  { %3123 = vmatpush.bf16.msra.mxu0 %v7302_v6  ;;  %3136 = vmatpush.bf16.msra.mxu1 %v7305_v24 }
 0x936   :  { %3149 = vmatpush.bf16.msra.mxu2 %v7308_v38  ;;  %3162 = vmatpush.bf16.msra.mxu3 %v7310_v39 }
 0x939   :  { %3124 = vmatpush.bf16.msra.mxu0 %v7313_v59  ;;  %3137 = vmatpush.bf16.msra.mxu1 %v7317_v18 }
 0x93a   :  { %3150 = vmatpush.bf16.msra.mxu2 %v7319_v27  ;;  %3163 = vmatpush.bf16.msra.mxu3 %v7321_v61 }
 0x93d   :  { %3125 = vmatpush.bf16.msra.mxu0 %v7324_v14  ;;  %3138 = vmatpush.bf16.msra.mxu1 %v7327_v44 }
 0x93e   :  { %3151 = vmatpush.bf16.msra.mxu2 %v7333_v16  ;;  %3164 = vmatpush.bf16.msra.mxu3 %v7335_v17 }
 0x941   :  { %3126 = vmatpush.bf16.msra.mxu0 %v7341_v46  ;;  %3139 = vmatpush.bf16.msra.mxu1 %v7352_v2 }
 0x942   :  { %3152 = vmatpush.bf16.msra.mxu2 %v7354_v9  ;;  %3165 = vmatpush.bf16.msra.mxu3 %v7356_v19 }
 0x945   :  { %3127 = vmatpush.bf16.msra.mxu0 %v7359_v60  ;;  %3140 = vmatpush.bf16.msra.mxu1 %v7364_v48 }
 0x946   :  { %3153 = vmatpush.bf16.msra.mxu2 %v7370_v4  ;;  %3166 = vmatpush.bf16.msra.mxu3 %v7384_v47 }
 0x949   :  { %3128 = vmatpush.bf16.msra.mxu0 %v7386_v50  ;;  %3141 = vmatpush.bf16.msra.mxu1 %v7390_v28 }
 0x94a   :  { %3154 = vmatpush.bf16.msra.mxu2 %v7392_v11  ;;  %3167 = vmatpush.bf16.msra.mxu3 %v7397_v57 }
 0x94d   :  { %3129 = vmatpush.bf16.msra.mxu0 %v7403_v34  ;;  %3142 = vmatpush.bf16.msra.mxu1 %v7412_v31 }
 0x94e   :  { %3155 = vmatpush.bf16.msra.mxu2 %v7425_v26  ;;  %3168 = vmatpush.bf16.msra.mxu3 %v7439_v10 }
 0x951   :  { %3130 = vmatpush.bf16.msra.mxu0 %v7447_v21  ;;  %3143 = vmatpush.bf16.msra.mxu1 %v7450_v1 }
 0x952   :  { %3156 = vmatpush.bf16.msra.mxu2 %v7454_v33  ;;  %3169 = vmatpush.bf16.msra.mxu3 %v7457_v13 }
 0x9b0   :  { %v2856_v6 = vpop.f32.mrf.mxu0  ;;  %v2869_v24 = vpop.f32.mrf.mxu1 }
 0x9b1   :  { %v2903_v38 = vrot.slane %v2856_v6, 6  ;;  %v2904_v39 = vrot.slane %v2869_v24, 6 }
 0x9b3   :  { %v2911_v59 = vadd.f32 %v2903_v38, %v7746_v62  ;;  %v2912_v18 = vadd.f32 %v2904_v39, %v7751_v29 }
 0x9b5   :  { %v5457_v27 = vmul.f32 -1.442695, %v2911_v59  ;;  %v5458_v61 = vmul.f32 -1.442695, %v2912_v18 }
 0x9b7   :  { %6193 = vpow2.f32 %v5457_v27  ;;  %v2882_v14 = vpop.f32.mrf.mxu2  ;;  %v2895_v44 = vpop.f32.mrf.mxu3 }
 0x9b8   :  { %6195 = vpow2.f32 %v5458_v61  ;;  %v2905_v16 = vrot.slane %v2882_v14, 6  ;;  %v2858_v17 = vpop.f32.mrf.mxu0  ;;  %v2871_v46 = vpop.f32.mrf.mxu1  ;;  %v2906_v28 = vrot.slane %v2895_v44, 6 }
 0x9ba   :  { %v2913_v2 = vadd.f32 %v2905_v16, %v7758_v49  ;;  %v2914_v31 = vadd.f32 %v2906_v28, %v7764_v42 }
 0x9bc   :  { %v5459_v9 = vmul.f32 -1.442695, %v2913_v2 }
 0x9bd   :  { %v6194_v19 = vpop.eup %6193 }
 0x9be   :  { %v6196_v60 = vpop.eup %6195  ;;  %v2924_v48 = vadd.f32 1.0, %v6194_v19  ;;  %6197 = vpow2.f32 %v5459_v9 }
 0x9bf   :  { %v2925_v4 = vadd.f32 1.0, %v6196_v60  ;;  %v2884_v47 = vpop.f32.mrf.mxu2  ;;  %v2897_v50 = vpop.f32.mrf.mxu3 }
 0x9c0   :  { %6199 = vrcp.f32 %v2924_v48  ;;  %v2938_v13 = vand.u32 2147483648, %v2924_v48  ;;  %v2936_v36 = vand.u32 2147483647, %v2924_v48  ;;  %vm2932_vm2 = vweird.f32 %v2924_v48 }
 0x9c1   :  { %6201 = vrcp.f32 %v2925_v4  ;;  %v2953_v63 = vand.u32 2147483648, %v2925_v4  ;;  %v2951_v25 = vand.u32 2147483647, %v2925_v4  ;;  %vm2947_vm3 = vweird.f32 %v2925_v4 }
 0x9c2   :  { %v2939_v37 = vor.u32 1.1754944e-38, %v2938_v13  ;;  %vm2937_vm0 = vcmp.eq.f32.partialorder %v2936_v36, 8.507059e+37 }
 0x9c3   :  { %v2954_v5 = vor.u32 1.1754944e-38, %v2953_v63  ;;  %vm2952_vm9 = vcmp.eq.f32.partialorder %v2951_v25, 8.507059e+37 }
 0x9c4   :  { %v6198_v11 = vpop.eup %6197 }
 0x9c5   :  { %v2926_v57 = vadd.f32 1.0, %v6198_v11 }
 0x9c6   :  { %v6200_v34 = vpop.eup %6199 }
 0x9c7   :  { %v6202_v26 = vpop.eup %6201  ;;  %v2928_v10 = vmul.f32 %v6200_v34, %v2924_v48  ;;  %6203 = vrcp.f32 %v2926_v57  ;;  %vm2933_vm15 = vweird.f32 %v6200_v34  ;;  %v2968_v23 = vand.u32 2147483648, %v2926_v57 }
 0x9c8   :  { %v2943_v21 = vmul.f32 %v6202_v26, %v2925_v4  ;;  %6205 = vtanh.f32 %v2914_v31  ;;  %vm2948_vm1 = vweird.f32 %v6202_v26  ;;  %vm2934_vm4 = vmor %vm2932_vm2, %vm2933_vm15  ;;  %vm2962_vm11 = vweird.f32 %v2926_v57 }
 0x9c9   :  { %v2929_v1 = vsub.f32 1.0, %v2928_v10  ;;  %vm2949_vm5 = vmor %vm2947_vm3, %vm2948_vm1  ;;  %v2966_v7 = vand.u32 2147483647, %v2926_v57  ;;  %v2969_v6 = vor.u32 1.1754944e-38, %v2968_v23 }
 0x9ca   :  { %v2944_v33 = vsub.f32 1.0, %v2943_v21 }
 0x9cb   :  { %v2930_v15 = vmul.f32 %v6200_v34, %v2929_v1  ;;  %vm2967_vm13 = vcmp.eq.f32.partialorder %v2966_v7, 8.507059e+37 }
 0x9cc   :  { %v2945_v53 = vmul.f32 %v6202_v26, %v2944_v33 }
 0x9cd   :  { %v6204_v41 = vpop.eup %6203  ;;  %v2931_v43 = vadd.f32 %v6200_v34, %v2930_v15 }
 0x9ce   :  { %v2958_v51 = vmul.f32 %v6204_v41, %v2926_v57  ;;  %v2946_v30 = vadd.f32 %v6202_v26, %v2945_v53  ;;  %v6206_v8 = vpop.eup %6205  ;;  %vm2963_vm10 = vweird.f32 %v6204_v41 }
 0x9cf   :  { %v2935_v22 = vsel %vm2934_vm4, %v6200_v34, %v2931_v43  ;;  %vm2964_vm12 = vmor %vm2962_vm11, %vm2963_vm10 }
 0x9d0   :  { %v2959_v35 = vsub.f32 1.0, %v2958_v51  ;;  %v2940_v58 = vsel %vm2937_vm0, %v2939_v37, %v2935_v22  ;;  %v2950_v20 = vsel %vm2949_vm5, %v6202_v26, %v2946_v30 }
 0x9d1   :  { %v2955_v32 = vsel %vm2952_vm9, %v2954_v5, %v2950_v20  ;;  %v2977_v54 = vmul.f32 %v6206_v8, %v2940_v58 }
 0x9d2   :  { %v2960_v0 = vmul.f32 %v6204_v41, %v2959_v35  ;;  %v2976_v12 = vmul.f32 %v2974_v3, %v2955_v32 }
 0x9d4   :  { %v7812_v45 = vadd.f32 %v2977_v54, %v2976_v12  ;;  %v2961_v40 = vadd.f32 %v6204_v41, %v2960_v0 }
 0x9d6   :  { %6207 = vtanh.f32 %v7812_v45  ;;  %v2965_v52 = vsel %vm2964_vm12, %v6204_v41, %v2961_v40  ;;  %v3112_v20 = vrot.slane %v7812_v45, 6 }
 0x9d7   :  { %v2970_v38 = vsel %vm2967_vm13, %v2969_v6, %v2965_v52 }
 0x9dc   :  { %v6208_v24 = vpop.eup %6207 }
 0x9dd   :  { %v7815_v39 = vmul.f32 %v6208_v24, %v2970_v38 }
 0x9df   :  { %v2981_v59 = vpack.c.bf16 %v7815_v39, %v7815_v39 }
 0x9e1   :  { %v2983_v18 = vrot.slane %v2981_v59, 1 }
 0x9e3   :  { %2993 = vmatmul.bf16.vlgmr.msrb.gmra.mxu0 %v2983_v18  ;;  %3006 = vmatmul.bf16.vlgmr.msrb.gmra.mxu1 %v2983_v18 }
 0x9e4   :  { %3019 = vmatmul.bf16.vlgmr.msrb.gmra.mxu2 %v2983_v18  ;;  %3032 = vmatmul.bf16.vlgmr.msrb.gmra.mxu3 %v2983_v18 }
 0xa60   :  { %v2994_v27 = vpop.f32.mrf.mxu0  ;;  %v3007_v61 = vpop.f32.mrf.mxu1 }
 0xa61   :  { %v3041_v14 = vrot.slane %v2994_v27, 4  ;;  %v3042_v44 = vrot.slane %v3007_v61, 4 }
 0xa63   :  { %v3049_v16 = vadd.f32 %v3041_v14, %v7746_v62  ;;  %v3050_v17 = vadd.f32 %v3042_v44, %v7751_v29 }
 0xa65   :  { %v5460_v46 = vmul.f32 -1.442695, %v3049_v16  ;;  %v5461_v2 = vmul.f32 -1.442695, %v3050_v17  ;;  %v3264_v17 = vsel %vm1725_vm7, %v7771_v56, %v7815_v39  ;;  %v5590_v56 = vld [vmem:[#allocation15 + $0xf8] sm:$0xf0] }
 0xa67   :  { %6209 = vpow2.f32 %v5460_v46  ;;  %v3020_v9 = vpop.f32.mrf.mxu2  ;;  %v3033_v19 = vpop.f32.mrf.mxu3 }
 0xa68   :  { %6211 = vpow2.f32 %v5461_v2  ;;  %v3043_v60 = vrot.slane %v3020_v9, 4  ;;  %v2996_v48 = vpop.f32.mrf.mxu0  ;;  %v3009_v4 = vpop.f32.mrf.mxu1  ;;  %v3044_v10 = vrot.slane %v3033_v19, 4  ;;  %v5580_v19 = vld [vmem:[#allocation15 + $0xe0] sm:$0xf] }
 0xa69   :  { %v5919_v48 = vld [vmem:[#allocation15 + $0xe4] sm:$0xf] }
 0xa6a   :  { %v3051_v47 = vadd.f32 %v3043_v60, %v7758_v49  ;;  %v3052_v13 = vadd.f32 %v3044_v10, %v7764_v42  ;;  %v5921_v60 = vld [vmem:[#allocation15 + $0xec] sm:$0xf0]  ;;  %v5915_v10 = vld [vmem:[#allocation15 + $0xc4] sm:$0xf] }
 0xa6b   :  { %v5581_v4 = vor.u32 %v5921_v60, %v5580_v19  ;;  %v5904_v19 = vld [vmem:[#allocation15 + $0x6c] sm:$0xf]  ;;  %v5526_v60 = vld [vmem:[#allocation15 + $0x78] sm:$0xf0] }
 0xa6c   :  { %v5462_v50 = vmul.f32 -1.442695, %v3051_v47  ;;  %v5582_v47 = vld [vmem:[#allocation15 + $0xf0] sm:$0xf0] }
 0xa6d   :  { %v6210_v28 = vpop.eup %6209  ;;  %3470 = vmatpush.bf16.msrb.mxu0 %v5581_v4  ;;  %v5500_v4 = vld [vmem:[#allocation15 + $0x40] sm:$0xf] }
 0xa6e   :  { %v6212_v11 = vpop.eup %6211  ;;  %v3062_v57 = vadd.f32 1.0, %v6210_v28  ;;  %6213 = vpow2.f32 %v5462_v50  ;;  %v5588_v50 = vld [vmem:[#allocation15 + $0xe8] sm:$0xf]  ;;  %v5922_v28 = vld [vmem:[#allocation15 + $0xf4] sm:$0xf0] }
 0xa6f   :  { %v3063_v34 = vadd.f32 1.0, %v6212_v11  ;;  %v3022_v31 = vpop.f32.mrf.mxu2  ;;  %v3035_v26 = vpop.f32.mrf.mxu3  ;;  %v5585_v11 = vor.u32 %v5919_v48, %v5582_v47  ;;  %v5529_v48 = vor.u32 %v5904_v19, %v5526_v60  ;;  %v5901_v47 = vld [vmem:[#allocation15 + $0x4c] sm:$0xf0] }
 0xa70   :  { %6215 = vrcp.f32 %v3062_v57  ;;  %v3076_v41 = vand.u32 2147483648, %v3062_v57  ;;  %v3074_v37 = vand.u32 2147483647, %v3062_v57  ;;  %vm3070_vm1 = vweird.f32 %v3062_v57  ;;  %v5564_v31 = vld [vmem:[#allocation15 + $0xc0] sm:$0xf] }
 0xa71   :  { %6217 = vrcp.f32 %v3063_v34  ;;  %v3091_v43 = vand.u32 2147483648, %v3063_v34  ;;  %v3089_v3 = vand.u32 2147483647, %v3063_v34  ;;  %vm3085_vm2 = vweird.f32 %v3063_v34  ;;  %3484 = vmatpush.bf16.msrb.mxu1 %v5585_v11  ;;  %v5917_v26 = vld [vmem:[#allocation15 + $0xcc] sm:$0xf0] }
 0xa72   :  { %v3077_v35 = vor.u32 1.1754944e-38, %v3076_v41  ;;  %vm3075_vm5 = vcmp.eq.f32.partialorder %v3074_v37, 8.507059e+37  ;;  %v5548_v41 = vld [vmem:[#allocation15 + $0xa0] sm:$0xf]  ;;  %v5502_v11 = vld [vmem:[#allocation15 + $0x50] sm:$0xf0] }
 0xa73   :  { %v3092_v32 = vor.u32 1.1754944e-38, %v3091_v43  ;;  %vm3090_vm0 = vcmp.eq.f32.partialorder %v3089_v3, 8.507059e+37  ;;  %v5913_v43 = vld [vmem:[#allocation15 + $0xac] sm:$0xf0]  ;;  %v5556_v3 = vld [vmem:[#allocation15 + $0xa8] sm:$0xf] }
 0xa74   :  { %v6214_v21 = vpop.eup %6213  ;;  %v5549_v37 = vor.u32 %v5913_v43, %v5548_v41  ;;  %v5896_v41 = vld [vmem:[#allocation15 + $0x2c] sm:$0xf]  ;;  %v5494_v43 = vld [vmem:[#allocation15 + $0x38] sm:$0xf0]  ;;  %v5949_v19 = vld [vmem:[#allocation16 + $0xcc] sm:$0xf0] }
 0xa75   :  { %v3064_v1 = vadd.f32 1.0, %v6214_v21  ;;  %v5565_v21 = vor.u32 %v5917_v26, %v5564_v31  ;;  %v5900_v31 = vld [vmem:[#allocation15 + $0x4c] sm:$0xf]  ;;  %v5510_v26 = vld [vmem:[#allocation15 + $0x58] sm:$0xf0] }
 0xa76   :  { %v6216_v33 = vpop.eup %6215 }
 0xa77   :  { %v6218_v63 = vpop.eup %6217  ;;  %v3066_v15 = vmul.f32 %v6216_v33, %v3062_v57  ;;  %6219 = vrcp.f32 %v3064_v1  ;;  %vm3071_vm14 = vweird.f32 %v6216_v33  ;;  %v3106_v18 = vand.u32 2147483648, %v3064_v1  ;;  %3471 = vmatpush.bf16.msrb.mxu0 %v5565_v21  ;;  %v5484_v21 = vld [vmem:[#allocation15 + $0x20] sm:$0xf] }
 0xa78   :  { %v3081_v36 = vmul.f32 %v6218_v63, %v3063_v34  ;;  %6221 = vtanh.f32 %v3052_v13  ;;  %vm3086_vm15 = vweird.f32 %v6218_v63  ;;  %vm3072_vm3 = vmor %vm3070_vm1, %vm3071_vm14  ;;  %vm3100_vm10 = vweird.f32 %v3064_v1  ;;  %v5920_v34 = vld [vmem:[#allocation15 + $0xec] sm:$0xf]  ;;  %v5918_v13 = vld [vmem:[#allocation15 + $0xd4] sm:$0xf0] }
 0xa79   :  { %v3067_v53 = vsub.f32 1.0, %v3066_v15  ;;  %vm3087_vm4 = vmor %vm3085_vm2, %vm3086_vm15  ;;  %v3104_v45 = vand.u32 2147483647, %v3064_v1  ;;  %v3107_v61 = vor.u32 1.1754944e-38, %v3106_v18  ;;  %v5589_v57 = vor.u32 %v5922_v28, %v5588_v50  ;;  %v5899_v50 = vld [vmem:[#allocation15 + $0x44] sm:$0xf] }
 0xa7a   :  { %v3082_v25 = vsub.f32 1.0, %v3081_v36  ;;  %v5593_v39 = vor.u32 %v5920_v34, %v5590_v56  ;;  %v5916_v36 = vld [vmem:[#allocation15 + $0xcc] sm:$0xf]  ;;  %v5501_v28 = vor.u32 %v5901_v47, %v5500_v4  ;;  %v5902_v34 = vld [vmem:[#allocation15 + $0x54] sm:$0xf0]  ;;  %v5505_v56 = vor.u32 %v5899_v50, %v5502_v11 }
 0xa7b   :  { %v3068_v51 = vmul.f32 %v6216_v33, %v3067_v53  ;;  %vm3105_vm12 = vcmp.eq.f32.partialorder %v3104_v45, 8.507059e+37  ;;  %3498 = vmatpush.bf16.msrb.mxu2 %v5589_v57  ;;  %v5574_v53 = vld [vmem:[#allocation15 + $0xd8] sm:$0xf0]  ;;  %3472 = vmatpush.bf16.msrb.mxu0 %v5549_v37  ;;  %v5516_v45 = vld [vmem:[#allocation15 + $0x60] sm:$0xf] }
 0xa7c   :  { %v3083_v30 = vmul.f32 %v6218_v63, %v3082_v25  ;;  %3512 = vmatpush.bf16.msrb.mxu3 %v5593_v39  ;;  %v5577_v25 = vor.u32 %v5916_v36, %v5574_v53  ;;  %v5508_v57 = vld [vmem:[#allocation15 + $0x48] sm:$0xf]  ;;  %v5898_v36 = vld [vmem:[#allocation15 + $0x34] sm:$0xf0]  ;;  %v5947_v50 = vld [vmem:[#allocation16 + $0xc4] sm:$0xf] }
 0xa7d   :  { %v6220_v5 = vpop.eup %6219  ;;  %v3069_v22 = vadd.f32 %v6216_v33, %v3068_v51  ;;  %v5911_v51 = vld [vmem:[#allocation15 + $0xa4] sm:$0xf]  ;;  %v5509_v39 = vor.u32 %v5902_v34, %v5508_v57  ;;  %v5701_v11 = vld [vmem:[#allocation16 + $0xc8] sm:$0xf] }
 0xa7e   :  { %v3096_v8 = vmul.f32 %v6220_v5, %v3064_v1  ;;  %v3084_v58 = vadd.f32 %v6218_v63, %v3083_v30  ;;  %v6222_v0 = vpop.eup %6221  ;;  %vm3101_vm9 = vweird.f32 %v6220_v5  ;;  %v5566_v1 = vld [vmem:[#allocation15 + $0xd0] sm:$0xf0] }
 0xa7f   :  { %v3073_v54 = vsel %vm3072_vm3, %v6216_v33, %v3069_v22  ;;  %vm3102_vm11 = vmor %vm3100_vm10, %vm3101_vm9  ;;  %v5572_v33 = vld [vmem:[#allocation15 + $0xc8] sm:$0xf]  ;;  %v5550_v30 = vld [vmem:[#allocation15 + $0xb0] sm:$0xf0] }
 0xa80   :  { %v3097_v12 = vsub.f32 1.0, %v3096_v8  ;;  %v3078_v40 = vsel %vm3075_vm5, %v3077_v35, %v3073_v54  ;;  %v3088_v23 = vsel %vm3087_vm4, %v6218_v63, %v3084_v58  ;;  %v5569_v63 = vor.u32 %v5915_v10, %v5566_v1  ;;  %3513 = vmatpush.bf16.msrb.mxu3 %v5577_v25  ;;  %v5912_v35 = vld [vmem:[#allocation15 + $0xac] sm:$0xf]  ;;  %v5558_v58 = vld [vmem:[#allocation15 + $0xb8] sm:$0xf0] }
 0xa81   :  { %v3093_v7 = vsel %vm3090_vm0, %v3092_v32, %v3088_v23  ;;  %v3115_v52 = vmul.f32 %v6222_v0, %v3078_v40  ;;  %v5573_v15 = vor.u32 %v5918_v13, %v5572_v33  ;;  %v5553_v22 = vor.u32 %v5911_v51, %v5550_v30  ;;  %v5532_v32 = vld [vmem:[#allocation15 + $0x80] sm:$0xf]  ;;  %v5909_v54 = vld [vmem:[#allocation15 + $0x8c] sm:$0xf0]  ;;  %v5907_v0 = vld [vmem:[#allocation15 + $0x84] sm:$0xf] }
 0xa82   :  { %v3098_v6 = vmul.f32 %v6220_v5, %v3097_v12  ;;  %v3114_v24 = vmul.f32 %v3112_v20, %v3093_v7  ;;  %3485 = vmatpush.bf16.msrb.mxu1 %v5569_v63  ;;  %v5561_v20 = vor.u32 %v5912_v35, %v5558_v58  ;;  %v5533_v12 = vor.u32 %v5909_v54, %v5532_v32  ;;  %v5534_v40 = vld [vmem:[#allocation15 + $0x90] sm:$0xf0]  ;;  %v5540_v23 = vld [vmem:[#allocation15 + $0x88] sm:$0xf]  ;;  %v5910_v7 = vld [vmem:[#allocation15 + $0x94] sm:$0xf0] }
 0xa83   :  { %3499 = vmatpush.bf16.msrb.mxu2 %v5573_v15  ;;  %v5513_v10 = vor.u32 %v5900_v31, %v5510_v26  ;;  %v5897_v1 = vld [vmem:[#allocation15 + $0x2c] sm:$0xf0]  ;;  %v5895_v33 = vld [vmem:[#allocation15 + $0x24] sm:$0xf]  ;;  %v5486_v63 = vld [vmem:[#allocation15 + $0x30] sm:$0xf0]  ;;  %v5497_v51 = vor.u32 %v5896_v41, %v5494_v43 }
 0xa84   :  { %v7824_v38 = vadd.f32 %v3115_v52, %v3114_v24  ;;  %v3099_v59 = vadd.f32 %v6220_v5, %v3098_v6  ;;  %3514 = vmatpush.bf16.msrb.mxu3 %v5561_v20  ;;  %v5537_v52 = vor.u32 %v5907_v0, %v5534_v40  ;;  %v5541_v6 = vor.u32 %v5910_v7, %v5540_v23  ;;  %v5908_v24 = vld [vmem:[#allocation15 + $0x8c] sm:$0xf]  ;;  %v5492_v15 = vld [vmem:[#allocation15 + $0x28] sm:$0xf]  ;;  %v5470_v20 = vld [vmem:[#allocation15 + $0x10] sm:$0xf0] }
 0xa85   :  { %3473 = vmatpush.bf16.msrb.mxu0 %v5533_v12  ;;  %v5485_v13 = vor.u32 %v5897_v1, %v5484_v21  ;;  %v5489_v53 = vor.u32 %v5895_v33, %v5486_v63  ;;  %v5493_v25 = vor.u32 %v5898_v36, %v5492_v15  ;;  %v5476_v32 = vld [vmem:[#allocation15 + $0x8] sm:$0xf]  ;;  %v5894_v0 = vld [vmem:[#allocation15 + $0x14] sm:$0xf0]  ;;  %v5892_v12 = vld [vmem:[#allocation15 + $0xc] sm:$0xf] }
 0xa86   :  { %6223 = vtanh.f32 %v7824_v38  ;;  %v3103_v27 = vsel %vm3102_vm11, %v6220_v5, %v3099_v59  ;;  %v5914_v5 = vld [vmem:[#allocation15 + $0xb4] sm:$0xf0]  ;;  %3486 = vmatpush.bf16.msrb.mxu1 %v5553_v22  ;;  %v5542_v59 = vld [vmem:[#allocation15 + $0x98] sm:$0xf0]  ;;  %v5891_v22 = vld [vmem:[#allocation15 + $0x4] sm:$0xf] }
 0xa87   :  { %v3108_v44 = vsel %vm3105_vm12, %v3107_v61, %v3103_v27  ;;  %v5557_v8 = vor.u32 %v5914_v5, %v5556_v3  ;;  %v5545_v18 = vor.u32 %v5908_v24, %v5542_v59  ;;  %v5905_v27 = vld [vmem:[#allocation15 + $0x6c] sm:$0xf0]  ;;  %v5903_v61 = vld [vmem:[#allocation15 + $0x64] sm:$0xf]  ;;  %v5468_v3 = vld [vmem:[#allocation15] sm:$0xf]  ;;  %v5473_v54 = vor.u32 %v5891_v22, %v5470_v20 }
 0xa88   :  { %v5893_v5 = vld [vmem:[#allocation15 + $0xc] sm:$0xf0]  ;;  %v5478_v40 = vld [vmem:[#allocation15 + $0x18] sm:$0xf0]  ;;  %v5709_v24 = vld [vmem:[#allocation16 + $0xe0] sm:$0xf] }
 0xa89   :  { %3500 = vmatpush.bf16.msrb.mxu2 %v5557_v8  ;;  %3515 = vmatpush.bf16.msrb.mxu3 %v5545_v18  ;;  %v5469_v58 = vor.u32 %v5893_v5, %v5468_v3  ;;  %v5953_v59 = vld [vmem:[#allocation16 + $0xec] sm:$0xf0]  ;;  %v5951_v18 = vld [vmem:[#allocation16 + $0xe4] sm:$0xf]  ;;  %v5950_v31 = vld [vmem:[#allocation16 + $0xd4] sm:$0xf0] }
 0xa8a   :  { %3487 = vmatpush.bf16.msrb.mxu1 %v5537_v52  ;;  %v5477_v52 = vor.u32 %v5894_v0, %v5476_v32  ;;  %v5948_v26 = vld [vmem:[#allocation16 + $0xcc] sm:$0xf]  ;;  %v5703_v21 = vld [vmem:[#allocation16 + $0xd8] sm:$0xf0]  ;;  %v5677_v1 = vld [vmem:[#allocation16 + $0xa0] sm:$0xf] }
 0xa8b   :  { %v5945_v33 = vld [vmem:[#allocation16 + $0xac] sm:$0xf0]  ;;  %v7857_v63 = vor.u32 %v5948_v26, %v5703_v21  ;;  %v5943_v36 = vld [vmem:[#allocation16 + $0xa4] sm:$0xf]  ;;  %v5946_v43 = vld [vmem:[#allocation16 + $0xb4] sm:$0xf0] }
 0xa8c   :  { %v6224_v14 = vpop.eup %6223  ;;  %v7859_v15 = vor.u32 %v5945_v33, %v5677_v1  ;;  %v5661_v3 = vld [vmem:[#allocation16 + $0x80] sm:$0xf]  ;;  %v5941_v5 = vld [vmem:[#allocation16 + $0x8c] sm:$0xf0]  ;;  %v5669_v20 = vld [vmem:[#allocation16 + $0x88] sm:$0xf] }
 0xa8d   :  { %v3118_v16 = vmul.f32 %v6224_v14, %v3108_v44  ;;  %3501 = vmatpush.bf16.msrb.mxu2 %v5541_v6  ;;  %v5517_v14 = vor.u32 %v5905_v27, %v5516_v45  ;;  %v5518_v44 = vld [vmem:[#allocation15 + $0x70] sm:$0xf0]  ;;  %3516 = vmatpush.bf16.msrb.mxu3 %v5529_v48  ;;  %v5481_v6 = vor.u32 %v5892_v12, %v5478_v40  ;;  %v5942_v12 = vld [vmem:[#allocation16 + $0x94] sm:$0xf0]  ;;  %v5933_v26 = vld [vmem:[#allocation16 + $0x4c] sm:$0xf0] }
 0xa8e   :  { %v7835_v45 = vor.u32 %v5953_v59, %v5709_v24  ;;  %v5711_v27 = vld [vmem:[#allocation16 + $0xf0] sm:$0xf0]  ;;  %v7873_v0 = vor.u32 %v5941_v5, %v5661_v3  ;;  %v5940_v24 = vld [vmem:[#allocation16 + $0x8c] sm:$0xf]  ;;  %v5671_v59 = vld [vmem:[#allocation16 + $0x98] sm:$0xf0] }
 0xa8f   :  { %v3119_v46 = vpack.c.bf16 %v3118_v16, %v3118_v16  ;;  %v7831_v2 = vsel %vm1727_vm8, %v3264_v17, %v3118_v16  ;;  %v5524_v16 = vld [vmem:[#allocation15 + $0x68] sm:$0xf]  ;;  %v5906_v17 = vld [vmem:[#allocation15 + $0x74] sm:$0xf0]  ;;  %3474 = vmatpush.bf16.msrb.mxu0 %v5517_v14  ;;  %v5931_v1 = vld [vmem:[#allocation16 + $0x44] sm:$0xf] }
 0xa90   :  { %v5954_v14 = vld [vmem:[#allocation16 + $0xf4] sm:$0xf0]  ;;  %v5631_v33 = vld [vmem:[#allocation16 + $0x50] sm:$0xf0]  ;;  %v5639_v5 = vld [vmem:[#allocation16 + $0x58] sm:$0xf0] }
 0xa91   :  { %v3121_v9 = vrot.slane %v3119_v46, 2  ;;  %v5521_v46 = vor.u32 %v5903_v61, %v5518_v44  ;;  %3517 = vmatpush.bf16.msrb.mxu3 %v5513_v10  ;;  %v5717_v61 = vld [vmem:[#allocation16 + $0xe8] sm:$0xf]  ;;  %v7853_v10 = vor.u32 %v5950_v31, %v5701_v11  ;;  %v5655_v11 = vld [vmem:[#allocation16 + $0x78] sm:$0xf0] }
 0xa92   :  { %v5629_v31 = vld [vmem:[#allocation16 + $0x40] sm:$0xf] }
 0xa93   :  { %3131 = vmatmul.bf16.vlgmr.msra.gmra.mxu0 %v3121_v9  ;;  %3144 = vmatmul.bf16.vlgmr.msra.gmra.mxu1 %v3121_v9 }
 0xa94   :  { %3157 = vmatmul.bf16.vlgmr.msra.gmra.mxu2 %v3121_v9  ;;  %3170 = vmatmul.bf16.vlgmr.msra.gmra.mxu3 %v3121_v9  ;;  %v5525_v9 = vor.u32 %v5906_v17, %v5524_v16  ;;  %v7837_v17 = vor.u32 %v5951_v18, %v5711_v27  ;;  %v5645_v27 = vld [vmem:[#allocation16 + $0x60] sm:$0xf] }
 0xa95   :  { %3488 = vmatpush.bf16.msrb.mxu1 %v5521_v46  ;;  %3475 = vmatpush.bf16.msrb.mxu0 %v5501_v28  ;;  %v5719_v46 = vld [vmem:[#allocation16 + $0xf8] sm:$0xf0]  ;;  %v5695_v28 = vld [vmem:[#allocation16 + $0xd0] sm:$0xf0] }
 0xa96   :  { %3502 = vmatpush.bf16.msrb.mxu2 %v5525_v9  ;;  %3518 = vmatpush.bf16.msrb.mxu3 %v5497_v51  ;;  %v5693_v9 = vld [vmem:[#allocation16 + $0xc0] sm:$0xf]  ;;  %v5944_v51 = vld [vmem:[#allocation16 + $0xac] sm:$0xf] }
 0xa97   :  { %v7848_v47 = vor.u32 %v5949_v19, %v5693_v9  ;;  %v5653_v9 = vld [vmem:[#allocation16 + $0x68] sm:$0xf] }
 0xa99   :  { %3489 = vmatpush.bf16.msrb.mxu1 %v5505_v56  ;;  %3476 = vmatpush.bf16.msrb.mxu0 %v5485_v13 }
 0xa9a   :  { %3503 = vmatpush.bf16.msrb.mxu2 %v5509_v39  ;;  %3519 = vmatpush.bf16.msrb.mxu3 %v5481_v6  ;;  %v7850_v39 = vor.u32 %v5947_v50, %v5695_v28  ;;  %v7881_v6 = vor.u32 %v5942_v12, %v5669_v20  ;;  %v5938_v50 = vld [vmem:[#allocation16 + $0x74] sm:$0xf0]  ;;  %v5936_v28 = vld [vmem:[#allocation16 + $0x6c] sm:$0xf]  ;;  %v7924_v20 = vor.u32 %v5931_v1, %v5631_v33  ;;  %v5929_v12 = vld [vmem:[#allocation16 + $0x2c] sm:$0xf0] }
 0xa9d   :  { %3490 = vmatpush.bf16.msrb.mxu1 %v5489_v53  ;;  %3477 = vmatpush.bf16.msrb.mxu0 %v5469_v58  ;;  %v5679_v53 = vld [vmem:[#allocation16 + $0xb0] sm:$0xf0] }
 0xa9e   :  { %3504 = vmatpush.bf16.msrb.mxu2 %v5493_v25  ;;  %v5685_v25 = vld [vmem:[#allocation16 + $0xa8] sm:$0xf]  ;;  %v7863_v41 = vor.u32 %v5943_v36, %v5679_v53  ;;  %v5663_v58 = vld [vmem:[#allocation16 + $0x90] sm:$0xf0]  ;;  %v3250_v53 = vrot.slane %v7824_v38, 6 }
 0xaa1   :  { %3491 = vmatpush.bf16.msrb.mxu1 %v5473_v54  ;;  %3723 = vmatpush.bf16.msra.mxu0 %v7835_v45 }
 0xaa2   :  { %3505 = vmatpush.bf16.msrb.mxu2 %v5477_v52 }
 0xaa5   :  { %3736 = vmatpush.bf16.msra.mxu1 %v7837_v17  ;;  %3724 = vmatpush.bf16.msra.mxu0 %v7848_v47 }
 0xaa9   :  { %3737 = vmatpush.bf16.msra.mxu1 %v7850_v39  ;;  %3725 = vmatpush.bf16.msra.mxu0 %v7859_v15 }
 0xaad   :  { %3738 = vmatpush.bf16.msra.mxu1 %v7863_v41  ;;  %3726 = vmatpush.bf16.msra.mxu0 %v7873_v0 }
 0xb10   :  { %v3132_v37 = vpop.f32.mrf.mxu0  ;;  %v3145_v30 = vpop.f32.mrf.mxu1 }
 0xb11   :  { %v3179_v8 = vrot.slane %v3132_v37, 2  ;;  %v3180_v35 = vrot.slane %v3145_v30, 2  ;;  %v5687_v37 = vld [vmem:[#allocation16 + $0xb8] sm:$0xf0] }
 0xb13   :  { %v3187_v23 = vadd.f32 %v3179_v8, %v7746_v62  ;;  %v3188_v7 = vadd.f32 %v3180_v35, %v7751_v29  ;;  %v7839_v62 = vor.u32 %v5954_v14, %v5717_v61  ;;  %v5952_v29 = vld [vmem:[#allocation16 + $0xec] sm:$0xf]  ;;  %v7868_v8 = vor.u32 %v5944_v51, %v5687_v37  ;;  %v5939_v35 = vld [vmem:[#allocation16 + $0x84] sm:$0xf]  ;;  %v5937_v14 = vld [vmem:[#allocation16 + $0x6c] sm:$0xf0] }
 0xb14   :  { %v7846_v4 = vor.u32 %v5952_v29, %v5719_v46  ;;  %v7879_v52 = vor.u32 %v5939_v35, %v5663_v58  ;;  %v7888_v61 = vor.u32 %v5940_v24, %v5671_v59  ;;  %v7893_v29 = vor.u32 %v5937_v14, %v5645_v27  ;;  %v5647_v46 = vld [vmem:[#allocation16 + $0x70] sm:$0xf0]  ;;  %v5934_v51 = vld [vmem:[#allocation16 + $0x54] sm:$0xf0]  ;;  %v5932_v37 = vld [vmem:[#allocation16 + $0x4c] sm:$0xf] }
 0xb15   :  { %v5463_v44 = vmul.f32 -1.442695, %v3187_v23  ;;  %v5464_v16 = vmul.f32 -1.442695, %v3188_v7  ;;  %3749 = vmatpush.bf16.msra.mxu2 %v7839_v62  ;;  %v7933_v59 = vor.u32 %v5932_v37, %v5639_v5  ;;  %v5615_v27 = vld [vmem:[#allocation16 + $0x30] sm:$0xf0] }
 0xb16   :  { %3762 = vmatpush.bf16.msra.mxu3 %v7846_v4  ;;  %3739 = vmatpush.bf16.msra.mxu1 %v7879_v52  ;;  %v5621_v14 = vld [vmem:[#allocation16 + $0x28] sm:$0xf] }
 0xb17   :  { %6225 = vpow2.f32 %v5463_v44  ;;  %v3158_v60 = vpop.f32.mrf.mxu2  ;;  %v7842_v48 = vpop.f32.mrf.mxu3  ;;  %v5935_v44 = vld [vmem:[#allocation16 + $0x64] sm:$0xf]  ;;  %3727 = vmatpush.bf16.msra.mxu0 %v7893_v29 }
 0xb18   :  { %6227 = vpow2.f32 %v5464_v16  ;;  %v3181_v57 = vrot.slane %v3158_v60, 2  ;;  %v3134_v34 = vpop.f32.mrf.mxu0  ;;  %v3147_v56 = vpop.f32.mrf.mxu1  ;;  %v3182_v18 = vrot.slane %v7842_v48, 2  ;;  %v7896_v48 = vor.u32 %v5935_v44, %v5647_v46  ;;  %v5930_v46 = vld [vmem:[#allocation16 + $0x34] sm:$0xf0] }
 0xb19   :  { %3750 = vmatpush.bf16.msra.mxu2 %v7853_v10  ;;  %v7901_v34 = vor.u32 %v5938_v50, %v5653_v9  ;;  %v7903_v56 = vor.u32 %v5936_v28, %v5655_v11  ;;  %v5928_v9 = vld [vmem:[#allocation16 + $0x2c] sm:$0xf]  ;;  %v7945_v50 = vor.u32 %v5930_v46, %v5621_v14  ;;  %v5597_v28 = vld [vmem:[#allocation16] sm:$0xf]  ;;  %v5925_v11 = vld [vmem:[#allocation16 + $0xc] sm:$0xf0] }
 0xb1a   :  { %v3189_v13 = vadd.f32 %v3181_v57, %v7758_v49  ;;  %v7865_v49 = vor.u32 %v5946_v43, %v5685_v25  ;;  %3763 = vmatpush.bf16.msra.mxu3 %v7857_v63  ;;  %v3190_v60 = vadd.f32 %v3182_v18, %v7764_v42  ;;  %v7908_v42 = vor.u32 %v5933_v26, %v5629_v31  ;;  %v5923_v31 = vld [vmem:[#allocation16 + $0x4] sm:$0xf] }
 0xb1b   :  { %3740 = vmatpush.bf16.msra.mxu1 %v7896_v48 }
 0xb1c   :  { %v5465_v30 = vmul.f32 -1.442695, %v3189_v13  ;;  %v5637_v13 = vld [vmem:[#allocation16 + $0x48] sm:$0xf]  ;;  %3728 = vmatpush.bf16.msra.mxu0 %v7908_v42 }
 0xb1d   :  { %v6226_v22 = vpop.eup %6225  ;;  %3751 = vmatpush.bf16.msra.mxu2 %v7865_v49 }
 0xb1e   :  { %v6228_v32 = vpop.eup %6227  ;;  %v7870_v54 = vadd.f32 1.0, %v6226_v22  ;;  %6229 = vpow2.f32 %v5465_v30  ;;  %3764 = vmatpush.bf16.msra.mxu3 %v7868_v8  ;;  %v5613_v22 = vld [vmem:[#allocation16 + $0x20] sm:$0xf] }
 0xb1f   :  { %v7875_v40 = vadd.f32 1.0, %v6228_v32  ;;  %v3160_v23 = vpop.f32.mrf.mxu2  ;;  %v3173_v7 = vpop.f32.mrf.mxu3  ;;  %v7926_v32 = vor.u32 %v5934_v51, %v5637_v13  ;;  %v7935_v18 = vor.u32 %v5929_v12, %v5613_v22  ;;  %3741 = vmatpush.bf16.msra.mxu1 %v7924_v20  ;;  %v5599_v13 = vld [vmem:[#allocation16 + $0x10] sm:$0xf0]  ;;  %v5926_v51 = vld [vmem:[#allocation16 + $0x14] sm:$0xf0] }
 0xb20   :  { %6231 = vrcp.f32 %v7870_v54  ;;  %v3212_v16 = vand.u32 2147483647, %v7870_v54  ;;  %v3214_v43 = vand.u32 2147483648, %v7870_v54  ;;  %v5927_v23 = vld [vmem:[#allocation16 + $0x24] sm:$0xf]  ;;  %vm3208_vm15 = vweird.f32 %v7870_v54 }
 0xb21   :  { %6233 = vrcp.f32 %v7875_v40  ;;  %3752 = vmatpush.bf16.msra.mxu2 %v7881_v6  ;;  %v3227_v3 = vand.u32 2147483647, %v7875_v40  ;;  %v3229_v58 = vand.u32 2147483648, %v7875_v40  ;;  %vm3223_vm14 = vweird.f32 %v7875_v40  ;;  %3729 = vmatpush.bf16.msra.mxu0 %v7935_v18  ;;  %v5924_v12 = vld [vmem:[#allocation16 + $0xc] sm:$0xf] }
 0xb22   :  { %3765 = vmatpush.bf16.msra.mxu3 %v7888_v61  ;;  %vm7928_vm7 = vcmp.eq.f32.partialorder %v3212_v16, 8.507059e+37  ;;  %v7941_v16 = vor.u32 %v5927_v23, %v5615_v27  ;;  %v3215_v22 = vor.u32 1.1754944e-38, %v3214_v43  ;;  %v5607_v23 = vld [vmem:[#allocation16 + $0x18] sm:$0xf0]  ;;  %v7973_v43 = vor.u32 %v5923_v31, %v5599_v13 }
 0xb23   :  { %vm3228_vm3 = vcmp.eq.f32.partialorder %v3227_v3, 8.507059e+37 }
 0xb24   :  { %v6230_v19 = vpop.eup %6229  ;;  %3742 = vmatpush.bf16.msra.mxu1 %v7941_v16 }
 0xb25   :  { %v7898_v57 = vadd.f32 1.0, %v6230_v19  ;;  %3753 = vmatpush.bf16.msra.mxu2 %v7901_v34  ;;  %v5623_v19 = vld [vmem:[#allocation16 + $0x38] sm:$0xf0] }
 0xb26   :  { %v7905_v21 = vpop.eup %6231  ;;  %3766 = vmatpush.bf16.msra.mxu3 %v7903_v56  ;;  %v7951_v33 = vor.u32 %v5928_v9, %v5623_v19 }
 0xb27   :  { %v7910_v36 = vpop.eup %6233  ;;  %v3204_v25 = vmul.f32 %v7905_v21, %v7870_v54  ;;  %6235 = vrcp.f32 %v7898_v57  ;;  %vm3209_vm8 = vweird.f32 %v7905_v21  ;;  %v7962_v54 = vor.u32 %v5925_v11, %v5597_v28 }
 0xb28   :  { %v3219_v30 = vmul.f32 %v7910_v36, %v7875_v40  ;;  %6237 = vtanh.f32 %v3190_v60  ;;  %vm3224_vm13 = vweird.f32 %v7910_v36  ;;  %vm7956_vm1 = vmor %vm3208_vm15, %vm3209_vm8  ;;  %3743 = vmatpush.bf16.msra.mxu1 %v7973_v43  ;;  %vm3238_vm5 = vweird.f32 %v7898_v57 }
 0xb29   :  { %v3205_v35 = vsub.f32 1.0, %v3204_v25  ;;  %3754 = vmatpush.bf16.msra.mxu2 %v7926_v32  ;;  %v5605_v25 = vld [vmem:[#allocation16 + $0x8] sm:$0xf]  ;;  %vm3225_vm2 = vmor %vm3223_vm14, %vm3224_vm13  ;;  %3730 = vmatpush.bf16.msra.mxu0 %v7962_v54  ;;  %v3242_v38 = vand.u32 2147483647, %v7898_v57 }
 0xb2a   :  { %v3220_v7 = vsub.f32 1.0, %v3219_v30  ;;  %3767 = vmatpush.bf16.msra.mxu3 %v7933_v59  ;;  %v7975_v14 = vor.u32 %v5926_v51, %v5605_v25  ;;  %v3300_v51 = vld [vmem:[#allocation18] sm:$0xf] }
 0xb2b   :  { %v3206_v44 = vmul.f32 %v7905_v21, %v3205_v35  ;;  %vm3243_vm9 = vcmp.eq.f32.partialorder %v3242_v38, 8.507059e+37 }
 0xb2c   :  { %v3221_v60 = vmul.f32 %v7910_v36, %v3220_v7  ;;  %v3230_v7 = vor.u32 1.1754944e-38, %v3229_v58 }
 0xb2d   :  { %v6236_v26 = vpop.eup %6235  ;;  %v3207_v1 = vadd.f32 %v7905_v21, %v3206_v44  ;;  %3755 = vmatpush.bf16.msra.mxu2 %v7945_v50 }
 0xb2e   :  { %v6238_v37 = vpop.eup %6237  ;;  %v3234_v30 = vmul.f32 %v6236_v26, %v7898_v57  ;;  %v3222_v35 = vadd.f32 %v7910_v36, %v3221_v60  ;;  %3768 = vmatpush.bf16.msra.mxu3 %v7951_v33  ;;  %vm3239_vm4 = vweird.f32 %v6236_v26 }
 0xb2f   :  { %v3211_v27 = vsel %vm7956_vm1, %v7905_v21, %v3207_v1  ;;  %v7981_v21 = vor.u32 %v5924_v12, %v5607_v23  ;;  %vm3240_vm0 = vmor %vm3238_vm5, %vm3239_vm4 }
 0xb30   :  { %v3235_v44 = vsub.f32 1.0, %v3234_v30  ;;  %v3216_v46 = vsel %vm7928_vm7, %v3215_v22, %v3211_v27  ;;  %v3226_v40 = vsel %vm3225_vm2, %v7910_v36, %v3222_v35  ;;  %v3244_v36 = vand.u32 2147483648, %v7898_v57 }
 0xb31   :  { %v3231_v58 = vsel %vm3228_vm3, %v3230_v7, %v3226_v40  ;;  %v3253_v9 = vmul.f32 %v6238_v37, %v3216_v46  ;;  %3756 = vmatpush.bf16.msra.mxu2 %v7975_v14  ;;  %v3302_v37 = vperm.slane %v3300_v51, 0  ;;  %v3303_v30 = vperm.slane %v3300_v51, 1 }
 0xb32   :  { %v3236_v19 = vmul.f32 %v6236_v26, %v3235_v44  ;;  %v3252_v60 = vmul.f32 %v3250_v53, %v3231_v58  ;;  %3769 = vmatpush.bf16.msra.mxu3 %v7981_v21  ;;  %v3245_v3 = vor.u32 1.1754944e-38, %v3244_v36  ;;  %v3304_v27 = vperm.slane %v3300_v51, 2 }
 0xb33   :  { %v3305_v44 = vperm.slane %v3300_v51, 3 }
 0xb34   :  { %v3254_v24 = vadd.f32 %v3253_v9, %v3252_v60  ;;  %v3237_v28 = vadd.f32 %v6236_v26, %v3236_v19 }
 0xb36   :  { %6239 = vtanh.f32 %v3254_v24  ;;  %3260 = vst [vmem:[#allocation24 - $0x4] sm:$0xc0] %v3254_v24  ;;  %v3241_v53 = vsel %vm3240_vm0, %v6236_v26, %v3237_v28 }
 0xb37   :  { %v3246_v31 = vsel %vm3243_vm9, %v3245_v3, %v3241_v53 }
 0xb3c   :  { %v6240_v11 = vpop.eup %6239 }
 0xb3d   :  { %v3256_v1 = vmul.f32 %v6240_v11, %v3246_v31 }
 0xb3f   :  { %v3266_v13 = vsel %vm1729_vm6, %v7831_v2, %v3256_v1  ;;  %3258 = vst [vmem:[#allocation22 - $0x4] sm:$0xc0] %v3256_v1 }
 0xb40   :  { %v3267_v25 = vpack.c.bf16 %v3266_v13, %v7709_v55  ;;  %v5594_v55 = vld [vmem:[%s8318_s2 + $0x4] sm:$0x3] }
 0xb41   :  { %v3530_v2 = vpack.c.bf16 %v5594_v55, %v5594_v55 }
 0xb42   :  { %3478 = vmatmul.bf16.vlgmr.msrb.gmra.mxu0 %v3267_v25  ;;  %3492 = vmatmul.bf16.vlgmr.msrb.gmra.mxu1 %v3267_v25 }
 0xb43   :  { %3506 = vmatmul.bf16.vlgmr.msrb.gmra.mxu2 %v3267_v25  ;;  %3520 = vmatmul.bf16.vlgmr.msrb.gmra.mxu3 %v3267_v25 }
 0xb44   :  { %3843 = vmatpush.bf16.msrb.mxu0 %v7835_v45  ;;  %3856 = vmatpush.bf16.msrb.mxu1 %v7837_v17 }
 0xb45   :  { %3869 = vmatpush.bf16.msrb.mxu2 %v7839_v62  ;;  %3882 = vmatpush.bf16.msrb.mxu3 %v7846_v4 }
 0xb48   :  { %3844 = vmatpush.bf16.msrb.mxu0 %v7848_v47  ;;  %3857 = vmatpush.bf16.msrb.mxu1 %v7850_v39 }
 0xb49   :  { %3870 = vmatpush.bf16.msrb.mxu2 %v7853_v10  ;;  %3883 = vmatpush.bf16.msrb.mxu3 %v7857_v63 }
 0xb4c   :  { %3845 = vmatpush.bf16.msrb.mxu0 %v7859_v15  ;;  %3858 = vmatpush.bf16.msrb.mxu1 %v7863_v41 }
 0xb4d   :  { %3871 = vmatpush.bf16.msrb.mxu2 %v7865_v49  ;;  %3884 = vmatpush.bf16.msrb.mxu3 %v7868_v8 }
 0xb50   :  { %3846 = vmatpush.bf16.msrb.mxu0 %v7873_v0  ;;  %3859 = vmatpush.bf16.msrb.mxu1 %v7879_v52 }
 0xb51   :  { %3872 = vmatpush.bf16.msrb.mxu2 %v7881_v6  ;;  %3885 = vmatpush.bf16.msrb.mxu3 %v7888_v61 }
 0xb52   :  { %3731 = vmatmul.bf16.vlgmr.msra.gmra.mxu0 %v3530_v2  ;;  %3744 = vmatmul.bf16.vlgmr.msra.gmra.mxu1 %v3530_v2 }
 0xb53   :  { %3757 = vmatmul.bf16.vlgmr.msra.gmra.mxu2 %v3530_v2  ;;  %3770 = vmatmul.bf16.vlgmr.msra.gmra.mxu3 %v3530_v2 }
 0xb54   :  { %3847 = vmatpush.bf16.msrb.mxu0 %v7893_v29  ;;  %3860 = vmatpush.bf16.msrb.mxu1 %v7896_v48 }
 0xb55   :  { %3873 = vmatpush.bf16.msrb.mxu2 %v7901_v34  ;;  %3886 = vmatpush.bf16.msrb.mxu3 %v7903_v56 }
 0xb58   :  { %3848 = vmatpush.bf16.msrb.mxu0 %v7908_v42  ;;  %3861 = vmatpush.bf16.msrb.mxu1 %v7924_v20 }
 0xb59   :  { %3874 = vmatpush.bf16.msrb.mxu2 %v7926_v32  ;;  %3887 = vmatpush.bf16.msrb.mxu3 %v7933_v59 }
 0xb5c   :  { %3849 = vmatpush.bf16.msrb.mxu0 %v7935_v18  ;;  %3862 = vmatpush.bf16.msrb.mxu1 %v7941_v16 }
 0xb5d   :  { %3875 = vmatpush.bf16.msrb.mxu2 %v7945_v50  ;;  %3888 = vmatpush.bf16.msrb.mxu3 %v7951_v33 }
 0xb60   :  { %3850 = vmatpush.bf16.msrb.mxu0 %v7962_v54  ;;  %3863 = vmatpush.bf16.msrb.mxu1 %v7973_v43 }
 0xb61   :  { %3876 = vmatpush.bf16.msrb.mxu2 %v7975_v14  ;;  %3889 = vmatpush.bf16.msrb.mxu3 %v7981_v21 }
 0xb64   :  { %3981 = vmatpush.bf16.msra.mxu0 %v7835_v45  ;;  %3994 = vmatpush.bf16.msra.mxu1 %v7837_v17 }
 0xb65   :  { %4007 = vmatpush.bf16.msra.mxu2 %v7839_v62  ;;  %4020 = vmatpush.bf16.msra.mxu3 %v7846_v4 }
 0xb68   :  { %3982 = vmatpush.bf16.msra.mxu0 %v7848_v47  ;;  %3995 = vmatpush.bf16.msra.mxu1 %v7850_v39 }
 0xb69   :  { %4008 = vmatpush.bf16.msra.mxu2 %v7853_v10  ;;  %4021 = vmatpush.bf16.msra.mxu3 %v7857_v63 }
 0xb6c   :  { %3983 = vmatpush.bf16.msra.mxu0 %v7859_v15  ;;  %3996 = vmatpush.bf16.msra.mxu1 %v7863_v41 }
 0xb6d   :  { %4009 = vmatpush.bf16.msra.mxu2 %v7865_v49  ;;  %4022 = vmatpush.bf16.msra.mxu3 %v7868_v8 }
 0xb70   :  { %3984 = vmatpush.bf16.msra.mxu0 %v7873_v0  ;;  %3997 = vmatpush.bf16.msra.mxu1 %v7879_v52 }
 0xb71   :  { %4010 = vmatpush.bf16.msra.mxu2 %v7881_v6  ;;  %4023 = vmatpush.bf16.msra.mxu3 %v7888_v61 }
 0xb74   :  { %3985 = vmatpush.bf16.msra.mxu0 %v7893_v29  ;;  %3998 = vmatpush.bf16.msra.mxu1 %v7896_v48 }
 0xb75   :  { %4011 = vmatpush.bf16.msra.mxu2 %v7901_v34  ;;  %4024 = vmatpush.bf16.msra.mxu3 %v7903_v56 }
 0xb78   :  { %3986 = vmatpush.bf16.msra.mxu0 %v7908_v42  ;;  %3999 = vmatpush.bf16.msra.mxu1 %v7924_v20 }
 0xb79   :  { %4012 = vmatpush.bf16.msra.mxu2 %v7926_v32  ;;  %4025 = vmatpush.bf16.msra.mxu3 %v7933_v59 }
 0xb7c   :  { %3987 = vmatpush.bf16.msra.mxu0 %v7935_v18  ;;  %4000 = vmatpush.bf16.msra.mxu1 %v7941_v16 }
 0xb7d   :  { %4013 = vmatpush.bf16.msra.mxu2 %v7945_v50  ;;  %4026 = vmatpush.bf16.msra.mxu3 %v7951_v33 }
 0xb80   :  { %3988 = vmatpush.bf16.msra.mxu0 %v7962_v54  ;;  %4001 = vmatpush.bf16.msra.mxu1 %v7973_v43 }
 0xb81   :  { %4014 = vmatpush.bf16.msra.mxu2 %v7975_v14  ;;  %4027 = vmatpush.bf16.msra.mxu3 %v7981_v21 }
 0xbbf   :  { %v3479_v57 = vpop.f32.mrf.mxu0  ;;  %v3493_v26 = vpop.f32.mrf.mxu1 }
 0xbc0   :  { %v8066_v46 = vadd.f32 %v3479_v57, %v3302_v37  ;;  %v8068_v40 = vadd.f32 %v3493_v26, %v3303_v30 }
 0xbc6   :  { %v3507_v5 = vpop.f32.mrf.mxu2  ;;  %v3521_v22 = vpop.f32.mrf.mxu3 }
 0xbc7   :  { %v3481_v35 = vpop.f32.mrf.mxu0  ;;  %v3495_v12 = vpop.f32.mrf.mxu1  ;;  %v8076_v11 = vadd.f32 %v3507_v5, %v3304_v27  ;;  %v8079_v5 = vadd.f32 %v3521_v22, %v3305_v44 }
 0xbc8   :  { %v8062_v23 = vadd.f32 %v3481_v35, %v3302_v37  ;;  %v8064_v7 = vadd.f32 %v3495_v12, %v3303_v30 }
 0xbca   :  { %8365 = vst [vmem:[#allocation34_spill] sm:$0xff] %v8064_v7 }
 0xbce   :  { %v3509_v58 = vpop.f32.mrf.mxu2  ;;  %v3523_v9 = vpop.f32.mrf.mxu3 }
 0xbcf   :  { %v8070_v19 = vadd.f32 %v3509_v58, %v3304_v27  ;;  %v8072_v60 = vadd.f32 %v3523_v9, %v3305_v44  ;;  %v3732_v24 = vpop.f32.mrf.mxu0  ;;  %v3745_v28 = vpop.f32.mrf.mxu1 }
 0xbd0   :  { %v3775_v36 = vadd.f32 %v3732_v24, %v8066_v46  ;;  %v3776_v38 = vadd.f32 %v3745_v28, %v8068_v40 }
 0xbd1   :  { %8366 = vst [vmem:[#allocation35_spill] sm:$0xff] %v8070_v19 }
 0xbd2   :  { %8367 = vst [vmem:[#allocation36_spill] sm:$0xff] %v8072_v60  ;;  %v5723_v53 = vmul.f32 -1.442695, %v3775_v36  ;;  %v5724_v3 = vmul.f32 -1.442695, %v3776_v38 }
 0xbd4   :  { %6241 = vpow2.f32 %v5723_v53 }
 0xbd5   :  { %6243 = vpow2.f32 %v5724_v3 }
 0xbd6   :  { %v3758_v31 = vpop.f32.mrf.mxu2  ;;  %v3771_v1 = vpop.f32.mrf.mxu3 }
 0xbd7   :  { %v3777_v13 = vadd.f32 %v3758_v31, %v8076_v11  ;;  %v3734_v25 = vpop.f32.mrf.mxu0  ;;  %v3747_v55 = vpop.f32.mrf.mxu1  ;;  %v3778_v9 = vadd.f32 %v3771_v1, %v8079_v5 }
 0xbd9   :  { %v5725_v2 = vmul.f32 -1.442695, %v3777_v13 }
 0xbda   :  { %v6242_v57 = vpop.eup %6241 }
 0xbdb   :  { %v6244_v26 = vpop.eup %6243  ;;  %v3788_v51 = vadd.f32 1.0, %v6242_v57  ;;  %6245 = vpow2.f32 %v5725_v2 }
 0xbdc   :  { %v3789_v37 = vadd.f32 1.0, %v6244_v26 }
 0xbdd   :  { %6247 = vrcp.f32 %v3788_v51  ;;  %v3802_v3 = vand.u32 2147483648, %v3788_v51  ;;  %v3800_v25 = vand.u32 2147483647, %v3788_v51  ;;  %vm3796_vm11 = vweird.f32 %v3788_v51 }
 0xbde   :  { %6249 = vrcp.f32 %v3789_v37  ;;  %v3760_v30 = vpop.f32.mrf.mxu2  ;;  %v3773_v35 = vpop.f32.mrf.mxu3  ;;  %v3817_v31 = vand.u32 2147483648, %v3789_v37  ;;  %v3815_v22 = vand.u32 2147483647, %v3789_v37  ;;  %vm3811_vm12 = vweird.f32 %v3789_v37 }
 0xbdf   :  { %v3803_v57 = vor.u32 1.1754944e-38, %v3802_v3  ;;  %v3529_v35 = vld [vmem:[#allocation7 + $0x4] sm:$0x3]  ;;  %vm3801_vm13 = vcmp.eq.f32.partialorder %v3800_v25, 8.507059e+37 }
 0xbe0   :  { %v3818_v30 = vor.u32 1.1754944e-38, %v3817_v31  ;;  %vm3816_vm14 = vcmp.eq.f32.partialorder %v3815_v22, 8.507059e+37 }
 0xbe1   :  { %v6246_v12 = vpop.eup %6245 }
 0xbe2   :  { %v3790_v27 = vadd.f32 1.0, %v6246_v12 }
 0xbe3   :  { %v6248_v58 = vpop.eup %6247 }
 0xbe4   :  { %v6250_v24 = vpop.eup %6249  ;;  %v3792_v28 = vmul.f32 %v6248_v58, %v3788_v51  ;;  %6251 = vrcp.f32 %v3790_v27  ;;  %vm3797_vm6 = vweird.f32 %v6248_v58  ;;  %v3832_v3 = vand.u32 2147483648, %v3790_v27 }
 0xbe5   :  { %v3807_v36 = vmul.f32 %v6250_v24, %v3789_v37  ;;  %6253 = vtanh.f32 %v3778_v9  ;;  %vm3812_vm10 = vweird.f32 %v6250_v24  ;;  %vm3798_vm7 = vmor %vm3796_vm11, %vm3797_vm6  ;;  %vm3826_vm1 = vweird.f32 %v3790_v27 }
 0xbe6   :  { %v3793_v38 = vsub.f32 1.0, %v3792_v28  ;;  %vm3813_vm8 = vmor %vm3811_vm12, %vm3812_vm10  ;;  %v3830_v31 = vand.u32 2147483647, %v3790_v27  ;;  %v3833_v25 = vor.u32 1.1754944e-38, %v3832_v3 }
 0xbe7   :  { %v3808_v53 = vsub.f32 1.0, %v3807_v36 }
 0xbe8   :  { %v3794_v13 = vmul.f32 %v6248_v58, %v3793_v38  ;;  %vm3831_vm3 = vcmp.eq.f32.partialorder %v3830_v31, 8.507059e+37 }
 0xbe9   :  { %v3809_v55 = vmul.f32 %v6250_v24, %v3808_v53 }
 0xbea   :  { %v6252_v44 = vpop.eup %6251  ;;  %v3795_v2 = vadd.f32 %v6248_v58, %v3794_v13 }
 0xbeb   :  { %v3822_v1 = vmul.f32 %v6252_v44, %v3790_v27  ;;  %v3810_v26 = vadd.f32 %v6250_v24, %v3809_v55  ;;  %v6254_v9 = vpop.eup %6253  ;;  %vm3827_vm15 = vweird.f32 %v6252_v44 }
 0xbec   :  { %v3799_v12 = vsel %vm3798_vm7, %v6248_v58, %v3795_v2  ;;  %vm3828_vm2 = vmor %vm3826_vm1, %vm3827_vm15 }
 0xbed   :  { %v3823_v28 = vsub.f32 1.0, %v3822_v1  ;;  %v3804_v36 = vsel %vm3801_vm13, %v3803_v57, %v3799_v12  ;;  %v3814_v38 = vsel %vm3813_vm8, %v6250_v24, %v3810_v26 }
 0xbee   :  { %v3819_v53 = vsel %vm3816_vm14, %v3818_v30, %v3814_v38  ;;  %v3838_v60 = vmul.f32 %v6254_v9, %v3804_v36 }
 0xbef   :  { %v3824_v19 = vmul.f32 %v6252_v44, %v3823_v28  ;;  %v3837_v13 = vmul.f32 %v3819_v53, %v3529_v35 }
 0xbf1   :  { %v8082_v51 = vadd.f32 %v3838_v60, %v3837_v13  ;;  %v3825_v37 = vadd.f32 %v6252_v44, %v3824_v19 }
 0xbf3   :  { %6255 = vtanh.f32 %v8082_v51  ;;  %v3829_v58 = vsel %vm3828_vm2, %v6252_v44, %v3825_v37 }
 0xbf4   :  { %v3834_v24 = vsel %vm3831_vm3, %v3833_v25, %v3829_v58 }
 0xbf9   :  { %v6256_v55 = vpop.eup %6255 }
 0xbfa   :  { %v3841_v22 = vmul.f32 %v6256_v55, %v3834_v24 }
 0xbfc   :  { %v3842_v2 = vpack.c.bf16 %v3841_v22, %v3841_v22 }
 0xbfe   :  { %3851 = vmatmul.bf16.vlgmr.msrb.gmra.mxu0 %v3842_v2  ;;  %3864 = vmatmul.bf16.vlgmr.msrb.gmra.mxu1 %v3842_v2 }
 0xbff   :  { %3877 = vmatmul.bf16.vlgmr.msrb.gmra.mxu2 %v3842_v2  ;;  %3890 = vmatmul.bf16.vlgmr.msrb.gmra.mxu3 %v3842_v2 }
 0xc00   :  { %4119 = vmatpush.bf16.msrb.mxu0 %v7835_v45  ;;  %4132 = vmatpush.bf16.msrb.mxu1 %v7837_v17 }
 0xc01   :  { %4145 = vmatpush.bf16.msrb.mxu2 %v7839_v62  ;;  %4158 = vmatpush.bf16.msrb.mxu3 %v7846_v4 }
 0xc04   :  { %4120 = vmatpush.bf16.msrb.mxu0 %v7848_v47  ;;  %4133 = vmatpush.bf16.msrb.mxu1 %v7850_v39 }
 0xc05   :  { %4146 = vmatpush.bf16.msrb.mxu2 %v7853_v10  ;;  %4159 = vmatpush.bf16.msrb.mxu3 %v7857_v63 }
 0xc08   :  { %4121 = vmatpush.bf16.msrb.mxu0 %v7859_v15  ;;  %4134 = vmatpush.bf16.msrb.mxu1 %v7863_v41 }
 0xc09   :  { %4147 = vmatpush.bf16.msrb.mxu2 %v7865_v49  ;;  %4160 = vmatpush.bf16.msrb.mxu3 %v7868_v8 }
 0xc0c   :  { %4122 = vmatpush.bf16.msrb.mxu0 %v7873_v0  ;;  %4135 = vmatpush.bf16.msrb.mxu1 %v7879_v52 }
 0xc0d   :  { %4148 = vmatpush.bf16.msrb.mxu2 %v7881_v6  ;;  %4161 = vmatpush.bf16.msrb.mxu3 %v7888_v61 }
 0xc10   :  { %4123 = vmatpush.bf16.msrb.mxu0 %v7893_v29  ;;  %4136 = vmatpush.bf16.msrb.mxu1 %v7896_v48 }
 0xc11   :  { %4149 = vmatpush.bf16.msrb.mxu2 %v7901_v34  ;;  %4162 = vmatpush.bf16.msrb.mxu3 %v7903_v56 }
 0xc14   :  { %4124 = vmatpush.bf16.msrb.mxu0 %v7908_v42  ;;  %4137 = vmatpush.bf16.msrb.mxu1 %v7924_v20 }
 0xc15   :  { %4150 = vmatpush.bf16.msrb.mxu2 %v7926_v32  ;;  %4163 = vmatpush.bf16.msrb.mxu3 %v7933_v59 }
 0xc18   :  { %4125 = vmatpush.bf16.msrb.mxu0 %v7935_v18  ;;  %4138 = vmatpush.bf16.msrb.mxu1 %v7941_v16 }
 0xc19   :  { %4151 = vmatpush.bf16.msrb.mxu2 %v7945_v50  ;;  %4164 = vmatpush.bf16.msrb.mxu3 %v7951_v33 }
 0xc1c   :  { %4126 = vmatpush.bf16.msrb.mxu0 %v7962_v54  ;;  %4139 = vmatpush.bf16.msrb.mxu1 %v7973_v43 }
 0xc1d   :  { %4152 = vmatpush.bf16.msrb.mxu2 %v7975_v14  ;;  %4165 = vmatpush.bf16.msrb.mxu3 %v7981_v21 }
 0xc7b   :  { %v3852_v19 = vpop.f32.mrf.mxu0  ;;  %v3865_v60 = vpop.f32.mrf.mxu1 }
 0xc7c   :  { %v3899_v27 = vrot.slane %v3852_v19, 6  ;;  %v3900_v44 = vrot.slane %v3865_v60, 6 }
 0xc7e   :  { %v3907_v1 = vadd.f32 %v3899_v27, %v8066_v46  ;;  %v3908_v57 = vadd.f32 %v3900_v44, %v8068_v40 }
 0xc80   :  { %v5726_v26 = vmul.f32 -1.442695, %v3907_v1  ;;  %v5727_v30 = vmul.f32 -1.442695, %v3908_v57 }
 0xc82   :  { %6257 = vpow2.f32 %v5726_v26  ;;  %v3878_v35 = vpop.f32.mrf.mxu2  ;;  %v3891_v12 = vpop.f32.mrf.mxu3 }
 0xc83   :  { %6259 = vpow2.f32 %v5727_v30  ;;  %v3901_v9 = vrot.slane %v3878_v35, 6  ;;  %v3854_v28 = vpop.f32.mrf.mxu0  ;;  %v3867_v36 = vpop.f32.mrf.mxu1  ;;  %v3902_v55 = vrot.slane %v3891_v12, 6 }
 0xc85   :  { %v3909_v38 = vadd.f32 %v3901_v9, %v8076_v11  ;;  %v3910_v19 = vadd.f32 %v3902_v55, %v8079_v5 }
 0xc87   :  { %v5728_v53 = vmul.f32 -1.442695, %v3909_v38 }
 0xc88   :  { %v6258_v13 = vpop.eup %6257 }
 0xc89   :  { %v6260_v37 = vpop.eup %6259  ;;  %v3920_v3 = vadd.f32 1.0, %v6258_v13  ;;  %6261 = vpow2.f32 %v5728_v53 }
 0xc8a   :  { %v3921_v31 = vadd.f32 1.0, %v6260_v37  ;;  %v3880_v58 = vpop.f32.mrf.mxu2  ;;  %v3893_v25 = vpop.f32.mrf.mxu3 }
 0xc8b   :  { %6263 = vrcp.f32 %v3920_v3  ;;  %v3934_v26 = vand.u32 2147483648, %v3920_v3  ;;  %v3932_v9 = vand.u32 2147483647, %v3920_v3  ;;  %vm3928_vm0 = vweird.f32 %v3920_v3 }
 0xc8c   :  { %6265 = vrcp.f32 %v3921_v31  ;;  %v3949_v30 = vand.u32 2147483648, %v3921_v31  ;;  %v3947_v12 = vand.u32 2147483647, %v3921_v31  ;;  %vm3943_vm9 = vweird.f32 %v3921_v31 }
 0xc8d   :  { %v3935_v13 = vor.u32 1.1754944e-38, %v3934_v26  ;;  %v3970_v58 = vrot.slane %v8082_v51, 6  ;;  %vm3933_vm11 = vcmp.eq.f32.partialorder %v3932_v9, 8.507059e+37 }
 0xc8e   :  { %v3950_v25 = vor.u32 1.1754944e-38, %v3949_v30  ;;  %vm3948_vm12 = vcmp.eq.f32.partialorder %v3947_v12, 8.507059e+37 }
 0xc8f   :  { %v6262_v24 = vpop.eup %6261 }
 0xc90   :  { %v3922_v22 = vadd.f32 1.0, %v6262_v24 }
 0xc91   :  { %v6264_v2 = vpop.eup %6263 }
 0xc92   :  { %v6266_v60 = vpop.eup %6265  ;;  %v3924_v27 = vmul.f32 %v6264_v2, %v3920_v3  ;;  %6267 = vrcp.f32 %v3922_v22  ;;  %vm3929_vm4 = vweird.f32 %v6264_v2  ;;  %v3964_v26 = vand.u32 2147483648, %v3922_v22 }
 0xc93   :  { %v3939_v44 = vmul.f32 %v6266_v60, %v3921_v31  ;;  %6269 = vtanh.f32 %v3910_v19  ;;  %vm3944_vm5 = vweird.f32 %v6266_v60  ;;  %vm3930_vm6 = vmor %vm3928_vm0, %vm3929_vm4  ;;  %vm3958_vm8 = vweird.f32 %v3922_v22 }
 0xc94   :  { %v3925_v1 = vsub.f32 1.0, %v3924_v27  ;;  %vm3945_vm10 = vmor %vm3943_vm9, %vm3944_vm5  ;;  %v3962_v51 = vand.u32 2147483647, %v3922_v22  ;;  %v3965_v30 = vor.u32 1.1754944e-38, %v3964_v26 }
 0xc95   :  { %v3940_v57 = vsub.f32 1.0, %v3939_v44 }
 0xc96   :  { %v3926_v35 = vmul.f32 %v6264_v2, %v3925_v1  ;;  %vm3963_vm14 = vcmp.eq.f32.partialorder %v3962_v51, 8.507059e+37 }
 0xc97   :  { %v3941_v28 = vmul.f32 %v6266_v60, %v3940_v57 }
 0xc98   :  { %v6268_v36 = vpop.eup %6267  ;;  %v3927_v38 = vadd.f32 %v6264_v2, %v3926_v35 }
 0xc99   :  { %v3954_v53 = vmul.f32 %v6268_v36, %v3922_v22  ;;  %v3942_v37 = vadd.f32 %v6266_v60, %v3941_v28  ;;  %v6270_v24 = vpop.eup %6269  ;;  %vm3959_vm7 = vweird.f32 %v6268_v36 }
 0xc9a   :  { %v3931_v55 = vsel %vm3930_vm6, %v6264_v2, %v3927_v38  ;;  %vm3960_vm13 = vmor %vm3958_vm8, %vm3959_vm7 }
 0xc9b   :  { %v3955_v19 = vsub.f32 1.0, %v3954_v53  ;;  %v3936_v27 = vsel %vm3933_vm11, %v3935_v13, %v3931_v55  ;;  %v3946_v44 = vsel %vm3945_vm10, %v6266_v60, %v3942_v37 }
 0xc9c   :  { %v3951_v1 = vsel %vm3948_vm12, %v3950_v25, %v3946_v44  ;;  %v3973_v57 = vmul.f32 %v6270_v24, %v3936_v27 }
 0xc9d   :  { %v3956_v35 = vmul.f32 %v6268_v36, %v3955_v19  ;;  %v3972_v3 = vmul.f32 %v3970_v58, %v3951_v1 }
 0xc9f   :  { %v8122_v31 = vadd.f32 %v3973_v57, %v3972_v3  ;;  %v3957_v7 = vadd.f32 %v6268_v36, %v3956_v35 }
 0xca1   :  { %6271 = vtanh.f32 %v8122_v31  ;;  %v3961_v2 = vsel %vm3960_vm13, %v6268_v36, %v3957_v7 }
 0xca2   :  { %v3966_v60 = vsel %vm3963_vm14, %v3965_v30, %v3961_v2 }
 0xca7   :  { %v6272_v9 = vpop.eup %6271 }
 0xca8   :  { %v3976_v28 = vmul.f32 %v6272_v9, %v3966_v60 }
 0xcaa   :  { %v3977_v12 = vpack.c.bf16 %v3976_v28, %v3976_v28 }
 0xcac   :  { %v3979_v38 = vrot.slane %v3977_v12, 1 }
 0xcae   :  { %3989 = vmatmul.bf16.vlgmr.msra.gmra.mxu0 %v3979_v38  ;;  %4002 = vmatmul.bf16.vlgmr.msra.gmra.mxu1 %v3979_v38 }
 0xcaf   :  { %4015 = vmatmul.bf16.vlgmr.msra.gmra.mxu2 %v3979_v38  ;;  %4028 = vmatmul.bf16.vlgmr.msra.gmra.mxu3 %v3979_v38 }
 0xcb0   :  { %4257 = vmatpush.bf16.msra.mxu0 %v7835_v45  ;;  %4270 = vmatpush.bf16.msra.mxu1 %v7837_v17 }
 0xcb1   :  { %4283 = vmatpush.bf16.msra.mxu2 %v7839_v62  ;;  %4296 = vmatpush.bf16.msra.mxu3 %v7846_v4 }
 0xcb4   :  { %4258 = vmatpush.bf16.msra.mxu0 %v7848_v47  ;;  %4271 = vmatpush.bf16.msra.mxu1 %v7850_v39 }
 0xcb5   :  { %4284 = vmatpush.bf16.msra.mxu2 %v7853_v10  ;;  %4297 = vmatpush.bf16.msra.mxu3 %v7857_v63 }
 0xcb8   :  { %4259 = vmatpush.bf16.msra.mxu0 %v7859_v15  ;;  %4272 = vmatpush.bf16.msra.mxu1 %v7863_v41 }
 0xcb9   :  { %4285 = vmatpush.bf16.msra.mxu2 %v7865_v49  ;;  %4298 = vmatpush.bf16.msra.mxu3 %v7868_v8 }
 0xcbc   :  { %4260 = vmatpush.bf16.msra.mxu0 %v7873_v0  ;;  %4273 = vmatpush.bf16.msra.mxu1 %v7879_v52 }
 0xcbd   :  { %4286 = vmatpush.bf16.msra.mxu2 %v7881_v6  ;;  %4299 = vmatpush.bf16.msra.mxu3 %v7888_v61 }
 0xcc0   :  { %4261 = vmatpush.bf16.msra.mxu0 %v7893_v29  ;;  %4274 = vmatpush.bf16.msra.mxu1 %v7896_v48 }
 0xcc1   :  { %4287 = vmatpush.bf16.msra.mxu2 %v7901_v34  ;;  %4300 = vmatpush.bf16.msra.mxu3 %v7903_v56 }
 0xcc4   :  { %4262 = vmatpush.bf16.msra.mxu0 %v7908_v42  ;;  %4275 = vmatpush.bf16.msra.mxu1 %v7924_v20 }
 0xcc5   :  { %4288 = vmatpush.bf16.msra.mxu2 %v7926_v32  ;;  %4301 = vmatpush.bf16.msra.mxu3 %v7933_v59 }
 0xcc8   :  { %4263 = vmatpush.bf16.msra.mxu0 %v7935_v18  ;;  %4276 = vmatpush.bf16.msra.mxu1 %v7941_v16 }
 0xcc9   :  { %4289 = vmatpush.bf16.msra.mxu2 %v7945_v50  ;;  %4302 = vmatpush.bf16.msra.mxu3 %v7951_v33 }
 0xccc   :  { %4264 = vmatpush.bf16.msra.mxu0 %v7962_v54  ;;  %4277 = vmatpush.bf16.msra.mxu1 %v7973_v43 }
 0xccd   :  { %4290 = vmatpush.bf16.msra.mxu2 %v7975_v14  ;;  %4303 = vmatpush.bf16.msra.mxu3 %v7981_v21 }
 0xd2b   :  { %v3990_v7 = vpop.f32.mrf.mxu0  ;;  %v4003_v22 = vpop.f32.mrf.mxu1 }
 0xd2c   :  { %v4037_v36 = vrot.slane %v3990_v7, 4  ;;  %v4038_v53 = vrot.slane %v4003_v22, 4 }
 0xd2e   :  { %v4045_v13 = vadd.f32 %v4037_v36, %v8066_v46  ;;  %v4046_v37 = vadd.f32 %v4038_v53, %v8068_v40 }
 0xd30   :  { %v5729_v58 = vmul.f32 -1.442695, %v4045_v13  ;;  %v5730_v25 = vmul.f32 -1.442695, %v4046_v37 }
 0xd32   :  { %6273 = vpow2.f32 %v5729_v58  ;;  %v4016_v55 = vpop.f32.mrf.mxu2  ;;  %v4029_v24 = vpop.f32.mrf.mxu3 }
 0xd33   :  { %6275 = vpow2.f32 %v5730_v25  ;;  %v4039_v19 = vrot.slane %v4016_v55, 4  ;;  %v3992_v27 = vpop.f32.mrf.mxu0  ;;  %v4005_v44 = vpop.f32.mrf.mxu1  ;;  %v4040_v9 = vrot.slane %v4029_v24, 4 }
 0xd35   :  { %v4047_v1 = vadd.f32 %v4039_v19, %v8076_v11  ;;  %v4048_v38 = vadd.f32 %v4040_v9, %v8079_v5 }
 0xd37   :  { %v5731_v57 = vmul.f32 -1.442695, %v4047_v1 }
 0xd38   :  { %v6274_v35 = vpop.eup %6273 }
 0xd39   :  { %v6276_v3 = vpop.eup %6275  ;;  %v4058_v26 = vadd.f32 1.0, %v6274_v35  ;;  %6277 = vpow2.f32 %v5731_v57 }
 0xd3a   :  { %v4059_v51 = vadd.f32 1.0, %v6276_v3  ;;  %v4018_v2 = vpop.f32.mrf.mxu2  ;;  %v4031_v30 = vpop.f32.mrf.mxu3  ;;  %v4108_v3 = vrot.slane %v8122_v31, 6 }
 0xd3b   :  { %6279 = vrcp.f32 %v4058_v26  ;;  %v4072_v37 = vand.u32 2147483648, %v4058_v26  ;;  %v4070_v55 = vand.u32 2147483647, %v4058_v26  ;;  %vm4066_vm2 = vweird.f32 %v4058_v26 }
 0xd3c   :  { %6281 = vrcp.f32 %v4059_v51  ;;  %v4087_v58 = vand.u32 2147483648, %v4059_v51  ;;  %v4085_v24 = vand.u32 2147483647, %v4059_v51  ;;  %vm4081_vm3 = vweird.f32 %v4059_v51 }
 0xd3d   :  { %v4073_v57 = vor.u32 1.1754944e-38, %v4072_v37  ;;  %vm4071_vm0 = vcmp.eq.f32.partialorder %v4070_v55, 8.507059e+37 }
 0xd3e   :  { %v4088_v2 = vor.u32 1.1754944e-38, %v4087_v58  ;;  %vm4086_vm9 = vcmp.eq.f32.partialorder %v4085_v24, 8.507059e+37 }
 0xd3f   :  { %v6278_v60 = vpop.eup %6277 }
 0xd40   :  { %v4060_v28 = vadd.f32 1.0, %v6278_v60 }
 0xd41   :  { %v6280_v12 = vpop.eup %6279 }
 0xd42   :  { %v6282_v7 = vpop.eup %6281  ;;  %v4062_v22 = vmul.f32 %v6280_v12, %v4058_v26  ;;  %6283 = vrcp.f32 %v4060_v28  ;;  %vm4067_vm15 = vweird.f32 %v6280_v12  ;;  %v4102_v37 = vand.u32 2147483648, %v4060_v28 }
 0xd43   :  { %v4077_v36 = vmul.f32 %v6282_v7, %v4059_v51  ;;  %6285 = vtanh.f32 %v4048_v38  ;;  %vm4082_vm1 = vweird.f32 %v6282_v7  ;;  %vm4068_vm4 = vmor %vm4066_vm2, %vm4067_vm15  ;;  %vm4096_vm10 = vweird.f32 %v4060_v28 }
 0xd44   :  { %v4063_v53 = vsub.f32 1.0, %v4062_v22  ;;  %vm4083_vm5 = vmor %vm4081_vm3, %vm4082_vm1  ;;  %v4100_v31 = vand.u32 2147483647, %v4060_v28  ;;  %v4103_v58 = vor.u32 1.1754944e-38, %v4102_v37 }
 0xd45   :  { %v4078_v13 = vsub.f32 1.0, %v4077_v36 }
 0xd46   :  { %v4064_v25 = vmul.f32 %v6280_v12, %v4063_v53  ;;  %vm4101_vm12 = vcmp.eq.f32.partialorder %v4100_v31, 8.507059e+37 }
 0xd47   :  { %v4079_v19 = vmul.f32 %v6282_v7, %v4078_v13 }
 0xd48   :  { %v6284_v27 = vpop.eup %6283  ;;  %v4065_v44 = vadd.f32 %v6280_v12, %v4064_v25 }
 0xd49   :  { %v4092_v1 = vmul.f32 %v6284_v27, %v4060_v28  ;;  %v4080_v35 = vadd.f32 %v6282_v7, %v4079_v19  ;;  %v6286_v9 = vpop.eup %6285  ;;  %vm4097_vm6 = vweird.f32 %v6284_v27 }
 0xd4a   :  { %v4069_v30 = vsel %vm4068_vm4, %v6280_v12, %v4065_v44  ;;  %vm4098_vm11 = vmor %vm4096_vm10, %vm4097_vm6 }
 0xd4b   :  { %v4093_v60 = vsub.f32 1.0, %v4092_v1  ;;  %v4074_v38 = vsel %vm4071_vm0, %v4073_v57, %v4069_v30  ;;  %v4084_v22 = vsel %vm4083_vm5, %v6282_v7, %v4080_v35 }
 0xd4c   :  { %v4089_v36 = vsel %vm4086_vm9, %v4088_v2, %v4084_v22  ;;  %v4111_v53 = vmul.f32 %v6286_v9, %v4074_v38 }
 0xd4d   :  { %v4094_v13 = vmul.f32 %v6284_v27, %v4093_v60  ;;  %v4110_v26 = vmul.f32 %v4108_v3, %v4089_v36 }
 0xd4f   :  { %v8162_v51 = vadd.f32 %v4111_v53, %v4110_v26  ;;  %v4095_v25 = vadd.f32 %v6284_v27, %v4094_v13 }
 0xd51   :  { %6287 = vtanh.f32 %v8162_v51  ;;  %v4099_v12 = vsel %vm4098_vm11, %v6284_v27, %v4095_v25 }
 0xd52   :  { %v4104_v7 = vsel %vm4101_vm12, %v4103_v58, %v4099_v12 }
 0xd57   :  { %v6288_v55 = vpop.eup %6287 }
 0xd58   :  { %v4114_v19 = vmul.f32 %v6288_v55, %v4104_v7 }
 0xd5a   :  { %v4115_v24 = vpack.c.bf16 %v4114_v19, %v4114_v19 }
 0xd5c   :  { %v4117_v44 = vrot.slane %v4115_v24, 2 }
 0xd5e   :  { %4127 = vmatmul.bf16.vlgmr.msrb.gmra.mxu0 %v4117_v44  ;;  %4140 = vmatmul.bf16.vlgmr.msrb.gmra.mxu1 %v4117_v44 }
 0xd5f   :  { %4153 = vmatmul.bf16.vlgmr.msrb.gmra.mxu2 %v4117_v44  ;;  %4166 = vmatmul.bf16.vlgmr.msrb.gmra.mxu3 %v4117_v44 }
 0xd60   :  { %4380 = vmatpush.bf16.msrb.mxu0 %v7835_v45  ;;  %4393 = vmatpush.bf16.msrb.mxu1 %v7837_v17 }
 0xd61   :  { %4406 = vmatpush.bf16.msrb.mxu2 %v7839_v62  ;;  %4419 = vmatpush.bf16.msrb.mxu3 %v7846_v4 }
 0xd64   :  { %4381 = vmatpush.bf16.msrb.mxu0 %v7848_v47  ;;  %4394 = vmatpush.bf16.msrb.mxu1 %v7850_v39 }
 0xd65   :  { %4407 = vmatpush.bf16.msrb.mxu2 %v7853_v10  ;;  %4420 = vmatpush.bf16.msrb.mxu3 %v7857_v63 }
 0xd68   :  { %4382 = vmatpush.bf16.msrb.mxu0 %v7859_v15  ;;  %4395 = vmatpush.bf16.msrb.mxu1 %v7863_v41 }
 0xd69   :  { %4408 = vmatpush.bf16.msrb.mxu2 %v7865_v49  ;;  %4421 = vmatpush.bf16.msrb.mxu3 %v7868_v8 }
 0xd6c   :  { %4383 = vmatpush.bf16.msrb.mxu0 %v7873_v0  ;;  %4396 = vmatpush.bf16.msrb.mxu1 %v7879_v52 }
 0xd6d   :  { %4409 = vmatpush.bf16.msrb.mxu2 %v7881_v6  ;;  %4422 = vmatpush.bf16.msrb.mxu3 %v7888_v61 }
 0xd70   :  { %4384 = vmatpush.bf16.msrb.mxu0 %v7893_v29  ;;  %4397 = vmatpush.bf16.msrb.mxu1 %v7896_v48 }
 0xd71   :  { %4410 = vmatpush.bf16.msrb.mxu2 %v7901_v34  ;;  %4423 = vmatpush.bf16.msrb.mxu3 %v7903_v56 }
 0xd74   :  { %4385 = vmatpush.bf16.msrb.mxu0 %v7908_v42  ;;  %4398 = vmatpush.bf16.msrb.mxu1 %v7924_v20 }
 0xd75   :  { %4411 = vmatpush.bf16.msrb.mxu2 %v7926_v32  ;;  %4424 = vmatpush.bf16.msrb.mxu3 %v7933_v59 }
 0xd78   :  { %4386 = vmatpush.bf16.msrb.mxu0 %v7935_v18  ;;  %4399 = vmatpush.bf16.msrb.mxu1 %v7941_v16 }
 0xd79   :  { %4412 = vmatpush.bf16.msrb.mxu2 %v7945_v50  ;;  %4425 = vmatpush.bf16.msrb.mxu3 %v7951_v33 }
 0xd7c   :  { %4387 = vmatpush.bf16.msrb.mxu0 %v7962_v54  ;;  %4400 = vmatpush.bf16.msrb.mxu1 %v7973_v43 }
 0xd7d   :  { %4413 = vmatpush.bf16.msrb.mxu2 %v7975_v14  ;;  %4426 = vmatpush.bf16.msrb.mxu3 %v7981_v21 }
 0xddb   :  { %v4128_v28 = vpop.f32.mrf.mxu0  ;;  %v4141_v27 = vpop.f32.mrf.mxu1 }
 0xddc   :  { %v4175_v1 = vrot.slane %v4128_v28, 2  ;;  %v4176_v57 = vrot.slane %v4141_v27, 2 }
 0xdde   :  { %v4183_v35 = vadd.f32 %v4175_v1, %v8066_v46  ;;  %v4184_v3 = vadd.f32 %v4176_v57, %v8068_v40 }
 0xde0   :  { %v5732_v2 = vmul.f32 -1.442695, %v4183_v35  ;;  %v5733_v30 = vmul.f32 -1.442695, %v4184_v3 }
 0xde2   :  { %6289 = vpow2.f32 %v5732_v2  ;;  %v4154_v9 = vpop.f32.mrf.mxu2  ;;  %v4167_v60 = vpop.f32.mrf.mxu3 }
 0xde3   :  { %6291 = vpow2.f32 %v5733_v30  ;;  %v4177_v38 = vrot.slane %v4154_v9, 2  ;;  %v4130_v22 = vpop.f32.mrf.mxu0  ;;  %v4143_v36 = vpop.f32.mrf.mxu1  ;;  %v4178_v40 = vrot.slane %v4167_v60, 2 }
 0xde4   :  { %v4246_v36 = vrot.slane %v8162_v51, 6 }
 0xde5   :  { %v4185_v53 = vadd.f32 %v4177_v38, %v8076_v11  ;;  %v4186_v19 = vadd.f32 %v4178_v40, %v8079_v5 }
 0xde7   :  { %v5734_v13 = vmul.f32 -1.442695, %v4185_v53 }
 0xde8   :  { %v6290_v26 = vpop.eup %6289 }
 0xde9   :  { %v6292_v25 = vpop.eup %6291  ;;  %v4196_v37 = vadd.f32 1.0, %v6290_v26  ;;  %6293 = vpow2.f32 %v5734_v13 }
 0xdea   :  { %v4197_v31 = vadd.f32 1.0, %v6292_v25  ;;  %v4156_v46 = vpop.f32.mrf.mxu2  ;;  %v4169_v12 = vpop.f32.mrf.mxu3 }
 0xdeb   :  { %6295 = vrcp.f32 %v4196_v37  ;;  %v4210_v1 = vand.u32 2147483648, %v4196_v37  ;;  %v4208_v3 = vand.u32 2147483647, %v4196_v37  ;;  %vm4204_vm13 = vweird.f32 %v4196_v37 }
 0xdec   :  { %6297 = vrcp.f32 %v4197_v31  ;;  %v4225_v57 = vand.u32 2147483648, %v4197_v31  ;;  %v4223_v30 = vand.u32 2147483647, %v4197_v31  ;;  %vm4219_vm14 = vweird.f32 %v4197_v31 }
 0xded   :  { %v4211_v38 = vor.u32 1.1754944e-38, %v4210_v1  ;;  %vm4209_vm2 = vcmp.eq.f32.partialorder %v4208_v3, 8.507059e+37 }
 0xdee   :  { %v4226_v53 = vor.u32 1.1754944e-38, %v4225_v57  ;;  %vm4224_vm3 = vcmp.eq.f32.partialorder %v4223_v30, 8.507059e+37  ;;  %v8368_v30 = vld [vmem:[#allocation34_spill] sm:$0xff] }
 0xdef   :  { %v6294_v58 = vpop.eup %6293 }
 0xdf0   :  { %v4198_v55 = vadd.f32 1.0, %v6294_v58 }
 0xdf1   :  { %v6296_v7 = vpop.eup %6295 }
 0xdf2   :  { %v6298_v24 = vpop.eup %6297  ;;  %v4200_v44 = vmul.f32 %v6296_v7, %v4196_v37  ;;  %6299 = vrcp.f32 %v4198_v55  ;;  %vm4205_vm7 = vweird.f32 %v6296_v7  ;;  %vm4234_vm5 = vweird.f32 %v4198_v55 }
 0xdf3   :  { %v4215_v11 = vmul.f32 %v6298_v24, %v4197_v31  ;;  %6301 = vtanh.f32 %v4186_v19  ;;  %vm4220_vm8 = vweird.f32 %v6298_v24  ;;  %vm4206_vm15 = vmor %vm4204_vm13, %vm4205_vm7  ;;  %v4238_v51 = vand.u32 2147483647, %v4198_v55 }
 0xdf4   :  { %v4201_v28 = vsub.f32 1.0, %v4200_v44  ;;  %vm4221_vm1 = vmor %vm4219_vm14, %vm4220_vm8 }
 0xdf5   :  { %v4216_v27 = vsub.f32 1.0, %v4215_v11  ;;  %v4240_v11 = vand.u32 2147483648, %v4198_v55  ;;  %vm4239_vm9 = vcmp.eq.f32.partialorder %v4238_v51, 8.507059e+37 }
 0xdf6   :  { %v4202_v35 = vmul.f32 %v6296_v7, %v4201_v28 }
 0xdf7   :  { %v4217_v2 = vmul.f32 %v6298_v24, %v4216_v27  ;;  %v4241_v28 = vor.u32 1.1754944e-38, %v4240_v11 }
 0xdf8   :  { %v6300_v9 = vpop.eup %6299  ;;  %v4203_v60 = vadd.f32 %v6296_v7, %v4202_v35 }
 0xdf9   :  { %v4230_v5 = vmul.f32 %v6300_v9, %v4198_v55  ;;  %v4218_v22 = vadd.f32 %v6298_v24, %v4217_v2  ;;  %v6302_v26 = vpop.eup %6301  ;;  %vm4235_vm4 = vweird.f32 %v6300_v9 }
 0xdfa   :  { %v4207_v13 = vsel %vm4206_vm15, %v6296_v7, %v4203_v60  ;;  %vm4236_vm0 = vmor %vm4234_vm5, %vm4235_vm4 }
 0xdfb   :  { %v4231_v25 = vsub.f32 1.0, %v4230_v5  ;;  %v4212_v46 = vsel %vm4209_vm2, %v4211_v38, %v4207_v13  ;;  %v4222_v12 = vsel %vm4221_vm1, %v6298_v24, %v4218_v22 }
 0xdfc   :  { %v4227_v40 = vsel %vm4224_vm3, %v4226_v53, %v4222_v12  ;;  %v4249_v58 = vmul.f32 %v6302_v26, %v4212_v46 }
 0xdfd   :  { %v4232_v19 = vmul.f32 %v6300_v9, %v4231_v25  ;;  %v4248_v37 = vmul.f32 %v4246_v36, %v4227_v40  ;;  %v8369_v36 = vld [vmem:[#allocation35_spill] sm:$0xff] }
 0xdff   :  { %v8202_v31 = vadd.f32 %v4249_v58, %v4248_v37  ;;  %v4233_v44 = vadd.f32 %v6300_v9, %v4232_v19 }
 0xe01   :  { %6303 = vtanh.f32 %v8202_v31  ;;  %v4237_v7 = vsel %vm4236_vm0, %v6300_v9, %v4233_v44 }
 0xe02   :  { %v4242_v24 = vsel %vm4239_vm9, %v4241_v28, %v4237_v7  ;;  %v8370_v7 = vld [vmem:[#allocation36_spill] sm:$0xff] }
 0xe07   :  { %v6304_v27 = vpop.eup %6303 }
 0xe08   :  { %v4252_v1 = vmul.f32 %v6304_v27, %v4242_v24 }
 0xe0a   :  { %v4253_v57 = vpack.c.bf16 %v4252_v1, %v4252_v1 }
 0xe0c   :  { %v4255_v35 = vrot.slane %v4253_v57, 3 }
 0xe0e   :  { %4265 = vmatmul.bf16.vlgmr.msra.gmra.mxu0 %v4255_v35  ;;  %4278 = vmatmul.bf16.vlgmr.msra.gmra.mxu1 %v4255_v35 }
 0xe0f   :  { %4291 = vmatmul.bf16.vlgmr.msra.gmra.mxu2 %v4255_v35  ;;  %4304 = vmatmul.bf16.vlgmr.msra.gmra.mxu3 %v4255_v35 }
 0xe10   :  { %4518 = vmatpush.bf16.msra.mxu0 %v7835_v45  ;;  %4531 = vmatpush.bf16.msra.mxu1 %v7837_v17 }
 0xe11   :  { %4544 = vmatpush.bf16.msra.mxu2 %v7839_v62  ;;  %4557 = vmatpush.bf16.msra.mxu3 %v7846_v4 }
 0xe14   :  { %4519 = vmatpush.bf16.msra.mxu0 %v7848_v47  ;;  %4532 = vmatpush.bf16.msra.mxu1 %v7850_v39 }
 0xe15   :  { %4545 = vmatpush.bf16.msra.mxu2 %v7853_v10  ;;  %4558 = vmatpush.bf16.msra.mxu3 %v7857_v63 }
 0xe18   :  { %4520 = vmatpush.bf16.msra.mxu0 %v7859_v15  ;;  %4533 = vmatpush.bf16.msra.mxu1 %v7863_v41 }
 0xe19   :  { %4546 = vmatpush.bf16.msra.mxu2 %v7865_v49  ;;  %4559 = vmatpush.bf16.msra.mxu3 %v7868_v8 }
 0xe1c   :  { %4521 = vmatpush.bf16.msra.mxu0 %v7873_v0  ;;  %4534 = vmatpush.bf16.msra.mxu1 %v7879_v52 }
 0xe1d   :  { %4547 = vmatpush.bf16.msra.mxu2 %v7881_v6  ;;  %4560 = vmatpush.bf16.msra.mxu3 %v7888_v61 }
 0xe20   :  { %4522 = vmatpush.bf16.msra.mxu0 %v7893_v29  ;;  %4535 = vmatpush.bf16.msra.mxu1 %v7896_v48 }
 0xe21   :  { %4548 = vmatpush.bf16.msra.mxu2 %v7901_v34  ;;  %4561 = vmatpush.bf16.msra.mxu3 %v7903_v56 }
 0xe24   :  { %4523 = vmatpush.bf16.msra.mxu0 %v7908_v42  ;;  %4536 = vmatpush.bf16.msra.mxu1 %v7924_v20 }
 0xe25   :  { %4549 = vmatpush.bf16.msra.mxu2 %v7926_v32  ;;  %4562 = vmatpush.bf16.msra.mxu3 %v7933_v59 }
 0xe28   :  { %4524 = vmatpush.bf16.msra.mxu0 %v7935_v18  ;;  %4537 = vmatpush.bf16.msra.mxu1 %v7941_v16 }
 0xe29   :  { %4550 = vmatpush.bf16.msra.mxu2 %v7945_v50  ;;  %4563 = vmatpush.bf16.msra.mxu3 %v7951_v33 }
 0xe2c   :  { %4525 = vmatpush.bf16.msra.mxu0 %v7962_v54  ;;  %4538 = vmatpush.bf16.msra.mxu1 %v7973_v43 }
 0xe2d   :  { %4551 = vmatpush.bf16.msra.mxu2 %v7975_v14  ;;  %4564 = vmatpush.bf16.msra.mxu3 %v7981_v21 }
 0xe8b   :  { %v4266_v55 = vpop.f32.mrf.mxu0  ;;  %v4279_v3 = vpop.f32.mrf.mxu1 }
 0xe8c   :  { %v4309_v2 = vadd.f32 %v4266_v55, %v8062_v23  ;;  %v4310_v9 = vadd.f32 %v4279_v3, %v8368_v30 }
 0xe8e   :  { %v5735_v60 = vmul.f32 -1.442695, %v4309_v2  ;;  %v5736_v5 = vmul.f32 -1.442695, %v4310_v9 }
 0xe90   :  { %6305 = vpow2.f32 %v5735_v60 }
 0xe91   :  { %6307 = vpow2.f32 %v5736_v5 }
 0xe92   :  { %v4292_v38 = vpop.f32.mrf.mxu2  ;;  %v4305_v22 = vpop.f32.mrf.mxu3 }
 0xe93   :  { %v4311_v53 = vadd.f32 %v4292_v38, %v8369_v36  ;;  %v4268_v13 = vpop.f32.mrf.mxu0  ;;  %v4281_v26 = vpop.f32.mrf.mxu1  ;;  %v4312_v28 = vadd.f32 %v4305_v22, %v8370_v7 }
 0xe95   :  { %v5737_v25 = vmul.f32 -1.442695, %v4311_v53 }
 0xe96   :  { %v6306_v46 = vpop.eup %6305 }
 0xe97   :  { %v6308_v12 = vpop.eup %6307  ;;  %v4322_v40 = vadd.f32 1.0, %v6306_v46  ;;  %6309 = vpow2.f32 %v5737_v25 }
 0xe98   :  { %v4323_v58 = vadd.f32 1.0, %v6308_v12  ;;  %v4372_v12 = vrot.slane %v8202_v31, 6 }
 0xe99   :  { %6311 = vrcp.f32 %v4322_v40  ;;  %v4336_v55 = vand.u32 2147483648, %v4322_v40  ;;  %v4334_v9 = vand.u32 2147483647, %v4322_v40  ;;  %vm4330_vm11 = vweird.f32 %v4322_v40 }
 0xe9a   :  { %6313 = vrcp.f32 %v4323_v58  ;;  %v4294_v19 = vpop.f32.mrf.mxu2  ;;  %v4307_v37 = vpop.f32.mrf.mxu3  ;;  %v4351_v3 = vand.u32 2147483648, %v4323_v58  ;;  %v4349_v5 = vand.u32 2147483647, %v4323_v58  ;;  %vm4345_vm12 = vweird.f32 %v4323_v58 }
 0xe9b   :  { %v4337_v13 = vor.u32 1.1754944e-38, %v4336_v55  ;;  %vm4335_vm13 = vcmp.eq.f32.partialorder %v4334_v9, 8.507059e+37 }
 0xe9c   :  { %v4352_v25 = vor.u32 1.1754944e-38, %v4351_v3  ;;  %vm4350_vm14 = vcmp.eq.f32.partialorder %v4349_v5, 8.507059e+37 }
 0xe9d   :  { %v6310_v44 = vpop.eup %6309 }
 0xe9e   :  { %v4324_v11 = vadd.f32 1.0, %v6310_v44 }
 0xe9f   :  { %v6312_v51 = vpop.eup %6311 }
 0xea0   :  { %v6314_v27 = vpop.eup %6313  ;;  %v4326_v24 = vmul.f32 %v6312_v51, %v4322_v40  ;;  %6315 = vrcp.f32 %v4324_v11  ;;  %vm4331_vm6 = vweird.f32 %v6312_v51  ;;  %v4366_v55 = vand.u32 2147483648, %v4324_v11 }
 0xea1   :  { %v4341_v1 = vmul.f32 %v6314_v27, %v4323_v58  ;;  %6317 = vtanh.f32 %v4312_v28  ;;  %vm4346_vm10 = vweird.f32 %v6314_v27  ;;  %vm4332_vm7 = vmor %vm4330_vm11, %vm4331_vm6  ;;  %vm4360_vm1 = vweird.f32 %v4324_v11 }
 0xea2   :  { %v4327_v57 = vsub.f32 1.0, %v4326_v24  ;;  %vm4347_vm8 = vmor %vm4345_vm12, %vm4346_vm10  ;;  %v4367_v3 = vor.u32 1.1754944e-38, %v4366_v55 }
 0xea3   :  { %v4342_v35 = vsub.f32 1.0, %v4341_v1 }
 0xea4   :  { %v4328_v2 = vmul.f32 %v6312_v51, %v4327_v57 }
 0xea5   :  { %v4343_v60 = vmul.f32 %v6314_v27, %v4342_v35 }
 0xea6   :  { %v6316_v38 = vpop.eup %6315  ;;  %v4329_v53 = vadd.f32 %v6312_v51, %v4328_v2 }
 0xea7   :  { %v4356_v22 = vmul.f32 %v6316_v38, %v4324_v11  ;;  %v4344_v26 = vadd.f32 %v6314_v27, %v4343_v60  ;;  %v6318_v19 = vpop.eup %6317  ;;  %vm4361_vm15 = vweird.f32 %v6316_v38 }
 0xea8   :  { %v4333_v46 = vsel %vm4332_vm7, %v6312_v51, %v4329_v53  ;;  %v4364_v51 = vand.u32 2147483647, %v4324_v11  ;;  %vm4362_vm2 = vmor %vm4360_vm1, %vm4361_vm15 }
 0xea9   :  { %v4357_v37 = vsub.f32 1.0, %v4356_v22  ;;  %v4338_v44 = vsel %vm4335_vm13, %v4337_v13, %v4333_v46  ;;  %v4348_v28 = vsel %vm4347_vm8, %v6314_v27, %v4344_v26 }
 0xeaa   :  { %v4353_v24 = vsel %vm4350_vm14, %v4352_v25, %v4348_v28  ;;  %v4375_v1 = vmul.f32 %v6318_v19, %v4338_v44  ;;  %vm4365_vm3 = vcmp.eq.f32.partialorder %v4364_v51, 8.507059e+37 }
 0xeab   :  { %v4358_v57 = vmul.f32 %v6316_v38, %v4357_v37  ;;  %v4374_v40 = vmul.f32 %v4372_v12, %v4353_v24 }
 0xead   :  { %v8242_v58 = vadd.f32 %v4375_v1, %v4374_v40  ;;  %v4359_v35 = vadd.f32 %v6316_v38, %v4358_v57 }
 0xeaf   :  { %6319 = vtanh.f32 %v8242_v58  ;;  %v4363_v31 = vsel %vm4362_vm2, %v6316_v38, %v4359_v35  ;;  %v4507_v19 = vrot.slane %v8242_v58, 6 }
 0xeb0   :  { %v4368_v27 = vsel %vm4365_vm3, %v4367_v3, %v4363_v31 }
 0xeb5   :  { %v6320_v2 = vpop.eup %6319 }
 0xeb6   :  { %v4378_v9 = vmul.f32 %v6320_v2, %v4368_v27 }
 0xeb8   :  { %v4379_v60 = vpack.c.bf16 %v4378_v9, %v4378_v9 }
 0xeba   :  { %4388 = vmatmul.bf16.vlgmr.msrb.gmra.mxu0 %v4379_v60  ;;  %4401 = vmatmul.bf16.vlgmr.msrb.gmra.mxu1 %v4379_v60 }
 0xebb   :  { %4414 = vmatmul.bf16.vlgmr.msrb.gmra.mxu2 %v4379_v60  ;;  %4427 = vmatmul.bf16.vlgmr.msrb.gmra.mxu3 %v4379_v60 }
 0xebc   :  { %4656 = vmatpush.bf16.msrb.mxu0 %v7835_v45  ;;  %4669 = vmatpush.bf16.msrb.mxu1 %v7837_v17 }
 0xebd   :  { %4682 = vmatpush.bf16.msrb.mxu2 %v7839_v62  ;;  %4695 = vmatpush.bf16.msrb.mxu3 %v7846_v4 }
 0xec0   :  { %4657 = vmatpush.bf16.msrb.mxu0 %v7848_v47  ;;  %4670 = vmatpush.bf16.msrb.mxu1 %v7850_v39 }
 0xec1   :  { %4683 = vmatpush.bf16.msrb.mxu2 %v7853_v10  ;;  %4696 = vmatpush.bf16.msrb.mxu3 %v7857_v63 }
 0xec4   :  { %4658 = vmatpush.bf16.msrb.mxu0 %v7859_v15  ;;  %4671 = vmatpush.bf16.msrb.mxu1 %v7863_v41 }
 0xec5   :  { %4684 = vmatpush.bf16.msrb.mxu2 %v7865_v49  ;;  %4697 = vmatpush.bf16.msrb.mxu3 %v7868_v8 }
 0xec8   :  { %4659 = vmatpush.bf16.msrb.mxu0 %v7873_v0  ;;  %4672 = vmatpush.bf16.msrb.mxu1 %v7879_v52 }
 0xec9   :  { %4685 = vmatpush.bf16.msrb.mxu2 %v7881_v6  ;;  %4698 = vmatpush.bf16.msrb.mxu3 %v7888_v61 }
 0xecc   :  { %4660 = vmatpush.bf16.msrb.mxu0 %v7893_v29  ;;  %4673 = vmatpush.bf16.msrb.mxu1 %v7896_v48 }
 0xecd   :  { %4686 = vmatpush.bf16.msrb.mxu2 %v7901_v34  ;;  %4699 = vmatpush.bf16.msrb.mxu3 %v7903_v56 }
 0xed0   :  { %4661 = vmatpush.bf16.msrb.mxu0 %v7908_v42  ;;  %4674 = vmatpush.bf16.msrb.mxu1 %v7924_v20 }
 0xed1   :  { %4687 = vmatpush.bf16.msrb.mxu2 %v7926_v32  ;;  %4700 = vmatpush.bf16.msrb.mxu3 %v7933_v59 }
 0xed4   :  { %4662 = vmatpush.bf16.msrb.mxu0 %v7935_v18  ;;  %4675 = vmatpush.bf16.msrb.mxu1 %v7941_v16 }
 0xed5   :  { %4688 = vmatpush.bf16.msrb.mxu2 %v7945_v50  ;;  %4701 = vmatpush.bf16.msrb.mxu3 %v7951_v33 }
 0xed8   :  { %4663 = vmatpush.bf16.msrb.mxu0 %v7962_v54  ;;  %4676 = vmatpush.bf16.msrb.mxu1 %v7973_v43 }
 0xed9   :  { %4689 = vmatpush.bf16.msrb.mxu2 %v7975_v14  ;;  %4702 = vmatpush.bf16.msrb.mxu3 %v7981_v21 }
 0xf37   :  { %v4389_v45 = vpop.f32.mrf.mxu0  ;;  %v4402_v17 = vpop.f32.mrf.mxu1 }
 0xf38   :  { %v4436_v62 = vrot.slane %v4389_v45, 6  ;;  %v4437_v4 = vrot.slane %v4402_v17, 6 }
 0xf3a   :  { %v4444_v47 = vadd.f32 %v4436_v62, %v8062_v23  ;;  %v4445_v39 = vadd.f32 %v4437_v4, %v8368_v30 }
 0xf3c   :  { %v5738_v10 = vmul.f32 -1.442695, %v4444_v47  ;;  %v5739_v63 = vmul.f32 -1.442695, %v4445_v39 }
 0xf3e   :  { %6321 = vpow2.f32 %v5738_v10  ;;  %v4415_v15 = vpop.f32.mrf.mxu2  ;;  %v4428_v41 = vpop.f32.mrf.mxu3 }
 0xf3f   :  { %6323 = vpow2.f32 %v5739_v63  ;;  %v4438_v49 = vrot.slane %v4415_v15, 6  ;;  %v4391_v8 = vpop.f32.mrf.mxu0  ;;  %v4404_v0 = vpop.f32.mrf.mxu1  ;;  %v4439_v20 = vrot.slane %v4428_v41, 6 }
 0xf41   :  { %v4446_v52 = vadd.f32 %v4438_v49, %v8369_v36  ;;  %v4447_v16 = vadd.f32 %v4439_v20, %v8370_v7 }
 0xf43   :  { %v5740_v6 = vmul.f32 -1.442695, %v4446_v52 }
 0xf44   :  { %v6322_v61 = vpop.eup %6321 }
 0xf45   :  { %v6324_v29 = vpop.eup %6323  ;;  %v4457_v48 = vadd.f32 1.0, %v6322_v61  ;;  %6325 = vpow2.f32 %v5740_v6 }
 0xf46   :  { %v4458_v34 = vadd.f32 1.0, %v6324_v29  ;;  %v4417_v56 = vpop.f32.mrf.mxu2  ;;  %v4430_v42 = vpop.f32.mrf.mxu3 }
 0xf47   :  { %6327 = vrcp.f32 %v4457_v48  ;;  %v4471_v21 = vand.u32 2147483648, %v4457_v48  ;;  %v4469_v38 = vand.u32 2147483647, %v4457_v48  ;;  %vm4465_vm0 = vweird.f32 %v4457_v48 }
 0xf48   :  { %6329 = vrcp.f32 %v4458_v34  ;;  %v4486_v11 = vand.u32 2147483648, %v4458_v34  ;;  %v4484_v22 = vand.u32 2147483647, %v4458_v34  ;;  %vm4480_vm9 = vweird.f32 %v4458_v34 }
 0xf49   :  { %v4472_v46 = vor.u32 1.1754944e-38, %v4471_v21  ;;  %vm4470_vm11 = vcmp.eq.f32.partialorder %v4469_v38, 8.507059e+37 }
 0xf4a   :  { %v4487_v37 = vor.u32 1.1754944e-38, %v4486_v11  ;;  %vm4485_vm12 = vcmp.eq.f32.partialorder %v4484_v22, 8.507059e+37 }
 0xf4b   :  { %v6326_v32 = vpop.eup %6325 }
 0xf4c   :  { %v4459_v59 = vadd.f32 1.0, %v6326_v32 }
 0xf4d   :  { %v6328_v18 = vpop.eup %6327 }
 0xf4e   :  { %v6330_v50 = vpop.eup %6329  ;;  %v4461_v33 = vmul.f32 %v6328_v18, %v4457_v48  ;;  %6331 = vrcp.f32 %v4459_v59  ;;  %vm4466_vm4 = vweird.f32 %v6328_v18  ;;  %v4501_v2 = vand.u32 2147483648, %v4459_v59 }
 0xf4f   :  { %v4476_v54 = vmul.f32 %v6330_v50, %v4458_v34  ;;  %6333 = vtanh.f32 %v4447_v16  ;;  %vm4481_vm5 = vweird.f32 %v6330_v50  ;;  %vm4467_vm6 = vmor %vm4465_vm0, %vm4466_vm4  ;;  %vm4495_vm8 = vweird.f32 %v4459_v59 }
 0xf50   :  { %v4462_v43 = vsub.f32 1.0, %v4461_v33  ;;  %vm4482_vm10 = vmor %vm4480_vm9, %vm4481_vm5  ;;  %v4499_v58 = vand.u32 2147483647, %v4459_v59  ;;  %v4502_v9 = vor.u32 1.1754944e-38, %v4501_v2 }
 0xf51   :  { %v4477_v14 = vsub.f32 1.0, %v4476_v54 }
 0xf52   :  { %v4463_v5 = vmul.f32 %v6328_v18, %v4462_v43  ;;  %vm4500_vm14 = vcmp.eq.f32.partialorder %v4499_v58, 8.507059e+37 }
 0xf53   :  { %v4478_v53 = vmul.f32 %v6330_v50, %v4477_v14 }
 0xf54   :  { %v6332_v13 = vpop.eup %6331  ;;  %v4464_v26 = vadd.f32 %v6328_v18, %v4463_v5 }
 0xf55   :  { %v4491_v25 = vmul.f32 %v6332_v13, %v4459_v59  ;;  %v4479_v12 = vadd.f32 %v6330_v50, %v4478_v53  ;;  %v6334_v28 = vpop.eup %6333  ;;  %vm4496_vm7 = vweird.f32 %v6332_v13 }
 0xf56   :  { %v4468_v44 = vsel %vm4467_vm6, %v6328_v18, %v4464_v26  ;;  %vm4497_vm13 = vmor %vm4495_vm8, %vm4496_vm7 }
 0xf57   :  { %v4492_v24 = vsub.f32 1.0, %v4491_v25  ;;  %v4473_v1 = vsel %vm4470_vm11, %v4472_v46, %v4468_v44  ;;  %v4483_v57 = vsel %vm4482_vm10, %v6330_v50, %v4479_v12 }
 0xf58   :  { %v4488_v40 = vsel %vm4485_vm12, %v4487_v37, %v4483_v57  ;;  %v4510_v35 = vmul.f32 %v6334_v28, %v4473_v1 }
 0xf59   :  { %v4493_v55 = vmul.f32 %v6332_v13, %v4492_v24  ;;  %v4509_v51 = vmul.f32 %v4507_v19, %v4488_v40 }
 0xf5b   :  { %v8282_v31 = vadd.f32 %v4510_v35, %v4509_v51  ;;  %v4494_v3 = vadd.f32 %v6332_v13, %v4493_v55 }
 0xf5d   :  { %6335 = vtanh.f32 %v8282_v31  ;;  %v4498_v27 = vsel %vm4497_vm13, %v6332_v13, %v4494_v3  ;;  %v4645_v24 = vrot.slane %v8282_v31, 6 }
 0xf5e   :  { %v4503_v45 = vsel %vm4500_vm14, %v4502_v9, %v4498_v27 }
 0xf63   :  { %v6336_v60 = vpop.eup %6335 }
 0xf64   :  { %v4513_v17 = vmul.f32 %v6336_v60, %v4503_v45 }
 0xf66   :  { %v4514_v62 = vpack.c.bf16 %v4513_v17, %v4513_v17 }
 0xf68   :  { %v4516_v4 = vrot.slane %v4514_v62, 1 }
 0xf6a   :  { %4526 = vmatmul.bf16.vlgmr.msra.gmra.mxu0 %v4516_v4  ;;  %4539 = vmatmul.bf16.vlgmr.msra.gmra.mxu1 %v4516_v4 }
 0xf6b   :  { %4552 = vmatmul.bf16.vlgmr.msra.gmra.mxu2 %v4516_v4  ;;  %4565 = vmatmul.bf16.vlgmr.msra.gmra.mxu3 %v4516_v4 }
 0xfe7   :  { %v4527_v47 = vpop.f32.mrf.mxu0  ;;  %v4540_v39 = vpop.f32.mrf.mxu1 }
 0xfe8   :  { %v4574_v10 = vrot.slane %v4527_v47, 4  ;;  %v4575_v63 = vrot.slane %v4540_v39, 4 }
 0xfea   :  { %v4582_v15 = vadd.f32 %v4574_v10, %v8062_v23  ;;  %v4583_v41 = vadd.f32 %v4575_v63, %v8368_v30 }
 0xfec   :  { %v5741_v49 = vmul.f32 -1.442695, %v4582_v15  ;;  %v5742_v8 = vmul.f32 -1.442695, %v4583_v41  ;;  %v5962_v15 = vld [vmem:[#allocation19 + $0x38] sm:$0xff]  ;;  %v5961_v41 = vld [vmem:[#allocation19 + $0x30] sm:$0xff] }
 0xfed   :  { %4866 = vmatpush.bf16.msra.mxu0 %v5962_v15 }
 0xfee   :  { %6337 = vpow2.f32 %v5741_v49  ;;  %v4553_v0 = vpop.f32.mrf.mxu2  ;;  %v4566_v52 = vpop.f32.mrf.mxu3  ;;  %v5960_v49 = vld [vmem:[#allocation19 + $0x28] sm:$0xff] }
 0xfef   :  { %6339 = vpow2.f32 %v5742_v8  ;;  %v4576_v6 = vrot.slane %v4553_v0, 4  ;;  %v4529_v61 = vpop.f32.mrf.mxu0  ;;  %v4542_v29 = vpop.f32.mrf.mxu1  ;;  %v4577_v16 = vrot.slane %v4566_v52, 4  ;;  %v5959_v8 = vld [vmem:[#allocation19 + $0x20] sm:$0xff] }
 0xff1   :  { %v4584_v48 = vadd.f32 %v4576_v6, %v8369_v36  ;;  %v4585_v43 = vadd.f32 %v4577_v16, %v8370_v7  ;;  %4867 = vmatpush.bf16.msra.mxu0 %v5961_v41 }
 0xff3   :  { %v5743_v34 = vmul.f32 -1.442695, %v4584_v48 }
 0xff4   :  { %v6338_v56 = vpop.eup %6337 }
 0xff5   :  { %v6340_v42 = vpop.eup %6339  ;;  %v4595_v20 = vadd.f32 1.0, %v6338_v56  ;;  %6341 = vpow2.f32 %v5743_v34  ;;  %4868 = vmatpush.bf16.msra.mxu0 %v5960_v49  ;;  %v5958_v34 = vld [vmem:[#allocation19 + $0x18] sm:$0xff] }
 0xff6   :  { %v4596_v32 = vadd.f32 1.0, %v6340_v42  ;;  %v4555_v59 = vpop.f32.mrf.mxu2  ;;  %v4568_v18 = vpop.f32.mrf.mxu3 }
 0xff7   :  { %6343 = vrcp.f32 %v4595_v20  ;;  %v4609_v53 = vand.u32 2147483648, %v4595_v20  ;;  %v4607_v26 = vand.u32 2147483647, %v4595_v20  ;;  %vm4603_vm2 = vweird.f32 %v4595_v20 }
 0xff8   :  { %6345 = vrcp.f32 %v4596_v32  ;;  %v4624_v22 = vand.u32 2147483648, %v4596_v32  ;;  %v4622_v46 = vand.u32 2147483647, %v4596_v32  ;;  %vm4618_vm3 = vweird.f32 %v4596_v32 }
 0xff9   :  { %v4610_v44 = vor.u32 1.1754944e-38, %v4609_v53  ;;  %vm4608_vm0 = vcmp.eq.f32.partialorder %v4607_v26, 8.507059e+37  ;;  %4869 = vmatpush.bf16.msra.mxu0 %v5959_v8 }
 0xffa   :  { %v4625_v1 = vor.u32 1.1754944e-38, %v4624_v22  ;;  %vm4623_vm9 = vcmp.eq.f32.partialorder %v4622_v46, 8.507059e+37 }
 0xffb   :  { %v6342_v50 = vpop.eup %6341 }
 0xffc   :  { %v4597_v33 = vadd.f32 1.0, %v6342_v50 }
 0xffd   :  { %v6344_v54 = vpop.eup %6343  ;;  %4870 = vmatpush.bf16.msra.mxu0 %v5958_v34 }
 0xffe   :  { %v6346_v14 = vpop.eup %6345  ;;  %v4599_v21 = vmul.f32 %v6344_v54, %v4595_v20  ;;  %6347 = vrcp.f32 %v4597_v33  ;;  %vm4604_vm15 = vweird.f32 %v6344_v54  ;;  %v4639_v45 = vand.u32 2147483648, %v4597_v33  ;;  %v5957_v20 = vld [vmem:[#allocation19 + $0x10] sm:$0xff] }
 0xfff   :  { %v4614_v11 = vmul.f32 %v6346_v14, %v4596_v32  ;;  %6349 = vtanh.f32 %v4585_v43  ;;  %vm4619_vm1 = vweird.f32 %v6346_v14  ;;  %vm4605_vm4 = vmor %vm4603_vm2, %vm4604_vm15  ;;  %vm4633_vm10 = vweird.f32 %v4597_v33 }
0x1000   :  { %v4600_v5 = vsub.f32 1.0, %v4599_v21  ;;  %vm4620_vm5 = vmor %vm4618_vm3, %vm4619_vm1  ;;  %v4637_v31 = vand.u32 2147483647, %v4597_v33  ;;  %v4640_v62 = vor.u32 1.1754944e-38, %v4639_v45 }
0x1001   :  { %v4615_v38 = vsub.f32 1.0, %v4614_v11  ;;  %4871 = vmatpush.bf16.msra.mxu0 %v5957_v20 }
0x1002   :  { %v4601_v13 = vmul.f32 %v6344_v54, %v4600_v5  ;;  %vm4638_vm12 = vcmp.eq.f32.partialorder %v4637_v31, 8.507059e+37 }
0x1003   :  { %v4616_v25 = vmul.f32 %v6346_v14, %v4615_v38 }
0x1004   :  { %v6348_v12 = vpop.eup %6347  ;;  %v4602_v19 = vadd.f32 %v6344_v54, %v4601_v13 }
0x1005   :  { %v4629_v37 = vmul.f32 %v6348_v12, %v4597_v33  ;;  %v4617_v28 = vadd.f32 %v6346_v14, %v4616_v25  ;;  %v6350_v40 = vpop.eup %6349  ;;  %vm4634_vm6 = vweird.f32 %v6348_v12  ;;  %v5956_v33 = vld [vmem:[#allocation19 + $0x8] sm:$0xff] }
0x1006   :  { %v4606_v57 = vsel %vm4605_vm4, %v6344_v54, %v4602_v19  ;;  %vm4635_vm11 = vmor %vm4633_vm10, %vm4634_vm6  ;;  %4872 = vmatpush.bf16.msra.mxu0 %v5956_v33 }
0x1007   :  { %v4630_v35 = vsub.f32 1.0, %v4629_v37  ;;  %v4611_v55 = vsel %vm4608_vm0, %v4610_v44, %v4606_v57  ;;  %v4621_v51 = vsel %vm4620_vm5, %v6346_v14, %v4617_v28 }
0x1008   :  { %v4626_v3 = vsel %vm4623_vm9, %v4625_v1, %v4621_v51  ;;  %v4648_v2 = vmul.f32 %v6350_v40, %v4611_v55 }
0x1009   :  { %v4631_v58 = vmul.f32 %v6348_v12, %v4630_v35  ;;  %v4647_v27 = vmul.f32 %v4645_v24, %v4626_v3 }
0x100b   :  { %v8290_v9 = vadd.f32 %v4648_v2, %v4647_v27  ;;  %v4632_v60 = vadd.f32 %v6348_v12, %v4631_v58 }
0x100d   :  { %6351 = vtanh.f32 %v8290_v9  ;;  %v4636_v17 = vsel %vm4635_vm11, %v6348_v12, %v4632_v60  ;;  %v4783_v2 = vrot.slane %v8290_v9, 6 }
0x100e   :  { %v4641_v47 = vsel %vm4638_vm12, %v4640_v62, %v4636_v17 }
0x1013   :  { %v6352_v4 = vpop.eup %6351 }
0x1014   :  { %v4651_v39 = vmul.f32 %v6352_v4, %v4641_v47 }
0x1016   :  { %v4652_v10 = vpack.c.bf16 %v4651_v39, %v4651_v39 }
0x1018   :  { %v4654_v63 = vrot.slane %v4652_v10, 2 }
0x101a   :  { %4664 = vmatmul.bf16.vlgmr.msrb.gmra.mxu0 %v4654_v63  ;;  %4677 = vmatmul.bf16.vlgmr.msrb.gmra.mxu1 %v4654_v63 }
0x101b   :  { %4690 = vmatmul.bf16.vlgmr.msrb.gmra.mxu2 %v4654_v63  ;;  %4703 = vmatmul.bf16.vlgmr.msrb.gmra.mxu3 %v4654_v63 }
0x1097   :  { %v4665_v0 = vpop.f32.mrf.mxu0  ;;  %v4678_v52 = vpop.f32.mrf.mxu1 }
0x1098   :  { %v4712_v6 = vrot.slane %v4665_v0, 2  ;;  %v4713_v61 = vrot.slane %v4678_v52, 2 }
0x109a   :  { %v4720_v29 = vadd.f32 %v4712_v6, %v8062_v23  ;;  %v4721_v48 = vadd.f32 %v4713_v61, %v8368_v30  ;;  %v5955_v30 = vld [vmem:[#allocation19] sm:$0xff] }
0x109b   :  { %4873 = vmatpush.bf16.msra.mxu0 %v5955_v30 }
0x109c   :  { %v5744_v56 = vmul.f32 -1.442695, %v4720_v29  ;;  %v5745_v42 = vmul.f32 -1.442695, %v4721_v48  ;;  %v5984_v29 = vld [vmem:[%s8328_s12] ss:$0 sm:$0xff] }
0x109e   :  { %6353 = vpow2.f32 %v5744_v56  ;;  %v4691_v32 = vpop.f32.mrf.mxu2  ;;  %v4704_v59 = vpop.f32.mrf.mxu3 }
0x109f   :  { %6355 = vpow2.f32 %v5745_v42  ;;  %v4714_v18 = vrot.slane %v4691_v32, 2  ;;  %v4667_v16 = vpop.f32.mrf.mxu0  ;;  %v4680_v50 = vpop.f32.mrf.mxu1  ;;  %v4715_v53 = vrot.slane %v4704_v59, 2 }
0x10a1   :  { %v4722_v54 = vadd.f32 %v4714_v18, %v8369_v36  ;;  %v4723_v25 = vadd.f32 %v4715_v53, %v8370_v7 }
0x10a3   :  { %v5746_v43 = vmul.f32 -1.442695, %v4722_v54 }
0x10a4   :  { %v6354_v23 = vpop.eup %6353 }
0x10a5   :  { %v6356_v14 = vpop.eup %6355  ;;  %v4733_v21 = vadd.f32 1.0, %v6354_v23  ;;  %6357 = vpow2.f32 %v5746_v43 }
0x10a6   :  { %v4734_v11 = vadd.f32 1.0, %v6356_v14  ;;  %v4693_v5 = vpop.f32.mrf.mxu2  ;;  %v4706_v38 = vpop.f32.mrf.mxu3 }
0x10a7   :  { %6359 = vrcp.f32 %v4733_v21  ;;  %v4747_v44 = vand.u32 2147483648, %v4733_v21  ;;  %v4745_v1 = vand.u32 2147483647, %v4733_v21  ;;  %vm4741_vm13 = vweird.f32 %v4733_v21 }
0x10a8   :  { %6361 = vrcp.f32 %v4734_v11  ;;  %v4762_v28 = vand.u32 2147483648, %v4734_v11  ;;  %v4760_v40 = vand.u32 2147483647, %v4734_v11  ;;  %vm4756_vm14 = vweird.f32 %v4734_v11 }
0x10a9   :  { %v4748_v51 = vor.u32 1.1754944e-38, %v4747_v44  ;;  %vm4746_vm2 = vcmp.eq.f32.partialorder %v4745_v1, 8.507059e+37 }
0x10aa   :  { %v4763_v58 = vor.u32 1.1754944e-38, %v4762_v28  ;;  %vm4761_vm3 = vcmp.eq.f32.partialorder %v4760_v40, 8.507059e+37 }
0x10ab   :  { %v6358_v22 = vpop.eup %6357 }
0x10ac   :  { %v4735_v13 = vadd.f32 1.0, %v6358_v22 }
0x10ad   :  { %v6360_v26 = vpop.eup %6359 }
0x10ae   :  { %v6362_v36 = vpop.eup %6361  ;;  %v4737_v46 = vmul.f32 %v6360_v26, %v4733_v21  ;;  %6363 = vrcp.f32 %v4735_v13  ;;  %vm4742_vm7 = vweird.f32 %v6360_v26  ;;  %v4777_v15 = vand.u32 2147483648, %v4735_v13 }
0x10af   :  { %v4752_v12 = vmul.f32 %v6362_v36, %v4734_v11  ;;  %6365 = vtanh.f32 %v4723_v25  ;;  %vm4757_vm8 = vweird.f32 %v6362_v36  ;;  %vm4743_vm15 = vmor %vm4741_vm13, %vm4742_vm7  ;;  %vm4771_vm5 = vweird.f32 %v4735_v13 }
0x10b0   :  { %v4738_v19 = vsub.f32 1.0, %v4737_v46  ;;  %vm4758_vm1 = vmor %vm4756_vm14, %vm4757_vm8  ;;  %v4775_v9 = vand.u32 2147483647, %v4735_v13  ;;  %v4778_v49 = vor.u32 1.1754944e-38, %v4777_v15 }
0x10b1   :  { %v4753_v37 = vsub.f32 1.0, %v4752_v12 }
0x10b2   :  { %v4739_v24 = vmul.f32 %v6360_v26, %v4738_v19  ;;  %vm4776_vm9 = vcmp.eq.f32.partialorder %v4775_v9, 8.507059e+37 }
0x10b3   :  { %v4754_v57 = vmul.f32 %v6362_v36, %v4753_v37 }
0x10b4   :  { %v6364_v35 = vpop.eup %6363  ;;  %v4740_v55 = vadd.f32 %v6360_v26, %v4739_v24 }
0x10b5   :  { %v4767_v7 = vmul.f32 %v6364_v35, %v4735_v13  ;;  %v4755_v3 = vadd.f32 %v6362_v36, %v4754_v57  ;;  %v6366_v60 = vpop.eup %6365  ;;  %vm4772_vm4 = vweird.f32 %v6364_v35 }
0x10b6   :  { %v4744_v27 = vsel %vm4743_vm15, %v6360_v26, %v4740_v55  ;;  %vm4773_vm0 = vmor %vm4771_vm5, %vm4772_vm4 }
0x10b7   :  { %v4768_v45 = vsub.f32 1.0, %v4767_v7  ;;  %v4749_v31 = vsel %vm4746_vm2, %v4748_v51, %v4744_v27  ;;  %v4759_v17 = vsel %vm4758_vm1, %v6362_v36, %v4755_v3 }
0x10b8   :  { %v4764_v62 = vsel %vm4761_vm3, %v4763_v58, %v4759_v17  ;;  %v4786_v4 = vmul.f32 %v6366_v60, %v4749_v31 }
0x10b9   :  { %v4769_v47 = vmul.f32 %v6364_v35, %v4768_v45  ;;  %v4785_v39 = vmul.f32 %v4783_v2, %v4764_v62 }
0x10bb   :  { %v4787_v10 = vadd.f32 %v4786_v4, %v4785_v39  ;;  %v4770_v63 = vadd.f32 %v6364_v35, %v4769_v47 }
0x10bd   :  { %6367 = vtanh.f32 %v4787_v10  ;;  %4793 = vst [vmem:[#allocation24 - $0x2] sm:$0xc0] %v4787_v10  ;;  %v4774_v41 = vsel %vm4773_vm0, %v6364_v35, %v4770_v63 }
0x10be   :  { %v4779_v0 = vsel %vm4776_vm9, %v4778_v49, %v4774_v41 }
0x10c3   :  { %v6368_v8 = vpop.eup %6367 }
0x10c4   :  { %v4789_v52 = vmul.f32 %v6368_v8, %v4779_v0 }
0x10c6   :  { %v4794_v6 = vpack.c.bf16 %v4789_v52, %v4789_v52  ;;  %4791 = vst [vmem:[#allocation22 - $0x2] sm:$0xc0] %v4789_v52 }
0x10c7   :  { %4903 = dma.vmem_to_hbm [thread:$0]  %s4896_s29, 96, %s4898_s4, [#allocation23], %s6712_s23, %s6712_s23, %s6713_s24  }
0x10c8   :  { %v4816_v61 = vrot.slane %v4794_v6, 3  ;;  %4916 = dma.vmem_to_hbm [thread:$0]  %s4909_s6, 96, %s4911_s19, [#allocation23], %s6712_s23, %s6712_s23, %s6713_s24  }
0x10ca   :  { %4874 = vmatmul.bf16.vlgmr.msra.gmra.mxu0 %v4816_v61 }
0x1147   :  { %v4875_v48 = vpop.f32.mrf.mxu0 }
0x1148   :  { %v4876_v34 = vadd.f32 %v5984_v29, %v4875_v48 }
0x114a   :  { %4879 = vst [vmem:[#allocation21] sm:$0x3] %v4876_v34 }
0x114b   :  { %4890 = dma.vmem_to_hbm [thread:$0]  %s4886_s5, 32, %s4888_s25, [#allocation4]  }
0x114f   :  { %v4877_v56 = vpop.f32.mrf.mxu0 }
0x1150   :  { %6707 = dma.done.wait [#allocation4], 32  }
0x1151   :  { %6708 = vsyncadd [#allocation4], 4294967264 }
0x1152   :  { %6709 = dma.done.wait [#allocation23], 192  }
0x1153   :  { %6710 = vsyncadd [#allocation23], 4294967104 }
0x1154   :  { %4929 = vsyncpa [#allocation3], 1 }
0x1155   :  { %4930 = vsyncpa [#allocation8], 1 }
0x1156   :  { %4931 = vsyncpa [#allocation11], 1 }
0x1157   :  { %4932 = vsyncpa [#allocation14], 1 }
0x1158   :  { %4933 = vsyncpa [#allocation17], 1 }
0x1159   :  { %4934 = vsyncpa [#allocation20], 1 }
0x115a   :  { %4935 = vsyncpa [#allocation4], 1 }
0x115b   :  { %4936 = vsyncpa [#allocation23], 1 }
0x115c   :  { %4937 = vsyncpa [#allocation5], 1 }

</bundles_post_ra>
